<compile_context>
chip_gen: v7x
topology: tpu7x:2x2x1
jax: 0.10.0
libtpu: 0.0.40
codegen_flags: <defaults>
</compile_context>

<pallas_src>
import functools

import jax
import jax.numpy as jnp
from jax import lax
from jax.experimental import pallas as pl
from jax.experimental.pallas import tpu as pltpu

# ----------------------------- configuration -------------------------------
HIDDEN_DIM = 32
EMB_DIM = 48
GNN_LAYERS = 2
MLP_LAYERS = 2
NUM_CLASS = 6
BETA_DIFFLOSS = 0.3
NUM_CHANNELS = 2           # short-distance / long-distance channels


# --------------------------------------------------------------------------
# DAG GNN layer: both channels in one pallas_call, grid=(2,) over channels.
# One grid step = GAT_dialoggcn_v1 attention + the two GRUCells, recursing
# sequentially over utterances (layout inside: (N, B, ...) so the recursion
# indexes the leading, untiled axis).
# --------------------------------------------------------------------------
def _dag_pair_kernel(*refs, apply_fc1):
    if apply_fc1:
        (x_ref, fc1_wT_ref, fc1_b_ref, adj_ref, smask_ref,
         wq_gru_ref, wm_gru_ref, bq_ref, bm_ref,
         gwq_ref, gwk_ref, gb_ref, wr_ref, h1_ref) = refs
    else:
        (x_ref, adj_ref, smask_ref,
         wq_gru_ref, wm_gru_ref, bq_ref, bm_ref,
         gwq_ref, gwk_ref, gb_ref, wr_ref, h1_ref) = refs
        fc1_wT_ref = fc1_b_ref = None

    N, B, D = h1_ref.shape
    D3 = 3 * D

    # ------ loop-invariant weight loads (hoisted out of the recursion) ------
    wq_gru = wq_gru_ref[...]       # (D, 6D) = [Wih_c | Whh_p]^T  (applied to q)
    wm_gru = wm_gru_ref[...]       # (D, 6D) = [Whh_c | Wih_p]^T  (applied to m)
    bq = bq_ref[...]               # (1, 6D) = [bih_c | bhh_p]
    bm = bm_ref[...]               # (1, 6D) = [bhh_c | bih_p]
    gwq = gwq_ref[...]             # (1, D)  GAT linear weight, query half
    gwk = gwk_ref[...]             # (1, D)  GAT linear weight, key half
    gb = gb_ref[...]               # (1, 1)  GAT linear bias
    wr = wr_ref[...]               # (2D, D) = [Wr0 ; Wr1]

    if apply_fc1:
        # fc1 fused: H_prev = relu(features @ fc1_wT + fc1_b)
        E = x_ref.shape[-1]
        x = x_ref[...].reshape(N * B, E)
        h_prev = jnp.maximum(
            jnp.dot(x, fc1_wT_ref[...], preferred_element_type=jnp.float32)
            + fc1_b_ref[...], 0.0).reshape(N, B, D)
    else:
        h_prev = x_ref[...]                                    # (N, B, D)

    # ------ hoisted iotas (not re-materialized per iteration) ------
    lane_j = lax.broadcasted_iota(jnp.int32, (B, N), 1)        # column index j
    row_i = lax.broadcasted_iota(jnp.int32, (N, B, D), 0)      # row index

    def dual_gru(q, m):
        # C = GRU_c(x=q, h=m); P = GRU_p(x=m, h=q); returns C + P.
        # Two lane-dense (B,6D) matmuls instead of four (B,3D) ones.
        gq = jnp.dot(q, wq_gru, preferred_element_type=jnp.float32) + bq
        gm = jnp.dot(m, wm_gru, preferred_element_type=jnp.float32) + bm
        sg = jax.nn.sigmoid(gq + gm)        # one EUP pass on the full (B,6D)
        r_c, z_c = sg[:, 0:D], sg[:, D:2 * D]
        r_p, z_p = sg[:, D3:D3 + D], sg[:, D3 + D:D3 + 2 * D]
        n_c = jnp.tanh(gq[:, 2 * D:D3] + r_c * gm[:, 2 * D:D3])
        n_p = jnp.tanh(gm[:, D3 + 2 * D:] + r_p * gq[:, D3 + 2 * D:])
        c = (1.0 - z_c) * n_c + z_c * m
        p = (1.0 - z_p) * n_p + z_p * q
        return c + p

    # ------ i = 0 :  C = GRU_c(x0, 0), P = GRU_p(0, x0) ------
    x0 = h_prev[0]                                             # (B, D)
    h_row = dual_gru(x0, jnp.zeros((B, D), jnp.float32))
    # h1 (built nodes) and ak (key scores <h1_j, wk>) are kept as register
    # values across the unrolled recursion; unbuilt rows stay exactly zero.
    h1 = jnp.where(row_i == 0, h_row[None, :, :],
                   jnp.zeros((N, B, D), jnp.float32))
    ak = jnp.where(lane_j == 0,
                   jnp.sum(h_row * gwk, axis=-1, keepdims=True),
                   jnp.zeros((B, N), jnp.float32))

    # ------ i = 1 .. N-1 : fully unrolled (the recursion is serial) ------
    for i in range(1, N):
        q = h_prev[i]                                          # (B, D)
        adj_row = adj_ref[i]                                   # (B, N)
        sm_row = smask_ref[i]                                  # (B, N)

        # GAT_dialoggcn_v1 scores: alpha[b,j] = q.wq + h1[j].wk + b
        aq = jnp.sum(q * gwq, axis=-1, keepdims=True) + gb     # (B, 1)
        scores = ak + aq - (1.0 - adj_row) * 1e30              # mask_logic
        # causal mask (only nodes j < i).  For i>=1 column 0 is always finite
        # (at worst ~-1e30), so `scores - mx` never hits -inf - (-inf).
        scores = jnp.where(lane_j < i, scores, -jnp.inf)
        mx = jnp.max(scores, axis=-1, keepdims=True)
        e = jnp.exp(scores - mx)
        attn = e / jnp.sum(e, axis=-1, keepdims=True)          # (B, N)

        # aggregate-then-project (exactly equal to attn-weighted Wr0/Wr1 mix):
        w0 = (attn * sm_row).T[:, :, None]                     # (N, B, 1)
        w1 = (attn * (1.0 - sm_row)).T[:, :, None]
        u0 = jnp.sum(w0 * h1, axis=0)                          # (B, D)
        u1 = jnp.sum(w1 * h1, axis=0)                          # (B, D)
        m_vec = jnp.dot(jnp.concatenate([u0, u1], axis=-1), wr,
                        preferred_element_type=jnp.float32)    # (B, D)

        h_row = dual_gru(q, m_vec)
        h1 = jnp.where(row_i == i, h_row[None, :, :], h1)
        ak = jnp.where(lane_j == i,
                       jnp.sum(h_row * gwk, axis=-1, keepdims=True), ak)

    h1_ref[...] = h1


def dag_gnn_pair(x_in, adj_stack, smask_t, lp, fc1_wT=None, fc1_b=None, *,
                 apply_fc1):
    """Run both channels of one DAG-GNN layer. x_in: (N,B,E) shared features
    when apply_fc1, else (2,N,B,D) per-channel hidden states."""
    N, B, _ = smask_t.shape
    D = HIDDEN_DIM

    def chan_spec(arr):
        n = arr.ndim - 1
        return pl.BlockSpec((None,) + tuple(arr.shape[1:]),
                            lambda c, _n=n: (c,) + (0,) * _n)

    def shared_spec(arr):
        n = arr.ndim
        return pl.BlockSpec(tuple(arr.shape), lambda c, _n=n: (0,) * _n)

    inputs, in_specs = [], []
    if apply_fc1:
        inputs += [x_in, fc1_wT, fc1_b]
        in_specs += [shared_spec(x_in), shared_spec(fc1_wT), shared_spec(fc1_b)]
    else:
        inputs += [x_in]
        in_specs += [chan_spec(x_in)]
    inputs += [adj_stack, smask_t]
    in_specs += [chan_spec(adj_stack), shared_spec(smask_t)]
    for name in ("wq_gru", "wm_gru", "bq", "bm", "gwq", "gwk", "gb", "wr"):
        inputs.append(lp[name])
        in_specs.append(chan_spec(lp[name]))

    return pl.pallas_call(
        functools.partial(_dag_pair_kernel, apply_fc1=apply_fc1),
        grid=(NUM_CHANNELS,),
        in_specs=in_specs,
        out_specs=pl.BlockSpec((None, N, B, D), lambda c: (c, 0, 0, 0)),
        out_shape=jax.ShapeDtypeStruct((NUM_CHANNELS, N, B, D), jnp.float32),
        compiler_params=pltpu.CompilerParams(
            dimension_semantics=("parallel",)),   # 2 TCs on v7x
    )(*inputs)


# --------------------------------------------------------------------------
# Cross-channel fusion (affine + bmm + softmax) fused with DiffLoss.
# Whole batch in a single kernel invocation (no grid).
# --------------------------------------------------------------------------
def _fusion_diff_kernel(hs_ref, hl_ref, a1_ref, a2_ref,
                        hs_out_ref, hl_out_ref, dl_ref):
    hs = hs_ref[...]                         # (B, N, D)
    hl = hl_ref[...]
    B, N, D = hs.shape
    a1 = a1_ref[...]
    a2 = a2_ref[...]

    hs2 = hs.reshape(B * N, D)
    hl2 = hl.reshape(B * N, D)
    hsa = jnp.dot(hs2, a1, preferred_element_type=jnp.float32).reshape(B, N, D)
    hla = jnp.dot(hl2, a2, preferred_element_type=jnp.float32).reshape(B, N, D)

    s1 = jnp.einsum('bnd,bmd->bnm', hsa, hl,
                    preferred_element_type=jnp.float32)          # (B, N, N)
    s2 = jnp.einsum('bnd,bmd->bnm', hla, hs,
                    preferred_element_type=jnp.float32)

    def softmax_last(x):
        m = jnp.max(x, axis=-1, keepdims=True)
        e = jnp.exp(x - m)
        return e / jnp.sum(e, axis=-1, keepdims=True)

    A1 = softmax_last(s1)
    A2 = softmax_last(s2)
    hs_out_ref[...] = jnp.einsum('bnm,bmd->bnd', A1, hl,
                                 preferred_element_type=jnp.float32)
    hl_out_ref[...] = jnp.einsum('bnm,bmd->bnd', A2, hs,
                                 preferred_element_type=jnp.float32)

    # ---- DiffLoss via the Gram identity (no (ND,ND) intermediate) ----
    nd = N * D
    x1 = hs.reshape(B, nd)
    x2 = hl.reshape(B, nd)
    x1 = x1 - jnp.mean(x1, axis=0, keepdims=True)
    x2 = x2 - jnp.mean(x2, axis=0, keepdims=True)
    n1 = jnp.sqrt(jnp.sum(x1 * x1, axis=1, keepdims=True))
    n2 = jnp.sqrt(jnp.sum(x2 * x2, axis=1, keepdims=True))
    x1 = x1 / (n1 + 1e-6)
    x2 = x2 / (n2 + 1e-6)
    g1 = lax.dot_general(x1, x1, (((1,), (1,)), ((), ())),
                         preferred_element_type=jnp.float32)     # (B, B)
    g2 = lax.dot_general(x2, x2, (((1,), (1,)), ((), ())),
                         preferred_element_type=jnp.float32)
    s = jnp.sum(g1 * g2, axis=1, keepdims=True)
    s = jnp.sum(s, axis=0, keepdims=True)                        # (1, 1)
    dl_ref[...] = s / float(nd * nd)


def fusion_diff(hs, hl, affine1, affine2):
    B, N, D = hs.shape
    return pl.pallas_call(
        _fusion_diff_kernel,
        out_shape=(jax.ShapeDtypeStruct((B, N, D), jnp.float32),
                   jax.ShapeDtypeStruct((B, N, D), jnp.float32),
                   jax.ShapeDtypeStruct((1, 1), jnp.float32)),
    )(hs, hl, affine1, affine2)


# --------------------------------------------------------------------------
# Fused MLP head: fc1 recompute + first MLP layer expressed as summed partial
# matmuls over the concatenation blocks + hidden layer + output projection.
# Specialized to gnn_layers=2 / mlp_layers=2 (the chosen config).
# --------------------------------------------------------------------------
def _head_kernel(feat_ref, hs1_ref, hl1_ref, hs2_ref, hl2_ref,
                 fc1_wT_ref, fc1_b_ref,
                 w1_h0_ref, w1_hs1_ref, w1_hl1_ref, w1_hs2_ref, w1_hl2_ref,
                 w1_ft_ref, b1_ref, w2_ref, b2_ref, wout_ref, bout_ref,
                 o_ref):
    def mm(x, w_ref):
        return jnp.dot(x, w_ref[...], preferred_element_type=jnp.float32)

    x_feat = feat_ref[...]                                     # (B*N, E)
    h0 = jnp.maximum(mm(x_feat, fc1_wT_ref) + fc1_b_ref[...], 0.0)

    # Linear(concat([H0, H0, HS1', HL1', HS2', HL2', features])) as a sum of
    # per-source partial matmuls (w1_h0 already sums the two H0 row-blocks).
    y = (mm(h0, w1_h0_ref)
         + mm(hs1_ref[...], w1_hs1_ref) + mm(hl1_ref[...], w1_hl1_ref)
         + mm(hs2_ref[...], w1_hs2_ref) + mm(hl2_ref[...], w1_hl2_ref)
         + mm(x_feat, w1_ft_ref) + b1_ref[...])
    y = jnp.maximum(y, 0.0)
    y = jnp.maximum(mm(y, w2_ref) + b2_ref[...], 0.0)
    # dropout is identity in eval mode
    o_ref[...] = mm(y, wout_ref) + bout_ref[...]


def mlp_head(features, fused, params):
    assert GNN_LAYERS == 2 and MLP_LAYERS == 2
    B, N, E = features.shape
    (hs1, hl1), (hs2, hl2) = fused
    flat = lambda a: a.reshape(B * N, a.shape[-1])
    logits = pl.pallas_call(
        _head_kernel,
        out_shape=jax.ShapeDtypeStruct((B * N, NUM_CLASS), jnp.float32),
    )(flat(features), flat(hs1), flat(hl1), flat(hs2), flat(hl2),
      params["fc1_wT"], params["fc1_b"],
      params["w1_h0"], params["w1_hs1"], params["w1_hl1"],
      params["w1_hs2"], params["w1_hl2"], params["w1_ft"], params["b1"],
      params["w2"], params["b2"], params["out_wT"], params["out_b"])
    return logits.reshape(B, N, NUM_CLASS)


# ----------------------------- full forward --------------------------------
def forward(params, features, adj_1, adj_2, s_mask):
    B, N, E = features.shape

    # one-time layout shuffles for the sequential (utterance-leading) kernels
    feat_t = jnp.transpose(features, (1, 0, 2))                        # (N,B,E)
    adj_stack = jnp.stack([jnp.transpose(adj_1, (1, 0, 2)),
                           jnp.transpose(adj_2, (1, 0, 2))], axis=0)   # (2,N,B,N)
    smask_t = jnp.transpose(s_mask, (1, 0, 2))                         # (N,B,N)

    h_stacks = []
    h = None
    for l in range(GNN_LAYERS):
        if l == 0:
            h = dag_gnn_pair(feat_t, adj_stack, smask_t, params["gnn"][l],
                             fc1_wT=params["fc1_wT"], fc1_b=params["fc1_b"],
                             apply_fc1=True)
        else:
            h = dag_gnn_pair(h, adj_stack, smask_t, params["gnn"][l],
                             apply_fc1=False)
        h_stacks.append(h)                                     # (2, N, B, D)

    fused = []
    diff_loss = jnp.float32(0.0)
    for l in range(GNN_LAYERS):
        hb = jnp.transpose(h_stacks[l], (0, 2, 1, 3))          # (2, B, N, D)
        hs_new, hl_new, dl = fusion_diff(hb[0], hb[1],
                                         params["affine1"], params["affine2"])
        diff_loss = diff_loss + dl[0, 0]
        fused.append((hs_new, hl_new))

    # attentive_node_features with nodal_att_type=None is the identity.
    logits = mlp_head(features, fused, params)
    return logits, BETA_DIFFLOSS * diff_loss


# ----------------------- deterministic parameter init -----------------------
def init_params(key):
    keys = iter(jax.random.split(key, 256))

    def nrm(shape, scale=0.1):
        return (scale * jax.random.normal(next(keys), shape)).astype(jnp.float32)

    D = HIDDEN_DIM
    params = {
        "fc1_wT": nrm((EMB_DIM, D)),
        "fc1_b": nrm((1, D)),
        "affine1": nrm((D, D)),
        "affine2": nrm((D, D)),
    }

    def gnn_layer_params():
        return {
            "wih_c": nrm((D, 3 * D)), "whh_c": nrm((D, 3 * D)),
            "bih_c": nrm((1, 3 * D)), "bhh_c": nrm((1, 3 * D)),
            "wih_p": nrm((D, 3 * D)), "whh_p": nrm((D, 3 * D)),
            "bih_p": nrm((1, 3 * D)), "bhh_p": nrm((1, 3 * D)),
            "wq": nrm((1, D)), "wk": nrm((1, D)), "lin_b": nrm((1, 1)),
            "wr0": nrm((D, D)), "wr1": nrm((D, D)),
        }

    params["short"] = [gnn_layer_params() for _ in range(GNN_LAYERS)]
    params["long"] = [gnn_layer_params() for _ in range(GNN_LAYERS)]

    in_dim = D * 2 * (GNN_LAYERS + 1) + EMB_DIM
    mlp_hidden = [(nrm((in_dim, D)), nrm((1, D)))]
    for _ in range(MLP_LAYERS - 1):
        mlp_hidden.append((nrm((D, D)), nrm((1, D))))
    params["mlp_hidden"] = mlp_hidden
    params["out_wT"] = nrm((D, NUM_CLASS))
    params["out_b"] = nrm((1, NUM_CLASS))
    # TODO(synk): fcs_short/fcs_long and attentive_node_features.transform exist
    # in __init__ but are never used in this forward path, so they are omitted.
    return params


def prepare_params(raw):
    """Repack PyTorch-style weights into the fused kernel layouts."""
    assert GNN_LAYERS == 2 and MLP_LAYERS == 2
    D = HIDDEN_DIM
    gnn = []
    for l in range(GNN_LAYERS):
        chans = [raw["short"][l], raw["long"][l]]   # channel 0 = short, 1 = long
        gnn.append({
            "wq_gru": jnp.stack([jnp.concatenate([c["wih_c"], c["whh_p"]], 1)
                                 for c in chans]),
            "wm_gru": jnp.stack([jnp.concatenate([c["whh_c"], c["wih_p"]], 1)
                                 for c in chans]),
            "bq": jnp.stack([jnp.concatenate([c["bih_c"], c["bhh_p"]], 1)
                             for c in chans]),
            "bm": jnp.stack([jnp.concatenate([c["bhh_c"], c["bih_p"]], 1)
                             for c in chans]),
            "gwq": jnp.stack([c["wq"] for c in chans]),
            "gwk": jnp.stack([c["wk"] for c in chans]),
            "gb": jnp.stack([c["lin_b"] for c in chans]),
            "wr": jnp.stack([jnp.concatenate([c["wr0"], c["wr1"]], 0)
                             for c in chans]),
        })

    w1, b1 = raw["mlp_hidden"][0]
    w2, b2 = raw["mlp_hidden"][1]
    assert w1.shape[0] == 6 * D + EMB_DIM
    return {
        "fc1_wT": raw["fc1_wT"], "fc1_b": raw["fc1_b"],
        "affine1": raw["affine1"], "affine2": raw["affine2"],
        "gnn": gnn,
        # row-block split of the first MLP layer (H_final column order):
        "w1_h0": w1[0:D] + w1[D:2 * D],       # [H0, H0] share the same input
        "w1_hs1": w1[2 * D:3 * D],
        "w1_hl1": w1[3 * D:4 * D],
        "w1_hs2": w1[4 * D:5 * D],
        "w1_hl2": w1[5 * D:6 * D],
        "w1_ft": w1[6 * D:6 * D + EMB_DIM],
        "b1": b1, "w2": w2, "b2": b2,
        "out_wT": raw["out_wT"], "out_b": raw["out_b"],
    }


# ---------------------------------- main ------------------------------------
if __name__ == "__main__":
    key = jax.random.PRNGKey(0)
    kp, kf, ka1, ka2, ks = jax.random.split(key, 5)

    B, N = 2, 8
    params = prepare_params(init_params(kp))
    features = jax.random.normal(kf, (B, N, EMB_DIM), dtype=jnp.float32)

    # strictly-lower-triangular DAG adjacencies (only past utterances)
    tri = jnp.tril(jnp.ones((N, N), jnp.float32), k=-1)
    adj_1 = jax.random.bernoulli(ka1, 0.6, (B, N, N)).astype(jnp.float32) * tri
    adj_2 = jax.random.bernoulli(ka2, 0.4, (B, N, N)).astype(jnp.float32) * tri
    s_mask = jax.random.bernoulli(ks, 0.5, (B, N, N)).astype(jnp.float32)
    lengths = [N, N - 2]  # unused because nodal_att_type=None

    fwd = jax.jit(forward)
    logits, dloss = fwd(params, features, adj_1, adj_2, s_mask)
    jax.block_until_ready((logits, dloss))

    assert logits.shape == (B, N, NUM_CLASS)
    assert dloss.shape == ()
    print("KERNEL_OK")
</pallas_src>

<mosaic_0001>
module attributes {stable_mosaic.version = 11 : i64} {
  func.func @_fusion_diff_kernel(%arg0: memref<2x8x32xf32, #tpu.memory_space<vmem>>, %arg1: memref<2x8x32xf32, #tpu.memory_space<vmem>>, %arg2: memref<32x32xf32, #tpu.memory_space<vmem>>, %arg3: memref<32x32xf32, #tpu.memory_space<vmem>>, %arg4: memref<2x8x32xf32, #tpu.memory_space<vmem>>, %arg5: memref<2x8x32xf32, #tpu.memory_space<vmem>>, %arg6: memref<1x1xf32, #tpu.memory_space<vmem>>) attributes {dimension_semantics = [], scalar_prefetch = 0 : i64, scratch_operands = 0 : i64, tpu.core_type = #tpu.core_type<tc>} {
    %c0 = arith.constant 0 : index
    %c0_0 = arith.constant 0 : index
    %c0_1 = arith.constant 0 : index
    %0 = vector.load %arg0[%c0, %c0_0, %c0_1] : memref<2x8x32xf32, #tpu.memory_space<vmem>>, vector<2x8x32xf32>
    %c0_2 = arith.constant 0 : index
    %c0_3 = arith.constant 0 : index
    %c0_4 = arith.constant 0 : index
    %1 = vector.load %arg1[%c0_2, %c0_3, %c0_4] : memref<2x8x32xf32, #tpu.memory_space<vmem>>, vector<2x8x32xf32>
    %c0_5 = arith.constant 0 : index
    %c0_6 = arith.constant 0 : index
    %2 = vector.load %arg2[%c0_5, %c0_6] : memref<32x32xf32, #tpu.memory_space<vmem>>, vector<32x32xf32>
    %c0_7 = arith.constant 0 : index
    %c0_8 = arith.constant 0 : index
    %3 = vector.load %arg3[%c0_7, %c0_8] : memref<32x32xf32, #tpu.memory_space<vmem>>, vector<32x32xf32>
    %4 = vector.shape_cast %0 : vector<2x8x32xf32> to vector<16x32xf32>
    %5 = vector.shape_cast %1 : vector<2x8x32xf32> to vector<16x32xf32>
    %cst = arith.constant dense<0.000000e+00> : vector<16x32xf32>
    %6 = tpu.matmul %4, %2, %cst {dimension_numbers = #tpu.dot_dimension_numbers<[1], [0], [0], [1], [0, 0, 1, 1], [], []>} : vector<16x32xf32>, vector<32x32xf32>, vector<16x32xf32> -> vector<16x32xf32>
    %7 = vector.shape_cast %6 : vector<16x32xf32> to vector<2x8x32xf32>
    %cst_9 = arith.constant dense<0.000000e+00> : vector<16x32xf32>
    %8 = tpu.matmul %5, %3, %cst_9 {dimension_numbers = #tpu.dot_dimension_numbers<[1], [0], [0], [1], [0, 0, 1, 1], [], []>} : vector<16x32xf32>, vector<32x32xf32>, vector<16x32xf32> -> vector<16x32xf32>
    %9 = vector.shape_cast %8 : vector<16x32xf32> to vector<2x8x32xf32>
    "tpu.trace_start"() <{level = 10 : i32, message = "bnd,bmd->bnm"}> : () -> ()
    %cst_10 = arith.constant dense<0.000000e+00> : vector<2x8x8xf32>
    %10 = tpu.matmul %7, %1, %cst_10 {dimension_numbers = #tpu.dot_dimension_numbers<[2], [2], [1], [1], [0, 0, 0, 1, 1, 1], [0], [0]>} : vector<2x8x32xf32>, vector<2x8x32xf32>, vector<2x8x8xf32> -> vector<2x8x8xf32>
    %cst_11 = arith.constant dense<0.000000e+00> : vector<2x8x8xf32>
    %11 = tpu.matmul %9, %0, %cst_11 {dimension_numbers = #tpu.dot_dimension_numbers<[2], [2], [1], [1], [0, 0, 0, 1, 1, 1], [0], [0]>} : vector<2x8x32xf32>, vector<2x8x32xf32>, vector<2x8x8xf32> -> vector<2x8x8xf32>
    "tpu.trace_stop"() : () -> ()
    %cst_12 = arith.constant dense<0xFF800000> : vector<2x8xf32>
    %12 = vector.multi_reduction <maximumf>, %10, %cst_12 [2] : vector<2x8x8xf32> to vector<2x8xf32>
    %13 = vector.shape_cast %12 : vector<2x8xf32> to vector<2x8x1xf32>
    %14 = vector.broadcast %13 : vector<2x8x1xf32> to vector<2x8x8xf32>
    %15 = arith.subf %10, %14 : vector<2x8x8xf32>
    %16 = math.exp %15 : vector<2x8x8xf32>
    %cst_13 = arith.constant dense<0.000000e+00> : vector<2x8xf32>
    %17 = vector.multi_reduction <add>, %16, %cst_13 [2] : vector<2x8x8xf32> to vector<2x8xf32>
    %18 = vector.shape_cast %17 : vector<2x8xf32> to vector<2x8x1xf32>
    %19 = vector.broadcast %18 : vector<2x8x1xf32> to vector<2x8x8xf32>
    %20 = arith.divf %16, %19 : vector<2x8x8xf32>
    %cst_14 = arith.constant dense<0xFF800000> : vector<2x8xf32>
    %21 = vector.multi_reduction <maximumf>, %11, %cst_14 [2] : vector<2x8x8xf32> to vector<2x8xf32>
    %22 = vector.shape_cast %21 : vector<2x8xf32> to vector<2x8x1xf32>
    %23 = vector.broadcast %22 : vector<2x8x1xf32> to vector<2x8x8xf32>
    %24 = arith.subf %11, %23 : vector<2x8x8xf32>
    %25 = math.exp %24 : vector<2x8x8xf32>
    %cst_15 = arith.constant dense<0.000000e+00> : vector<2x8xf32>
    %26 = vector.multi_reduction <add>, %25, %cst_15 [2] : vector<2x8x8xf32> to vector<2x8xf32>
    %27 = vector.shape_cast %26 : vector<2x8xf32> to vector<2x8x1xf32>
    %28 = vector.broadcast %27 : vector<2x8x1xf32> to vector<2x8x8xf32>
    %29 = arith.divf %25, %28 : vector<2x8x8xf32>
    "tpu.trace_start"() <{level = 10 : i32, message = "bnm,bmd->bnd"}> : () -> ()
    %cst_16 = arith.constant dense<0.000000e+00> : vector<2x8x32xf32>
    %30 = tpu.matmul %20, %1, %cst_16 {dimension_numbers = #tpu.dot_dimension_numbers<[2], [1], [1], [2], [0, 0, 0, 1, 1, 2], [0], [0]>} : vector<2x8x8xf32>, vector<2x8x32xf32>, vector<2x8x32xf32> -> vector<2x8x32xf32>
    "tpu.trace_stop"() : () -> ()
    %c0_17 = arith.constant 0 : index
    %c0_18 = arith.constant 0 : index
    %c0_19 = arith.constant 0 : index
    %31 = vector.load %arg4[%c0_17, %c0_18, %c0_19] : memref<2x8x32xf32, #tpu.memory_space<vmem>>, vector<2x8x32xf32>
    tpu.vector_store %arg4[%c0_17, %c0_18, %c0_19], %30 {strides = array<i32>} : memref<2x8x32xf32, #tpu.memory_space<vmem>>, vector<2x8x32xf32>,
    "tpu.trace_start"() <{level = 10 : i32, message = "bnm,bmd->bnd"}> : () -> ()
    %cst_20 = arith.constant dense<0.000000e+00> : vector<2x8x32xf32>
    %32 = tpu.matmul %29, %0, %cst_20 {dimension_numbers = #tpu.dot_dimension_numbers<[2], [1], [1], [2], [0, 0, 0, 1, 1, 2], [0], [0]>} : vector<2x8x8xf32>, vector<2x8x32xf32>, vector<2x8x32xf32> -> vector<2x8x32xf32>
    "tpu.trace_stop"() : () -> ()
    %c0_21 = arith.constant 0 : index
    %c0_22 = arith.constant 0 : index
    %c0_23 = arith.constant 0 : index
    %33 = vector.load %arg5[%c0_21, %c0_22, %c0_23] : memref<2x8x32xf32, #tpu.memory_space<vmem>>, vector<2x8x32xf32>
    tpu.vector_store %arg5[%c0_21, %c0_22, %c0_23], %32 {strides = array<i32>} : memref<2x8x32xf32, #tpu.memory_space<vmem>>, vector<2x8x32xf32>,
    %34 = vector.shape_cast %0 : vector<2x8x32xf32> to vector<2x256xf32>
    %35 = vector.shape_cast %1 : vector<2x8x32xf32> to vector<2x256xf32>
    %cst_24 = arith.constant dense<0.000000e+00> : vector<256xf32>
    %36 = vector.multi_reduction <add>, %34, %cst_24 [0] : vector<2x256xf32> to vector<256xf32>
    %37 = vector.shape_cast %36 : vector<256xf32> to vector<1x256xf32>
    %cst_25 = arith.constant 2.000000e+00 : f32
    %38 = vector.broadcast %cst_25 : f32 to vector<1x256xf32>
    %39 = arith.divf %37, %38 : vector<1x256xf32>
    %40 = vector.broadcast %39 : vector<1x256xf32> to vector<2x256xf32>
    %41 = arith.subf %34, %40 : vector<2x256xf32>
    %cst_26 = arith.constant dense<0.000000e+00> : vector<256xf32>
    %42 = vector.multi_reduction <add>, %35, %cst_26 [0] : vector<2x256xf32> to vector<256xf32>
    %43 = vector.shape_cast %42 : vector<256xf32> to vector<1x256xf32>
    %cst_27 = arith.constant 2.000000e+00 : f32
    %44 = vector.broadcast %cst_27 : f32 to vector<1x256xf32>
    %45 = arith.divf %43, %44 : vector<1x256xf32>
    %46 = vector.broadcast %45 : vector<1x256xf32> to vector<2x256xf32>
    %47 = arith.subf %35, %46 : vector<2x256xf32>
    %48 = arith.mulf %41, %41 : vector<2x256xf32>
    %cst_28 = arith.constant dense<0.000000e+00> : vector<2xf32>
    %49 = vector.multi_reduction <add>, %48, %cst_28 [1] : vector<2x256xf32> to vector<2xf32>
    %50 = vector.shape_cast %49 : vector<2xf32> to vector<2x1xf32>
    %51 = math.sqrt %50 : vector<2x1xf32>
    %52 = arith.mulf %47, %47 : vector<2x256xf32>
    %cst_29 = arith.constant dense<0.000000e+00> : vector<2xf32>
    %53 = vector.multi_reduction <add>, %52, %cst_29 [1] : vector<2x256xf32> to vector<2xf32>
    %54 = vector.shape_cast %53 : vector<2xf32> to vector<2x1xf32>
    %55 = math.sqrt %54 : vector<2x1xf32>
    %cst_30 = arith.constant 9.99999997E-7 : f32
    %56 = vector.broadcast %cst_30 : f32 to vector<2x1xf32>
    %57 = arith.addf %51, %56 : vector<2x1xf32>
    %58 = vector.broadcast %57 : vector<2x1xf32> to vector<2x256xf32>
    %59 = arith.divf %41, %58 : vector<2x256xf32>
    %cst_31 = arith.constant 9.99999997E-7 : f32
    %60 = vector.broadcast %cst_31 : f32 to vector<2x1xf32>
    %61 = arith.addf %55, %60 : vector<2x1xf32>
    %62 = vector.broadcast %61 : vector<2x1xf32> to vector<2x256xf32>
    %63 = arith.divf %47, %62 : vector<2x256xf32>
    %cst_32 = arith.constant dense<0.000000e+00> : vector<2x2xf32>
    %64 = tpu.matmul %59, %59, %cst_32 {dimension_numbers = #tpu.dot_dimension_numbers<[1], [1], [0], [0], [0, 0, 1, 0], [], []>} : vector<2x256xf32>, vector<2x256xf32>, vector<2x2xf32> -> vector<2x2xf32>
    %cst_33 = arith.constant dense<0.000000e+00> : vector<2x2xf32>
    %65 = tpu.matmul %63, %63, %cst_33 {dimension_numbers = #tpu.dot_dimension_numbers<[1], [1], [0], [0], [0, 0, 1, 0], [], []>} : vector<2x256xf32>, vector<2x256xf32>, vector<2x2xf32> -> vector<2x2xf32>
    %66 = arith.mulf %64, %65 : vector<2x2xf32>
    %cst_34 = arith.constant dense<0.000000e+00> : vector<2xf32>
    %67 = vector.multi_reduction <add>, %66, %cst_34 [1] : vector<2x2xf32> to vector<2xf32>
    %68 = vector.shape_cast %67 : vector<2xf32> to vector<2x1xf32>
    %cst_35 = arith.constant dense<0.000000e+00> : vector<1xf32>
    %69 = vector.multi_reduction <add>, %68, %cst_35 [0] : vector<2x1xf32> to vector<1xf32>
    %70 = vector.shape_cast %69 : vector<1xf32> to vector<1x1xf32>
    %cst_36 = arith.constant 6.553600e+04 : f32
    %71 = vector.broadcast %cst_36 : f32 to vector<1x1xf32>
    %72 = arith.divf %70, %71 : vector<1x1xf32>
    %c0_37 = arith.constant 0 : index
    %c0_38 = arith.constant 0 : index
    %73 = vector.load %arg6[%c0_37, %c0_38] : memref<1x1xf32, #tpu.memory_space<vmem>>, vector<1x1xf32>
    tpu.vector_store %arg6[%c0_37, %c0_38], %72 {strides = array<i32>} : memref<1x1xf32, #tpu.memory_space<vmem>>, vector<1x1xf32>,
    return
  }
}

module attributes {stable_mosaic.version = 11 : i64} {
  func.func @_dag_pair_kernel(%arg0: i32, %arg1: memref<8x2x48xf32, #tpu.memory_space<vmem>>, %arg2: memref<48x32xf32, #tpu.memory_space<vmem>>, %arg3: memref<1x32xf32, #tpu.memory_space<vmem>>, %arg4: memref<1x8x2x8xf32, #tpu.memory_space<vmem>>, %arg5: memref<8x2x8xf32, #tpu.memory_space<vmem>>, %arg6: memref<1x32x192xf32, #tpu.memory_space<vmem>>, %arg7: memref<1x32x192xf32, #tpu.memory_space<vmem>>, %arg8: memref<1x1x192xf32, #tpu.memory_space<vmem>>, %arg9: memref<1x1x192xf32, #tpu.memory_space<vmem>>, %arg10: memref<1x1x32xf32, #tpu.memory_space<vmem>>, %arg11: memref<1x1x32xf32, #tpu.memory_space<vmem>>, %arg12: memref<1x1x1xf32, #tpu.memory_space<vmem>>, %arg13: memref<1x64x32xf32, #tpu.memory_space<vmem>>, %arg14: memref<1x8x2x32xf32, #tpu.memory_space<vmem>>) attributes {dimension_semantics = [#tpu.dimension_semantics<parallel>], iteration_bounds = array<i64: 2>, scalar_prefetch = 0 : i64, scratch_operands = 0 : i64, tpu.core_type = #tpu.core_type<tc>, window_params = [{pipeline_mode = #tpu.pipeline_mode<synchronous>, transform_indices = @transform_0, window_bounds = array<i64: 8, 2, 48>}, {pipeline_mode = #tpu.pipeline_mode<synchronous>, transform_indices = @transform_1, window_bounds = array<i64: 48, 32>}, {pipeline_mode = #tpu.pipeline_mode<synchronous>, transform_indices = @transform_2, window_bounds = array<i64: 1, 32>}, {transform_indices = @transform_3, window_bounds = array<i64: 1, 8, 2, 8>}, {pipeline_mode = #tpu.pipeline_mode<synchronous>, transform_indices = @transform_4, window_bounds = array<i64: 8, 2, 8>}, {transform_indices = @transform_5, window_bounds = array<i64: 1, 32, 192>}, {transform_indices = @transform_6, window_bounds = array<i64: 1, 32, 192>}, {transform_indices = @transform_7, window_bounds = array<i64: 1, 1, 192>}, {transform_indices = @transform_8, window_bounds = array<i64: 1, 1, 192>}, {transform_indices = @transform_9, window_bounds = array<i64: 1, 1, 32>}, {transform_indices = @transform_10, window_bounds = array<i64: 1, 1, 32>}, {transform_indices = @transform_11, window_bounds = array<i64: 1, 1, 1>}, {transform_indices = @transform_12, window_bounds = array<i64: 1, 64, 32>}, {transform_indices = @transform_13, window_bounds = array<i64: 1, 8, 2, 32>}]} {
    %c0 = arith.constant 0 : index
    %c0_0 = arith.constant 0 : index
    %c0_1 = arith.constant 0 : index
    %0 = vector.load %arg6[%c0, %c0_0, %c0_1] : memref<1x32x192xf32, #tpu.memory_space<vmem>>, vector<1x32x192xf32>
    %1 = vector.shape_cast %0 : vector<1x32x192xf32> to vector<32x192xf32>
    %c0_2 = arith.constant 0 : index
    %c0_3 = arith.constant 0 : index
    %c0_4 = arith.constant 0 : index
    %2 = vector.load %arg7[%c0_2, %c0_3, %c0_4] : memref<1x32x192xf32, #tpu.memory_space<vmem>>, vector<1x32x192xf32>
    %3 = vector.shape_cast %2 : vector<1x32x192xf32> to vector<32x192xf32>
    %c0_5 = arith.constant 0 : index
    %c0_6 = arith.constant 0 : index
    %c0_7 = arith.constant 0 : index
    %4 = vector.load %arg8[%c0_5, %c0_6, %c0_7] : memref<1x1x192xf32, #tpu.memory_space<vmem>>, vector<1x1x192xf32>
    %5 = vector.shape_cast %4 : vector<1x1x192xf32> to vector<1x192xf32>
    %c0_8 = arith.constant 0 : index
    %c0_9 = arith.constant 0 : index
    %c0_10 = arith.constant 0 : index
    %6 = vector.load %arg9[%c0_8, %c0_9, %c0_10] : memref<1x1x192xf32, #tpu.memory_space<vmem>>, vector<1x1x192xf32>
    %7 = vector.shape_cast %6 : vector<1x1x192xf32> to vector<1x192xf32>
    %c0_11 = arith.constant 0 : index
    %c0_12 = arith.constant 0 : index
    %c0_13 = arith.constant 0 : index
    %8 = vector.load %arg10[%c0_11, %c0_12, %c0_13] : memref<1x1x32xf32, #tpu.memory_space<vmem>>, vector<1x1x32xf32>
    %9 = vector.shape_cast %8 : vector<1x1x32xf32> to vector<1x32xf32>
    %c0_14 = arith.constant 0 : index
    %c0_15 = arith.constant 0 : index
    %c0_16 = arith.constant 0 : index
    %10 = vector.load %arg11[%c0_14, %c0_15, %c0_16] : memref<1x1x32xf32, #tpu.memory_space<vmem>>, vector<1x1x32xf32>
    %11 = vector.shape_cast %10 : vector<1x1x32xf32> to vector<1x32xf32>
    %c0_17 = arith.constant 0 : index
    %c0_18 = arith.constant 0 : index
    %c0_19 = arith.constant 0 : index
    %12 = vector.load %arg12[%c0_17, %c0_18, %c0_19] : memref<1x1x1xf32, #tpu.memory_space<vmem>>, vector<1x1x1xf32>
    %13 = vector.shape_cast %12 : vector<1x1x1xf32> to vector<1x1xf32>
    %c0_20 = arith.constant 0 : index
    %c0_21 = arith.constant 0 : index
    %c0_22 = arith.constant 0 : index
    %14 = vector.load %arg13[%c0_20, %c0_21, %c0_22] : memref<1x64x32xf32, #tpu.memory_space<vmem>>, vector<1x64x32xf32>
    %15 = vector.shape_cast %14 : vector<1x64x32xf32> to vector<64x32xf32>
    %c0_23 = arith.constant 0 : index
    %c0_24 = arith.constant 0 : index
    %c0_25 = arith.constant 0 : index
    %16 = vector.load %arg1[%c0_23, %c0_24, %c0_25] : memref<8x2x48xf32, #tpu.memory_space<vmem>>, vector<8x2x48xf32>
    %17 = vector.shape_cast %16 : vector<8x2x48xf32> to vector<16x48xf32>
    %c0_26 = arith.constant 0 : index
    %c0_27 = arith.constant 0 : index
    %18 = vector.load %arg2[%c0_26, %c0_27] : memref<48x32xf32, #tpu.memory_space<vmem>>, vector<48x32xf32>
    %cst = arith.constant dense<0.000000e+00> : vector<16x32xf32>
    %19 = tpu.matmul %17, %18, %cst {dimension_numbers = #tpu.dot_dimension_numbers<[1], [0], [0], [1], [0, 0, 1, 1], [], []>} : vector<16x48xf32>, vector<48x32xf32>, vector<16x32xf32> -> vector<16x32xf32>
    %c0_28 = arith.constant 0 : index
    %c0_29 = arith.constant 0 : index
    %20 = vector.load %arg3[%c0_28, %c0_29] : memref<1x32xf32, #tpu.memory_space<vmem>>, vector<1x32xf32>
    %21 = vector.broadcast %20 : vector<1x32xf32> to vector<16x32xf32>
    %22 = arith.addf %19, %21 : vector<16x32xf32>
    %cst_30 = arith.constant 0.000000e+00 : f32
    %23 = vector.broadcast %cst_30 : f32 to vector<16x32xf32>
    %24 = arith.maximumf %22, %23 : vector<16x32xf32>
    %25 = vector.shape_cast %24 : vector<16x32xf32> to vector<8x2x32xf32>
    %26 = tpu.iota {dimensions = array<i32: 1>} : vector<2x8xi32>
    %27 = tpu.iota {dimensions = array<i32: 0>} : vector<8x2x32xi32>
    %28 = vector.extract_strided_slice %25 {offsets = [0, 0, 0], sizes = [1, 2, 32], strides = [1, 1, 1]} : vector<8x2x32xf32> to vector<1x2x32xf32>
    %29 = vector.shape_cast %28 : vector<1x2x32xf32> to vector<2x32xf32>
    %cst_31 = arith.constant 0.000000e+00 : f32
    %30 = vector.broadcast %cst_31 : f32 to vector<2x32xf32>
    %cst_32 = arith.constant dense<0.000000e+00> : vector<2x192xf32>
    %31 = tpu.matmul %29, %1, %cst_32 {dimension_numbers = #tpu.dot_dimension_numbers<[1], [0], [0], [1], [0, 0, 1, 1], [], []>} : vector<2x32xf32>, vector<32x192xf32>, vector<2x192xf32> -> vector<2x192xf32>
    %32 = vector.broadcast %5 : vector<1x192xf32> to vector<2x192xf32>
    %33 = arith.addf %31, %32 : vector<2x192xf32>
    %cst_33 = arith.constant dense<0.000000e+00> : vector<2x192xf32>
    %34 = tpu.matmul %30, %3, %cst_33 {dimension_numbers = #tpu.dot_dimension_numbers<[1], [0], [0], [1], [0, 0, 1, 1], [], []>} : vector<2x32xf32>, vector<32x192xf32>, vector<2x192xf32> -> vector<2x192xf32>
    %35 = vector.broadcast %7 : vector<1x192xf32> to vector<2x192xf32>
    %36 = arith.addf %34, %35 : vector<2x192xf32>
    %37 = arith.addf %33, %36 : vector<2x192xf32>
    %38 = arith.negf %37 : vector<2x192xf32>
    %39 = math.exp %38 : vector<2x192xf32>
    %cst_34 = arith.constant 1.000000e+00 : f32
    %40 = vector.broadcast %cst_34 : f32 to vector<2x192xf32>
    %41 = arith.addf %40, %39 : vector<2x192xf32>
    %42 = arith.divf %40, %41 : vector<2x192xf32>
    %43 = vector.extract_strided_slice %42 {offsets = [0, 0], sizes = [2, 32], strides = [1, 1]} : vector<2x192xf32> to vector<2x32xf32>
    %44 = vector.extract_strided_slice %42 {offsets = [0, 32], sizes = [2, 32], strides = [1, 1]} : vector<2x192xf32> to vector<2x32xf32>
    %45 = vector.extract_strided_slice %42 {offsets = [0, 96], sizes = [2, 32], strides = [1, 1]} : vector<2x192xf32> to vector<2x32xf32>
    %46 = vector.extract_strided_slice %42 {offsets = [0, 128], sizes = [2, 32], strides = [1, 1]} : vector<2x192xf32> to vector<2x32xf32>
    %47 = vector.extract_strided_slice %33 {offsets = [0, 64], sizes = [2, 32], strides = [1, 1]} : vector<2x192xf32> to vector<2x32xf32>
    %48 = vector.extract_strided_slice %36 {offsets = [0, 64], sizes = [2, 32], strides = [1, 1]} : vector<2x192xf32> to vector<2x32xf32>
    %49 = arith.mulf %43, %48 : vector<2x32xf32>
    %50 = arith.addf %47, %49 : vector<2x32xf32>
    %51 = math.tanh %50 : vector<2x32xf32>
    %52 = vector.extract_strided_slice %36 {offsets = [0, 160], sizes = [2, 32], strides = [1, 1]} : vector<2x192xf32> to vector<2x32xf32>
    %53 = vector.extract_strided_slice %33 {offsets = [0, 160], sizes = [2, 32], strides = [1, 1]} : vector<2x192xf32> to vector<2x32xf32>
    %54 = arith.mulf %45, %53 : vector<2x32xf32>
    %55 = arith.addf %52, %54 : vector<2x32xf32>
    %56 = math.tanh %55 : vector<2x32xf32>
    %cst_35 = arith.constant 1.000000e+00 : f32
    %57 = vector.broadcast %cst_35 : f32 to vector<2x32xf32>
    %58 = arith.subf %57, %44 : vector<2x32xf32>
    %59 = arith.mulf %58, %51 : vector<2x32xf32>
    %60 = arith.mulf %44, %30 : vector<2x32xf32>
    %61 = arith.addf %59, %60 : vector<2x32xf32>
    %cst_36 = arith.constant 1.000000e+00 : f32
    %62 = vector.broadcast %cst_36 : f32 to vector<2x32xf32>
    %63 = arith.subf %62, %46 : vector<2x32xf32>
    %64 = arith.mulf %63, %56 : vector<2x32xf32>
    %65 = arith.mulf %46, %29 : vector<2x32xf32>
    %66 = arith.addf %64, %65 : vector<2x32xf32>
    %67 = arith.addf %61, %66 : vector<2x32xf32>
    %c0_i32 = arith.constant 0 : i32
    %68 = vector.broadcast %c0_i32 : i32 to vector<8x2x32xi32>
    %69 = arith.cmpi eq, %27, %68 : vector<8x2x32xi32>
    %70 = vector.shape_cast %67 : vector<2x32xf32> to vector<1x2x32xf32>
    %cst_37 = arith.constant 0.000000e+00 : f32
    %71 = vector.broadcast %cst_37 : f32 to vector<8x2x32xf32>
    %72 = vector.shape_cast %70 : vector<1x2x32xf32> to vector<1x2x32xf32>
    %73 = vector.broadcast %72 : vector<1x2x32xf32> to vector<8x2x32xf32>
    %74 = arith.select %69, %73, %71 : vector<8x2x32xi1>, vector<8x2x32xf32>
    %c0_i32_38 = arith.constant 0 : i32
    %75 = vector.broadcast %c0_i32_38 : i32 to vector<2x8xi32>
    %76 = arith.cmpi eq, %26, %75 : vector<2x8xi32>
    %77 = vector.broadcast %11 : vector<1x32xf32> to vector<2x32xf32>
    %78 = arith.mulf %67, %77 : vector<2x32xf32>
    %cst_39 = arith.constant dense<0.000000e+00> : vector<2xf32>
    %79 = vector.multi_reduction <add>, %78, %cst_39 [1] : vector<2x32xf32> to vector<2xf32>
    %80 = vector.shape_cast %79 : vector<2xf32> to vector<2x1xf32>
    %cst_40 = arith.constant 0.000000e+00 : f32
    %81 = vector.broadcast %cst_40 : f32 to vector<2x8xf32>
    %82 = vector.shape_cast %80 : vector<2x1xf32> to vector<2x1xf32>
    %83 = vector.broadcast %82 : vector<2x1xf32> to vector<2x8xf32>
    %84 = arith.select %76, %83, %81 : vector<2x8xi1>, vector<2x8xf32>
    %85 = vector.extract_strided_slice %25 {offsets = [1, 0, 0], sizes = [1, 2, 32], strides = [1, 1, 1]} : vector<8x2x32xf32> to vector<1x2x32xf32>
    %86 = vector.shape_cast %85 : vector<1x2x32xf32> to vector<2x32xf32>
    %c0_41 = arith.constant 0 : index
    %c1 = arith.constant 1 : index
    %c0_42 = arith.constant 0 : index
    %c0_43 = arith.constant 0 : index
    %87 = vector.load %arg4[%c0_41, %c1, %c0_42, %c0_43] : memref<1x8x2x8xf32, #tpu.memory_space<vmem>>, vector<1x1x2x8xf32>
    %88 = vector.shape_cast %87 : vector<1x1x2x8xf32> to vector<2x8xf32>
    %c1_44 = arith.constant 1 : index
    %c0_45 = arith.constant 0 : index
    %c0_46 = arith.constant 0 : index
    %89 = vector.load %arg5[%c1_44, %c0_45, %c0_46] : memref<8x2x8xf32, #tpu.memory_space<vmem>>, vector<1x2x8xf32>
    %90 = vector.shape_cast %89 : vector<1x2x8xf32> to vector<2x8xf32>
    %91 = vector.broadcast %9 : vector<1x32xf32> to vector<2x32xf32>
    %92 = arith.mulf %86, %91 : vector<2x32xf32>
    %cst_47 = arith.constant dense<0.000000e+00> : vector<2xf32>
    %93 = vector.multi_reduction <add>, %92, %cst_47 [1] : vector<2x32xf32> to vector<2xf32>
    %94 = vector.shape_cast %93 : vector<2xf32> to vector<2x1xf32>
    %95 = vector.broadcast %13 : vector<1x1xf32> to vector<2x1xf32>
    %96 = arith.addf %94, %95 : vector<2x1xf32>
    %97 = vector.broadcast %96 : vector<2x1xf32> to vector<2x8xf32>
    %98 = arith.addf %84, %97 : vector<2x8xf32>
    %cst_48 = arith.constant 1.000000e+00 : f32
    %99 = vector.broadcast %cst_48 : f32 to vector<2x8xf32>
    %100 = arith.subf %99, %88 : vector<2x8xf32>
    %cst_49 = arith.constant 1.000000e+30 : f32
    %101 = vector.broadcast %cst_49 : f32 to vector<2x8xf32>
    %102 = arith.mulf %100, %101 : vector<2x8xf32>
    %103 = arith.subf %98, %102 : vector<2x8xf32>
    %c1_i32 = arith.constant 1 : i32
    %104 = vector.broadcast %c1_i32 : i32 to vector<2x8xi32>
    %105 = arith.cmpi slt, %26, %104 : vector<2x8xi32>
    %cst_50 = arith.constant 0xFF800000 : f32
    %106 = vector.broadcast %cst_50 : f32 to vector<2x8xf32>
    %107 = arith.select %105, %103, %106 : vector<2x8xi1>, vector<2x8xf32>
    %cst_51 = arith.constant dense<0xFF800000> : vector<2xf32>
    %108 = vector.multi_reduction <maximumf>, %107, %cst_51 [1] : vector<2x8xf32> to vector<2xf32>
    %109 = vector.shape_cast %108 : vector<2xf32> to vector<2x1xf32>
    %110 = vector.broadcast %109 : vector<2x1xf32> to vector<2x8xf32>
    %111 = arith.subf %107, %110 : vector<2x8xf32>
    %112 = math.exp %111 : vector<2x8xf32>
    %cst_52 = arith.constant dense<0.000000e+00> : vector<2xf32>
    %113 = vector.multi_reduction <add>, %112, %cst_52 [1] : vector<2x8xf32> to vector<2xf32>
    %114 = vector.shape_cast %113 : vector<2xf32> to vector<2x1xf32>
    %115 = vector.broadcast %114 : vector<2x1xf32> to vector<2x8xf32>
    %116 = arith.divf %112, %115 : vector<2x8xf32>
    %117 = arith.mulf %116, %90 : vector<2x8xf32>
    %118 = tpu.transpose %117, [1, 0] : vector<2x8xf32> -> vector<8x2xf32>
    %119 = vector.shape_cast %118 : vector<8x2xf32> to vector<8x2x1xf32>
    %cst_53 = arith.constant 1.000000e+00 : f32
    %120 = vector.broadcast %cst_53 : f32 to vector<2x8xf32>
    %121 = arith.subf %120, %90 : vector<2x8xf32>
    %122 = arith.mulf %116, %121 : vector<2x8xf32>
    %123 = tpu.transpose %122, [1, 0] : vector<2x8xf32> -> vector<8x2xf32>
    %124 = vector.shape_cast %123 : vector<8x2xf32> to vector<8x2x1xf32>
    %125 = vector.broadcast %119 : vector<8x2x1xf32> to vector<8x2x32xf32>
    %126 = arith.mulf %125, %74 : vector<8x2x32xf32>
    %cst_54 = arith.constant dense<0.000000e+00> : vector<2x32xf32>
    %127 = vector.multi_reduction <add>, %126, %cst_54 [0] : vector<8x2x32xf32> to vector<2x32xf32>
    %128 = vector.broadcast %124 : vector<8x2x1xf32> to vector<8x2x32xf32>
    %129 = arith.mulf %128, %74 : vector<8x2x32xf32>
    %cst_55 = arith.constant dense<0.000000e+00> : vector<2x32xf32>
    %130 = vector.multi_reduction <add>, %129, %cst_55 [0] : vector<8x2x32xf32> to vector<2x32xf32>
    %131 = tpu.concatenate %127, %130 in 1 : vector<2x32xf32>, vector<2x32xf32> -> vector<2x64xf32>
    %cst_56 = arith.constant dense<0.000000e+00> : vector<2x32xf32>
    %132 = tpu.matmul %131, %15, %cst_56 {dimension_numbers = #tpu.dot_dimension_numbers<[1], [0], [0], [1], [0, 0, 1, 1], [], []>} : vector<2x64xf32>, vector<64x32xf32>, vector<2x32xf32> -> vector<2x32xf32>
    %cst_57 = arith.constant dense<0.000000e+00> : vector<2x192xf32>
    %133 = tpu.matmul %86, %1, %cst_57 {dimension_numbers = #tpu.dot_dimension_numbers<[1], [0], [0], [1], [0, 0, 1, 1], [], []>} : vector<2x32xf32>, vector<32x192xf32>, vector<2x192xf32> -> vector<2x192xf32>
    %134 = vector.broadcast %5 : vector<1x192xf32> to vector<2x192xf32>
    %135 = arith.addf %133, %134 : vector<2x192xf32>
    %cst_58 = arith.constant dense<0.000000e+00> : vector<2x192xf32>
    %136 = tpu.matmul %132, %3, %cst_58 {dimension_numbers = #tpu.dot_dimension_numbers<[1], [0], [0], [1], [0, 0, 1, 1], [], []>} : vector<2x32xf32>, vector<32x192xf32>, vector<2x192xf32> -> vector<2x192xf32>
    %137 = vector.broadcast %7 : vector<1x192xf32> to vector<2x192xf32>
    %138 = arith.addf %136, %137 : vector<2x192xf32>
    %139 = arith.addf %135, %138 : vector<2x192xf32>
    %140 = arith.negf %139 : vector<2x192xf32>
    %141 = math.exp %140 : vector<2x192xf32>
    %cst_59 = arith.constant 1.000000e+00 : f32
    %142 = vector.broadcast %cst_59 : f32 to vector<2x192xf32>
    %143 = arith.addf %142, %141 : vector<2x192xf32>
    %144 = arith.divf %142, %143 : vector<2x192xf32>
    %145 = vector.extract_strided_slice %144 {offsets = [0, 0], sizes = [2, 32], strides = [1, 1]} : vector<2x192xf32> to vector<2x32xf32>
    %146 = vector.extract_strided_slice %144 {offsets = [0, 32], sizes = [2, 32], strides = [1, 1]} : vector<2x192xf32> to vector<2x32xf32>
    %147 = vector.extract_strided_slice %144 {offsets = [0, 96], sizes = [2, 32], strides = [1, 1]} : vector<2x192xf32> to vector<2x32xf32>
    %148 = vector.extract_strided_slice %144 {offsets = [0, 128], sizes = [2, 32], strides = [1, 1]} : vector<2x192xf32> to vector<2x32xf32>
    %149 = vector.extract_strided_slice %135 {offsets = [0, 64], sizes = [2, 32], strides = [1, 1]} : vector<2x192xf32> to vector<2x32xf32>
    %150 = vector.extract_strided_slice %138 {offsets = [0, 64], sizes = [2, 32], strides = [1, 1]} : vector<2x192xf32> to vector<2x32xf32>
    %151 = arith.mulf %145, %150 : vector<2x32xf32>
    %152 = arith.addf %149, %151 : vector<2x32xf32>
    %153 = math.tanh %152 : vector<2x32xf32>
    %154 = vector.extract_strided_slice %138 {offsets = [0, 160], sizes = [2, 32], strides = [1, 1]} : vector<2x192xf32> to vector<2x32xf32>
    %155 = vector.extract_strided_slice %135 {offsets = [0, 160], sizes = [2, 32], strides = [1, 1]} : vector<2x192xf32> to vector<2x32xf32>
    %156 = arith.mulf %147, %155 : vector<2x32xf32>
    %157 = arith.addf %154, %156 : vector<2x32xf32>
    %158 = math.tanh %157 : vector<2x32xf32>
    %cst_60 = arith.constant 1.000000e+00 : f32
    %159 = vector.broadcast %cst_60 : f32 to vector<2x32xf32>
    %160 = arith.subf %159, %146 : vector<2x32xf32>
    %161 = arith.mulf %160, %153 : vector<2x32xf32>
    %162 = arith.mulf %146, %132 : vector<2x32xf32>
    %163 = arith.addf %161, %162 : vector<2x32xf32>
    %cst_61 = arith.constant 1.000000e+00 : f32
    %164 = vector.broadcast %cst_61 : f32 to vector<2x32xf32>
    %165 = arith.subf %164, %148 : vector<2x32xf32>
    %166 = arith.mulf %165, %158 : vector<2x32xf32>
    %167 = arith.mulf %148, %86 : vector<2x32xf32>
    %168 = arith.addf %166, %167 : vector<2x32xf32>
    %169 = arith.addf %163, %168 : vector<2x32xf32>
    %c1_i32_62 = arith.constant 1 : i32
    %170 = vector.broadcast %c1_i32_62 : i32 to vector<8x2x32xi32>
    %171 = arith.cmpi eq, %27, %170 : vector<8x2x32xi32>
    %172 = vector.shape_cast %169 : vector<2x32xf32> to vector<1x2x32xf32>
    %173 = vector.shape_cast %172 : vector<1x2x32xf32> to vector<1x2x32xf32>
    %174 = vector.broadcast %173 : vector<1x2x32xf32> to vector<8x2x32xf32>
    %175 = arith.select %171, %174, %74 : vector<8x2x32xi1>, vector<8x2x32xf32>
    %c1_i32_63 = arith.constant 1 : i32
    %176 = vector.broadcast %c1_i32_63 : i32 to vector<2x8xi32>
    %177 = arith.cmpi eq, %26, %176 : vector<2x8xi32>
    %178 = vector.broadcast %11 : vector<1x32xf32> to vector<2x32xf32>
    %179 = arith.mulf %169, %178 : vector<2x32xf32>
    %cst_64 = arith.constant dense<0.000000e+00> : vector<2xf32>
    %180 = vector.multi_reduction <add>, %179, %cst_64 [1] : vector<2x32xf32> to vector<2xf32>
    %181 = vector.shape_cast %180 : vector<2xf32> to vector<2x1xf32>
    %182 = vector.shape_cast %181 : vector<2x1xf32> to vector<2x1xf32>
    %183 = vector.broadcast %182 : vector<2x1xf32> to vector<2x8xf32>
    %184 = arith.select %177, %183, %84 : vector<2x8xi1>, vector<2x8xf32>
    %185 = vector.extract_strided_slice %25 {offsets = [2, 0, 0], sizes = [1, 2, 32], strides = [1, 1, 1]} : vector<8x2x32xf32> to vector<1x2x32xf32>
    %186 = vector.shape_cast %185 : vector<1x2x32xf32> to vector<2x32xf32>
    %c0_65 = arith.constant 0 : index
    %c2 = arith.constant 2 : index
    %c0_66 = arith.constant 0 : index
    %c0_67 = arith.constant 0 : index
    %187 = vector.load %arg4[%c0_65, %c2, %c0_66, %c0_67] : memref<1x8x2x8xf32, #tpu.memory_space<vmem>>, vector<1x1x2x8xf32>
    %188 = vector.shape_cast %187 : vector<1x1x2x8xf32> to vector<2x8xf32>
    %c2_68 = arith.constant 2 : index
    %c0_69 = arith.constant 0 : index
    %c0_70 = arith.constant 0 : index
    %189 = vector.load %arg5[%c2_68, %c0_69, %c0_70] : memref<8x2x8xf32, #tpu.memory_space<vmem>>, vector<1x2x8xf32>
    %190 = vector.shape_cast %189 : vector<1x2x8xf32> to vector<2x8xf32>
    %191 = vector.broadcast %9 : vector<1x32xf32> to vector<2x32xf32>
    %192 = arith.mulf %186, %191 : vector<2x32xf32>
    %cst_71 = arith.constant dense<0.000000e+00> : vector<2xf32>
    %193 = vector.multi_reduction <add>, %192, %cst_71 [1] : vector<2x32xf32> to vector<2xf32>
    %194 = vector.shape_cast %193 : vector<2xf32> to vector<2x1xf32>
    %195 = vector.broadcast %13 : vector<1x1xf32> to vector<2x1xf32>
    %196 = arith.addf %194, %195 : vector<2x1xf32>
    %197 = vector.broadcast %196 : vector<2x1xf32> to vector<2x8xf32>
    %198 = arith.addf %184, %197 : vector<2x8xf32>
    %cst_72 = arith.constant 1.000000e+00 : f32
    %199 = vector.broadcast %cst_72 : f32 to vector<2x8xf32>
    %200 = arith.subf %199, %188 : vector<2x8xf32>
    %cst_73 = arith.constant 1.000000e+30 : f32
    %201 = vector.broadcast %cst_73 : f32 to vector<2x8xf32>
    %202 = arith.mulf %200, %201 : vector<2x8xf32>
    %203 = arith.subf %198, %202 : vector<2x8xf32>
    %c2_i32 = arith.constant 2 : i32
    %204 = vector.broadcast %c2_i32 : i32 to vector<2x8xi32>
    %205 = arith.cmpi slt, %26, %204 : vector<2x8xi32>
    %cst_74 = arith.constant 0xFF800000 : f32
    %206 = vector.broadcast %cst_74 : f32 to vector<2x8xf32>
    %207 = arith.select %205, %203, %206 : vector<2x8xi1>, vector<2x8xf32>
    %cst_75 = arith.constant dense<0xFF800000> : vector<2xf32>
    %208 = vector.multi_reduction <maximumf>, %207, %cst_75 [1] : vector<2x8xf32> to vector<2xf32>
    %209 = vector.shape_cast %208 : vector<2xf32> to vector<2x1xf32>
    %210 = vector.broadcast %209 : vector<2x1xf32> to vector<2x8xf32>
    %211 = arith.subf %207, %210 : vector<2x8xf32>
    %212 = math.exp %211 : vector<2x8xf32>
    %cst_76 = arith.constant dense<0.000000e+00> : vector<2xf32>
    %213 = vector.multi_reduction <add>, %212, %cst_76 [1] : vector<2x8xf32> to vector<2xf32>
    %214 = vector.shape_cast %213 : vector<2xf32> to vector<2x1xf32>
    %215 = vector.broadcast %214 : vector<2x1xf32> to vector<2x8xf32>
    %216 = arith.divf %212, %215 : vector<2x8xf32>
    %217 = arith.mulf %216, %190 : vector<2x8xf32>
    %218 = tpu.transpose %217, [1, 0] : vector<2x8xf32> -> vector<8x2xf32>
    %219 = vector.shape_cast %218 : vector<8x2xf32> to vector<8x2x1xf32>
    %cst_77 = arith.constant 1.000000e+00 : f32
    %220 = vector.broadcast %cst_77 : f32 to vector<2x8xf32>
    %221 = arith.subf %220, %190 : vector<2x8xf32>
    %222 = arith.mulf %216, %221 : vector<2x8xf32>
    %223 = tpu.transpose %222, [1, 0] : vector<2x8xf32> -> vector<8x2xf32>
    %224 = vector.shape_cast %223 : vector<8x2xf32> to vector<8x2x1xf32>
    %225 = vector.broadcast %219 : vector<8x2x1xf32> to vector<8x2x32xf32>
    %226 = arith.mulf %225, %175 : vector<8x2x32xf32>
    %cst_78 = arith.constant dense<0.000000e+00> : vector<2x32xf32>
    %227 = vector.multi_reduction <add>, %226, %cst_78 [0] : vector<8x2x32xf32> to vector<2x32xf32>
    %228 = vector.broadcast %224 : vector<8x2x1xf32> to vector<8x2x32xf32>
    %229 = arith.mulf %228, %175 : vector<8x2x32xf32>
    %cst_79 = arith.constant dense<0.000000e+00> : vector<2x32xf32>
    %230 = vector.multi_reduction <add>, %229, %cst_79 [0] : vector<8x2x32xf32> to vector<2x32xf32>
    %231 = tpu.concatenate %227, %230 in 1 : vector<2x32xf32>, vector<2x32xf32> -> vector<2x64xf32>
    %cst_80 = arith.constant dense<0.000000e+00> : vector<2x32xf32>
    %232 = tpu.matmul %231, %15, %cst_80 {dimension_numbers = #tpu.dot_dimension_numbers<[1], [0], [0], [1], [0, 0, 1, 1], [], []>} : vector<2x64xf32>, vector<64x32xf32>, vector<2x32xf32> -> vector<2x32xf32>
    %cst_81 = arith.constant dense<0.000000e+00> : vector<2x192xf32>
    %233 = tpu.matmul %186, %1, %cst_81 {dimension_numbers = #tpu.dot_dimension_numbers<[1], [0], [0], [1], [0, 0, 1, 1], [], []>} : vector<2x32xf32>, vector<32x192xf32>, vector<2x192xf32> -> vector<2x192xf32>
    %234 = vector.broadcast %5 : vector<1x192xf32> to vector<2x192xf32>
    %235 = arith.addf %233, %234 : vector<2x192xf32>
    %cst_82 = arith.constant dense<0.000000e+00> : vector<2x192xf32>
    %236 = tpu.matmul %232, %3, %cst_82 {dimension_numbers = #tpu.dot_dimension_numbers<[1], [0], [0], [1], [0, 0, 1, 1], [], []>} : vector<2x32xf32>, vector<32x192xf32>, vector<2x192xf32> -> vector<2x192xf32>
    %237 = vector.broadcast %7 : vector<1x192xf32> to vector<2x192xf32>
    %238 = arith.addf %236, %237 : vector<2x192xf32>
    %239 = arith.addf %235, %238 : vector<2x192xf32>
    %240 = arith.negf %239 : vector<2x192xf32>
    %241 = math.exp %240 : vector<2x192xf32>
    %cst_83 = arith.constant 1.000000e+00 : f32
    %242 = vector.broadcast %cst_83 : f32 to vector<2x192xf32>
    %243 = arith.addf %242, %241 : vector<2x192xf32>
    %244 = arith.divf %242, %243 : vector<2x192xf32>
    %245 = vector.extract_strided_slice %244 {offsets = [0, 0], sizes = [2, 32], strides = [1, 1]} : vector<2x192xf32> to vector<2x32xf32>
    %246 = vector.extract_strided_slice %244 {offsets = [0, 32], sizes = [2, 32], strides = [1, 1]} : vector<2x192xf32> to vector<2x32xf32>
    %247 = vector.extract_strided_slice %244 {offsets = [0, 96], sizes = [2, 32], strides = [1, 1]} : vector<2x192xf32> to vector<2x32xf32>
    %248 = vector.extract_strided_slice %244 {offsets = [0, 128], sizes = [2, 32], strides = [1, 1]} : vector<2x192xf32> to vector<2x32xf32>
    %249 = vector.extract_strided_slice %235 {offsets = [0, 64], sizes = [2, 32], strides = [1, 1]} : vector<2x192xf32> to vector<2x32xf32>
    %250 = vector.extract_strided_slice %238 {offsets = [0, 64], sizes = [2, 32], strides = [1, 1]} : vector<2x192xf32> to vector<2x32xf32>
    %251 = arith.mulf %245, %250 : vector<2x32xf32>
    %252 = arith.addf %249, %251 : vector<2x32xf32>
    %253 = math.tanh %252 : vector<2x32xf32>
    %254 = vector.extract_strided_slice %238 {offsets = [0, 160], sizes = [2, 32], strides = [1, 1]} : vector<2x192xf32> to vector<2x32xf32>
    %255 = vector.extract_strided_slice %235 {offsets = [0, 160], sizes = [2, 32], strides = [1, 1]} : vector<2x192xf32> to vector<2x32xf32>
    %256 = arith.mulf %247, %255 : vector<2x32xf32>
    %257 = arith.addf %254, %256 : vector<2x32xf32>
    %258 = math.tanh %257 : vector<2x32xf32>
    %cst_84 = arith.constant 1.000000e+00 : f32
    %259 = vector.broadcast %cst_84 : f32 to vector<2x32xf32>
    %260 = arith.subf %259, %246 : vector<2x32xf32>
    %261 = arith.mulf %260, %253 : vector<2x32xf32>
    %262 = arith.mulf %246, %232 : vector<2x32xf32>
    %263 = arith.addf %261, %262 : vector<2x32xf32>
    %cst_85 = arith.constant 1.000000e+00 : f32
    %264 = vector.broadcast %cst_85 : f32 to vector<2x32xf32>
    %265 = arith.subf %264, %248 : vector<2x32xf32>
    %266 = arith.mulf %265, %258 : vector<2x32xf32>
    %267 = arith.mulf %248, %186 : vector<2x32xf32>
    %268 = arith.addf %266, %267 : vector<2x32xf32>
    %269 = arith.addf %263, %268 : vector<2x32xf32>
    %c2_i32_86 = arith.constant 2 : i32
    %270 = vector.broadcast %c2_i32_86 : i32 to vector<8x2x32xi32>
    %271 = arith.cmpi eq, %27, %270 : vector<8x2x32xi32>
    %272 = vector.shape_cast %269 : vector<2x32xf32> to vector<1x2x32xf32>
    %273 = vector.shape_cast %272 : vector<1x2x32xf32> to vector<1x2x32xf32>
    %274 = vector.broadcast %273 : vector<1x2x32xf32> to vector<8x2x32xf32>
    %275 = arith.select %271, %274, %175 : vector<8x2x32xi1>, vector<8x2x32xf32>
    %c2_i32_87 = arith.constant 2 : i32
    %276 = vector.broadcast %c2_i32_87 : i32 to vector<2x8xi32>
    %277 = arith.cmpi eq, %26, %276 : vector<2x8xi32>
    %278 = vector.broadcast %11 : vector<1x32xf32> to vector<2x32xf32>
    %279 = arith.mulf %269, %278 : vector<2x32xf32>
    %cst_88 = arith.constant dense<0.000000e+00> : vector<2xf32>
    %280 = vector.multi_reduction <add>, %279, %cst_88 [1] : vector<2x32xf32> to vector<2xf32>
    %281 = vector.shape_cast %280 : vector<2xf32> to vector<2x1xf32>
    %282 = vector.shape_cast %281 : vector<2x1xf32> to vector<2x1xf32>
    %283 = vector.broadcast %282 : vector<2x1xf32> to vector<2x8xf32>
    %284 = arith.select %277, %283, %184 : vector<2x8xi1>, vector<2x8xf32>
    %285 = vector.extract_strided_slice %25 {offsets = [3, 0, 0], sizes = [1, 2, 32], strides = [1, 1, 1]} : vector<8x2x32xf32> to vector<1x2x32xf32>
    %286 = vector.shape_cast %285 : vector<1x2x32xf32> to vector<2x32xf32>
    %c0_89 = arith.constant 0 : index
    %c3 = arith.constant 3 : index
    %c0_90 = arith.constant 0 : index
    %c0_91 = arith.constant 0 : index
    %287 = vector.load %arg4[%c0_89, %c3, %c0_90, %c0_91] : memref<1x8x2x8xf32, #tpu.memory_space<vmem>>, vector<1x1x2x8xf32>
    %288 = vector.shape_cast %287 : vector<1x1x2x8xf32> to vector<2x8xf32>
    %c3_92 = arith.constant 3 : index
    %c0_93 = arith.constant 0 : index
    %c0_94 = arith.constant 0 : index
    %289 = vector.load %arg5[%c3_92, %c0_93, %c0_94] : memref<8x2x8xf32, #tpu.memory_space<vmem>>, vector<1x2x8xf32>
    %290 = vector.shape_cast %289 : vector<1x2x8xf32> to vector<2x8xf32>
    %291 = vector.broadcast %9 : vector<1x32xf32> to vector<2x32xf32>
    %292 = arith.mulf %286, %291 : vector<2x32xf32>
    %cst_95 = arith.constant dense<0.000000e+00> : vector<2xf32>
    %293 = vector.multi_reduction <add>, %292, %cst_95 [1] : vector<2x32xf32> to vector<2xf32>
    %294 = vector.shape_cast %293 : vector<2xf32> to vector<2x1xf32>
    %295 = vector.broadcast %13 : vector<1x1xf32> to vector<2x1xf32>
    %296 = arith.addf %294, %295 : vector<2x1xf32>
    %297 = vector.broadcast %296 : vector<2x1xf32> to vector<2x8xf32>
    %298 = arith.addf %284, %297 : vector<2x8xf32>
    %cst_96 = arith.constant 1.000000e+00 : f32
    %299 = vector.broadcast %cst_96 : f32 to vector<2x8xf32>
    %300 = arith.subf %299, %288 : vector<2x8xf32>
    %cst_97 = arith.constant 1.000000e+30 : f32
    %301 = vector.broadcast %cst_97 : f32 to vector<2x8xf32>
    %302 = arith.mulf %300, %301 : vector<2x8xf32>
    %303 = arith.subf %298, %302 : vector<2x8xf32>
    %c3_i32 = arith.constant 3 : i32
    %304 = vector.broadcast %c3_i32 : i32 to vector<2x8xi32>
    %305 = arith.cmpi slt, %26, %304 : vector<2x8xi32>
    %cst_98 = arith.constant 0xFF800000 : f32
    %306 = vector.broadcast %cst_98 : f32 to vector<2x8xf32>
    %307 = arith.select %305, %303, %306 : vector<2x8xi1>, vector<2x8xf32>
    %cst_99 = arith.constant dense<0xFF800000> : vector<2xf32>
    %308 = vector.multi_reduction <maximumf>, %307, %cst_99 [1] : vector<2x8xf32> to vector<2xf32>
    %309 = vector.shape_cast %308 : vector<2xf32> to vector<2x1xf32>
    %310 = vector.broadcast %309 : vector<2x1xf32> to vector<2x8xf32>
    %311 = arith.subf %307, %310 : vector<2x8xf32>
    %312 = math.exp %311 : vector<2x8xf32>
    %cst_100 = arith.constant dense<0.000000e+00> : vector<2xf32>
    %313 = vector.multi_reduction <add>, %312, %cst_100 [1] : vector<2x8xf32> to vector<2xf32>
    %314 = vector.shape_cast %313 : vector<2xf32> to vector<2x1xf32>
    %315 = vector.broadcast %314 : vector<2x1xf32> to vector<2x8xf32>
    %316 = arith.divf %312, %315 : vector<2x8xf32>
    %317 = arith.mulf %316, %290 : vector<2x8xf32>
    %318 = tpu.transpose %317, [1, 0] : vector<2x8xf32> -> vector<8x2xf32>
    %319 = vector.shape_cast %318 : vector<8x2xf32> to vector<8x2x1xf32>
    %cst_101 = arith.constant 1.000000e+00 : f32
    %320 = vector.broadcast %cst_101 : f32 to vector<2x8xf32>
    %321 = arith.subf %320, %290 : vector<2x8xf32>
    %322 = arith.mulf %316, %321 : vector<2x8xf32>
    %323 = tpu.transpose %322, [1, 0] : vector<2x8xf32> -> vector<8x2xf32>
    %324 = vector.shape_cast %323 : vector<8x2xf32> to vector<8x2x1xf32>
    %325 = vector.broadcast %319 : vector<8x2x1xf32> to vector<8x2x32xf32>
    %326 = arith.mulf %325, %275 : vector<8x2x32xf32>
    %cst_102 = arith.constant dense<0.000000e+00> : vector<2x32xf32>
    %327 = vector.multi_reduction <add>, %326, %cst_102 [0] : vector<8x2x32xf32> to vector<2x32xf32>
    %328 = vector.broadcast %324 : vector<8x2x1xf32> to vector<8x2x32xf32>
    %329 = arith.mulf %328, %275 : vector<8x2x32xf32>
    %cst_103 = arith.constant dense<0.000000e+00> : vector<2x32xf32>
    %330 = vector.multi_reduction <add>, %329, %cst_103 [0] : vector<8x2x32xf32> to vector<2x32xf32>
    %331 = tpu.concatenate %327, %330 in 1 : vector<2x32xf32>, vector<2x32xf32> -> vector<2x64xf32>
    %cst_104 = arith.constant dense<0.000000e+00> : vector<2x32xf32>
    %332 = tpu.matmul %331, %15, %cst_104 {dimension_numbers = #tpu.dot_dimension_numbers<[1], [0], [0], [1], [0, 0, 1, 1], [], []>} : vector<2x64xf32>, vector<64x32xf32>, vector<2x32xf32> -> vector<2x32xf32>
    %cst_105 = arith.constant dense<0.000000e+00> : vector<2x192xf32>
    %333 = tpu.matmul %286, %1, %cst_105 {dimension_numbers = #tpu.dot_dimension_numbers<[1], [0], [0], [1], [0, 0, 1, 1], [], []>} : vector<2x32xf32>, vector<32x192xf32>, vector<2x192xf32> -> vector<2x192xf32>
    %334 = vector.broadcast %5 : vector<1x192xf32> to vector<2x192xf32>
    %335 = arith.addf %333, %334 : vector<2x192xf32>
    %cst_106 = arith.constant dense<0.000000e+00> : vector<2x192xf32>
    %336 = tpu.matmul %332, %3, %cst_106 {dimension_numbers = #tpu.dot_dimension_numbers<[1], [0], [0], [1], [0, 0, 1, 1], [], []>} : vector<2x32xf32>, vector<32x192xf32>, vector<2x192xf32> -> vector<2x192xf32>
    %337 = vector.broadcast %7 : vector<1x192xf32> to vector<2x192xf32>
    %338 = arith.addf %336, %337 : vector<2x192xf32>
    %339 = arith.addf %335, %338 : vector<2x192xf32>
    %340 = arith.negf %339 : vector<2x192xf32>
    %341 = math.exp %340 : vector<2x192xf32>
    %cst_107 = arith.constant 1.000000e+00 : f32
    %342 = vector.broadcast %cst_107 : f32 to vector<2x192xf32>
    %343 = arith.addf %342, %341 : vector<2x192xf32>
    %344 = arith.divf %342, %343 : vector<2x192xf32>
    %345 = vector.extract_strided_slice %344 {offsets = [0, 0], sizes = [2, 32], strides = [1, 1]} : vector<2x192xf32> to vector<2x32xf32>
    %346 = vector.extract_strided_slice %344 {offsets = [0, 32], sizes = [2, 32], strides = [1, 1]} : vector<2x192xf32> to vector<2x32xf32>
    %347 = vector.extract_strided_slice %344 {offsets = [0, 96], sizes = [2, 32], strides = [1, 1]} : vector<2x192xf32> to vector<2x32xf32>
    %348 = vector.extract_strided_slice %344 {offsets = [0, 128], sizes = [2, 32], strides = [1, 1]} : vector<2x192xf32> to vector<2x32xf32>
    %349 = vector.extract_strided_slice %335 {offsets = [0, 64], sizes = [2, 32], strides = [1, 1]} : vector<2x192xf32> to vector<2x32xf32>
    %350 = vector.extract_strided_slice %338 {offsets = [0, 64], sizes = [2, 32], strides = [1, 1]} : vector<2x192xf32> to vector<2x32xf32>
    %351 = arith.mulf %345, %350 : vector<2x32xf32>
    %352 = arith.addf %349, %351 : vector<2x32xf32>
    %353 = math.tanh %352 : vector<2x32xf32>
    %354 = vector.extract_strided_slice %338 {offsets = [0, 160], sizes = [2, 32], strides = [1, 1]} : vector<2x192xf32> to vector<2x32xf32>
    %355 = vector.extract_strided_slice %335 {offsets = [0, 160], sizes = [2, 32], strides = [1, 1]} : vector<2x192xf32> to vector<2x32xf32>
    %356 = arith.mulf %347, %355 : vector<2x32xf32>
    %357 = arith.addf %354, %356 : vector<2x32xf32>
    %358 = math.tanh %357 : vector<2x32xf32>
    %cst_108 = arith.constant 1.000000e+00 : f32
    %359 = vector.broadcast %cst_108 : f32 to vector<2x32xf32>
    %360 = arith.subf %359, %346 : vector<2x32xf32>
    %361 = arith.mulf %360, %353 : vector<2x32xf32>
    %362 = arith.mulf %346, %332 : vector<2x32xf32>
    %363 = arith.addf %361, %362 : vector<2x32xf32>
    %cst_109 = arith.constant 1.000000e+00 : f32
    %364 = vector.broadcast %cst_109 : f32 to vector<2x32xf32>
    %365 = arith.subf %364, %348 : vector<2x32xf32>
    %366 = arith.mulf %365, %358 : vector<2x32xf32>
    %367 = arith.mulf %348, %286 : vector<2x32xf32>
    %368 = arith.addf %366, %367 : vector<2x32xf32>
    %369 = arith.addf %363, %368 : vector<2x32xf32>
    %c3_i32_110 = arith.constant 3 : i32
    %370 = vector.broadcast %c3_i32_110 : i32 to vector<8x2x32xi32>
    %371 = arith.cmpi eq, %27, %370 : vector<8x2x32xi32>
    %372 = vector.shape_cast %369 : vector<2x32xf32> to vector<1x2x32xf32>
    %373 = vector.shape_cast %372 : vector<1x2x32xf32> to vector<1x2x32xf32>
    %374 = vector.broadcast %373 : vector<1x2x32xf32> to vector<8x2x32xf32>
    %375 = arith.select %371, %374, %275 : vector<8x2x32xi1>, vector<8x2x32xf32>
    %c3_i32_111 = arith.constant 3 : i32
    %376 = vector.broadcast %c3_i32_111 : i32 to vector<2x8xi32>
    %377 = arith.cmpi eq, %26, %376 : vector<2x8xi32>
    %378 = vector.broadcast %11 : vector<1x32xf32> to vector<2x32xf32>
    %379 = arith.mulf %369, %378 : vector<2x32xf32>
    %cst_112 = arith.constant dense<0.000000e+00> : vector<2xf32>
    %380 = vector.multi_reduction <add>, %379, %cst_112 [1] : vector<2x32xf32> to vector<2xf32>
    %381 = vector.shape_cast %380 : vector<2xf32> to vector<2x1xf32>
    %382 = vector.shape_cast %381 : vector<2x1xf32> to vector<2x1xf32>
    %383 = vector.broadcast %382 : vector<2x1xf32> to vector<2x8xf32>
    %384 = arith.select %377, %383, %284 : vector<2x8xi1>, vector<2x8xf32>
    %385 = vector.extract_strided_slice %25 {offsets = [4, 0, 0], sizes = [1, 2, 32], strides = [1, 1, 1]} : vector<8x2x32xf32> to vector<1x2x32xf32>
    %386 = vector.shape_cast %385 : vector<1x2x32xf32> to vector<2x32xf32>
    %c0_113 = arith.constant 0 : index
    %c4 = arith.constant 4 : index
    %c0_114 = arith.constant 0 : index
    %c0_115 = arith.constant 0 : index
    %387 = vector.load %arg4[%c0_113, %c4, %c0_114, %c0_115] : memref<1x8x2x8xf32, #tpu.memory_space<vmem>>, vector<1x1x2x8xf32>
    %388 = vector.shape_cast %387 : vector<1x1x2x8xf32> to vector<2x8xf32>
    %c4_116 = arith.constant 4 : index
    %c0_117 = arith.constant 0 : index
    %c0_118 = arith.constant 0 : index
    %389 = vector.load %arg5[%c4_116, %c0_117, %c0_118] : memref<8x2x8xf32, #tpu.memory_space<vmem>>, vector<1x2x8xf32>
    %390 = vector.shape_cast %389 : vector<1x2x8xf32> to vector<2x8xf32>
    %391 = vector.broadcast %9 : vector<1x32xf32> to vector<2x32xf32>
    %392 = arith.mulf %386, %391 : vector<2x32xf32>
    %cst_119 = arith.constant dense<0.000000e+00> : vector<2xf32>
    %393 = vector.multi_reduction <add>, %392, %cst_119 [1] : vector<2x32xf32> to vector<2xf32>
    %394 = vector.shape_cast %393 : vector<2xf32> to vector<2x1xf32>
    %395 = vector.broadcast %13 : vector<1x1xf32> to vector<2x1xf32>
    %396 = arith.addf %394, %395 : vector<2x1xf32>
    %397 = vector.broadcast %396 : vector<2x1xf32> to vector<2x8xf32>
    %398 = arith.addf %384, %397 : vector<2x8xf32>
    %cst_120 = arith.constant 1.000000e+00 : f32
    %399 = vector.broadcast %cst_120 : f32 to vector<2x8xf32>
    %400 = arith.subf %399, %388 : vector<2x8xf32>
    %cst_121 = arith.constant 1.000000e+30 : f32
    %401 = vector.broadcast %cst_121 : f32 to vector<2x8xf32>
    %402 = arith.mulf %400, %401 : vector<2x8xf32>
    %403 = arith.subf %398, %402 : vector<2x8xf32>
    %c4_i32 = arith.constant 4 : i32
    %404 = vector.broadcast %c4_i32 : i32 to vector<2x8xi32>
    %405 = arith.cmpi slt, %26, %404 : vector<2x8xi32>
    %cst_122 = arith.constant 0xFF800000 : f32
    %406 = vector.broadcast %cst_122 : f32 to vector<2x8xf32>
    %407 = arith.select %405, %403, %406 : vector<2x8xi1>, vector<2x8xf32>
    %cst_123 = arith.constant dense<0xFF800000> : vector<2xf32>
    %408 = vector.multi_reduction <maximumf>, %407, %cst_123 [1] : vector<2x8xf32> to vector<2xf32>
    %409 = vector.shape_cast %408 : vector<2xf32> to vector<2x1xf32>
    %410 = vector.broadcast %409 : vector<2x1xf32> to vector<2x8xf32>
    %411 = arith.subf %407, %410 : vector<2x8xf32>
    %412 = math.exp %411 : vector<2x8xf32>
    %cst_124 = arith.constant dense<0.000000e+00> : vector<2xf32>
    %413 = vector.multi_reduction <add>, %412, %cst_124 [1] : vector<2x8xf32> to vector<2xf32>
    %414 = vector.shape_cast %413 : vector<2xf32> to vector<2x1xf32>
    %415 = vector.broadcast %414 : vector<2x1xf32> to vector<2x8xf32>
    %416 = arith.divf %412, %415 : vector<2x8xf32>
    %417 = arith.mulf %416, %390 : vector<2x8xf32>
    %418 = tpu.transpose %417, [1, 0] : vector<2x8xf32> -> vector<8x2xf32>
    %419 = vector.shape_cast %418 : vector<8x2xf32> to vector<8x2x1xf32>
    %cst_125 = arith.constant 1.000000e+00 : f32
    %420 = vector.broadcast %cst_125 : f32 to vector<2x8xf32>
    %421 = arith.subf %420, %390 : vector<2x8xf32>
    %422 = arith.mulf %416, %421 : vector<2x8xf32>
    %423 = tpu.transpose %422, [1, 0] : vector<2x8xf32> -> vector<8x2xf32>
    %424 = vector.shape_cast %423 : vector<8x2xf32> to vector<8x2x1xf32>
    %425 = vector.broadcast %419 : vector<8x2x1xf32> to vector<8x2x32xf32>
    %426 = arith.mulf %425, %375 : vector<8x2x32xf32>
    %cst_126 = arith.constant dense<0.000000e+00> : vector<2x32xf32>
    %427 = vector.multi_reduction <add>, %426, %cst_126 [0] : vector<8x2x32xf32> to vector<2x32xf32>
    %428 = vector.broadcast %424 : vector<8x2x1xf32> to vector<8x2x32xf32>
    %429 = arith.mulf %428, %375 : vector<8x2x32xf32>
    %cst_127 = arith.constant dense<0.000000e+00> : vector<2x32xf32>
    %430 = vector.multi_reduction <add>, %429, %cst_127 [0] : vector<8x2x32xf32> to vector<2x32xf32>
    %431 = tpu.concatenate %427, %430 in 1 : vector<2x32xf32>, vector<2x32xf32> -> vector<2x64xf32>
    %cst_128 = arith.constant dense<0.000000e+00> : vector<2x32xf32>
    %432 = tpu.matmul %431, %15, %cst_128 {dimension_numbers = #tpu.dot_dimension_numbers<[1], [0], [0], [1], [0, 0, 1, 1], [], []>} : vector<2x64xf32>, vector<64x32xf32>, vector<2x32xf32> -> vector<2x32xf32>
    %cst_129 = arith.constant dense<0.000000e+00> : vector<2x192xf32>
    %433 = tpu.matmul %386, %1, %cst_129 {dimension_numbers = #tpu.dot_dimension_numbers<[1], [0], [0], [1], [0, 0, 1, 1], [], []>} : vector<2x32xf32>, vector<32x192xf32>, vector<2x192xf32> -> vector<2x192xf32>
    %434 = vector.broadcast %5 : vector<1x192xf32> to vector<2x192xf32>
    %435 = arith.addf %433, %434 : vector<2x192xf32>
    %cst_130 = arith.constant dense<0.000000e+00> : vector<2x192xf32>
    %436 = tpu.matmul %432, %3, %cst_130 {dimension_numbers = #tpu.dot_dimension_numbers<[1], [0], [0], [1], [0, 0, 1, 1], [], []>} : vector<2x32xf32>, vector<32x192xf32>, vector<2x192xf32> -> vector<2x192xf32>
    %437 = vector.broadcast %7 : vector<1x192xf32> to vector<2x192xf32>
    %438 = arith.addf %436, %437 : vector<2x192xf32>
    %439 = arith.addf %435, %438 : vector<2x192xf32>
    %440 = arith.negf %439 : vector<2x192xf32>
    %441 = math.exp %440 : vector<2x192xf32>
    %cst_131 = arith.constant 1.000000e+00 : f32
    %442 = vector.broadcast %cst_131 : f32 to vector<2x192xf32>
    %443 = arith.addf %442, %441 : vector<2x192xf32>
    %444 = arith.divf %442, %443 : vector<2x192xf32>
    %445 = vector.extract_strided_slice %444 {offsets = [0, 0], sizes = [2, 32], strides = [1, 1]} : vector<2x192xf32> to vector<2x32xf32>
    %446 = vector.extract_strided_slice %444 {offsets = [0, 32], sizes = [2, 32], strides = [1, 1]} : vector<2x192xf32> to vector<2x32xf32>
    %447 = vector.extract_strided_slice %444 {offsets = [0, 96], sizes = [2, 32], strides = [1, 1]} : vector<2x192xf32> to vector<2x32xf32>
    %448 = vector.extract_strided_slice %444 {offsets = [0, 128], sizes = [2, 32], strides = [1, 1]} : vector<2x192xf32> to vector<2x32xf32>
    %449 = vector.extract_strided_slice %435 {offsets = [0, 64], sizes = [2, 32], strides = [1, 1]} : vector<2x192xf32> to vector<2x32xf32>
    %450 = vector.extract_strided_slice %438 {offsets = [0, 64], sizes = [2, 32], strides = [1, 1]} : vector<2x192xf32> to vector<2x32xf32>
    %451 = arith.mulf %445, %450 : vector<2x32xf32>
    %452 = arith.addf %449, %451 : vector<2x32xf32>
    %453 = math.tanh %452 : vector<2x32xf32>
    %454 = vector.extract_strided_slice %438 {offsets = [0, 160], sizes = [2, 32], strides = [1, 1]} : vector<2x192xf32> to vector<2x32xf32>
    %455 = vector.extract_strided_slice %435 {offsets = [0, 160], sizes = [2, 32], strides = [1, 1]} : vector<2x192xf32> to vector<2x32xf32>
    %456 = arith.mulf %447, %455 : vector<2x32xf32>
    %457 = arith.addf %454, %456 : vector<2x32xf32>
    %458 = math.tanh %457 : vector<2x32xf32>
    %cst_132 = arith.constant 1.000000e+00 : f32
    %459 = vector.broadcast %cst_132 : f32 to vector<2x32xf32>
    %460 = arith.subf %459, %446 : vector<2x32xf32>
    %461 = arith.mulf %460, %453 : vector<2x32xf32>
    %462 = arith.mulf %446, %432 : vector<2x32xf32>
    %463 = arith.addf %461, %462 : vector<2x32xf32>
    %cst_133 = arith.constant 1.000000e+00 : f32
    %464 = vector.broadcast %cst_133 : f32 to vector<2x32xf32>
    %465 = arith.subf %464, %448 : vector<2x32xf32>
    %466 = arith.mulf %465, %458 : vector<2x32xf32>
    %467 = arith.mulf %448, %386 : vector<2x32xf32>
    %468 = arith.addf %466, %467 : vector<2x32xf32>
    %469 = arith.addf %463, %468 : vector<2x32xf32>
    %c4_i32_134 = arith.constant 4 : i32
    %470 = vector.broadcast %c4_i32_134 : i32 to vector<8x2x32xi32>
    %471 = arith.cmpi eq, %27, %470 : vector<8x2x32xi32>
    %472 = vector.shape_cast %469 : vector<2x32xf32> to vector<1x2x32xf32>
    %473 = vector.shape_cast %472 : vector<1x2x32xf32> to vector<1x2x32xf32>
    %474 = vector.broadcast %473 : vector<1x2x32xf32> to vector<8x2x32xf32>
    %475 = arith.select %471, %474, %375 : vector<8x2x32xi1>, vector<8x2x32xf32>
    %c4_i32_135 = arith.constant 4 : i32
    %476 = vector.broadcast %c4_i32_135 : i32 to vector<2x8xi32>
    %477 = arith.cmpi eq, %26, %476 : vector<2x8xi32>
    %478 = vector.broadcast %11 : vector<1x32xf32> to vector<2x32xf32>
    %479 = arith.mulf %469, %478 : vector<2x32xf32>
    %cst_136 = arith.constant dense<0.000000e+00> : vector<2xf32>
    %480 = vector.multi_reduction <add>, %479, %cst_136 [1] : vector<2x32xf32> to vector<2xf32>
    %481 = vector.shape_cast %480 : vector<2xf32> to vector<2x1xf32>
    %482 = vector.shape_cast %481 : vector<2x1xf32> to vector<2x1xf32>
    %483 = vector.broadcast %482 : vector<2x1xf32> to vector<2x8xf32>
    %484 = arith.select %477, %483, %384 : vector<2x8xi1>, vector<2x8xf32>
    %485 = vector.extract_strided_slice %25 {offsets = [5, 0, 0], sizes = [1, 2, 32], strides = [1, 1, 1]} : vector<8x2x32xf32> to vector<1x2x32xf32>
    %486 = vector.shape_cast %485 : vector<1x2x32xf32> to vector<2x32xf32>
    %c0_137 = arith.constant 0 : index
    %c5 = arith.constant 5 : index
    %c0_138 = arith.constant 0 : index
    %c0_139 = arith.constant 0 : index
    %487 = vector.load %arg4[%c0_137, %c5, %c0_138, %c0_139] : memref<1x8x2x8xf32, #tpu.memory_space<vmem>>, vector<1x1x2x8xf32>
    %488 = vector.shape_cast %487 : vector<1x1x2x8xf32> to vector<2x8xf32>
    %c5_140 = arith.constant 5 : index
    %c0_141 = arith.constant 0 : index
    %c0_142 = arith.constant 0 : index
    %489 = vector.load %arg5[%c5_140, %c0_141, %c0_142] : memref<8x2x8xf32, #tpu.memory_space<vmem>>, vector<1x2x8xf32>
    %490 = vector.shape_cast %489 : vector<1x2x8xf32> to vector<2x8xf32>
    %491 = vector.broadcast %9 : vector<1x32xf32> to vector<2x32xf32>
    %492 = arith.mulf %486, %491 : vector<2x32xf32>
    %cst_143 = arith.constant dense<0.000000e+00> : vector<2xf32>
    %493 = vector.multi_reduction <add>, %492, %cst_143 [1] : vector<2x32xf32> to vector<2xf32>
    %494 = vector.shape_cast %493 : vector<2xf32> to vector<2x1xf32>
    %495 = vector.broadcast %13 : vector<1x1xf32> to vector<2x1xf32>
    %496 = arith.addf %494, %495 : vector<2x1xf32>
    %497 = vector.broadcast %496 : vector<2x1xf32> to vector<2x8xf32>
    %498 = arith.addf %484, %497 : vector<2x8xf32>
    %cst_144 = arith.constant 1.000000e+00 : f32
    %499 = vector.broadcast %cst_144 : f32 to vector<2x8xf32>
    %500 = arith.subf %499, %488 : vector<2x8xf32>
    %cst_145 = arith.constant 1.000000e+30 : f32
    %501 = vector.broadcast %cst_145 : f32 to vector<2x8xf32>
    %502 = arith.mulf %500, %501 : vector<2x8xf32>
    %503 = arith.subf %498, %502 : vector<2x8xf32>
    %c5_i32 = arith.constant 5 : i32
    %504 = vector.broadcast %c5_i32 : i32 to vector<2x8xi32>
    %505 = arith.cmpi slt, %26, %504 : vector<2x8xi32>
    %cst_146 = arith.constant 0xFF800000 : f32
    %506 = vector.broadcast %cst_146 : f32 to vector<2x8xf32>
    %507 = arith.select %505, %503, %506 : vector<2x8xi1>, vector<2x8xf32>
    %cst_147 = arith.constant dense<0xFF800000> : vector<2xf32>
    %508 = vector.multi_reduction <maximumf>, %507, %cst_147 [1] : vector<2x8xf32> to vector<2xf32>
    %509 = vector.shape_cast %508 : vector<2xf32> to vector<2x1xf32>
    %510 = vector.broadcast %509 : vector<2x1xf32> to vector<2x8xf32>
    %511 = arith.subf %507, %510 : vector<2x8xf32>
    %512 = math.exp %511 : vector<2x8xf32>
    %cst_148 = arith.constant dense<0.000000e+00> : vector<2xf32>
    %513 = vector.multi_reduction <add>, %512, %cst_148 [1] : vector<2x8xf32> to vector<2xf32>
    %514 = vector.shape_cast %513 : vector<2xf32> to vector<2x1xf32>
    %515 = vector.broadcast %514 : vector<2x1xf32> to vector<2x8xf32>
    %516 = arith.divf %512, %515 : vector<2x8xf32>
    %517 = arith.mulf %516, %490 : vector<2x8xf32>
    %518 = tpu.transpose %517, [1, 0] : vector<2x8xf32> -> vector<8x2xf32>
    %519 = vector.shape_cast %518 : vector<8x2xf32> to vector<8x2x1xf32>
    %cst_149 = arith.constant 1.000000e+00 : f32
    %520 = vector.broadcast %cst_149 : f32 to vector<2x8xf32>
    %521 = arith.subf %520, %490 : vector<2x8xf32>
    %522 = arith.mulf %516, %521 : vector<2x8xf32>
    %523 = tpu.transpose %522, [1, 0] : vector<2x8xf32> -> vector<8x2xf32>
    %524 = vector.shape_cast %523 : vector<8x2xf32> to vector<8x2x1xf32>
    %525 = vector.broadcast %519 : vector<8x2x1xf32> to vector<8x2x32xf32>
    %526 = arith.mulf %525, %475 : vector<8x2x32xf32>
    %cst_150 = arith.constant dense<0.000000e+00> : vector<2x32xf32>
    %527 = vector.multi_reduction <add>, %526, %cst_150 [0] : vector<8x2x32xf32> to vector<2x32xf32>
    %528 = vector.broadcast %524 : vector<8x2x1xf32> to vector<8x2x32xf32>
    %529 = arith.mulf %528, %475 : vector<8x2x32xf32>
    %cst_151 = arith.constant dense<0.000000e+00> : vector<2x32xf32>
    %530 = vector.multi_reduction <add>, %529, %cst_151 [0] : vector<8x2x32xf32> to vector<2x32xf32>
    %531 = tpu.concatenate %527, %530 in 1 : vector<2x32xf32>, vector<2x32xf32> -> vector<2x64xf32>
    %cst_152 = arith.constant dense<0.000000e+00> : vector<2x32xf32>
    %532 = tpu.matmul %531, %15, %cst_152 {dimension_numbers = #tpu.dot_dimension_numbers<[1], [0], [0], [1], [0, 0, 1, 1], [], []>} : vector<2x64xf32>, vector<64x32xf32>, vector<2x32xf32> -> vector<2x32xf32>
    %cst_153 = arith.constant dense<0.000000e+00> : vector<2x192xf32>
    %533 = tpu.matmul %486, %1, %cst_153 {dimension_numbers = #tpu.dot_dimension_numbers<[1], [0], [0], [1], [0, 0, 1, 1], [], []>} : vector<2x32xf32>, vector<32x192xf32>, vector<2x192xf32> -> vector<2x192xf32>
    %534 = vector.broadcast %5 : vector<1x192xf32> to vector<2x192xf32>
    %535 = arith.addf %533, %534 : vector<2x192xf32>
    %cst_154 = arith.constant dense<0.000000e+00> : vector<2x192xf32>
    %536 = tpu.matmul %532, %3, %cst_154 {dimension_numbers = #tpu.dot_dimension_numbers<[1], [0], [0], [1], [0, 0, 1, 1], [], []>} : vector<2x32xf32>, vector<32x192xf32>, vector<2x192xf32> -> vector<2x192xf32>
    %537 = vector.broadcast %7 : vector<1x192xf32> to vector<2x192xf32>
    %538 = arith.addf %536, %537 : vector<2x192xf32>
    %539 = arith.addf %535, %538 : vector<2x192xf32>
    %540 = arith.negf %539 : vector<2x192xf32>
    %541 = math.exp %540 : vector<2x192xf32>
    %cst_155 = arith.constant 1.000000e+00 : f32
    %542 = vector.broadcast %cst_155 : f32 to vector<2x192xf32>
    %543 = arith.addf %542, %541 : vector<2x192xf32>
    %544 = arith.divf %542, %543 : vector<2x192xf32>
    %545 = vector.extract_strided_slice %544 {offsets = [0, 0], sizes = [2, 32], strides = [1, 1]} : vector<2x192xf32> to vector<2x32xf32>
    %546 = vector.extract_strided_slice %544 {offsets = [0, 32], sizes = [2, 32], strides = [1, 1]} : vector<2x192xf32> to vector<2x32xf32>
    %547 = vector.extract_strided_slice %544 {offsets = [0, 96], sizes = [2, 32], strides = [1, 1]} : vector<2x192xf32> to vector<2x32xf32>
    %548 = vector.extract_strided_slice %544 {offsets = [0, 128], sizes = [2, 32], strides = [1, 1]} : vector<2x192xf32> to vector<2x32xf32>
    %549 = vector.extract_strided_slice %535 {offsets = [0, 64], sizes = [2, 32], strides = [1, 1]} : vector<2x192xf32> to vector<2x32xf32>
    %550 = vector.extract_strided_slice %538 {offsets = [0, 64], sizes = [2, 32], strides = [1, 1]} : vector<2x192xf32> to vector<2x32xf32>
    %551 = arith.mulf %545, %550 : vector<2x32xf32>
    %552 = arith.addf %549, %551 : vector<2x32xf32>
    %553 = math.tanh %552 : vector<2x32xf32>
    %554 = vector.extract_strided_slice %538 {offsets = [0, 160], sizes = [2, 32], strides = [1, 1]} : vector<2x192xf32> to vector<2x32xf32>
    %555 = vector.extract_strided_slice %535 {offsets = [0, 160], sizes = [2, 32], strides = [1, 1]} : vector<2x192xf32> to vector<2x32xf32>
    %556 = arith.mulf %547, %555 : vector<2x32xf32>
    %557 = arith.addf %554, %556 : vector<2x32xf32>
    %558 = math.tanh %557 : vector<2x32xf32>
    %cst_156 = arith.constant 1.000000e+00 : f32
    %559 = vector.broadcast %cst_156 : f32 to vector<2x32xf32>
    %560 = arith.subf %559, %546 : vector<2x32xf32>
    %561 = arith.mulf %560, %553 : vector<2x32xf32>
    %562 = arith.mulf %546, %532 : vector<2x32xf32>
    %563 = arith.addf %561, %562 : vector<2x32xf32>
    %cst_157 = arith.constant 1.000000e+00 : f32
    %564 = vector.broadcast %cst_157 : f32 to vector<2x32xf32>
    %565 = arith.subf %564, %548 : vector<2x32xf32>
    %566 = arith.mulf %565, %558 : vector<2x32xf32>
    %567 = arith.mulf %548, %486 : vector<2x32xf32>
    %568 = arith.addf %566, %567 : vector<2x32xf32>
    %569 = arith.addf %563, %568 : vector<2x32xf32>
    %c5_i32_158 = arith.constant 5 : i32
    %570 = vector.broadcast %c5_i32_158 : i32 to vector<8x2x32xi32>
    %571 = arith.cmpi eq, %27, %570 : vector<8x2x32xi32>
    %572 = vector.shape_cast %569 : vector<2x32xf32> to vector<1x2x32xf32>
    %573 = vector.shape_cast %572 : vector<1x2x32xf32> to vector<1x2x32xf32>
    %574 = vector.broadcast %573 : vector<1x2x32xf32> to vector<8x2x32xf32>
    %575 = arith.select %571, %574, %475 : vector<8x2x32xi1>, vector<8x2x32xf32>
    %c5_i32_159 = arith.constant 5 : i32
    %576 = vector.broadcast %c5_i32_159 : i32 to vector<2x8xi32>
    %577 = arith.cmpi eq, %26, %576 : vector<2x8xi32>
    %578 = vector.broadcast %11 : vector<1x32xf32> to vector<2x32xf32>
    %579 = arith.mulf %569, %578 : vector<2x32xf32>
    %cst_160 = arith.constant dense<0.000000e+00> : vector<2xf32>
    %580 = vector.multi_reduction <add>, %579, %cst_160 [1] : vector<2x32xf32> to vector<2xf32>
    %581 = vector.shape_cast %580 : vector<2xf32> to vector<2x1xf32>
    %582 = vector.shape_cast %581 : vector<2x1xf32> to vector<2x1xf32>
    %583 = vector.broadcast %582 : vector<2x1xf32> to vector<2x8xf32>
    %584 = arith.select %577, %583, %484 : vector<2x8xi1>, vector<2x8xf32>
    %585 = vector.extract_strided_slice %25 {offsets = [6, 0, 0], sizes = [1, 2, 32], strides = [1, 1, 1]} : vector<8x2x32xf32> to vector<1x2x32xf32>
    %586 = vector.shape_cast %585 : vector<1x2x32xf32> to vector<2x32xf32>
    %c0_161 = arith.constant 0 : index
    %c6 = arith.constant 6 : index
    %c0_162 = arith.constant 0 : index
    %c0_163 = arith.constant 0 : index
    %587 = vector.load %arg4[%c0_161, %c6, %c0_162, %c0_163] : memref<1x8x2x8xf32, #tpu.memory_space<vmem>>, vector<1x1x2x8xf32>
    %588 = vector.shape_cast %587 : vector<1x1x2x8xf32> to vector<2x8xf32>
    %c6_164 = arith.constant 6 : index
    %c0_165 = arith.constant 0 : index
    %c0_166 = arith.constant 0 : index
    %589 = vector.load %arg5[%c6_164, %c0_165, %c0_166] : memref<8x2x8xf32, #tpu.memory_space<vmem>>, vector<1x2x8xf32>
    %590 = vector.shape_cast %589 : vector<1x2x8xf32> to vector<2x8xf32>
    %591 = vector.broadcast %9 : vector<1x32xf32> to vector<2x32xf32>
    %592 = arith.mulf %586, %591 : vector<2x32xf32>
    %cst_167 = arith.constant dense<0.000000e+00> : vector<2xf32>
    %593 = vector.multi_reduction <add>, %592, %cst_167 [1] : vector<2x32xf32> to vector<2xf32>
    %594 = vector.shape_cast %593 : vector<2xf32> to vector<2x1xf32>
    %595 = vector.broadcast %13 : vector<1x1xf32> to vector<2x1xf32>
    %596 = arith.addf %594, %595 : vector<2x1xf32>
    %597 = vector.broadcast %596 : vector<2x1xf32> to vector<2x8xf32>
    %598 = arith.addf %584, %597 : vector<2x8xf32>
    %cst_168 = arith.constant 1.000000e+00 : f32
    %599 = vector.broadcast %cst_168 : f32 to vector<2x8xf32>
    %600 = arith.subf %599, %588 : vector<2x8xf32>
    %cst_169 = arith.constant 1.000000e+30 : f32
    %601 = vector.broadcast %cst_169 : f32 to vector<2x8xf32>
    %602 = arith.mulf %600, %601 : vector<2x8xf32>
    %603 = arith.subf %598, %602 : vector<2x8xf32>
    %c6_i32 = arith.constant 6 : i32
    %604 = vector.broadcast %c6_i32 : i32 to vector<2x8xi32>
    %605 = arith.cmpi slt, %26, %604 : vector<2x8xi32>
    %cst_170 = arith.constant 0xFF800000 : f32
    %606 = vector.broadcast %cst_170 : f32 to vector<2x8xf32>
    %607 = arith.select %605, %603, %606 : vector<2x8xi1>, vector<2x8xf32>
    %cst_171 = arith.constant dense<0xFF800000> : vector<2xf32>
    %608 = vector.multi_reduction <maximumf>, %607, %cst_171 [1] : vector<2x8xf32> to vector<2xf32>
    %609 = vector.shape_cast %608 : vector<2xf32> to vector<2x1xf32>
    %610 = vector.broadcast %609 : vector<2x1xf32> to vector<2x8xf32>
    %611 = arith.subf %607, %610 : vector<2x8xf32>
    %612 = math.exp %611 : vector<2x8xf32>
    %cst_172 = arith.constant dense<0.000000e+00> : vector<2xf32>
    %613 = vector.multi_reduction <add>, %612, %cst_172 [1] : vector<2x8xf32> to vector<2xf32>
    %614 = vector.shape_cast %613 : vector<2xf32> to vector<2x1xf32>
    %615 = vector.broadcast %614 : vector<2x1xf32> to vector<2x8xf32>
    %616 = arith.divf %612, %615 : vector<2x8xf32>
    %617 = arith.mulf %616, %590 : vector<2x8xf32>
    %618 = tpu.transpose %617, [1, 0] : vector<2x8xf32> -> vector<8x2xf32>
    %619 = vector.shape_cast %618 : vector<8x2xf32> to vector<8x2x1xf32>
    %cst_173 = arith.constant 1.000000e+00 : f32
    %620 = vector.broadcast %cst_173 : f32 to vector<2x8xf32>
    %621 = arith.subf %620, %590 : vector<2x8xf32>
    %622 = arith.mulf %616, %621 : vector<2x8xf32>
    %623 = tpu.transpose %622, [1, 0] : vector<2x8xf32> -> vector<8x2xf32>
    %624 = vector.shape_cast %623 : vector<8x2xf32> to vector<8x2x1xf32>
    %625 = vector.broadcast %619 : vector<8x2x1xf32> to vector<8x2x32xf32>
    %626 = arith.mulf %625, %575 : vector<8x2x32xf32>
    %cst_174 = arith.constant dense<0.000000e+00> : vector<2x32xf32>
    %627 = vector.multi_reduction <add>, %626, %cst_174 [0] : vector<8x2x32xf32> to vector<2x32xf32>
    %628 = vector.broadcast %624 : vector<8x2x1xf32> to vector<8x2x32xf32>
    %629 = arith.mulf %628, %575 : vector<8x2x32xf32>
    %cst_175 = arith.constant dense<0.000000e+00> : vector<2x32xf32>
    %630 = vector.multi_reduction <add>, %629, %cst_175 [0] : vector<8x2x32xf32> to vector<2x32xf32>
    %631 = tpu.concatenate %627, %630 in 1 : vector<2x32xf32>, vector<2x32xf32> -> vector<2x64xf32>
    %cst_176 = arith.constant dense<0.000000e+00> : vector<2x32xf32>
    %632 = tpu.matmul %631, %15, %cst_176 {dimension_numbers = #tpu.dot_dimension_numbers<[1], [0], [0], [1], [0, 0, 1, 1], [], []>} : vector<2x64xf32>, vector<64x32xf32>, vector<2x32xf32> -> vector<2x32xf32>
    %cst_177 = arith.constant dense<0.000000e+00> : vector<2x192xf32>
    %633 = tpu.matmul %586, %1, %cst_177 {dimension_numbers = #tpu.dot_dimension_numbers<[1], [0], [0], [1], [0, 0, 1, 1], [], []>} : vector<2x32xf32>, vector<32x192xf32>, vector<2x192xf32> -> vector<2x192xf32>
    %634 = vector.broadcast %5 : vector<1x192xf32> to vector<2x192xf32>
    %635 = arith.addf %633, %634 : vector<2x192xf32>
    %cst_178 = arith.constant dense<0.000000e+00> : vector<2x192xf32>
    %636 = tpu.matmul %632, %3, %cst_178 {dimension_numbers = #tpu.dot_dimension_numbers<[1], [0], [0], [1], [0, 0, 1, 1], [], []>} : vector<2x32xf32>, vector<32x192xf32>, vector<2x192xf32> -> vector<2x192xf32>
    %637 = vector.broadcast %7 : vector<1x192xf32> to vector<2x192xf32>
    %638 = arith.addf %636, %637 : vector<2x192xf32>
    %639 = arith.addf %635, %638 : vector<2x192xf32>
    %640 = arith.negf %639 : vector<2x192xf32>
    %641 = math.exp %640 : vector<2x192xf32>
    %cst_179 = arith.constant 1.000000e+00 : f32
    %642 = vector.broadcast %cst_179 : f32 to vector<2x192xf32>
    %643 = arith.addf %642, %641 : vector<2x192xf32>
    %644 = arith.divf %642, %643 : vector<2x192xf32>
    %645 = vector.extract_strided_slice %644 {offsets = [0, 0], sizes = [2, 32], strides = [1, 1]} : vector<2x192xf32> to vector<2x32xf32>
    %646 = vector.extract_strided_slice %644 {offsets = [0, 32], sizes = [2, 32], strides = [1, 1]} : vector<2x192xf32> to vector<2x32xf32>
    %647 = vector.extract_strided_slice %644 {offsets = [0, 96], sizes = [2, 32], strides = [1, 1]} : vector<2x192xf32> to vector<2x32xf32>
    %648 = vector.extract_strided_slice %644 {offsets = [0, 128], sizes = [2, 32], strides = [1, 1]} : vector<2x192xf32> to vector<2x32xf32>
    %649 = vector.extract_strided_slice %635 {offsets = [0, 64], sizes = [2, 32], strides = [1, 1]} : vector<2x192xf32> to vector<2x32xf32>
    %650 = vector.extract_strided_slice %638 {offsets = [0, 64], sizes = [2, 32], strides = [1, 1]} : vector<2x192xf32> to vector<2x32xf32>
    %651 = arith.mulf %645, %650 : vector<2x32xf32>
    %652 = arith.addf %649, %651 : vector<2x32xf32>
    %653 = math.tanh %652 : vector<2x32xf32>
    %654 = vector.extract_strided_slice %638 {offsets = [0, 160], sizes = [2, 32], strides = [1, 1]} : vector<2x192xf32> to vector<2x32xf32>
    %655 = vector.extract_strided_slice %635 {offsets = [0, 160], sizes = [2, 32], strides = [1, 1]} : vector<2x192xf32> to vector<2x32xf32>
    %656 = arith.mulf %647, %655 : vector<2x32xf32>
    %657 = arith.addf %654, %656 : vector<2x32xf32>
    %658 = math.tanh %657 : vector<2x32xf32>
    %cst_180 = arith.constant 1.000000e+00 : f32
    %659 = vector.broadcast %cst_180 : f32 to vector<2x32xf32>
    %660 = arith.subf %659, %646 : vector<2x32xf32>
    %661 = arith.mulf %660, %653 : vector<2x32xf32>
    %662 = arith.mulf %646, %632 : vector<2x32xf32>
    %663 = arith.addf %661, %662 : vector<2x32xf32>
    %cst_181 = arith.constant 1.000000e+00 : f32
    %664 = vector.broadcast %cst_181 : f32 to vector<2x32xf32>
    %665 = arith.subf %664, %648 : vector<2x32xf32>
    %666 = arith.mulf %665, %658 : vector<2x32xf32>
    %667 = arith.mulf %648, %586 : vector<2x32xf32>
    %668 = arith.addf %666, %667 : vector<2x32xf32>
    %669 = arith.addf %663, %668 : vector<2x32xf32>
    %c6_i32_182 = arith.constant 6 : i32
    %670 = vector.broadcast %c6_i32_182 : i32 to vector<8x2x32xi32>
    %671 = arith.cmpi eq, %27, %670 : vector<8x2x32xi32>
    %672 = vector.shape_cast %669 : vector<2x32xf32> to vector<1x2x32xf32>
    %673 = vector.shape_cast %672 : vector<1x2x32xf32> to vector<1x2x32xf32>
    %674 = vector.broadcast %673 : vector<1x2x32xf32> to vector<8x2x32xf32>
    %675 = arith.select %671, %674, %575 : vector<8x2x32xi1>, vector<8x2x32xf32>
    %c6_i32_183 = arith.constant 6 : i32
    %676 = vector.broadcast %c6_i32_183 : i32 to vector<2x8xi32>
    %677 = arith.cmpi eq, %26, %676 : vector<2x8xi32>
    %678 = vector.broadcast %11 : vector<1x32xf32> to vector<2x32xf32>
    %679 = arith.mulf %669, %678 : vector<2x32xf32>
    %cst_184 = arith.constant dense<0.000000e+00> : vector<2xf32>
    %680 = vector.multi_reduction <add>, %679, %cst_184 [1] : vector<2x32xf32> to vector<2xf32>
    %681 = vector.shape_cast %680 : vector<2xf32> to vector<2x1xf32>
    %682 = vector.shape_cast %681 : vector<2x1xf32> to vector<2x1xf32>
    %683 = vector.broadcast %682 : vector<2x1xf32> to vector<2x8xf32>
    %684 = arith.select %677, %683, %584 : vector<2x8xi1>, vector<2x8xf32>
    %685 = vector.extract_strided_slice %25 {offsets = [7, 0, 0], sizes = [1, 2, 32], strides = [1, 1, 1]} : vector<8x2x32xf32> to vector<1x2x32xf32>
    %686 = vector.shape_cast %685 : vector<1x2x32xf32> to vector<2x32xf32>
    %c0_185 = arith.constant 0 : index
    %c7 = arith.constant 7 : index
    %c0_186 = arith.constant 0 : index
    %c0_187 = arith.constant 0 : index
    %687 = vector.load %arg4[%c0_185, %c7, %c0_186, %c0_187] : memref<1x8x2x8xf32, #tpu.memory_space<vmem>>, vector<1x1x2x8xf32>
    %688 = vector.shape_cast %687 : vector<1x1x2x8xf32> to vector<2x8xf32>
    %c7_188 = arith.constant 7 : index
    %c0_189 = arith.constant 0 : index
    %c0_190 = arith.constant 0 : index
    %689 = vector.load %arg5[%c7_188, %c0_189, %c0_190] : memref<8x2x8xf32, #tpu.memory_space<vmem>>, vector<1x2x8xf32>
    %690 = vector.shape_cast %689 : vector<1x2x8xf32> to vector<2x8xf32>
    %691 = vector.broadcast %9 : vector<1x32xf32> to vector<2x32xf32>
    %692 = arith.mulf %686, %691 : vector<2x32xf32>
    %cst_191 = arith.constant dense<0.000000e+00> : vector<2xf32>
    %693 = vector.multi_reduction <add>, %692, %cst_191 [1] : vector<2x32xf32> to vector<2xf32>
    %694 = vector.shape_cast %693 : vector<2xf32> to vector<2x1xf32>
    %695 = vector.broadcast %13 : vector<1x1xf32> to vector<2x1xf32>
    %696 = arith.addf %694, %695 : vector<2x1xf32>
    %697 = vector.broadcast %696 : vector<2x1xf32> to vector<2x8xf32>
    %698 = arith.addf %684, %697 : vector<2x8xf32>
    %cst_192 = arith.constant 1.000000e+00 : f32
    %699 = vector.broadcast %cst_192 : f32 to vector<2x8xf32>
    %700 = arith.subf %699, %688 : vector<2x8xf32>
    %cst_193 = arith.constant 1.000000e+30 : f32
    %701 = vector.broadcast %cst_193 : f32 to vector<2x8xf32>
    %702 = arith.mulf %700, %701 : vector<2x8xf32>
    %703 = arith.subf %698, %702 : vector<2x8xf32>
    %c7_i32 = arith.constant 7 : i32
    %704 = vector.broadcast %c7_i32 : i32 to vector<2x8xi32>
    %705 = arith.cmpi slt, %26, %704 : vector<2x8xi32>
    %cst_194 = arith.constant 0xFF800000 : f32
    %706 = vector.broadcast %cst_194 : f32 to vector<2x8xf32>
    %707 = arith.select %705, %703, %706 : vector<2x8xi1>, vector<2x8xf32>
    %cst_195 = arith.constant dense<0xFF800000> : vector<2xf32>
    %708 = vector.multi_reduction <maximumf>, %707, %cst_195 [1] : vector<2x8xf32> to vector<2xf32>
    %709 = vector.shape_cast %708 : vector<2xf32> to vector<2x1xf32>
    %710 = vector.broadcast %709 : vector<2x1xf32> to vector<2x8xf32>
    %711 = arith.subf %707, %710 : vector<2x8xf32>
    %712 = math.exp %711 : vector<2x8xf32>
    %cst_196 = arith.constant dense<0.000000e+00> : vector<2xf32>
    %713 = vector.multi_reduction <add>, %712, %cst_196 [1] : vector<2x8xf32> to vector<2xf32>
    %714 = vector.shape_cast %713 : vector<2xf32> to vector<2x1xf32>
    %715 = vector.broadcast %714 : vector<2x1xf32> to vector<2x8xf32>
    %716 = arith.divf %712, %715 : vector<2x8xf32>
    %717 = arith.mulf %716, %690 : vector<2x8xf32>
    %718 = tpu.transpose %717, [1, 0] : vector<2x8xf32> -> vector<8x2xf32>
    %719 = vector.shape_cast %718 : vector<8x2xf32> to vector<8x2x1xf32>
    %cst_197 = arith.constant 1.000000e+00 : f32
    %720 = vector.broadcast %cst_197 : f32 to vector<2x8xf32>
    %721 = arith.subf %720, %690 : vector<2x8xf32>
    %722 = arith.mulf %716, %721 : vector<2x8xf32>
    %723 = tpu.transpose %722, [1, 0] : vector<2x8xf32> -> vector<8x2xf32>
    %724 = vector.shape_cast %723 : vector<8x2xf32> to vector<8x2x1xf32>
    %725 = vector.broadcast %719 : vector<8x2x1xf32> to vector<8x2x32xf32>
    %726 = arith.mulf %725, %675 : vector<8x2x32xf32>
    %cst_198 = arith.constant dense<0.000000e+00> : vector<2x32xf32>
    %727 = vector.multi_reduction <add>, %726, %cst_198 [0] : vector<8x2x32xf32> to vector<2x32xf32>
    %728 = vector.broadcast %724 : vector<8x2x1xf32> to vector<8x2x32xf32>
    %729 = arith.mulf %728, %675 : vector<8x2x32xf32>
    %cst_199 = arith.constant dense<0.000000e+00> : vector<2x32xf32>
    %730 = vector.multi_reduction <add>, %729, %cst_199 [0] : vector<8x2x32xf32> to vector<2x32xf32>
    %731 = tpu.concatenate %727, %730 in 1 : vector<2x32xf32>, vector<2x32xf32> -> vector<2x64xf32>
    %cst_200 = arith.constant dense<0.000000e+00> : vector<2x32xf32>
    %732 = tpu.matmul %731, %15, %cst_200 {dimension_numbers = #tpu.dot_dimension_numbers<[1], [0], [0], [1], [0, 0, 1, 1], [], []>} : vector<2x64xf32>, vector<64x32xf32>, vector<2x32xf32> -> vector<2x32xf32>
    %cst_201 = arith.constant dense<0.000000e+00> : vector<2x192xf32>
    %733 = tpu.matmul %686, %1, %cst_201 {dimension_numbers = #tpu.dot_dimension_numbers<[1], [0], [0], [1], [0, 0, 1, 1], [], []>} : vector<2x32xf32>, vector<32x192xf32>, vector<2x192xf32> -> vector<2x192xf32>
    %734 = vector.broadcast %5 : vector<1x192xf32> to vector<2x192xf32>
    %735 = arith.addf %733, %734 : vector<2x192xf32>
    %cst_202 = arith.constant dense<0.000000e+00> : vector<2x192xf32>
    %736 = tpu.matmul %732, %3, %cst_202 {dimension_numbers = #tpu.dot_dimension_numbers<[1], [0], [0], [1], [0, 0, 1, 1], [], []>} : vector<2x32xf32>, vector<32x192xf32>, vector<2x192xf32> -> vector<2x192xf32>
    %737 = vector.broadcast %7 : vector<1x192xf32> to vector<2x192xf32>
    %738 = arith.addf %736, %737 : vector<2x192xf32>
    %739 = arith.addf %735, %738 : vector<2x192xf32>
    %740 = arith.negf %739 : vector<2x192xf32>
    %741 = math.exp %740 : vector<2x192xf32>
    %cst_203 = arith.constant 1.000000e+00 : f32
    %742 = vector.broadcast %cst_203 : f32 to vector<2x192xf32>
    %743 = arith.addf %742, %741 : vector<2x192xf32>
    %744 = arith.divf %742, %743 : vector<2x192xf32>
    %745 = vector.extract_strided_slice %744 {offsets = [0, 0], sizes = [2, 32], strides = [1, 1]} : vector<2x192xf32> to vector<2x32xf32>
    %746 = vector.extract_strided_slice %744 {offsets = [0, 32], sizes = [2, 32], strides = [1, 1]} : vector<2x192xf32> to vector<2x32xf32>
    %747 = vector.extract_strided_slice %744 {offsets = [0, 96], sizes = [2, 32], strides = [1, 1]} : vector<2x192xf32> to vector<2x32xf32>
    %748 = vector.extract_strided_slice %744 {offsets = [0, 128], sizes = [2, 32], strides = [1, 1]} : vector<2x192xf32> to vector<2x32xf32>
    %749 = vector.extract_strided_slice %735 {offsets = [0, 64], sizes = [2, 32], strides = [1, 1]} : vector<2x192xf32> to vector<2x32xf32>
    %750 = vector.extract_strided_slice %738 {offsets = [0, 64], sizes = [2, 32], strides = [1, 1]} : vector<2x192xf32> to vector<2x32xf32>
    %751 = arith.mulf %745, %750 : vector<2x32xf32>
    %752 = arith.addf %749, %751 : vector<2x32xf32>
    %753 = math.tanh %752 : vector<2x32xf32>
    %754 = vector.extract_strided_slice %738 {offsets = [0, 160], sizes = [2, 32], strides = [1, 1]} : vector<2x192xf32> to vector<2x32xf32>
    %755 = vector.extract_strided_slice %735 {offsets = [0, 160], sizes = [2, 32], strides = [1, 1]} : vector<2x192xf32> to vector<2x32xf32>
    %756 = arith.mulf %747, %755 : vector<2x32xf32>
    %757 = arith.addf %754, %756 : vector<2x32xf32>
    %758 = math.tanh %757 : vector<2x32xf32>
    %cst_204 = arith.constant 1.000000e+00 : f32
    %759 = vector.broadcast %cst_204 : f32 to vector<2x32xf32>
    %760 = arith.subf %759, %746 : vector<2x32xf32>
    %761 = arith.mulf %760, %753 : vector<2x32xf32>
    %762 = arith.mulf %746, %732 : vector<2x32xf32>
    %763 = arith.addf %761, %762 : vector<2x32xf32>
    %cst_205 = arith.constant 1.000000e+00 : f32
    %764 = vector.broadcast %cst_205 : f32 to vector<2x32xf32>
    %765 = arith.subf %764, %748 : vector<2x32xf32>
    %766 = arith.mulf %765, %758 : vector<2x32xf32>
    %767 = arith.mulf %748, %686 : vector<2x32xf32>
    %768 = arith.addf %766, %767 : vector<2x32xf32>
    %769 = arith.addf %763, %768 : vector<2x32xf32>
    %c7_i32_206 = arith.constant 7 : i32
    %770 = vector.broadcast %c7_i32_206 : i32 to vector<8x2x32xi32>
    %771 = arith.cmpi eq, %27, %770 : vector<8x2x32xi32>
    %772 = vector.shape_cast %769 : vector<2x32xf32> to vector<1x2x32xf32>
    %773 = vector.shape_cast %772 : vector<1x2x32xf32> to vector<1x2x32xf32>
    %774 = vector.broadcast %773 : vector<1x2x32xf32> to vector<8x2x32xf32>
    %775 = arith.select %771, %774, %675 : vector<8x2x32xi1>, vector<8x2x32xf32>
    %c0_207 = arith.constant 0 : index
    %c0_208 = arith.constant 0 : index
    %c0_209 = arith.constant 0 : index
    %c0_210 = arith.constant 0 : index
    %776 = vector.load %arg14[%c0_207, %c0_208, %c0_209, %c0_210] : memref<1x8x2x32xf32, #tpu.memory_space<vmem>>, vector<1x8x2x32xf32>
    %777 = vector.shape_cast %776 : vector<1x8x2x32xf32> to vector<8x2x32xf32>
    %778 = vector.shape_cast %775 : vector<8x2x32xf32> to vector<1x8x2x32xf32>
    tpu.vector_store %arg14[%c0_207, %c0_208, %c0_209, %c0_210], %778 {strides = array<i32>} : memref<1x8x2x32xf32, #tpu.memory_space<vmem>>, vector<1x8x2x32xf32>,
    return
  }
  func.func @transform_0(%arg0: i32) -> (i32, i32, i32) {
    %c0_i32 = arith.constant 0 : i32
    %c0_i32_0 = arith.constant 0 : i32
    %c0_i32_1 = arith.constant 0 : i32
    %c0_i32_2 = arith.constant 0 : i32
    return %c0_i32, %c0_i32_0, %c0_i32_1 : i32, i32, i32
  }
  func.func @transform_1(%arg0: i32) -> (i32, i32) {
    %c0_i32 = arith.constant 0 : i32
    %c0_i32_0 = arith.constant 0 : i32
    %c0_i32_1 = arith.constant 0 : i32
    return %c0_i32, %c0_i32_0 : i32, i32
  }
  func.func @transform_2(%arg0: i32) -> (i32, i32) {
    %c0_i32 = arith.constant 0 : i32
    %c0_i32_0 = arith.constant 0 : i32
    %c0_i32_1 = arith.constant 0 : i32
    return %c0_i32, %c0_i32_0 : i32, i32
  }
  func.func @transform_3(%arg0: i32) -> (i32, i32, i32, i32) {
    %c0_i32 = arith.constant 0 : i32
    %c0_i32_0 = arith.constant 0 : i32
    %c0_i32_1 = arith.constant 0 : i32
    %c0_i32_2 = arith.constant 0 : i32
    return %arg0, %c0_i32, %c0_i32_0, %c0_i32_1 : i32, i32, i32, i32
  }
  func.func @transform_4(%arg0: i32) -> (i32, i32, i32) {
    %c0_i32 = arith.constant 0 : i32
    %c0_i32_0 = arith.constant 0 : i32
    %c0_i32_1 = arith.constant 0 : i32
    %c0_i32_2 = arith.constant 0 : i32
    return %c0_i32, %c0_i32_0, %c0_i32_1 : i32, i32, i32
  }
  func.func @transform_5(%arg0: i32) -> (i32, i32, i32) {
    %c0_i32 = arith.constant 0 : i32
    %c0_i32_0 = arith.constant 0 : i32
    %c0_i32_1 = arith.constant 0 : i32
    return %arg0, %c0_i32, %c0_i32_0 : i32, i32, i32
  }
  func.func @transform_6(%arg0: i32) -> (i32, i32, i32) {
    %c0_i32 = arith.constant 0 : i32
    %c0_i32_0 = arith.constant 0 : i32
    %c0_i32_1 = arith.constant 0 : i32
    return %arg0, %c0_i32, %c0_i32_0 : i32, i32, i32
  }
  func.func @transform_7(%arg0: i32) -> (i32, i32, i32) {
    %c0_i32 = arith.constant 0 : i32
    %c0_i32_0 = arith.constant 0 : i32
    %c0_i32_1 = arith.constant 0 : i32
    return %arg0, %c0_i32, %c0_i32_0 : i32, i32, i32
  }
  func.func @transform_8(%arg0: i32) -> (i32, i32, i32) {
    %c0_i32 = arith.constant 0 : i32
    %c0_i32_0 = arith.constant 0 : i32
    %c0_i32_1 = arith.constant 0 : i32
    return %arg0, %c0_i32, %c0_i32_0 : i32, i32, i32
  }
  func.func @transform_9(%arg0: i32) -> (i32, i32, i32) {
    %c0_i32 = arith.constant 0 : i32
    %c0_i32_0 = arith.constant 0 : i32
    %c0_i32_1 = arith.constant 0 : i32
    return %arg0, %c0_i32, %c0_i32_0 : i32, i32, i32
  }
  func.func @transform_10(%arg0: i32) -> (i32, i32, i32) {
    %c0_i32 = arith.constant 0 : i32
    %c0_i32_0 = arith.constant 0 : i32
    %c0_i32_1 = arith.constant 0 : i32
    return %arg0, %c0_i32, %c0_i32_0 : i32, i32, i32
  }
  func.func @transform_11(%arg0: i32) -> (i32, i32, i32) {
    %c0_i32 = arith.constant 0 : i32
    %c0_i32_0 = arith.constant 0 : i32
    %c0_i32_1 = arith.constant 0 : i32
    return %arg0, %c0_i32, %c0_i32_0 : i32, i32, i32
  }
  func.func @transform_12(%arg0: i32) -> (i32, i32, i32) {
    %c0_i32 = arith.constant 0 : i32
    %c0_i32_0 = arith.constant 0 : i32
    %c0_i32_1 = arith.constant 0 : i32
    return %arg0, %c0_i32, %c0_i32_0 : i32, i32, i32
  }
  func.func @transform_13(%arg0: i32) -> (i32, i32, i32, i32) {
    %c0_i32 = arith.constant 0 : i32
    %c0_i32_0 = arith.constant 0 : i32
    %c0_i32_1 = arith.constant 0 : i32
    %c0_i32_2 = arith.constant 0 : i32
    return %arg0, %c0_i32, %c0_i32_0, %c0_i32_1 : i32, i32, i32, i32
  }
}

module attributes {stable_mosaic.version = 11 : i64} {
  func.func @_head_kernel(%arg0: memref<16x48xf32, #tpu.memory_space<vmem>>, %arg1: memref<16x32xf32, #tpu.memory_space<vmem>>, %arg2: memref<16x32xf32, #tpu.memory_space<vmem>>, %arg3: memref<16x32xf32, #tpu.memory_space<vmem>>, %arg4: memref<16x32xf32, #tpu.memory_space<vmem>>, %arg5: memref<48x32xf32, #tpu.memory_space<vmem>>, %arg6: memref<1x32xf32, #tpu.memory_space<vmem>>, %arg7: memref<32x32xf32, #tpu.memory_space<vmem>>, %arg8: memref<32x32xf32, #tpu.memory_space<vmem>>, %arg9: memref<32x32xf32, #tpu.memory_space<vmem>>, %arg10: memref<32x32xf32, #tpu.memory_space<vmem>>, %arg11: memref<32x32xf32, #tpu.memory_space<vmem>>, %arg12: memref<48x32xf32, #tpu.memory_space<vmem>>, %arg13: memref<1x32xf32, #tpu.memory_space<vmem>>, %arg14: memref<32x32xf32, #tpu.memory_space<vmem>>, %arg15: memref<1x32xf32, #tpu.memory_space<vmem>>, %arg16: memref<32x6xf32, #tpu.memory_space<vmem>>, %arg17: memref<1x6xf32, #tpu.memory_space<vmem>>, %arg18: memref<16x6xf32, #tpu.memory_space<vmem>>) attributes {dimension_semantics = [], scalar_prefetch = 0 : i64, scratch_operands = 0 : i64, tpu.core_type = #tpu.core_type<tc>} {
    %c0 = arith.constant 0 : index
    %c0_0 = arith.constant 0 : index
    %0 = vector.load %arg0[%c0, %c0_0] : memref<16x48xf32, #tpu.memory_space<vmem>>, vector<16x48xf32>
    %c0_1 = arith.constant 0 : index
    %c0_2 = arith.constant 0 : index
    %1 = vector.load %arg5[%c0_1, %c0_2] : memref<48x32xf32, #tpu.memory_space<vmem>>, vector<48x32xf32>
    %cst = arith.constant dense<0.000000e+00> : vector<16x32xf32>
    %2 = tpu.matmul %0, %1, %cst {dimension_numbers = #tpu.dot_dimension_numbers<[1], [0], [0], [1], [0, 0, 1, 1], [], []>} : vector<16x48xf32>, vector<48x32xf32>, vector<16x32xf32> -> vector<16x32xf32>
    %c0_3 = arith.constant 0 : index
    %c0_4 = arith.constant 0 : index
    %3 = vector.load %arg6[%c0_3, %c0_4] : memref<1x32xf32, #tpu.memory_space<vmem>>, vector<1x32xf32>
    %4 = vector.broadcast %3 : vector<1x32xf32> to vector<16x32xf32>
    %5 = arith.addf %2, %4 : vector<16x32xf32>
    %cst_5 = arith.constant 0.000000e+00 : f32
    %6 = vector.broadcast %cst_5 : f32 to vector<16x32xf32>
    %7 = arith.maximumf %5, %6 : vector<16x32xf32>
    %c0_6 = arith.constant 0 : index
    %c0_7 = arith.constant 0 : index
    %8 = vector.load %arg7[%c0_6, %c0_7] : memref<32x32xf32, #tpu.memory_space<vmem>>, vector<32x32xf32>
    %cst_8 = arith.constant dense<0.000000e+00> : vector<16x32xf32>
    %9 = tpu.matmul %7, %8, %cst_8 {dimension_numbers = #tpu.dot_dimension_numbers<[1], [0], [0], [1], [0, 0, 1, 1], [], []>} : vector<16x32xf32>, vector<32x32xf32>, vector<16x32xf32> -> vector<16x32xf32>
    %c0_9 = arith.constant 0 : index
    %c0_10 = arith.constant 0 : index
    %10 = vector.load %arg1[%c0_9, %c0_10] : memref<16x32xf32, #tpu.memory_space<vmem>>, vector<16x32xf32>
    %c0_11 = arith.constant 0 : index
    %c0_12 = arith.constant 0 : index
    %11 = vector.load %arg8[%c0_11, %c0_12] : memref<32x32xf32, #tpu.memory_space<vmem>>, vector<32x32xf32>
    %cst_13 = arith.constant dense<0.000000e+00> : vector<16x32xf32>
    %12 = tpu.matmul %10, %11, %cst_13 {dimension_numbers = #tpu.dot_dimension_numbers<[1], [0], [0], [1], [0, 0, 1, 1], [], []>} : vector<16x32xf32>, vector<32x32xf32>, vector<16x32xf32> -> vector<16x32xf32>
    %13 = arith.addf %9, %12 : vector<16x32xf32>
    %c0_14 = arith.constant 0 : index
    %c0_15 = arith.constant 0 : index
    %14 = vector.load %arg2[%c0_14, %c0_15] : memref<16x32xf32, #tpu.memory_space<vmem>>, vector<16x32xf32>
    %c0_16 = arith.constant 0 : index
    %c0_17 = arith.constant 0 : index
    %15 = vector.load %arg9[%c0_16, %c0_17] : memref<32x32xf32, #tpu.memory_space<vmem>>, vector<32x32xf32>
    %cst_18 = arith.constant dense<0.000000e+00> : vector<16x32xf32>
    %16 = tpu.matmul %14, %15, %cst_18 {dimension_numbers = #tpu.dot_dimension_numbers<[1], [0], [0], [1], [0, 0, 1, 1], [], []>} : vector<16x32xf32>, vector<32x32xf32>, vector<16x32xf32> -> vector<16x32xf32>
    %17 = arith.addf %13, %16 : vector<16x32xf32>
    %c0_19 = arith.constant 0 : index
    %c0_20 = arith.constant 0 : index
    %18 = vector.load %arg3[%c0_19, %c0_20] : memref<16x32xf32, #tpu.memory_space<vmem>>, vector<16x32xf32>
    %c0_21 = arith.constant 0 : index
    %c0_22 = arith.constant 0 : index
    %19 = vector.load %arg10[%c0_21, %c0_22] : memref<32x32xf32, #tpu.memory_space<vmem>>, vector<32x32xf32>
    %cst_23 = arith.constant dense<0.000000e+00> : vector<16x32xf32>
    %20 = tpu.matmul %18, %19, %cst_23 {dimension_numbers = #tpu.dot_dimension_numbers<[1], [0], [0], [1], [0, 0, 1, 1], [], []>} : vector<16x32xf32>, vector<32x32xf32>, vector<16x32xf32> -> vector<16x32xf32>
    %21 = arith.addf %17, %20 : vector<16x32xf32>
    %c0_24 = arith.constant 0 : index
    %c0_25 = arith.constant 0 : index
    %22 = vector.load %arg4[%c0_24, %c0_25] : memref<16x32xf32, #tpu.memory_space<vmem>>, vector<16x32xf32>
    %c0_26 = arith.constant 0 : index
    %c0_27 = arith.constant 0 : index
    %23 = vector.load %arg11[%c0_26, %c0_27] : memref<32x32xf32, #tpu.memory_space<vmem>>, vector<32x32xf32>
    %cst_28 = arith.constant dense<0.000000e+00> : vector<16x32xf32>
    %24 = tpu.matmul %22, %23, %cst_28 {dimension_numbers = #tpu.dot_dimension_numbers<[1], [0], [0], [1], [0, 0, 1, 1], [], []>} : vector<16x32xf32>, vector<32x32xf32>, vector<16x32xf32> -> vector<16x32xf32>
    %25 = arith.addf %21, %24 : vector<16x32xf32>
    %c0_29 = arith.constant 0 : index
    %c0_30 = arith.constant 0 : index
    %26 = vector.load %arg12[%c0_29, %c0_30] : memref<48x32xf32, #tpu.memory_space<vmem>>, vector<48x32xf32>
    %cst_31 = arith.constant dense<0.000000e+00> : vector<16x32xf32>
    %27 = tpu.matmul %0, %26, %cst_31 {dimension_numbers = #tpu.dot_dimension_numbers<[1], [0], [0], [1], [0, 0, 1, 1], [], []>} : vector<16x48xf32>, vector<48x32xf32>, vector<16x32xf32> -> vector<16x32xf32>
    %28 = arith.addf %25, %27 : vector<16x32xf32>
    %c0_32 = arith.constant 0 : index
    %c0_33 = arith.constant 0 : index
    %29 = vector.load %arg13[%c0_32, %c0_33] : memref<1x32xf32, #tpu.memory_space<vmem>>, vector<1x32xf32>
    %30 = vector.broadcast %29 : vector<1x32xf32> to vector<16x32xf32>
    %31 = arith.addf %28, %30 : vector<16x32xf32>
    %cst_34 = arith.constant 0.000000e+00 : f32
    %32 = vector.broadcast %cst_34 : f32 to vector<16x32xf32>
    %33 = arith.maximumf %31, %32 : vector<16x32xf32>
    %c0_35 = arith.constant 0 : index
    %c0_36 = arith.constant 0 : index
    %34 = vector.load %arg14[%c0_35, %c0_36] : memref<32x32xf32, #tpu.memory_space<vmem>>, vector<32x32xf32>
    %cst_37 = arith.constant dense<0.000000e+00> : vector<16x32xf32>
    %35 = tpu.matmul %33, %34, %cst_37 {dimension_numbers = #tpu.dot_dimension_numbers<[1], [0], [0], [1], [0, 0, 1, 1], [], []>} : vector<16x32xf32>, vector<32x32xf32>, vector<16x32xf32> -> vector<16x32xf32>
    %c0_38 = arith.constant 0 : index
    %c0_39 = arith.constant 0 : index
    %36 = vector.load %arg15[%c0_38, %c0_39] : memref<1x32xf32, #tpu.memory_space<vmem>>, vector<1x32xf32>
    %37 = vector.broadcast %36 : vector<1x32xf32> to vector<16x32xf32>
    %38 = arith.addf %35, %37 : vector<16x32xf32>
    %cst_40 = arith.constant 0.000000e+00 : f32
    %39 = vector.broadcast %cst_40 : f32 to vector<16x32xf32>
    %40 = arith.maximumf %38, %39 : vector<16x32xf32>
    %c0_41 = arith.constant 0 : index
    %c0_42 = arith.constant 0 : index
    %41 = vector.load %arg16[%c0_41, %c0_42] : memref<32x6xf32, #tpu.memory_space<vmem>>, vector<32x6xf32>
    %cst_43 = arith.constant dense<0.000000e+00> : vector<16x6xf32>
    %42 = tpu.matmul %40, %41, %cst_43 {dimension_numbers = #tpu.dot_dimension_numbers<[1], [0], [0], [1], [0, 0, 1, 1], [], []>} : vector<16x32xf32>, vector<32x6xf32>, vector<16x6xf32> -> vector<16x6xf32>
    %c0_44 = arith.constant 0 : index
    %c0_45 = arith.constant 0 : index
    %43 = vector.load %arg17[%c0_44, %c0_45] : memref<1x6xf32, #tpu.memory_space<vmem>>, vector<1x6xf32>
    %44 = vector.broadcast %43 : vector<1x6xf32> to vector<16x6xf32>
    %45 = arith.addf %42, %44 : vector<16x6xf32>
    %c0_46 = arith.constant 0 : index
    %c0_47 = arith.constant 0 : index
    %46 = vector.load %arg18[%c0_46, %c0_47] : memref<16x6xf32, #tpu.memory_space<vmem>>, vector<16x6xf32>
    tpu.vector_store %arg18[%c0_46, %c0_47], %45 {strides = array<i32>} : memref<16x6xf32, #tpu.memory_space<vmem>>, vector<16x6xf32>,
    return
  }
}

module attributes {stable_mosaic.version = 11 : i64} {
  func.func @_dag_pair_kernel(%arg0: i32, %arg1: memref<1x8x2x32xf32, #tpu.memory_space<vmem>>, %arg2: memref<1x8x2x8xf32, #tpu.memory_space<vmem>>, %arg3: memref<8x2x8xf32, #tpu.memory_space<vmem>>, %arg4: memref<1x32x192xf32, #tpu.memory_space<vmem>>, %arg5: memref<1x32x192xf32, #tpu.memory_space<vmem>>, %arg6: memref<1x1x192xf32, #tpu.memory_space<vmem>>, %arg7: memref<1x1x192xf32, #tpu.memory_space<vmem>>, %arg8: memref<1x1x32xf32, #tpu.memory_space<vmem>>, %arg9: memref<1x1x32xf32, #tpu.memory_space<vmem>>, %arg10: memref<1x1x1xf32, #tpu.memory_space<vmem>>, %arg11: memref<1x64x32xf32, #tpu.memory_space<vmem>>, %arg12: memref<1x8x2x32xf32, #tpu.memory_space<vmem>>) attributes {dimension_semantics = [#tpu.dimension_semantics<parallel>], iteration_bounds = array<i64: 2>, scalar_prefetch = 0 : i64, scratch_operands = 0 : i64, tpu.core_type = #tpu.core_type<tc>, window_params = [{transform_indices = @transform_0, window_bounds = array<i64: 1, 8, 2, 32>}, {transform_indices = @transform_1, window_bounds = array<i64: 1, 8, 2, 8>}, {pipeline_mode = #tpu.pipeline_mode<synchronous>, transform_indices = @transform_2, window_bounds = array<i64: 8, 2, 8>}, {transform_indices = @transform_3, window_bounds = array<i64: 1, 32, 192>}, {transform_indices = @transform_4, window_bounds = array<i64: 1, 32, 192>}, {transform_indices = @transform_5, window_bounds = array<i64: 1, 1, 192>}, {transform_indices = @transform_6, window_bounds = array<i64: 1, 1, 192>}, {transform_indices = @transform_7, window_bounds = array<i64: 1, 1, 32>}, {transform_indices = @transform_8, window_bounds = array<i64: 1, 1, 32>}, {transform_indices = @transform_9, window_bounds = array<i64: 1, 1, 1>}, {transform_indices = @transform_10, window_bounds = array<i64: 1, 64, 32>}, {transform_indices = @transform_11, window_bounds = array<i64: 1, 8, 2, 32>}]} {
    %c0 = arith.constant 0 : index
    %c0_0 = arith.constant 0 : index
    %c0_1 = arith.constant 0 : index
    %0 = vector.load %arg4[%c0, %c0_0, %c0_1] : memref<1x32x192xf32, #tpu.memory_space<vmem>>, vector<1x32x192xf32>
    %1 = vector.shape_cast %0 : vector<1x32x192xf32> to vector<32x192xf32>
    %c0_2 = arith.constant 0 : index
    %c0_3 = arith.constant 0 : index
    %c0_4 = arith.constant 0 : index
    %2 = vector.load %arg5[%c0_2, %c0_3, %c0_4] : memref<1x32x192xf32, #tpu.memory_space<vmem>>, vector<1x32x192xf32>
    %3 = vector.shape_cast %2 : vector<1x32x192xf32> to vector<32x192xf32>
    %c0_5 = arith.constant 0 : index
    %c0_6 = arith.constant 0 : index
    %c0_7 = arith.constant 0 : index
    %4 = vector.load %arg6[%c0_5, %c0_6, %c0_7] : memref<1x1x192xf32, #tpu.memory_space<vmem>>, vector<1x1x192xf32>
    %5 = vector.shape_cast %4 : vector<1x1x192xf32> to vector<1x192xf32>
    %c0_8 = arith.constant 0 : index
    %c0_9 = arith.constant 0 : index
    %c0_10 = arith.constant 0 : index
    %6 = vector.load %arg7[%c0_8, %c0_9, %c0_10] : memref<1x1x192xf32, #tpu.memory_space<vmem>>, vector<1x1x192xf32>
    %7 = vector.shape_cast %6 : vector<1x1x192xf32> to vector<1x192xf32>
    %c0_11 = arith.constant 0 : index
    %c0_12 = arith.constant 0 : index
    %c0_13 = arith.constant 0 : index
    %8 = vector.load %arg8[%c0_11, %c0_12, %c0_13] : memref<1x1x32xf32, #tpu.memory_space<vmem>>, vector<1x1x32xf32>
    %9 = vector.shape_cast %8 : vector<1x1x32xf32> to vector<1x32xf32>
    %c0_14 = arith.constant 0 : index
    %c0_15 = arith.constant 0 : index
    %c0_16 = arith.constant 0 : index
    %10 = vector.load %arg9[%c0_14, %c0_15, %c0_16] : memref<1x1x32xf32, #tpu.memory_space<vmem>>, vector<1x1x32xf32>
    %11 = vector.shape_cast %10 : vector<1x1x32xf32> to vector<1x32xf32>
    %c0_17 = arith.constant 0 : index
    %c0_18 = arith.constant 0 : index
    %c0_19 = arith.constant 0 : index
    %12 = vector.load %arg10[%c0_17, %c0_18, %c0_19] : memref<1x1x1xf32, #tpu.memory_space<vmem>>, vector<1x1x1xf32>
    %13 = vector.shape_cast %12 : vector<1x1x1xf32> to vector<1x1xf32>
    %c0_20 = arith.constant 0 : index
    %c0_21 = arith.constant 0 : index
    %c0_22 = arith.constant 0 : index
    %14 = vector.load %arg11[%c0_20, %c0_21, %c0_22] : memref<1x64x32xf32, #tpu.memory_space<vmem>>, vector<1x64x32xf32>
    %15 = vector.shape_cast %14 : vector<1x64x32xf32> to vector<64x32xf32>
    %c0_23 = arith.constant 0 : index
    %c0_24 = arith.constant 0 : index
    %c0_25 = arith.constant 0 : index
    %c0_26 = arith.constant 0 : index
    %16 = vector.load %arg1[%c0_23, %c0_24, %c0_25, %c0_26] : memref<1x8x2x32xf32, #tpu.memory_space<vmem>>, vector<1x8x2x32xf32>
    %17 = vector.shape_cast %16 : vector<1x8x2x32xf32> to vector<8x2x32xf32>
    %18 = tpu.iota {dimensions = array<i32: 1>} : vector<2x8xi32>
    %19 = tpu.iota {dimensions = array<i32: 0>} : vector<8x2x32xi32>
    %20 = vector.extract_strided_slice %17 {offsets = [0, 0, 0], sizes = [1, 2, 32], strides = [1, 1, 1]} : vector<8x2x32xf32> to vector<1x2x32xf32>
    %21 = vector.shape_cast %20 : vector<1x2x32xf32> to vector<2x32xf32>
    %cst = arith.constant 0.000000e+00 : f32
    %22 = vector.broadcast %cst : f32 to vector<2x32xf32>
    %cst_27 = arith.constant dense<0.000000e+00> : vector<2x192xf32>
    %23 = tpu.matmul %21, %1, %cst_27 {dimension_numbers = #tpu.dot_dimension_numbers<[1], [0], [0], [1], [0, 0, 1, 1], [], []>} : vector<2x32xf32>, vector<32x192xf32>, vector<2x192xf32> -> vector<2x192xf32>
    %24 = vector.broadcast %5 : vector<1x192xf32> to vector<2x192xf32>
    %25 = arith.addf %23, %24 : vector<2x192xf32>
    %cst_28 = arith.constant dense<0.000000e+00> : vector<2x192xf32>
    %26 = tpu.matmul %22, %3, %cst_28 {dimension_numbers = #tpu.dot_dimension_numbers<[1], [0], [0], [1], [0, 0, 1, 1], [], []>} : vector<2x32xf32>, vector<32x192xf32>, vector<2x192xf32> -> vector<2x192xf32>
    %27 = vector.broadcast %7 : vector<1x192xf32> to vector<2x192xf32>
    %28 = arith.addf %26, %27 : vector<2x192xf32>
    %29 = arith.addf %25, %28 : vector<2x192xf32>
    %30 = arith.negf %29 : vector<2x192xf32>
    %31 = math.exp %30 : vector<2x192xf32>
    %cst_29 = arith.constant 1.000000e+00 : f32
    %32 = vector.broadcast %cst_29 : f32 to vector<2x192xf32>
    %33 = arith.addf %32, %31 : vector<2x192xf32>
    %34 = arith.divf %32, %33 : vector<2x192xf32>
    %35 = vector.extract_strided_slice %34 {offsets = [0, 0], sizes = [2, 32], strides = [1, 1]} : vector<2x192xf32> to vector<2x32xf32>
    %36 = vector.extract_strided_slice %34 {offsets = [0, 32], sizes = [2, 32], strides = [1, 1]} : vector<2x192xf32> to vector<2x32xf32>
    %37 = vector.extract_strided_slice %34 {offsets = [0, 96], sizes = [2, 32], strides = [1, 1]} : vector<2x192xf32> to vector<2x32xf32>
    %38 = vector.extract_strided_slice %34 {offsets = [0, 128], sizes = [2, 32], strides = [1, 1]} : vector<2x192xf32> to vector<2x32xf32>
    %39 = vector.extract_strided_slice %25 {offsets = [0, 64], sizes = [2, 32], strides = [1, 1]} : vector<2x192xf32> to vector<2x32xf32>
    %40 = vector.extract_strided_slice %28 {offsets = [0, 64], sizes = [2, 32], strides = [1, 1]} : vector<2x192xf32> to vector<2x32xf32>
    %41 = arith.mulf %35, %40 : vector<2x32xf32>
    %42 = arith.addf %39, %41 : vector<2x32xf32>
    %43 = math.tanh %42 : vector<2x32xf32>
    %44 = vector.extract_strided_slice %28 {offsets = [0, 160], sizes = [2, 32], strides = [1, 1]} : vector<2x192xf32> to vector<2x32xf32>
    %45 = vector.extract_strided_slice %25 {offsets = [0, 160], sizes = [2, 32], strides = [1, 1]} : vector<2x192xf32> to vector<2x32xf32>
    %46 = arith.mulf %37, %45 : vector<2x32xf32>
    %47 = arith.addf %44, %46 : vector<2x32xf32>
    %48 = math.tanh %47 : vector<2x32xf32>
    %cst_30 = arith.constant 1.000000e+00 : f32
    %49 = vector.broadcast %cst_30 : f32 to vector<2x32xf32>
    %50 = arith.subf %49, %36 : vector<2x32xf32>
    %51 = arith.mulf %50, %43 : vector<2x32xf32>
    %52 = arith.mulf %36, %22 : vector<2x32xf32>
    %53 = arith.addf %51, %52 : vector<2x32xf32>
    %cst_31 = arith.constant 1.000000e+00 : f32
    %54 = vector.broadcast %cst_31 : f32 to vector<2x32xf32>
    %55 = arith.subf %54, %38 : vector<2x32xf32>
    %56 = arith.mulf %55, %48 : vector<2x32xf32>
    %57 = arith.mulf %38, %21 : vector<2x32xf32>
    %58 = arith.addf %56, %57 : vector<2x32xf32>
    %59 = arith.addf %53, %58 : vector<2x32xf32>
    %c0_i32 = arith.constant 0 : i32
    %60 = vector.broadcast %c0_i32 : i32 to vector<8x2x32xi32>
    %61 = arith.cmpi eq, %19, %60 : vector<8x2x32xi32>
    %62 = vector.shape_cast %59 : vector<2x32xf32> to vector<1x2x32xf32>
    %cst_32 = arith.constant 0.000000e+00 : f32
    %63 = vector.broadcast %cst_32 : f32 to vector<8x2x32xf32>
    %64 = vector.shape_cast %62 : vector<1x2x32xf32> to vector<1x2x32xf32>
    %65 = vector.broadcast %64 : vector<1x2x32xf32> to vector<8x2x32xf32>
    %66 = arith.select %61, %65, %63 : vector<8x2x32xi1>, vector<8x2x32xf32>
    %c0_i32_33 = arith.constant 0 : i32
    %67 = vector.broadcast %c0_i32_33 : i32 to vector<2x8xi32>
    %68 = arith.cmpi eq, %18, %67 : vector<2x8xi32>
    %69 = vector.broadcast %11 : vector<1x32xf32> to vector<2x32xf32>
    %70 = arith.mulf %59, %69 : vector<2x32xf32>
    %cst_34 = arith.constant dense<0.000000e+00> : vector<2xf32>
    %71 = vector.multi_reduction <add>, %70, %cst_34 [1] : vector<2x32xf32> to vector<2xf32>
    %72 = vector.shape_cast %71 : vector<2xf32> to vector<2x1xf32>
    %cst_35 = arith.constant 0.000000e+00 : f32
    %73 = vector.broadcast %cst_35 : f32 to vector<2x8xf32>
    %74 = vector.shape_cast %72 : vector<2x1xf32> to vector<2x1xf32>
    %75 = vector.broadcast %74 : vector<2x1xf32> to vector<2x8xf32>
    %76 = arith.select %68, %75, %73 : vector<2x8xi1>, vector<2x8xf32>
    %77 = vector.extract_strided_slice %17 {offsets = [1, 0, 0], sizes = [1, 2, 32], strides = [1, 1, 1]} : vector<8x2x32xf32> to vector<1x2x32xf32>
    %78 = vector.shape_cast %77 : vector<1x2x32xf32> to vector<2x32xf32>
    %c0_36 = arith.constant 0 : index
    %c1 = arith.constant 1 : index
    %c0_37 = arith.constant 0 : index
    %c0_38 = arith.constant 0 : index
    %79 = vector.load %arg2[%c0_36, %c1, %c0_37, %c0_38] : memref<1x8x2x8xf32, #tpu.memory_space<vmem>>, vector<1x1x2x8xf32>
    %80 = vector.shape_cast %79 : vector<1x1x2x8xf32> to vector<2x8xf32>
    %c1_39 = arith.constant 1 : index
    %c0_40 = arith.constant 0 : index
    %c0_41 = arith.constant 0 : index
    %81 = vector.load %arg3[%c1_39, %c0_40, %c0_41] : memref<8x2x8xf32, #tpu.memory_space<vmem>>, vector<1x2x8xf32>
    %82 = vector.shape_cast %81 : vector<1x2x8xf32> to vector<2x8xf32>
    %83 = vector.broadcast %9 : vector<1x32xf32> to vector<2x32xf32>
    %84 = arith.mulf %78, %83 : vector<2x32xf32>
    %cst_42 = arith.constant dense<0.000000e+00> : vector<2xf32>
    %85 = vector.multi_reduction <add>, %84, %cst_42 [1] : vector<2x32xf32> to vector<2xf32>
    %86 = vector.shape_cast %85 : vector<2xf32> to vector<2x1xf32>
    %87 = vector.broadcast %13 : vector<1x1xf32> to vector<2x1xf32>
    %88 = arith.addf %86, %87 : vector<2x1xf32>
    %89 = vector.broadcast %88 : vector<2x1xf32> to vector<2x8xf32>
    %90 = arith.addf %76, %89 : vector<2x8xf32>
    %cst_43 = arith.constant 1.000000e+00 : f32
    %91 = vector.broadcast %cst_43 : f32 to vector<2x8xf32>
    %92 = arith.subf %91, %80 : vector<2x8xf32>
    %cst_44 = arith.constant 1.000000e+30 : f32
    %93 = vector.broadcast %cst_44 : f32 to vector<2x8xf32>
    %94 = arith.mulf %92, %93 : vector<2x8xf32>
    %95 = arith.subf %90, %94 : vector<2x8xf32>
    %c1_i32 = arith.constant 1 : i32
    %96 = vector.broadcast %c1_i32 : i32 to vector<2x8xi32>
    %97 = arith.cmpi slt, %18, %96 : vector<2x8xi32>
    %cst_45 = arith.constant 0xFF800000 : f32
    %98 = vector.broadcast %cst_45 : f32 to vector<2x8xf32>
    %99 = arith.select %97, %95, %98 : vector<2x8xi1>, vector<2x8xf32>
    %cst_46 = arith.constant dense<0xFF800000> : vector<2xf32>
    %100 = vector.multi_reduction <maximumf>, %99, %cst_46 [1] : vector<2x8xf32> to vector<2xf32>
    %101 = vector.shape_cast %100 : vector<2xf32> to vector<2x1xf32>
    %102 = vector.broadcast %101 : vector<2x1xf32> to vector<2x8xf32>
    %103 = arith.subf %99, %102 : vector<2x8xf32>
    %104 = math.exp %103 : vector<2x8xf32>
    %cst_47 = arith.constant dense<0.000000e+00> : vector<2xf32>
    %105 = vector.multi_reduction <add>, %104, %cst_47 [1] : vector<2x8xf32> to vector<2xf32>
    %106 = vector.shape_cast %105 : vector<2xf32> to vector<2x1xf32>
    %107 = vector.broadcast %106 : vector<2x1xf32> to vector<2x8xf32>
    %108 = arith.divf %104, %107 : vector<2x8xf32>
    %109 = arith.mulf %108, %82 : vector<2x8xf32>
    %110 = tpu.transpose %109, [1, 0] : vector<2x8xf32> -> vector<8x2xf32>
    %111 = vector.shape_cast %110 : vector<8x2xf32> to vector<8x2x1xf32>
    %cst_48 = arith.constant 1.000000e+00 : f32
    %112 = vector.broadcast %cst_48 : f32 to vector<2x8xf32>
    %113 = arith.subf %112, %82 : vector<2x8xf32>
    %114 = arith.mulf %108, %113 : vector<2x8xf32>
    %115 = tpu.transpose %114, [1, 0] : vector<2x8xf32> -> vector<8x2xf32>
    %116 = vector.shape_cast %115 : vector<8x2xf32> to vector<8x2x1xf32>
    %117 = vector.broadcast %111 : vector<8x2x1xf32> to vector<8x2x32xf32>
    %118 = arith.mulf %117, %66 : vector<8x2x32xf32>
    %cst_49 = arith.constant dense<0.000000e+00> : vector<2x32xf32>
    %119 = vector.multi_reduction <add>, %118, %cst_49 [0] : vector<8x2x32xf32> to vector<2x32xf32>
    %120 = vector.broadcast %116 : vector<8x2x1xf32> to vector<8x2x32xf32>
    %121 = arith.mulf %120, %66 : vector<8x2x32xf32>
    %cst_50 = arith.constant dense<0.000000e+00> : vector<2x32xf32>
    %122 = vector.multi_reduction <add>, %121, %cst_50 [0] : vector<8x2x32xf32> to vector<2x32xf32>
    %123 = tpu.concatenate %119, %122 in 1 : vector<2x32xf32>, vector<2x32xf32> -> vector<2x64xf32>
    %cst_51 = arith.constant dense<0.000000e+00> : vector<2x32xf32>
    %124 = tpu.matmul %123, %15, %cst_51 {dimension_numbers = #tpu.dot_dimension_numbers<[1], [0], [0], [1], [0, 0, 1, 1], [], []>} : vector<2x64xf32>, vector<64x32xf32>, vector<2x32xf32> -> vector<2x32xf32>
    %cst_52 = arith.constant dense<0.000000e+00> : vector<2x192xf32>
    %125 = tpu.matmul %78, %1, %cst_52 {dimension_numbers = #tpu.dot_dimension_numbers<[1], [0], [0], [1], [0, 0, 1, 1], [], []>} : vector<2x32xf32>, vector<32x192xf32>, vector<2x192xf32> -> vector<2x192xf32>
    %126 = vector.broadcast %5 : vector<1x192xf32> to vector<2x192xf32>
    %127 = arith.addf %125, %126 : vector<2x192xf32>
    %cst_53 = arith.constant dense<0.000000e+00> : vector<2x192xf32>
    %128 = tpu.matmul %124, %3, %cst_53 {dimension_numbers = #tpu.dot_dimension_numbers<[1], [0], [0], [1], [0, 0, 1, 1], [], []>} : vector<2x32xf32>, vector<32x192xf32>, vector<2x192xf32> -> vector<2x192xf32>
    %129 = vector.broadcast %7 : vector<1x192xf32> to vector<2x192xf32>
    %130 = arith.addf %128, %129 : vector<2x192xf32>
    %131 = arith.addf %127, %130 : vector<2x192xf32>
    %132 = arith.negf %131 : vector<2x192xf32>
    %133 = math.exp %132 : vector<2x192xf32>
    %cst_54 = arith.constant 1.000000e+00 : f32
    %134 = vector.broadcast %cst_54 : f32 to vector<2x192xf32>
    %135 = arith.addf %134, %133 : vector<2x192xf32>
    %136 = arith.divf %134, %135 : vector<2x192xf32>
    %137 = vector.extract_strided_slice %136 {offsets = [0, 0], sizes = [2, 32], strides = [1, 1]} : vector<2x192xf32> to vector<2x32xf32>
    %138 = vector.extract_strided_slice %136 {offsets = [0, 32], sizes = [2, 32], strides = [1, 1]} : vector<2x192xf32> to vector<2x32xf32>
    %139 = vector.extract_strided_slice %136 {offsets = [0, 96], sizes = [2, 32], strides = [1, 1]} : vector<2x192xf32> to vector<2x32xf32>
    %140 = vector.extract_strided_slice %136 {offsets = [0, 128], sizes = [2, 32], strides = [1, 1]} : vector<2x192xf32> to vector<2x32xf32>
    %141 = vector.extract_strided_slice %127 {offsets = [0, 64], sizes = [2, 32], strides = [1, 1]} : vector<2x192xf32> to vector<2x32xf32>
    %142 = vector.extract_strided_slice %130 {offsets = [0, 64], sizes = [2, 32], strides = [1, 1]} : vector<2x192xf32> to vector<2x32xf32>
    %143 = arith.mulf %137, %142 : vector<2x32xf32>
    %144 = arith.addf %141, %143 : vector<2x32xf32>
    %145 = math.tanh %144 : vector<2x32xf32>
    %146 = vector.extract_strided_slice %130 {offsets = [0, 160], sizes = [2, 32], strides = [1, 1]} : vector<2x192xf32> to vector<2x32xf32>
    %147 = vector.extract_strided_slice %127 {offsets = [0, 160], sizes = [2, 32], strides = [1, 1]} : vector<2x192xf32> to vector<2x32xf32>
    %148 = arith.mulf %139, %147 : vector<2x32xf32>
    %149 = arith.addf %146, %148 : vector<2x32xf32>
    %150 = math.tanh %149 : vector<2x32xf32>
    %cst_55 = arith.constant 1.000000e+00 : f32
    %151 = vector.broadcast %cst_55 : f32 to vector<2x32xf32>
    %152 = arith.subf %151, %138 : vector<2x32xf32>
    %153 = arith.mulf %152, %145 : vector<2x32xf32>
    %154 = arith.mulf %138, %124 : vector<2x32xf32>
    %155 = arith.addf %153, %154 : vector<2x32xf32>
    %cst_56 = arith.constant 1.000000e+00 : f32
    %156 = vector.broadcast %cst_56 : f32 to vector<2x32xf32>
    %157 = arith.subf %156, %140 : vector<2x32xf32>
    %158 = arith.mulf %157, %150 : vector<2x32xf32>
    %159 = arith.mulf %140, %78 : vector<2x32xf32>
    %160 = arith.addf %158, %159 : vector<2x32xf32>
    %161 = arith.addf %155, %160 : vector<2x32xf32>
    %c1_i32_57 = arith.constant 1 : i32
    %162 = vector.broadcast %c1_i32_57 : i32 to vector<8x2x32xi32>
    %163 = arith.cmpi eq, %19, %162 : vector<8x2x32xi32>
    %164 = vector.shape_cast %161 : vector<2x32xf32> to vector<1x2x32xf32>
    %165 = vector.shape_cast %164 : vector<1x2x32xf32> to vector<1x2x32xf32>
    %166 = vector.broadcast %165 : vector<1x2x32xf32> to vector<8x2x32xf32>
    %167 = arith.select %163, %166, %66 : vector<8x2x32xi1>, vector<8x2x32xf32>
    %c1_i32_58 = arith.constant 1 : i32
    %168 = vector.broadcast %c1_i32_58 : i32 to vector<2x8xi32>
    %169 = arith.cmpi eq, %18, %168 : vector<2x8xi32>
    %170 = vector.broadcast %11 : vector<1x32xf32> to vector<2x32xf32>
    %171 = arith.mulf %161, %170 : vector<2x32xf32>
    %cst_59 = arith.constant dense<0.000000e+00> : vector<2xf32>
    %172 = vector.multi_reduction <add>, %171, %cst_59 [1] : vector<2x32xf32> to vector<2xf32>
    %173 = vector.shape_cast %172 : vector<2xf32> to vector<2x1xf32>
    %174 = vector.shape_cast %173 : vector<2x1xf32> to vector<2x1xf32>
    %175 = vector.broadcast %174 : vector<2x1xf32> to vector<2x8xf32>
    %176 = arith.select %169, %175, %76 : vector<2x8xi1>, vector<2x8xf32>
    %177 = vector.extract_strided_slice %17 {offsets = [2, 0, 0], sizes = [1, 2, 32], strides = [1, 1, 1]} : vector<8x2x32xf32> to vector<1x2x32xf32>
    %178 = vector.shape_cast %177 : vector<1x2x32xf32> to vector<2x32xf32>
    %c0_60 = arith.constant 0 : index
    %c2 = arith.constant 2 : index
    %c0_61 = arith.constant 0 : index
    %c0_62 = arith.constant 0 : index
    %179 = vector.load %arg2[%c0_60, %c2, %c0_61, %c0_62] : memref<1x8x2x8xf32, #tpu.memory_space<vmem>>, vector<1x1x2x8xf32>
    %180 = vector.shape_cast %179 : vector<1x1x2x8xf32> to vector<2x8xf32>
    %c2_63 = arith.constant 2 : index
    %c0_64 = arith.constant 0 : index
    %c0_65 = arith.constant 0 : index
    %181 = vector.load %arg3[%c2_63, %c0_64, %c0_65] : memref<8x2x8xf32, #tpu.memory_space<vmem>>, vector<1x2x8xf32>
    %182 = vector.shape_cast %181 : vector<1x2x8xf32> to vector<2x8xf32>
    %183 = vector.broadcast %9 : vector<1x32xf32> to vector<2x32xf32>
    %184 = arith.mulf %178, %183 : vector<2x32xf32>
    %cst_66 = arith.constant dense<0.000000e+00> : vector<2xf32>
    %185 = vector.multi_reduction <add>, %184, %cst_66 [1] : vector<2x32xf32> to vector<2xf32>
    %186 = vector.shape_cast %185 : vector<2xf32> to vector<2x1xf32>
    %187 = vector.broadcast %13 : vector<1x1xf32> to vector<2x1xf32>
    %188 = arith.addf %186, %187 : vector<2x1xf32>
    %189 = vector.broadcast %188 : vector<2x1xf32> to vector<2x8xf32>
    %190 = arith.addf %176, %189 : vector<2x8xf32>
    %cst_67 = arith.constant 1.000000e+00 : f32
    %191 = vector.broadcast %cst_67 : f32 to vector<2x8xf32>
    %192 = arith.subf %191, %180 : vector<2x8xf32>
    %cst_68 = arith.constant 1.000000e+30 : f32
    %193 = vector.broadcast %cst_68 : f32 to vector<2x8xf32>
    %194 = arith.mulf %192, %193 : vector<2x8xf32>
    %195 = arith.subf %190, %194 : vector<2x8xf32>
    %c2_i32 = arith.constant 2 : i32
    %196 = vector.broadcast %c2_i32 : i32 to vector<2x8xi32>
    %197 = arith.cmpi slt, %18, %196 : vector<2x8xi32>
    %cst_69 = arith.constant 0xFF800000 : f32
    %198 = vector.broadcast %cst_69 : f32 to vector<2x8xf32>
    %199 = arith.select %197, %195, %198 : vector<2x8xi1>, vector<2x8xf32>
    %cst_70 = arith.constant dense<0xFF800000> : vector<2xf32>
    %200 = vector.multi_reduction <maximumf>, %199, %cst_70 [1] : vector<2x8xf32> to vector<2xf32>
    %201 = vector.shape_cast %200 : vector<2xf32> to vector<2x1xf32>
    %202 = vector.broadcast %201 : vector<2x1xf32> to vector<2x8xf32>
    %203 = arith.subf %199, %202 : vector<2x8xf32>
    %204 = math.exp %203 : vector<2x8xf32>
    %cst_71 = arith.constant dense<0.000000e+00> : vector<2xf32>
    %205 = vector.multi_reduction <add>, %204, %cst_71 [1] : vector<2x8xf32> to vector<2xf32>
    %206 = vector.shape_cast %205 : vector<2xf32> to vector<2x1xf32>
    %207 = vector.broadcast %206 : vector<2x1xf32> to vector<2x8xf32>
    %208 = arith.divf %204, %207 : vector<2x8xf32>
    %209 = arith.mulf %208, %182 : vector<2x8xf32>
    %210 = tpu.transpose %209, [1, 0] : vector<2x8xf32> -> vector<8x2xf32>
    %211 = vector.shape_cast %210 : vector<8x2xf32> to vector<8x2x1xf32>
    %cst_72 = arith.constant 1.000000e+00 : f32
    %212 = vector.broadcast %cst_72 : f32 to vector<2x8xf32>
    %213 = arith.subf %212, %182 : vector<2x8xf32>
    %214 = arith.mulf %208, %213 : vector<2x8xf32>
    %215 = tpu.transpose %214, [1, 0] : vector<2x8xf32> -> vector<8x2xf32>
    %216 = vector.shape_cast %215 : vector<8x2xf32> to vector<8x2x1xf32>
    %217 = vector.broadcast %211 : vector<8x2x1xf32> to vector<8x2x32xf32>
    %218 = arith.mulf %217, %167 : vector<8x2x32xf32>
    %cst_73 = arith.constant dense<0.000000e+00> : vector<2x32xf32>
    %219 = vector.multi_reduction <add>, %218, %cst_73 [0] : vector<8x2x32xf32> to vector<2x32xf32>
    %220 = vector.broadcast %216 : vector<8x2x1xf32> to vector<8x2x32xf32>
    %221 = arith.mulf %220, %167 : vector<8x2x32xf32>
    %cst_74 = arith.constant dense<0.000000e+00> : vector<2x32xf32>
    %222 = vector.multi_reduction <add>, %221, %cst_74 [0] : vector<8x2x32xf32> to vector<2x32xf32>
    %223 = tpu.concatenate %219, %222 in 1 : vector<2x32xf32>, vector<2x32xf32> -> vector<2x64xf32>
    %cst_75 = arith.constant dense<0.000000e+00> : vector<2x32xf32>
    %224 = tpu.matmul %223, %15, %cst_75 {dimension_numbers = #tpu.dot_dimension_numbers<[1], [0], [0], [1], [0, 0, 1, 1], [], []>} : vector<2x64xf32>, vector<64x32xf32>, vector<2x32xf32> -> vector<2x32xf32>
    %cst_76 = arith.constant dense<0.000000e+00> : vector<2x192xf32>
    %225 = tpu.matmul %178, %1, %cst_76 {dimension_numbers = #tpu.dot_dimension_numbers<[1], [0], [0], [1], [0, 0, 1, 1], [], []>} : vector<2x32xf32>, vector<32x192xf32>, vector<2x192xf32> -> vector<2x192xf32>
    %226 = vector.broadcast %5 : vector<1x192xf32> to vector<2x192xf32>
    %227 = arith.addf %225, %226 : vector<2x192xf32>
    %cst_77 = arith.constant dense<0.000000e+00> : vector<2x192xf32>
    %228 = tpu.matmul %224, %3, %cst_77 {dimension_numbers = #tpu.dot_dimension_numbers<[1], [0], [0], [1], [0, 0, 1, 1], [], []>} : vector<2x32xf32>, vector<32x192xf32>, vector<2x192xf32> -> vector<2x192xf32>
    %229 = vector.broadcast %7 : vector<1x192xf32> to vector<2x192xf32>
    %230 = arith.addf %228, %229 : vector<2x192xf32>
    %231 = arith.addf %227, %230 : vector<2x192xf32>
    %232 = arith.negf %231 : vector<2x192xf32>
    %233 = math.exp %232 : vector<2x192xf32>
    %cst_78 = arith.constant 1.000000e+00 : f32
    %234 = vector.broadcast %cst_78 : f32 to vector<2x192xf32>
    %235 = arith.addf %234, %233 : vector<2x192xf32>
    %236 = arith.divf %234, %235 : vector<2x192xf32>
    %237 = vector.extract_strided_slice %236 {offsets = [0, 0], sizes = [2, 32], strides = [1, 1]} : vector<2x192xf32> to vector<2x32xf32>
    %238 = vector.extract_strided_slice %236 {offsets = [0, 32], sizes = [2, 32], strides = [1, 1]} : vector<2x192xf32> to vector<2x32xf32>
    %239 = vector.extract_strided_slice %236 {offsets = [0, 96], sizes = [2, 32], strides = [1, 1]} : vector<2x192xf32> to vector<2x32xf32>
    %240 = vector.extract_strided_slice %236 {offsets = [0, 128], sizes = [2, 32], strides = [1, 1]} : vector<2x192xf32> to vector<2x32xf32>
    %241 = vector.extract_strided_slice %227 {offsets = [0, 64], sizes = [2, 32], strides = [1, 1]} : vector<2x192xf32> to vector<2x32xf32>
    %242 = vector.extract_strided_slice %230 {offsets = [0, 64], sizes = [2, 32], strides = [1, 1]} : vector<2x192xf32> to vector<2x32xf32>
    %243 = arith.mulf %237, %242 : vector<2x32xf32>
    %244 = arith.addf %241, %243 : vector<2x32xf32>
    %245 = math.tanh %244 : vector<2x32xf32>
    %246 = vector.extract_strided_slice %230 {offsets = [0, 160], sizes = [2, 32], strides = [1, 1]} : vector<2x192xf32> to vector<2x32xf32>
    %247 = vector.extract_strided_slice %227 {offsets = [0, 160], sizes = [2, 32], strides = [1, 1]} : vector<2x192xf32> to vector<2x32xf32>
    %248 = arith.mulf %239, %247 : vector<2x32xf32>
    %249 = arith.addf %246, %248 : vector<2x32xf32>
    %250 = math.tanh %249 : vector<2x32xf32>
    %cst_79 = arith.constant 1.000000e+00 : f32
    %251 = vector.broadcast %cst_79 : f32 to vector<2x32xf32>
    %252 = arith.subf %251, %238 : vector<2x32xf32>
    %253 = arith.mulf %252, %245 : vector<2x32xf32>
    %254 = arith.mulf %238, %224 : vector<2x32xf32>
    %255 = arith.addf %253, %254 : vector<2x32xf32>
    %cst_80 = arith.constant 1.000000e+00 : f32
    %256 = vector.broadcast %cst_80 : f32 to vector<2x32xf32>
    %257 = arith.subf %256, %240 : vector<2x32xf32>
    %258 = arith.mulf %257, %250 : vector<2x32xf32>
    %259 = arith.mulf %240, %178 : vector<2x32xf32>
    %260 = arith.addf %258, %259 : vector<2x32xf32>
    %261 = arith.addf %255, %260 : vector<2x32xf32>
    %c2_i32_81 = arith.constant 2 : i32
    %262 = vector.broadcast %c2_i32_81 : i32 to vector<8x2x32xi32>
    %263 = arith.cmpi eq, %19, %262 : vector<8x2x32xi32>
    %264 = vector.shape_cast %261 : vector<2x32xf32> to vector<1x2x32xf32>
    %265 = vector.shape_cast %264 : vector<1x2x32xf32> to vector<1x2x32xf32>
    %266 = vector.broadcast %265 : vector<1x2x32xf32> to vector<8x2x32xf32>
    %267 = arith.select %263, %266, %167 : vector<8x2x32xi1>, vector<8x2x32xf32>
    %c2_i32_82 = arith.constant 2 : i32
    %268 = vector.broadcast %c2_i32_82 : i32 to vector<2x8xi32>
    %269 = arith.cmpi eq, %18, %268 : vector<2x8xi32>
    %270 = vector.broadcast %11 : vector<1x32xf32> to vector<2x32xf32>
    %271 = arith.mulf %261, %270 : vector<2x32xf32>
    %cst_83 = arith.constant dense<0.000000e+00> : vector<2xf32>
    %272 = vector.multi_reduction <add>, %271, %cst_83 [1] : vector<2x32xf32> to vector<2xf32>
    %273 = vector.shape_cast %272 : vector<2xf32> to vector<2x1xf32>
    %274 = vector.shape_cast %273 : vector<2x1xf32> to vector<2x1xf32>
    %275 = vector.broadcast %274 : vector<2x1xf32> to vector<2x8xf32>
    %276 = arith.select %269, %275, %176 : vector<2x8xi1>, vector<2x8xf32>
    %277 = vector.extract_strided_slice %17 {offsets = [3, 0, 0], sizes = [1, 2, 32], strides = [1, 1, 1]} : vector<8x2x32xf32> to vector<1x2x32xf32>
    %278 = vector.shape_cast %277 : vector<1x2x32xf32> to vector<2x32xf32>
    %c0_84 = arith.constant 0 : index
    %c3 = arith.constant 3 : index
    %c0_85 = arith.constant 0 : index
    %c0_86 = arith.constant 0 : index
    %279 = vector.load %arg2[%c0_84, %c3, %c0_85, %c0_86] : memref<1x8x2x8xf32, #tpu.memory_space<vmem>>, vector<1x1x2x8xf32>
    %280 = vector.shape_cast %279 : vector<1x1x2x8xf32> to vector<2x8xf32>
    %c3_87 = arith.constant 3 : index
    %c0_88 = arith.constant 0 : index
    %c0_89 = arith.constant 0 : index
    %281 = vector.load %arg3[%c3_87, %c0_88, %c0_89] : memref<8x2x8xf32, #tpu.memory_space<vmem>>, vector<1x2x8xf32>
    %282 = vector.shape_cast %281 : vector<1x2x8xf32> to vector<2x8xf32>
    %283 = vector.broadcast %9 : vector<1x32xf32> to vector<2x32xf32>
    %284 = arith.mulf %278, %283 : vector<2x32xf32>
    %cst_90 = arith.constant dense<0.000000e+00> : vector<2xf32>
    %285 = vector.multi_reduction <add>, %284, %cst_90 [1] : vector<2x32xf32> to vector<2xf32>
    %286 = vector.shape_cast %285 : vector<2xf32> to vector<2x1xf32>
    %287 = vector.broadcast %13 : vector<1x1xf32> to vector<2x1xf32>
    %288 = arith.addf %286, %287 : vector<2x1xf32>
    %289 = vector.broadcast %288 : vector<2x1xf32> to vector<2x8xf32>
    %290 = arith.addf %276, %289 : vector<2x8xf32>
    %cst_91 = arith.constant 1.000000e+00 : f32
    %291 = vector.broadcast %cst_91 : f32 to vector<2x8xf32>
    %292 = arith.subf %291, %280 : vector<2x8xf32>
    %cst_92 = arith.constant 1.000000e+30 : f32
    %293 = vector.broadcast %cst_92 : f32 to vector<2x8xf32>
    %294 = arith.mulf %292, %293 : vector<2x8xf32>
    %295 = arith.subf %290, %294 : vector<2x8xf32>
    %c3_i32 = arith.constant 3 : i32
    %296 = vector.broadcast %c3_i32 : i32 to vector<2x8xi32>
    %297 = arith.cmpi slt, %18, %296 : vector<2x8xi32>
    %cst_93 = arith.constant 0xFF800000 : f32
    %298 = vector.broadcast %cst_93 : f32 to vector<2x8xf32>
    %299 = arith.select %297, %295, %298 : vector<2x8xi1>, vector<2x8xf32>
    %cst_94 = arith.constant dense<0xFF800000> : vector<2xf32>
    %300 = vector.multi_reduction <maximumf>, %299, %cst_94 [1] : vector<2x8xf32> to vector<2xf32>
    %301 = vector.shape_cast %300 : vector<2xf32> to vector<2x1xf32>
    %302 = vector.broadcast %301 : vector<2x1xf32> to vector<2x8xf32>
    %303 = arith.subf %299, %302 : vector<2x8xf32>
    %304 = math.exp %303 : vector<2x8xf32>
    %cst_95 = arith.constant dense<0.000000e+00> : vector<2xf32>
    %305 = vector.multi_reduction <add>, %304, %cst_95 [1] : vector<2x8xf32> to vector<2xf32>
    %306 = vector.shape_cast %305 : vector<2xf32> to vector<2x1xf32>
    %307 = vector.broadcast %306 : vector<2x1xf32> to vector<2x8xf32>
    %308 = arith.divf %304, %307 : vector<2x8xf32>
    %309 = arith.mulf %308, %282 : vector<2x8xf32>
    %310 = tpu.transpose %309, [1, 0] : vector<2x8xf32> -> vector<8x2xf32>
    %311 = vector.shape_cast %310 : vector<8x2xf32> to vector<8x2x1xf32>
    %cst_96 = arith.constant 1.000000e+00 : f32
    %312 = vector.broadcast %cst_96 : f32 to vector<2x8xf32>
    %313 = arith.subf %312, %282 : vector<2x8xf32>
    %314 = arith.mulf %308, %313 : vector<2x8xf32>
    %315 = tpu.transpose %314, [1, 0] : vector<2x8xf32> -> vector<8x2xf32>
    %316 = vector.shape_cast %315 : vector<8x2xf32> to vector<8x2x1xf32>
    %317 = vector.broadcast %311 : vector<8x2x1xf32> to vector<8x2x32xf32>
    %318 = arith.mulf %317, %267 : vector<8x2x32xf32>
    %cst_97 = arith.constant dense<0.000000e+00> : vector<2x32xf32>
    %319 = vector.multi_reduction <add>, %318, %cst_97 [0] : vector<8x2x32xf32> to vector<2x32xf32>
    %320 = vector.broadcast %316 : vector<8x2x1xf32> to vector<8x2x32xf32>
    %321 = arith.mulf %320, %267 : vector<8x2x32xf32>
    %cst_98 = arith.constant dense<0.000000e+00> : vector<2x32xf32>
    %322 = vector.multi_reduction <add>, %321, %cst_98 [0] : vector<8x2x32xf32> to vector<2x32xf32>
    %323 = tpu.concatenate %319, %322 in 1 : vector<2x32xf32>, vector<2x32xf32> -> vector<2x64xf32>
    %cst_99 = arith.constant dense<0.000000e+00> : vector<2x32xf32>
    %324 = tpu.matmul %323, %15, %cst_99 {dimension_numbers = #tpu.dot_dimension_numbers<[1], [0], [0], [1], [0, 0, 1, 1], [], []>} : vector<2x64xf32>, vector<64x32xf32>, vector<2x32xf32> -> vector<2x32xf32>
    %cst_100 = arith.constant dense<0.000000e+00> : vector<2x192xf32>
    %325 = tpu.matmul %278, %1, %cst_100 {dimension_numbers = #tpu.dot_dimension_numbers<[1], [0], [0], [1], [0, 0, 1, 1], [], []>} : vector<2x32xf32>, vector<32x192xf32>, vector<2x192xf32> -> vector<2x192xf32>
    %326 = vector.broadcast %5 : vector<1x192xf32> to vector<2x192xf32>
    %327 = arith.addf %325, %326 : vector<2x192xf32>
    %cst_101 = arith.constant dense<0.000000e+00> : vector<2x192xf32>
    %328 = tpu.matmul %324, %3, %cst_101 {dimension_numbers = #tpu.dot_dimension_numbers<[1], [0], [0], [1], [0, 0, 1, 1], [], []>} : vector<2x32xf32>, vector<32x192xf32>, vector<2x192xf32> -> vector<2x192xf32>
    %329 = vector.broadcast %7 : vector<1x192xf32> to vector<2x192xf32>
    %330 = arith.addf %328, %329 : vector<2x192xf32>
    %331 = arith.addf %327, %330 : vector<2x192xf32>
    %332 = arith.negf %331 : vector<2x192xf32>
    %333 = math.exp %332 : vector<2x192xf32>
    %cst_102 = arith.constant 1.000000e+00 : f32
    %334 = vector.broadcast %cst_102 : f32 to vector<2x192xf32>
    %335 = arith.addf %334, %333 : vector<2x192xf32>
    %336 = arith.divf %334, %335 : vector<2x192xf32>
    %337 = vector.extract_strided_slice %336 {offsets = [0, 0], sizes = [2, 32], strides = [1, 1]} : vector<2x192xf32> to vector<2x32xf32>
    %338 = vector.extract_strided_slice %336 {offsets = [0, 32], sizes = [2, 32], strides = [1, 1]} : vector<2x192xf32> to vector<2x32xf32>
    %339 = vector.extract_strided_slice %336 {offsets = [0, 96], sizes = [2, 32], strides = [1, 1]} : vector<2x192xf32> to vector<2x32xf32>
    %340 = vector.extract_strided_slice %336 {offsets = [0, 128], sizes = [2, 32], strides = [1, 1]} : vector<2x192xf32> to vector<2x32xf32>
    %341 = vector.extract_strided_slice %327 {offsets = [0, 64], sizes = [2, 32], strides = [1, 1]} : vector<2x192xf32> to vector<2x32xf32>
    %342 = vector.extract_strided_slice %330 {offsets = [0, 64], sizes = [2, 32], strides = [1, 1]} : vector<2x192xf32> to vector<2x32xf32>
    %343 = arith.mulf %337, %342 : vector<2x32xf32>
    %344 = arith.addf %341, %343 : vector<2x32xf32>
    %345 = math.tanh %344 : vector<2x32xf32>
    %346 = vector.extract_strided_slice %330 {offsets = [0, 160], sizes = [2, 32], strides = [1, 1]} : vector<2x192xf32> to vector<2x32xf32>
    %347 = vector.extract_strided_slice %327 {offsets = [0, 160], sizes = [2, 32], strides = [1, 1]} : vector<2x192xf32> to vector<2x32xf32>
    %348 = arith.mulf %339, %347 : vector<2x32xf32>
    %349 = arith.addf %346, %348 : vector<2x32xf32>
    %350 = math.tanh %349 : vector<2x32xf32>
    %cst_103 = arith.constant 1.000000e+00 : f32
    %351 = vector.broadcast %cst_103 : f32 to vector<2x32xf32>
    %352 = arith.subf %351, %338 : vector<2x32xf32>
    %353 = arith.mulf %352, %345 : vector<2x32xf32>
    %354 = arith.mulf %338, %324 : vector<2x32xf32>
    %355 = arith.addf %353, %354 : vector<2x32xf32>
    %cst_104 = arith.constant 1.000000e+00 : f32
    %356 = vector.broadcast %cst_104 : f32 to vector<2x32xf32>
    %357 = arith.subf %356, %340 : vector<2x32xf32>
    %358 = arith.mulf %357, %350 : vector<2x32xf32>
    %359 = arith.mulf %340, %278 : vector<2x32xf32>
    %360 = arith.addf %358, %359 : vector<2x32xf32>
    %361 = arith.addf %355, %360 : vector<2x32xf32>
    %c3_i32_105 = arith.constant 3 : i32
    %362 = vector.broadcast %c3_i32_105 : i32 to vector<8x2x32xi32>
    %363 = arith.cmpi eq, %19, %362 : vector<8x2x32xi32>
    %364 = vector.shape_cast %361 : vector<2x32xf32> to vector<1x2x32xf32>
    %365 = vector.shape_cast %364 : vector<1x2x32xf32> to vector<1x2x32xf32>
    %366 = vector.broadcast %365 : vector<1x2x32xf32> to vector<8x2x32xf32>
    %367 = arith.select %363, %366, %267 : vector<8x2x32xi1>, vector<8x2x32xf32>
    %c3_i32_106 = arith.constant 3 : i32
    %368 = vector.broadcast %c3_i32_106 : i32 to vector<2x8xi32>
    %369 = arith.cmpi eq, %18, %368 : vector<2x8xi32>
    %370 = vector.broadcast %11 : vector<1x32xf32> to vector<2x32xf32>
    %371 = arith.mulf %361, %370 : vector<2x32xf32>
    %cst_107 = arith.constant dense<0.000000e+00> : vector<2xf32>
    %372 = vector.multi_reduction <add>, %371, %cst_107 [1] : vector<2x32xf32> to vector<2xf32>
    %373 = vector.shape_cast %372 : vector<2xf32> to vector<2x1xf32>
    %374 = vector.shape_cast %373 : vector<2x1xf32> to vector<2x1xf32>
    %375 = vector.broadcast %374 : vector<2x1xf32> to vector<2x8xf32>
    %376 = arith.select %369, %375, %276 : vector<2x8xi1>, vector<2x8xf32>
    %377 = vector.extract_strided_slice %17 {offsets = [4, 0, 0], sizes = [1, 2, 32], strides = [1, 1, 1]} : vector<8x2x32xf32> to vector<1x2x32xf32>
    %378 = vector.shape_cast %377 : vector<1x2x32xf32> to vector<2x32xf32>
    %c0_108 = arith.constant 0 : index
    %c4 = arith.constant 4 : index
    %c0_109 = arith.constant 0 : index
    %c0_110 = arith.constant 0 : index
    %379 = vector.load %arg2[%c0_108, %c4, %c0_109, %c0_110] : memref<1x8x2x8xf32, #tpu.memory_space<vmem>>, vector<1x1x2x8xf32>
    %380 = vector.shape_cast %379 : vector<1x1x2x8xf32> to vector<2x8xf32>
    %c4_111 = arith.constant 4 : index
    %c0_112 = arith.constant 0 : index
    %c0_113 = arith.constant 0 : index
    %381 = vector.load %arg3[%c4_111, %c0_112, %c0_113] : memref<8x2x8xf32, #tpu.memory_space<vmem>>, vector<1x2x8xf32>
    %382 = vector.shape_cast %381 : vector<1x2x8xf32> to vector<2x8xf32>
    %383 = vector.broadcast %9 : vector<1x32xf32> to vector<2x32xf32>
    %384 = arith.mulf %378, %383 : vector<2x32xf32>
    %cst_114 = arith.constant dense<0.000000e+00> : vector<2xf32>
    %385 = vector.multi_reduction <add>, %384, %cst_114 [1] : vector<2x32xf32> to vector<2xf32>
    %386 = vector.shape_cast %385 : vector<2xf32> to vector<2x1xf32>
    %387 = vector.broadcast %13 : vector<1x1xf32> to vector<2x1xf32>
    %388 = arith.addf %386, %387 : vector<2x1xf32>
    %389 = vector.broadcast %388 : vector<2x1xf32> to vector<2x8xf32>
    %390 = arith.addf %376, %389 : vector<2x8xf32>
    %cst_115 = arith.constant 1.000000e+00 : f32
    %391 = vector.broadcast %cst_115 : f32 to vector<2x8xf32>
    %392 = arith.subf %391, %380 : vector<2x8xf32>
    %cst_116 = arith.constant 1.000000e+30 : f32
    %393 = vector.broadcast %cst_116 : f32 to vector<2x8xf32>
    %394 = arith.mulf %392, %393 : vector<2x8xf32>
    %395 = arith.subf %390, %394 : vector<2x8xf32>
    %c4_i32 = arith.constant 4 : i32
    %396 = vector.broadcast %c4_i32 : i32 to vector<2x8xi32>
    %397 = arith.cmpi slt, %18, %396 : vector<2x8xi32>
    %cst_117 = arith.constant 0xFF800000 : f32
    %398 = vector.broadcast %cst_117 : f32 to vector<2x8xf32>
    %399 = arith.select %397, %395, %398 : vector<2x8xi1>, vector<2x8xf32>
    %cst_118 = arith.constant dense<0xFF800000> : vector<2xf32>
    %400 = vector.multi_reduction <maximumf>, %399, %cst_118 [1] : vector<2x8xf32> to vector<2xf32>
    %401 = vector.shape_cast %400 : vector<2xf32> to vector<2x1xf32>
    %402 = vector.broadcast %401 : vector<2x1xf32> to vector<2x8xf32>
    %403 = arith.subf %399, %402 : vector<2x8xf32>
    %404 = math.exp %403 : vector<2x8xf32>
    %cst_119 = arith.constant dense<0.000000e+00> : vector<2xf32>
    %405 = vector.multi_reduction <add>, %404, %cst_119 [1] : vector<2x8xf32> to vector<2xf32>
    %406 = vector.shape_cast %405 : vector<2xf32> to vector<2x1xf32>
    %407 = vector.broadcast %406 : vector<2x1xf32> to vector<2x8xf32>
    %408 = arith.divf %404, %407 : vector<2x8xf32>
    %409 = arith.mulf %408, %382 : vector<2x8xf32>
    %410 = tpu.transpose %409, [1, 0] : vector<2x8xf32> -> vector<8x2xf32>
    %411 = vector.shape_cast %410 : vector<8x2xf32> to vector<8x2x1xf32>
    %cst_120 = arith.constant 1.000000e+00 : f32
    %412 = vector.broadcast %cst_120 : f32 to vector<2x8xf32>
    %413 = arith.subf %412, %382 : vector<2x8xf32>
    %414 = arith.mulf %408, %413 : vector<2x8xf32>
    %415 = tpu.transpose %414, [1, 0] : vector<2x8xf32> -> vector<8x2xf32>
    %416 = vector.shape_cast %415 : vector<8x2xf32> to vector<8x2x1xf32>
    %417 = vector.broadcast %411 : vector<8x2x1xf32> to vector<8x2x32xf32>
    %418 = arith.mulf %417, %367 : vector<8x2x32xf32>
    %cst_121 = arith.constant dense<0.000000e+00> : vector<2x32xf32>
    %419 = vector.multi_reduction <add>, %418, %cst_121 [0] : vector<8x2x32xf32> to vector<2x32xf32>
    %420 = vector.broadcast %416 : vector<8x2x1xf32> to vector<8x2x32xf32>
    %421 = arith.mulf %420, %367 : vector<8x2x32xf32>
    %cst_122 = arith.constant dense<0.000000e+00> : vector<2x32xf32>
    %422 = vector.multi_reduction <add>, %421, %cst_122 [0] : vector<8x2x32xf32> to vector<2x32xf32>
    %423 = tpu.concatenate %419, %422 in 1 : vector<2x32xf32>, vector<2x32xf32> -> vector<2x64xf32>
    %cst_123 = arith.constant dense<0.000000e+00> : vector<2x32xf32>
    %424 = tpu.matmul %423, %15, %cst_123 {dimension_numbers = #tpu.dot_dimension_numbers<[1], [0], [0], [1], [0, 0, 1, 1], [], []>} : vector<2x64xf32>, vector<64x32xf32>, vector<2x32xf32> -> vector<2x32xf32>
    %cst_124 = arith.constant dense<0.000000e+00> : vector<2x192xf32>
    %425 = tpu.matmul %378, %1, %cst_124 {dimension_numbers = #tpu.dot_dimension_numbers<[1], [0], [0], [1], [0, 0, 1, 1], [], []>} : vector<2x32xf32>, vector<32x192xf32>, vector<2x192xf32> -> vector<2x192xf32>
    %426 = vector.broadcast %5 : vector<1x192xf32> to vector<2x192xf32>
    %427 = arith.addf %425, %426 : vector<2x192xf32>
    %cst_125 = arith.constant dense<0.000000e+00> : vector<2x192xf32>
    %428 = tpu.matmul %424, %3, %cst_125 {dimension_numbers = #tpu.dot_dimension_numbers<[1], [0], [0], [1], [0, 0, 1, 1], [], []>} : vector<2x32xf32>, vector<32x192xf32>, vector<2x192xf32> -> vector<2x192xf32>
    %429 = vector.broadcast %7 : vector<1x192xf32> to vector<2x192xf32>
    %430 = arith.addf %428, %429 : vector<2x192xf32>
    %431 = arith.addf %427, %430 : vector<2x192xf32>
    %432 = arith.negf %431 : vector<2x192xf32>
    %433 = math.exp %432 : vector<2x192xf32>
    %cst_126 = arith.constant 1.000000e+00 : f32
    %434 = vector.broadcast %cst_126 : f32 to vector<2x192xf32>
    %435 = arith.addf %434, %433 : vector<2x192xf32>
    %436 = arith.divf %434, %435 : vector<2x192xf32>
    %437 = vector.extract_strided_slice %436 {offsets = [0, 0], sizes = [2, 32], strides = [1, 1]} : vector<2x192xf32> to vector<2x32xf32>
    %438 = vector.extract_strided_slice %436 {offsets = [0, 32], sizes = [2, 32], strides = [1, 1]} : vector<2x192xf32> to vector<2x32xf32>
    %439 = vector.extract_strided_slice %436 {offsets = [0, 96], sizes = [2, 32], strides = [1, 1]} : vector<2x192xf32> to vector<2x32xf32>
    %440 = vector.extract_strided_slice %436 {offsets = [0, 128], sizes = [2, 32], strides = [1, 1]} : vector<2x192xf32> to vector<2x32xf32>
    %441 = vector.extract_strided_slice %427 {offsets = [0, 64], sizes = [2, 32], strides = [1, 1]} : vector<2x192xf32> to vector<2x32xf32>
    %442 = vector.extract_strided_slice %430 {offsets = [0, 64], sizes = [2, 32], strides = [1, 1]} : vector<2x192xf32> to vector<2x32xf32>
    %443 = arith.mulf %437, %442 : vector<2x32xf32>
    %444 = arith.addf %441, %443 : vector<2x32xf32>
    %445 = math.tanh %444 : vector<2x32xf32>
    %446 = vector.extract_strided_slice %430 {offsets = [0, 160], sizes = [2, 32], strides = [1, 1]} : vector<2x192xf32> to vector<2x32xf32>
    %447 = vector.extract_strided_slice %427 {offsets = [0, 160], sizes = [2, 32], strides = [1, 1]} : vector<2x192xf32> to vector<2x32xf32>
    %448 = arith.mulf %439, %447 : vector<2x32xf32>
    %449 = arith.addf %446, %448 : vector<2x32xf32>
    %450 = math.tanh %449 : vector<2x32xf32>
    %cst_127 = arith.constant 1.000000e+00 : f32
    %451 = vector.broadcast %cst_127 : f32 to vector<2x32xf32>
    %452 = arith.subf %451, %438 : vector<2x32xf32>
    %453 = arith.mulf %452, %445 : vector<2x32xf32>
    %454 = arith.mulf %438, %424 : vector<2x32xf32>
    %455 = arith.addf %453, %454 : vector<2x32xf32>
    %cst_128 = arith.constant 1.000000e+00 : f32
    %456 = vector.broadcast %cst_128 : f32 to vector<2x32xf32>
    %457 = arith.subf %456, %440 : vector<2x32xf32>
    %458 = arith.mulf %457, %450 : vector<2x32xf32>
    %459 = arith.mulf %440, %378 : vector<2x32xf32>
    %460 = arith.addf %458, %459 : vector<2x32xf32>
    %461 = arith.addf %455, %460 : vector<2x32xf32>
    %c4_i32_129 = arith.constant 4 : i32
    %462 = vector.broadcast %c4_i32_129 : i32 to vector<8x2x32xi32>
    %463 = arith.cmpi eq, %19, %462 : vector<8x2x32xi32>
    %464 = vector.shape_cast %461 : vector<2x32xf32> to vector<1x2x32xf32>
    %465 = vector.shape_cast %464 : vector<1x2x32xf32> to vector<1x2x32xf32>
    %466 = vector.broadcast %465 : vector<1x2x32xf32> to vector<8x2x32xf32>
    %467 = arith.select %463, %466, %367 : vector<8x2x32xi1>, vector<8x2x32xf32>
    %c4_i32_130 = arith.constant 4 : i32
    %468 = vector.broadcast %c4_i32_130 : i32 to vector<2x8xi32>
    %469 = arith.cmpi eq, %18, %468 : vector<2x8xi32>
    %470 = vector.broadcast %11 : vector<1x32xf32> to vector<2x32xf32>
    %471 = arith.mulf %461, %470 : vector<2x32xf32>
    %cst_131 = arith.constant dense<0.000000e+00> : vector<2xf32>
    %472 = vector.multi_reduction <add>, %471, %cst_131 [1] : vector<2x32xf32> to vector<2xf32>
    %473 = vector.shape_cast %472 : vector<2xf32> to vector<2x1xf32>
    %474 = vector.shape_cast %473 : vector<2x1xf32> to vector<2x1xf32>
    %475 = vector.broadcast %474 : vector<2x1xf32> to vector<2x8xf32>
    %476 = arith.select %469, %475, %376 : vector<2x8xi1>, vector<2x8xf32>
    %477 = vector.extract_strided_slice %17 {offsets = [5, 0, 0], sizes = [1, 2, 32], strides = [1, 1, 1]} : vector<8x2x32xf32> to vector<1x2x32xf32>
    %478 = vector.shape_cast %477 : vector<1x2x32xf32> to vector<2x32xf32>
    %c0_132 = arith.constant 0 : index
    %c5 = arith.constant 5 : index
    %c0_133 = arith.constant 0 : index
    %c0_134 = arith.constant 0 : index
    %479 = vector.load %arg2[%c0_132, %c5, %c0_133, %c0_134] : memref<1x8x2x8xf32, #tpu.memory_space<vmem>>, vector<1x1x2x8xf32>
    %480 = vector.shape_cast %479 : vector<1x1x2x8xf32> to vector<2x8xf32>
    %c5_135 = arith.constant 5 : index
    %c0_136 = arith.constant 0 : index
    %c0_137 = arith.constant 0 : index
    %481 = vector.load %arg3[%c5_135, %c0_136, %c0_137] : memref<8x2x8xf32, #tpu.memory_space<vmem>>, vector<1x2x8xf32>
    %482 = vector.shape_cast %481 : vector<1x2x8xf32> to vector<2x8xf32>
    %483 = vector.broadcast %9 : vector<1x32xf32> to vector<2x32xf32>
    %484 = arith.mulf %478, %483 : vector<2x32xf32>
    %cst_138 = arith.constant dense<0.000000e+00> : vector<2xf32>
    %485 = vector.multi_reduction <add>, %484, %cst_138 [1] : vector<2x32xf32> to vector<2xf32>
    %486 = vector.shape_cast %485 : vector<2xf32> to vector<2x1xf32>
    %487 = vector.broadcast %13 : vector<1x1xf32> to vector<2x1xf32>
    %488 = arith.addf %486, %487 : vector<2x1xf32>
    %489 = vector.broadcast %488 : vector<2x1xf32> to vector<2x8xf32>
    %490 = arith.addf %476, %489 : vector<2x8xf32>
    %cst_139 = arith.constant 1.000000e+00 : f32
    %491 = vector.broadcast %cst_139 : f32 to vector<2x8xf32>
    %492 = arith.subf %491, %480 : vector<2x8xf32>
    %cst_140 = arith.constant 1.000000e+30 : f32
    %493 = vector.broadcast %cst_140 : f32 to vector<2x8xf32>
    %494 = arith.mulf %492, %493 : vector<2x8xf32>
    %495 = arith.subf %490, %494 : vector<2x8xf32>
    %c5_i32 = arith.constant 5 : i32
    %496 = vector.broadcast %c5_i32 : i32 to vector<2x8xi32>
    %497 = arith.cmpi slt, %18, %496 : vector<2x8xi32>
    %cst_141 = arith.constant 0xFF800000 : f32
    %498 = vector.broadcast %cst_141 : f32 to vector<2x8xf32>
    %499 = arith.select %497, %495, %498 : vector<2x8xi1>, vector<2x8xf32>
    %cst_142 = arith.constant dense<0xFF800000> : vector<2xf32>
    %500 = vector.multi_reduction <maximumf>, %499, %cst_142 [1] : vector<2x8xf32> to vector<2xf32>
    %501 = vector.shape_cast %500 : vector<2xf32> to vector<2x1xf32>
    %502 = vector.broadcast %501 : vector<2x1xf32> to vector<2x8xf32>
    %503 = arith.subf %499, %502 : vector<2x8xf32>
    %504 = math.exp %503 : vector<2x8xf32>
    %cst_143 = arith.constant dense<0.000000e+00> : vector<2xf32>
    %505 = vector.multi_reduction <add>, %504, %cst_143 [1] : vector<2x8xf32> to vector<2xf32>
    %506 = vector.shape_cast %505 : vector<2xf32> to vector<2x1xf32>
    %507 = vector.broadcast %506 : vector<2x1xf32> to vector<2x8xf32>
    %508 = arith.divf %504, %507 : vector<2x8xf32>
    %509 = arith.mulf %508, %482 : vector<2x8xf32>
    %510 = tpu.transpose %509, [1, 0] : vector<2x8xf32> -> vector<8x2xf32>
    %511 = vector.shape_cast %510 : vector<8x2xf32> to vector<8x2x1xf32>
    %cst_144 = arith.constant 1.000000e+00 : f32
    %512 = vector.broadcast %cst_144 : f32 to vector<2x8xf32>
    %513 = arith.subf %512, %482 : vector<2x8xf32>
    %514 = arith.mulf %508, %513 : vector<2x8xf32>
    %515 = tpu.transpose %514, [1, 0] : vector<2x8xf32> -> vector<8x2xf32>
    %516 = vector.shape_cast %515 : vector<8x2xf32> to vector<8x2x1xf32>
    %517 = vector.broadcast %511 : vector<8x2x1xf32> to vector<8x2x32xf32>
    %518 = arith.mulf %517, %467 : vector<8x2x32xf32>
    %cst_145 = arith.constant dense<0.000000e+00> : vector<2x32xf32>
    %519 = vector.multi_reduction <add>, %518, %cst_145 [0] : vector<8x2x32xf32> to vector<2x32xf32>
    %520 = vector.broadcast %516 : vector<8x2x1xf32> to vector<8x2x32xf32>
    %521 = arith.mulf %520, %467 : vector<8x2x32xf32>
    %cst_146 = arith.constant dense<0.000000e+00> : vector<2x32xf32>
    %522 = vector.multi_reduction <add>, %521, %cst_146 [0] : vector<8x2x32xf32> to vector<2x32xf32>
    %523 = tpu.concatenate %519, %522 in 1 : vector<2x32xf32>, vector<2x32xf32> -> vector<2x64xf32>
    %cst_147 = arith.constant dense<0.000000e+00> : vector<2x32xf32>
    %524 = tpu.matmul %523, %15, %cst_147 {dimension_numbers = #tpu.dot_dimension_numbers<[1], [0], [0], [1], [0, 0, 1, 1], [], []>} : vector<2x64xf32>, vector<64x32xf32>, vector<2x32xf32> -> vector<2x32xf32>
    %cst_148 = arith.constant dense<0.000000e+00> : vector<2x192xf32>
    %525 = tpu.matmul %478, %1, %cst_148 {dimension_numbers = #tpu.dot_dimension_numbers<[1], [0], [0], [1], [0, 0, 1, 1], [], []>} : vector<2x32xf32>, vector<32x192xf32>, vector<2x192xf32> -> vector<2x192xf32>
    %526 = vector.broadcast %5 : vector<1x192xf32> to vector<2x192xf32>
    %527 = arith.addf %525, %526 : vector<2x192xf32>
    %cst_149 = arith.constant dense<0.000000e+00> : vector<2x192xf32>
    %528 = tpu.matmul %524, %3, %cst_149 {dimension_numbers = #tpu.dot_dimension_numbers<[1], [0], [0], [1], [0, 0, 1, 1], [], []>} : vector<2x32xf32>, vector<32x192xf32>, vector<2x192xf32> -> vector<2x192xf32>
    %529 = vector.broadcast %7 : vector<1x192xf32> to vector<2x192xf32>
    %530 = arith.addf %528, %529 : vector<2x192xf32>
    %531 = arith.addf %527, %530 : vector<2x192xf32>
    %532 = arith.negf %531 : vector<2x192xf32>
    %533 = math.exp %532 : vector<2x192xf32>
    %cst_150 = arith.constant 1.000000e+00 : f32
    %534 = vector.broadcast %cst_150 : f32 to vector<2x192xf32>
    %535 = arith.addf %534, %533 : vector<2x192xf32>
    %536 = arith.divf %534, %535 : vector<2x192xf32>
    %537 = vector.extract_strided_slice %536 {offsets = [0, 0], sizes = [2, 32], strides = [1, 1]} : vector<2x192xf32> to vector<2x32xf32>
    %538 = vector.extract_strided_slice %536 {offsets = [0, 32], sizes = [2, 32], strides = [1, 1]} : vector<2x192xf32> to vector<2x32xf32>
    %539 = vector.extract_strided_slice %536 {offsets = [0, 96], sizes = [2, 32], strides = [1, 1]} : vector<2x192xf32> to vector<2x32xf32>
    %540 = vector.extract_strided_slice %536 {offsets = [0, 128], sizes = [2, 32], strides = [1, 1]} : vector<2x192xf32> to vector<2x32xf32>
    %541 = vector.extract_strided_slice %527 {offsets = [0, 64], sizes = [2, 32], strides = [1, 1]} : vector<2x192xf32> to vector<2x32xf32>
    %542 = vector.extract_strided_slice %530 {offsets = [0, 64], sizes = [2, 32], strides = [1, 1]} : vector<2x192xf32> to vector<2x32xf32>
    %543 = arith.mulf %537, %542 : vector<2x32xf32>
    %544 = arith.addf %541, %543 : vector<2x32xf32>
    %545 = math.tanh %544 : vector<2x32xf32>
    %546 = vector.extract_strided_slice %530 {offsets = [0, 160], sizes = [2, 32], strides = [1, 1]} : vector<2x192xf32> to vector<2x32xf32>
    %547 = vector.extract_strided_slice %527 {offsets = [0, 160], sizes = [2, 32], strides = [1, 1]} : vector<2x192xf32> to vector<2x32xf32>
    %548 = arith.mulf %539, %547 : vector<2x32xf32>
    %549 = arith.addf %546, %548 : vector<2x32xf32>
    %550 = math.tanh %549 : vector<2x32xf32>
    %cst_151 = arith.constant 1.000000e+00 : f32
    %551 = vector.broadcast %cst_151 : f32 to vector<2x32xf32>
    %552 = arith.subf %551, %538 : vector<2x32xf32>
    %553 = arith.mulf %552, %545 : vector<2x32xf32>
    %554 = arith.mulf %538, %524 : vector<2x32xf32>
    %555 = arith.addf %553, %554 : vector<2x32xf32>
    %cst_152 = arith.constant 1.000000e+00 : f32
    %556 = vector.broadcast %cst_152 : f32 to vector<2x32xf32>
    %557 = arith.subf %556, %540 : vector<2x32xf32>
    %558 = arith.mulf %557, %550 : vector<2x32xf32>
    %559 = arith.mulf %540, %478 : vector<2x32xf32>
    %560 = arith.addf %558, %559 : vector<2x32xf32>
    %561 = arith.addf %555, %560 : vector<2x32xf32>
    %c5_i32_153 = arith.constant 5 : i32
    %562 = vector.broadcast %c5_i32_153 : i32 to vector<8x2x32xi32>
    %563 = arith.cmpi eq, %19, %562 : vector<8x2x32xi32>
    %564 = vector.shape_cast %561 : vector<2x32xf32> to vector<1x2x32xf32>
    %565 = vector.shape_cast %564 : vector<1x2x32xf32> to vector<1x2x32xf32>
    %566 = vector.broadcast %565 : vector<1x2x32xf32> to vector<8x2x32xf32>
    %567 = arith.select %563, %566, %467 : vector<8x2x32xi1>, vector<8x2x32xf32>
    %c5_i32_154 = arith.constant 5 : i32
    %568 = vector.broadcast %c5_i32_154 : i32 to vector<2x8xi32>
    %569 = arith.cmpi eq, %18, %568 : vector<2x8xi32>
    %570 = vector.broadcast %11 : vector<1x32xf32> to vector<2x32xf32>
    %571 = arith.mulf %561, %570 : vector<2x32xf32>
    %cst_155 = arith.constant dense<0.000000e+00> : vector<2xf32>
    %572 = vector.multi_reduction <add>, %571, %cst_155 [1] : vector<2x32xf32> to vector<2xf32>
    %573 = vector.shape_cast %572 : vector<2xf32> to vector<2x1xf32>
    %574 = vector.shape_cast %573 : vector<2x1xf32> to vector<2x1xf32>
    %575 = vector.broadcast %574 : vector<2x1xf32> to vector<2x8xf32>
    %576 = arith.select %569, %575, %476 : vector<2x8xi1>, vector<2x8xf32>
    %577 = vector.extract_strided_slice %17 {offsets = [6, 0, 0], sizes = [1, 2, 32], strides = [1, 1, 1]} : vector<8x2x32xf32> to vector<1x2x32xf32>
    %578 = vector.shape_cast %577 : vector<1x2x32xf32> to vector<2x32xf32>
    %c0_156 = arith.constant 0 : index
    %c6 = arith.constant 6 : index
    %c0_157 = arith.constant 0 : index
    %c0_158 = arith.constant 0 : index
    %579 = vector.load %arg2[%c0_156, %c6, %c0_157, %c0_158] : memref<1x8x2x8xf32, #tpu.memory_space<vmem>>, vector<1x1x2x8xf32>
    %580 = vector.shape_cast %579 : vector<1x1x2x8xf32> to vector<2x8xf32>
    %c6_159 = arith.constant 6 : index
    %c0_160 = arith.constant 0 : index
    %c0_161 = arith.constant 0 : index
    %581 = vector.load %arg3[%c6_159, %c0_160, %c0_161] : memref<8x2x8xf32, #tpu.memory_space<vmem>>, vector<1x2x8xf32>
    %582 = vector.shape_cast %581 : vector<1x2x8xf32> to vector<2x8xf32>
    %583 = vector.broadcast %9 : vector<1x32xf32> to vector<2x32xf32>
    %584 = arith.mulf %578, %583 : vector<2x32xf32>
    %cst_162 = arith.constant dense<0.000000e+00> : vector<2xf32>
    %585 = vector.multi_reduction <add>, %584, %cst_162 [1] : vector<2x32xf32> to vector<2xf32>
    %586 = vector.shape_cast %585 : vector<2xf32> to vector<2x1xf32>
    %587 = vector.broadcast %13 : vector<1x1xf32> to vector<2x1xf32>
    %588 = arith.addf %586, %587 : vector<2x1xf32>
    %589 = vector.broadcast %588 : vector<2x1xf32> to vector<2x8xf32>
    %590 = arith.addf %576, %589 : vector<2x8xf32>
    %cst_163 = arith.constant 1.000000e+00 : f32
    %591 = vector.broadcast %cst_163 : f32 to vector<2x8xf32>
    %592 = arith.subf %591, %580 : vector<2x8xf32>
    %cst_164 = arith.constant 1.000000e+30 : f32
    %593 = vector.broadcast %cst_164 : f32 to vector<2x8xf32>
    %594 = arith.mulf %592, %593 : vector<2x8xf32>
    %595 = arith.subf %590, %594 : vector<2x8xf32>
    %c6_i32 = arith.constant 6 : i32
    %596 = vector.broadcast %c6_i32 : i32 to vector<2x8xi32>
    %597 = arith.cmpi slt, %18, %596 : vector<2x8xi32>
    %cst_165 = arith.constant 0xFF800000 : f32
    %598 = vector.broadcast %cst_165 : f32 to vector<2x8xf32>
    %599 = arith.select %597, %595, %598 : vector<2x8xi1>, vector<2x8xf32>
    %cst_166 = arith.constant dense<0xFF800000> : vector<2xf32>
    %600 = vector.multi_reduction <maximumf>, %599, %cst_166 [1] : vector<2x8xf32> to vector<2xf32>
    %601 = vector.shape_cast %600 : vector<2xf32> to vector<2x1xf32>
    %602 = vector.broadcast %601 : vector<2x1xf32> to vector<2x8xf32>
    %603 = arith.subf %599, %602 : vector<2x8xf32>
    %604 = math.exp %603 : vector<2x8xf32>
    %cst_167 = arith.constant dense<0.000000e+00> : vector<2xf32>
    %605 = vector.multi_reduction <add>, %604, %cst_167 [1] : vector<2x8xf32> to vector<2xf32>
    %606 = vector.shape_cast %605 : vector<2xf32> to vector<2x1xf32>
    %607 = vector.broadcast %606 : vector<2x1xf32> to vector<2x8xf32>
    %608 = arith.divf %604, %607 : vector<2x8xf32>
    %609 = arith.mulf %608, %582 : vector<2x8xf32>
    %610 = tpu.transpose %609, [1, 0] : vector<2x8xf32> -> vector<8x2xf32>
    %611 = vector.shape_cast %610 : vector<8x2xf32> to vector<8x2x1xf32>
    %cst_168 = arith.constant 1.000000e+00 : f32
    %612 = vector.broadcast %cst_168 : f32 to vector<2x8xf32>
    %613 = arith.subf %612, %582 : vector<2x8xf32>
    %614 = arith.mulf %608, %613 : vector<2x8xf32>
    %615 = tpu.transpose %614, [1, 0] : vector<2x8xf32> -> vector<8x2xf32>
    %616 = vector.shape_cast %615 : vector<8x2xf32> to vector<8x2x1xf32>
    %617 = vector.broadcast %611 : vector<8x2x1xf32> to vector<8x2x32xf32>
    %618 = arith.mulf %617, %567 : vector<8x2x32xf32>
    %cst_169 = arith.constant dense<0.000000e+00> : vector<2x32xf32>
    %619 = vector.multi_reduction <add>, %618, %cst_169 [0] : vector<8x2x32xf32> to vector<2x32xf32>
    %620 = vector.broadcast %616 : vector<8x2x1xf32> to vector<8x2x32xf32>
    %621 = arith.mulf %620, %567 : vector<8x2x32xf32>
    %cst_170 = arith.constant dense<0.000000e+00> : vector<2x32xf32>
    %622 = vector.multi_reduction <add>, %621, %cst_170 [0] : vector<8x2x32xf32> to vector<2x32xf32>
    %623 = tpu.concatenate %619, %622 in 1 : vector<2x32xf32>, vector<2x32xf32> -> vector<2x64xf32>
    %cst_171 = arith.constant dense<0.000000e+00> : vector<2x32xf32>
    %624 = tpu.matmul %623, %15, %cst_171 {dimension_numbers = #tpu.dot_dimension_numbers<[1], [0], [0], [1], [0, 0, 1, 1], [], []>} : vector<2x64xf32>, vector<64x32xf32>, vector<2x32xf32> -> vector<2x32xf32>
    %cst_172 = arith.constant dense<0.000000e+00> : vector<2x192xf32>
    %625 = tpu.matmul %578, %1, %cst_172 {dimension_numbers = #tpu.dot_dimension_numbers<[1], [0], [0], [1], [0, 0, 1, 1], [], []>} : vector<2x32xf32>, vector<32x192xf32>, vector<2x192xf32> -> vector<2x192xf32>
    %626 = vector.broadcast %5 : vector<1x192xf32> to vector<2x192xf32>
    %627 = arith.addf %625, %626 : vector<2x192xf32>
    %cst_173 = arith.constant dense<0.000000e+00> : vector<2x192xf32>
    %628 = tpu.matmul %624, %3, %cst_173 {dimension_numbers = #tpu.dot_dimension_numbers<[1], [0], [0], [1], [0, 0, 1, 1], [], []>} : vector<2x32xf32>, vector<32x192xf32>, vector<2x192xf32> -> vector<2x192xf32>
    %629 = vector.broadcast %7 : vector<1x192xf32> to vector<2x192xf32>
    %630 = arith.addf %628, %629 : vector<2x192xf32>
    %631 = arith.addf %627, %630 : vector<2x192xf32>
    %632 = arith.negf %631 : vector<2x192xf32>
    %633 = math.exp %632 : vector<2x192xf32>
    %cst_174 = arith.constant 1.000000e+00 : f32
    %634 = vector.broadcast %cst_174 : f32 to vector<2x192xf32>
    %635 = arith.addf %634, %633 : vector<2x192xf32>
    %636 = arith.divf %634, %635 : vector<2x192xf32>
    %637 = vector.extract_strided_slice %636 {offsets = [0, 0], sizes = [2, 32], strides = [1, 1]} : vector<2x192xf32> to vector<2x32xf32>
    %638 = vector.extract_strided_slice %636 {offsets = [0, 32], sizes = [2, 32], strides = [1, 1]} : vector<2x192xf32> to vector<2x32xf32>
    %639 = vector.extract_strided_slice %636 {offsets = [0, 96], sizes = [2, 32], strides = [1, 1]} : vector<2x192xf32> to vector<2x32xf32>
    %640 = vector.extract_strided_slice %636 {offsets = [0, 128], sizes = [2, 32], strides = [1, 1]} : vector<2x192xf32> to vector<2x32xf32>
    %641 = vector.extract_strided_slice %627 {offsets = [0, 64], sizes = [2, 32], strides = [1, 1]} : vector<2x192xf32> to vector<2x32xf32>
    %642 = vector.extract_strided_slice %630 {offsets = [0, 64], sizes = [2, 32], strides = [1, 1]} : vector<2x192xf32> to vector<2x32xf32>
    %643 = arith.mulf %637, %642 : vector<2x32xf32>
    %644 = arith.addf %641, %643 : vector<2x32xf32>
    %645 = math.tanh %644 : vector<2x32xf32>
    %646 = vector.extract_strided_slice %630 {offsets = [0, 160], sizes = [2, 32], strides = [1, 1]} : vector<2x192xf32> to vector<2x32xf32>
    %647 = vector.extract_strided_slice %627 {offsets = [0, 160], sizes = [2, 32], strides = [1, 1]} : vector<2x192xf32> to vector<2x32xf32>
    %648 = arith.mulf %639, %647 : vector<2x32xf32>
    %649 = arith.addf %646, %648 : vector<2x32xf32>
    %650 = math.tanh %649 : vector<2x32xf32>
    %cst_175 = arith.constant 1.000000e+00 : f32
    %651 = vector.broadcast %cst_175 : f32 to vector<2x32xf32>
    %652 = arith.subf %651, %638 : vector<2x32xf32>
    %653 = arith.mulf %652, %645 : vector<2x32xf32>
    %654 = arith.mulf %638, %624 : vector<2x32xf32>
    %655 = arith.addf %653, %654 : vector<2x32xf32>
    %cst_176 = arith.constant 1.000000e+00 : f32
    %656 = vector.broadcast %cst_176 : f32 to vector<2x32xf32>
    %657 = arith.subf %656, %640 : vector<2x32xf32>
    %658 = arith.mulf %657, %650 : vector<2x32xf32>
    %659 = arith.mulf %640, %578 : vector<2x32xf32>
    %660 = arith.addf %658, %659 : vector<2x32xf32>
    %661 = arith.addf %655, %660 : vector<2x32xf32>
    %c6_i32_177 = arith.constant 6 : i32
    %662 = vector.broadcast %c6_i32_177 : i32 to vector<8x2x32xi32>
    %663 = arith.cmpi eq, %19, %662 : vector<8x2x32xi32>
    %664 = vector.shape_cast %661 : vector<2x32xf32> to vector<1x2x32xf32>
    %665 = vector.shape_cast %664 : vector<1x2x32xf32> to vector<1x2x32xf32>
    %666 = vector.broadcast %665 : vector<1x2x32xf32> to vector<8x2x32xf32>
    %667 = arith.select %663, %666, %567 : vector<8x2x32xi1>, vector<8x2x32xf32>
    %c6_i32_178 = arith.constant 6 : i32
    %668 = vector.broadcast %c6_i32_178 : i32 to vector<2x8xi32>
    %669 = arith.cmpi eq, %18, %668 : vector<2x8xi32>
    %670 = vector.broadcast %11 : vector<1x32xf32> to vector<2x32xf32>
    %671 = arith.mulf %661, %670 : vector<2x32xf32>
    %cst_179 = arith.constant dense<0.000000e+00> : vector<2xf32>
    %672 = vector.multi_reduction <add>, %671, %cst_179 [1] : vector<2x32xf32> to vector<2xf32>
    %673 = vector.shape_cast %672 : vector<2xf32> to vector<2x1xf32>
    %674 = vector.shape_cast %673 : vector<2x1xf32> to vector<2x1xf32>
    %675 = vector.broadcast %674 : vector<2x1xf32> to vector<2x8xf32>
    %676 = arith.select %669, %675, %576 : vector<2x8xi1>, vector<2x8xf32>
    %677 = vector.extract_strided_slice %17 {offsets = [7, 0, 0], sizes = [1, 2, 32], strides = [1, 1, 1]} : vector<8x2x32xf32> to vector<1x2x32xf32>
    %678 = vector.shape_cast %677 : vector<1x2x32xf32> to vector<2x32xf32>
    %c0_180 = arith.constant 0 : index
    %c7 = arith.constant 7 : index
    %c0_181 = arith.constant 0 : index
    %c0_182 = arith.constant 0 : index
    %679 = vector.load %arg2[%c0_180, %c7, %c0_181, %c0_182] : memref<1x8x2x8xf32, #tpu.memory_space<vmem>>, vector<1x1x2x8xf32>
    %680 = vector.shape_cast %679 : vector<1x1x2x8xf32> to vector<2x8xf32>
    %c7_183 = arith.constant 7 : index
    %c0_184 = arith.constant 0 : index
    %c0_185 = arith.constant 0 : index
    %681 = vector.load %arg3[%c7_183, %c0_184, %c0_185] : memref<8x2x8xf32, #tpu.memory_space<vmem>>, vector<1x2x8xf32>
    %682 = vector.shape_cast %681 : vector<1x2x8xf32> to vector<2x8xf32>
    %683 = vector.broadcast %9 : vector<1x32xf32> to vector<2x32xf32>
    %684 = arith.mulf %678, %683 : vector<2x32xf32>
    %cst_186 = arith.constant dense<0.000000e+00> : vector<2xf32>
    %685 = vector.multi_reduction <add>, %684, %cst_186 [1] : vector<2x32xf32> to vector<2xf32>
    %686 = vector.shape_cast %685 : vector<2xf32> to vector<2x1xf32>
    %687 = vector.broadcast %13 : vector<1x1xf32> to vector<2x1xf32>
    %688 = arith.addf %686, %687 : vector<2x1xf32>
    %689 = vector.broadcast %688 : vector<2x1xf32> to vector<2x8xf32>
    %690 = arith.addf %676, %689 : vector<2x8xf32>
    %cst_187 = arith.constant 1.000000e+00 : f32
    %691 = vector.broadcast %cst_187 : f32 to vector<2x8xf32>
    %692 = arith.subf %691, %680 : vector<2x8xf32>
    %cst_188 = arith.constant 1.000000e+30 : f32
    %693 = vector.broadcast %cst_188 : f32 to vector<2x8xf32>
    %694 = arith.mulf %692, %693 : vector<2x8xf32>
    %695 = arith.subf %690, %694 : vector<2x8xf32>
    %c7_i32 = arith.constant 7 : i32
    %696 = vector.broadcast %c7_i32 : i32 to vector<2x8xi32>
    %697 = arith.cmpi slt, %18, %696 : vector<2x8xi32>
    %cst_189 = arith.constant 0xFF800000 : f32
    %698 = vector.broadcast %cst_189 : f32 to vector<2x8xf32>
    %699 = arith.select %697, %695, %698 : vector<2x8xi1>, vector<2x8xf32>
    %cst_190 = arith.constant dense<0xFF800000> : vector<2xf32>
    %700 = vector.multi_reduction <maximumf>, %699, %cst_190 [1] : vector<2x8xf32> to vector<2xf32>
    %701 = vector.shape_cast %700 : vector<2xf32> to vector<2x1xf32>
    %702 = vector.broadcast %701 : vector<2x1xf32> to vector<2x8xf32>
    %703 = arith.subf %699, %702 : vector<2x8xf32>
    %704 = math.exp %703 : vector<2x8xf32>
    %cst_191 = arith.constant dense<0.000000e+00> : vector<2xf32>
    %705 = vector.multi_reduction <add>, %704, %cst_191 [1] : vector<2x8xf32> to vector<2xf32>
    %706 = vector.shape_cast %705 : vector<2xf32> to vector<2x1xf32>
    %707 = vector.broadcast %706 : vector<2x1xf32> to vector<2x8xf32>
    %708 = arith.divf %704, %707 : vector<2x8xf32>
    %709 = arith.mulf %708, %682 : vector<2x8xf32>
    %710 = tpu.transpose %709, [1, 0] : vector<2x8xf32> -> vector<8x2xf32>
    %711 = vector.shape_cast %710 : vector<8x2xf32> to vector<8x2x1xf32>
    %cst_192 = arith.constant 1.000000e+00 : f32
    %712 = vector.broadcast %cst_192 : f32 to vector<2x8xf32>
    %713 = arith.subf %712, %682 : vector<2x8xf32>
    %714 = arith.mulf %708, %713 : vector<2x8xf32>
    %715 = tpu.transpose %714, [1, 0] : vector<2x8xf32> -> vector<8x2xf32>
    %716 = vector.shape_cast %715 : vector<8x2xf32> to vector<8x2x1xf32>
    %717 = vector.broadcast %711 : vector<8x2x1xf32> to vector<8x2x32xf32>
    %718 = arith.mulf %717, %667 : vector<8x2x32xf32>
    %cst_193 = arith.constant dense<0.000000e+00> : vector<2x32xf32>
    %719 = vector.multi_reduction <add>, %718, %cst_193 [0] : vector<8x2x32xf32> to vector<2x32xf32>
    %720 = vector.broadcast %716 : vector<8x2x1xf32> to vector<8x2x32xf32>
    %721 = arith.mulf %720, %667 : vector<8x2x32xf32>
    %cst_194 = arith.constant dense<0.000000e+00> : vector<2x32xf32>
    %722 = vector.multi_reduction <add>, %721, %cst_194 [0] : vector<8x2x32xf32> to vector<2x32xf32>
    %723 = tpu.concatenate %719, %722 in 1 : vector<2x32xf32>, vector<2x32xf32> -> vector<2x64xf32>
    %cst_195 = arith.constant dense<0.000000e+00> : vector<2x32xf32>
    %724 = tpu.matmul %723, %15, %cst_195 {dimension_numbers = #tpu.dot_dimension_numbers<[1], [0], [0], [1], [0, 0, 1, 1], [], []>} : vector<2x64xf32>, vector<64x32xf32>, vector<2x32xf32> -> vector<2x32xf32>
    %cst_196 = arith.constant dense<0.000000e+00> : vector<2x192xf32>
    %725 = tpu.matmul %678, %1, %cst_196 {dimension_numbers = #tpu.dot_dimension_numbers<[1], [0], [0], [1], [0, 0, 1, 1], [], []>} : vector<2x32xf32>, vector<32x192xf32>, vector<2x192xf32> -> vector<2x192xf32>
    %726 = vector.broadcast %5 : vector<1x192xf32> to vector<2x192xf32>
    %727 = arith.addf %725, %726 : vector<2x192xf32>
    %cst_197 = arith.constant dense<0.000000e+00> : vector<2x192xf32>
    %728 = tpu.matmul %724, %3, %cst_197 {dimension_numbers = #tpu.dot_dimension_numbers<[1], [0], [0], [1], [0, 0, 1, 1], [], []>} : vector<2x32xf32>, vector<32x192xf32>, vector<2x192xf32> -> vector<2x192xf32>
    %729 = vector.broadcast %7 : vector<1x192xf32> to vector<2x192xf32>
    %730 = arith.addf %728, %729 : vector<2x192xf32>
    %731 = arith.addf %727, %730 : vector<2x192xf32>
    %732 = arith.negf %731 : vector<2x192xf32>
    %733 = math.exp %732 : vector<2x192xf32>
    %cst_198 = arith.constant 1.000000e+00 : f32
    %734 = vector.broadcast %cst_198 : f32 to vector<2x192xf32>
    %735 = arith.addf %734, %733 : vector<2x192xf32>
    %736 = arith.divf %734, %735 : vector<2x192xf32>
    %737 = vector.extract_strided_slice %736 {offsets = [0, 0], sizes = [2, 32], strides = [1, 1]} : vector<2x192xf32> to vector<2x32xf32>
    %738 = vector.extract_strided_slice %736 {offsets = [0, 32], sizes = [2, 32], strides = [1, 1]} : vector<2x192xf32> to vector<2x32xf32>
    %739 = vector.extract_strided_slice %736 {offsets = [0, 96], sizes = [2, 32], strides = [1, 1]} : vector<2x192xf32> to vector<2x32xf32>
    %740 = vector.extract_strided_slice %736 {offsets = [0, 128], sizes = [2, 32], strides = [1, 1]} : vector<2x192xf32> to vector<2x32xf32>
    %741 = vector.extract_strided_slice %727 {offsets = [0, 64], sizes = [2, 32], strides = [1, 1]} : vector<2x192xf32> to vector<2x32xf32>
    %742 = vector.extract_strided_slice %730 {offsets = [0, 64], sizes = [2, 32], strides = [1, 1]} : vector<2x192xf32> to vector<2x32xf32>
    %743 = arith.mulf %737, %742 : vector<2x32xf32>
    %744 = arith.addf %741, %743 : vector<2x32xf32>
    %745 = math.tanh %744 : vector<2x32xf32>
    %746 = vector.extract_strided_slice %730 {offsets = [0, 160], sizes = [2, 32], strides = [1, 1]} : vector<2x192xf32> to vector<2x32xf32>
    %747 = vector.extract_strided_slice %727 {offsets = [0, 160], sizes = [2, 32], strides = [1, 1]} : vector<2x192xf32> to vector<2x32xf32>
    %748 = arith.mulf %739, %747 : vector<2x32xf32>
    %749 = arith.addf %746, %748 : vector<2x32xf32>
    %750 = math.tanh %749 : vector<2x32xf32>
    %cst_199 = arith.constant 1.000000e+00 : f32
    %751 = vector.broadcast %cst_199 : f32 to vector<2x32xf32>
    %752 = arith.subf %751, %738 : vector<2x32xf32>
    %753 = arith.mulf %752, %745 : vector<2x32xf32>
    %754 = arith.mulf %738, %724 : vector<2x32xf32>
    %755 = arith.addf %753, %754 : vector<2x32xf32>
    %cst_200 = arith.constant 1.000000e+00 : f32
    %756 = vector.broadcast %cst_200 : f32 to vector<2x32xf32>
    %757 = arith.subf %756, %740 : vector<2x32xf32>
    %758 = arith.mulf %757, %750 : vector<2x32xf32>
    %759 = arith.mulf %740, %678 : vector<2x32xf32>
    %760 = arith.addf %758, %759 : vector<2x32xf32>
    %761 = arith.addf %755, %760 : vector<2x32xf32>
    %c7_i32_201 = arith.constant 7 : i32
    %762 = vector.broadcast %c7_i32_201 : i32 to vector<8x2x32xi32>
    %763 = arith.cmpi eq, %19, %762 : vector<8x2x32xi32>
    %764 = vector.shape_cast %761 : vector<2x32xf32> to vector<1x2x32xf32>
    %765 = vector.shape_cast %764 : vector<1x2x32xf32> to vector<1x2x32xf32>
    %766 = vector.broadcast %765 : vector<1x2x32xf32> to vector<8x2x32xf32>
    %767 = arith.select %763, %766, %667 : vector<8x2x32xi1>, vector<8x2x32xf32>
    %c0_202 = arith.constant 0 : index
    %c0_203 = arith.constant 0 : index
    %c0_204 = arith.constant 0 : index
    %c0_205 = arith.constant 0 : index
    %768 = vector.load %arg12[%c0_202, %c0_203, %c0_204, %c0_205] : memref<1x8x2x32xf32, #tpu.memory_space<vmem>>, vector<1x8x2x32xf32>
    %769 = vector.shape_cast %768 : vector<1x8x2x32xf32> to vector<8x2x32xf32>
    %770 = vector.shape_cast %767 : vector<8x2x32xf32> to vector<1x8x2x32xf32>
    tpu.vector_store %arg12[%c0_202, %c0_203, %c0_204, %c0_205], %770 {strides = array<i32>} : memref<1x8x2x32xf32, #tpu.memory_space<vmem>>, vector<1x8x2x32xf32>,
    return
  }
  func.func @transform_0(%arg0: i32) -> (i32, i32, i32, i32) {
    %c0_i32 = arith.constant 0 : i32
    %c0_i32_0 = arith.constant 0 : i32
    %c0_i32_1 = arith.constant 0 : i32
    %c0_i32_2 = arith.constant 0 : i32
    return %arg0, %c0_i32, %c0_i32_0, %c0_i32_1 : i32, i32, i32, i32
  }
  func.func @transform_1(%arg0: i32) -> (i32, i32, i32, i32) {
    %c0_i32 = arith.constant 0 : i32
    %c0_i32_0 = arith.constant 0 : i32
    %c0_i32_1 = arith.constant 0 : i32
    %c0_i32_2 = arith.constant 0 : i32
    return %arg0, %c0_i32, %c0_i32_0, %c0_i32_1 : i32, i32, i32, i32
  }
  func.func @transform_2(%arg0: i32) -> (i32, i32, i32) {
    %c0_i32 = arith.constant 0 : i32
    %c0_i32_0 = arith.constant 0 : i32
    %c0_i32_1 = arith.constant 0 : i32
    %c0_i32_2 = arith.constant 0 : i32
    return %c0_i32, %c0_i32_0, %c0_i32_1 : i32, i32, i32
  }
  func.func @transform_3(%arg0: i32) -> (i32, i32, i32) {
    %c0_i32 = arith.constant 0 : i32
    %c0_i32_0 = arith.constant 0 : i32
    %c0_i32_1 = arith.constant 0 : i32
    return %arg0, %c0_i32, %c0_i32_0 : i32, i32, i32
  }
  func.func @transform_4(%arg0: i32) -> (i32, i32, i32) {
    %c0_i32 = arith.constant 0 : i32
    %c0_i32_0 = arith.constant 0 : i32
    %c0_i32_1 = arith.constant 0 : i32
    return %arg0, %c0_i32, %c0_i32_0 : i32, i32, i32
  }
  func.func @transform_5(%arg0: i32) -> (i32, i32, i32) {
    %c0_i32 = arith.constant 0 : i32
    %c0_i32_0 = arith.constant 0 : i32
    %c0_i32_1 = arith.constant 0 : i32
    return %arg0, %c0_i32, %c0_i32_0 : i32, i32, i32
  }
  func.func @transform_6(%arg0: i32) -> (i32, i32, i32) {
    %c0_i32 = arith.constant 0 : i32
    %c0_i32_0 = arith.constant 0 : i32
    %c0_i32_1 = arith.constant 0 : i32
    return %arg0, %c0_i32, %c0_i32_0 : i32, i32, i32
  }
  func.func @transform_7(%arg0: i32) -> (i32, i32, i32) {
    %c0_i32 = arith.constant 0 : i32
    %c0_i32_0 = arith.constant 0 : i32
    %c0_i32_1 = arith.constant 0 : i32
    return %arg0, %c0_i32, %c0_i32_0 : i32, i32, i32
  }
  func.func @transform_8(%arg0: i32) -> (i32, i32, i32) {
    %c0_i32 = arith.constant 0 : i32
    %c0_i32_0 = arith.constant 0 : i32
    %c0_i32_1 = arith.constant 0 : i32
    return %arg0, %c0_i32, %c0_i32_0 : i32, i32, i32
  }
  func.func @transform_9(%arg0: i32) -> (i32, i32, i32) {
    %c0_i32 = arith.constant 0 : i32
    %c0_i32_0 = arith.constant 0 : i32
    %c0_i32_1 = arith.constant 0 : i32
    return %arg0, %c0_i32, %c0_i32_0 : i32, i32, i32
  }
  func.func @transform_10(%arg0: i32) -> (i32, i32, i32) {
    %c0_i32 = arith.constant 0 : i32
    %c0_i32_0 = arith.constant 0 : i32
    %c0_i32_1 = arith.constant 0 : i32
    return %arg0, %c0_i32, %c0_i32_0 : i32, i32, i32
  }
  func.func @transform_11(%arg0: i32) -> (i32, i32, i32, i32) {
    %c0_i32 = arith.constant 0 : i32
    %c0_i32_0 = arith.constant 0 : i32
    %c0_i32_1 = arith.constant 0 : i32
    %c0_i32_2 = arith.constant 0 : i32
    return %arg0, %c0_i32, %c0_i32_0, %c0_i32_1 : i32, i32, i32, i32
  }
}

</mosaic_0001>

<bundles_post_ra>
// kernel: forward.9
= control target key start
LH: loop header
LB: loop body
LE: loop exit
PB: predicated region body
PF: predicated region fallthrough
CT: control target
= control target key end

     0   :  { %vm74_vm0 = vcmask 392192   ;;  %vm168_vm1 = vcmask 261120   ;;  %vm878_vm2 = vcmask 48128   ;;  %s1443_s5 = inlined_call_operand.vmem [shape: f32[48,32], index: 5, kind: input, shape index: {}]   ;;  %s1444_s0 = inlined_call_operand.vmem [shape: f32[16,48], index: 0, kind: input, shape index: {}]   ;;  %s1445_s8 = inlined_call_operand.vmem [shape: f32[32,32], index: 8, kind: input, shape index: {}]   ;;  %s1446_s1 = inlined_call_operand.vmem [shape: f32[16,32], index: 1, kind: input, shape index: {}]   ;;  %s1447_s7 = inlined_call_operand.vmem [shape: f32[32,32], index: 7, kind: input, shape index: {}]   ;;  %s1448_s9 = inlined_call_operand.vmem [shape: f32[32,32], index: 9, kind: input, shape index: {}]   ;;  %s1449_s12 = inlined_call_operand.vmem [shape: f32[48,32], index: 12, kind: input, shape index: {}]   ;;  %s1450_s6 = inlined_call_operand.vmem [shape: f32[1,32], index: 6, kind: input, shape index: {}]   ;;  %s1451_s2 = inlined_call_operand.vmem [shape: f32[16,32], index: 2, kind: input, shape index: {}]   ;;  %s1452_s10 = inlined_call_operand.vmem [shape: f32[32,32], index: 10, kind: input, shape index: {}]   ;;  %s1453_s3 = inlined_call_operand.vmem [shape: f32[16,32], index: 3, kind: input, shape index: {}]   ;;  %s1454_s11 = inlined_call_operand.vmem [shape: f32[32,32], index: 11, kind: input, shape index: {}]   ;;  %s1455_s4 = inlined_call_operand.vmem [shape: f32[16,32], index: 4, kind: input, shape index: {}]   ;;  %s1456_s14 = inlined_call_operand.vmem [shape: f32[32,32], index: 14, kind: input, shape index: {}]   ;;  %s1457_s16 = inlined_call_operand.vmem [shape: f32[32,6], index: 16, kind: input, shape index: {}]   ;;  %s1458_s13 = inlined_call_operand.vmem [shape: f32[1,32], index: 13, kind: input, shape index: {}]   ;;  %s1459_s15 = inlined_call_operand.vmem [shape: f32[1,32], index: 15, kind: input, shape index: {}]   ;;  %s1460_s17 = inlined_call_operand.vmem [shape: f32[1,6], index: 17, kind: input, shape index: {}]   ;;  %s1461_s18 = inlined_call_operand.vmem [shape: f32[16,6], index: 18, kind: output, shape index: {}]  }
   0x1   :  { %1465 = sst [smem:[#allocation2_spill]] %s1443_s5  ;;  %v162_v15 = vld [vmem:[%s1446_s1] sm:$0xff]  ;;  %v159_v18 = vld [vmem:[%s1447_s7 + $0x8] sm:$0xff]  ;;  %v160_v22 = vld [vmem:[%s1447_s7 + $0x10] sm:$0xff] }
   0x2   :  { %1466 = sst [smem:[#allocation3_spill]] %s1444_s0  ;;  %s1468_s29 = sld [smem:[#allocation2_spill]]  ;;  %988 = vmatprep.mubr.msk.f32.mxu1 %vm168_vm1, %v162_v15  ;;  %v158_v17 = vld [vmem:[%s1447_s7] sm:$0xff]  ;;  %v163_v20 = vld [vmem:[%s1446_s1 + $0x8] sm:$0xff]  ;;  %v161_v23 = vld [vmem:[%s1447_s7 + $0x18] sm:$0xff] }
   0x3   :  { %1467 = sst [smem:[#allocation4_spill]] %s1445_s8  ;;  %s1469_s27 = sld [smem:[#allocation3_spill]]  ;;  %v1092_v19 = vpack.c.bf16 %v159_v18, %v158_v17  ;;  %v1096_v24 = vpack.c.bf16 %v161_v23, %v160_v22  ;;  %v333_v25 = vld [vmem:[%s1448_s9] sm:$0xff]  ;;  %v334_v26 = vld [vmem:[%s1448_s9 + $0x8] sm:$0xff]  ;;  %v600_v31 = vld [vmem:[%s1449_s12 + $0x10] sm:$0xff] }
   0x4   :  { %s1470_s5 = sld [smem:[#allocation4_spill]]  ;;  %v1100_v27 = vpack.c.bf16 %v334_v26, %v333_v25  ;;  %v598_v28 = vld [vmem:[%s1449_s12] sm:$0xff]  ;;  %v599_v29 = vld [vmem:[%s1449_s12 + $0x8] sm:$0xff]  ;;  %v601_v32 = vld [vmem:[%s1449_s12 + $0x18] sm:$0xff] }
   0x5   :  { %v1124_v30 = vpack.c.bf16 %v599_v29, %v598_v28  ;;  %v1128_v33 = vpack.c.bf16 %v601_v32, %v600_v31  ;;  %v602_v34 = vld [vmem:[%s1449_s12 + $0x20] sm:$0xff]  ;;  %v603_v35 = vld [vmem:[%s1449_s12 + $0x28] sm:$0xff]  ;;  %v335_v42 = vld [vmem:[%s1448_s9 + $0x10] sm:$0xff] }
   0x6   :  { %v1132_v36 = vpack.c.bf16 %v603_v35, %v602_v34  ;;  %v885_v37 = vld [vmem:[%s1450_s6] ss:$0 sm:$0xff]  ;;  %v336_v43 = vld [vmem:[%s1448_s9 + $0x18] sm:$0xff]  ;;  %v423_v49 = vld [vmem:[%s1452_s10 + $0x8] sm:$0xff] }
   0x7   :  { %v1104_v46 = vpack.c.bf16 %v336_v43, %v335_v42  ;;  %v331_v47 = vld [vmem:[%s1451_s2] sm:$0xff]  ;;  %v424_v51 = vld [vmem:[%s1452_s10 + $0x10] sm:$0xff]  ;;  %v425_v52 = vld [vmem:[%s1452_s10 + $0x18] sm:$0xff] }
   0x8   :  { %v61_v0 = vld [vmem:[%s1468_s29] sm:$0xff]  ;;  %v62_v1 = vld [vmem:[%s1468_s29 + $0x8] sm:$0xff]  ;;  %v63_v2 = vld [vmem:[%s1468_s29 + $0x10] sm:$0xff]  ;;  %v1112_v54 = vpack.c.bf16 %v425_v52, %v424_v51 }
   0x9   :  { %v1072_v3 = vpack.c.bf16 %v62_v1, %v61_v0  ;;  %v64_v4 = vld [vmem:[%s1468_s29 + $0x18] sm:$0xff]  ;;  %v65_v5 = vld [vmem:[%s1468_s29 + $0x20] sm:$0xff]  ;;  %v66_v7 = vld [vmem:[%s1468_s29 + $0x28] sm:$0xff] }
   0xa   :  { %v1076_v6 = vpack.c.bf16 %v64_v4, %v63_v2  ;;  %v59_v8 = vld [vmem:[%s1469_s27] sm:$0xff]  ;;  %v165_v10 = vld [vmem:[%s1470_s5 + $0x8] sm:$0xff]  ;;  %v166_v11 = vld [vmem:[%s1470_s5 + $0x10] sm:$0xff]  ;;  %v1080_v16 = vpack.c.bf16 %v66_v7, %v65_v5 }
   0xb   :  { %v164_v9 = vld [vmem:[%s1470_s5] sm:$0xff]  ;;  %1073 = vmatprep.subr.bf16.mxu0 %v1072_v3  ;;  %977 = vmatprep.mubr.msk.f32.mxu0 %vm74_vm0, %v59_v8  ;;  %v167_v12 = vld [vmem:[%s1470_s5 + $0x18] sm:$0xff]  ;;  %v60_v21 = vld [vmem:[%s1469_s27 + $0x8] sm:$0xff] }
   0xc   :  { %1075 = vmatpush3.bf16.msra.mxu0 %v1072_v3  ;;  %v1084_v13 = vpack.c.bf16 %v165_v10, %v164_v9  ;;  %v1088_v14 = vpack.c.bf16 %v167_v12, %v166_v11  ;;  %v422_v48 = vld [vmem:[%s1452_s10] sm:$0xff]  ;;  %v332_v53 = vld [vmem:[%s1451_s2 + $0x8] sm:$0xff]  ;;  %v513_v59 = vld [vmem:[%s1454_s11 + $0x10] sm:$0xff] }
   0xd   :  { %1077 = vmatprep.subr.bf16.mxu0 %v1076_v6  ;;  %v1108_v50 = vpack.c.bf16 %v423_v49, %v422_v48  ;;  %v420_v55 = vld [vmem:[%s1453_s3] sm:$0xff]  ;;  %v512_v57 = vld [vmem:[%s1454_s11 + $0x8] sm:$0xff]  ;;  %v514_v60 = vld [vmem:[%s1454_s11 + $0x18] sm:$0xff] }
   0xe   :  { %1085 = vmatprep.subr.bf16.mxu1 %v1084_v13  ;;  %v511_v56 = vld [vmem:[%s1454_s11] sm:$0xff]  ;;  %v421_v61 = vld [vmem:[%s1453_s3 + $0x8] sm:$0xff]  ;;  %v1120_v62 = vpack.c.bf16 %v514_v60, %v513_v59  ;;  %v695_v7 = vld [vmem:[%s1456_s14 + $0x18] sm:$0xff] }
   0xf   :  { %1087 = vmatpush3.bf16.msra.mxu1 %v1084_v13  ;;  %v1116_v58 = vpack.c.bf16 %v512_v57, %v511_v56  ;;  %v509_v63 = vld [vmem:[%s1455_s4] sm:$0xff]  ;;  %v510_v0 = vld [vmem:[%s1455_s4 + $0x8] sm:$0xff]  ;;  %v789_v22 = vld [vmem:[%s1457_s16 + $0x18] sm:$0xff] }
  0x10   :  { %1079 = vmatpush3.bf16.msra.mxu0 %v1076_v6  ;;  %1089 = vmatprep.subr.bf16.mxu1 %v1088_v14  ;;  %v692_v1 = vld [vmem:[%s1456_s14] sm:$0xff]  ;;  %v693_v2 = vld [vmem:[%s1456_s14 + $0x8] sm:$0xff]  ;;  %v694_v6 = vld [vmem:[%s1456_s14 + $0x10] sm:$0xff] }
  0x11   :  { %1081 = vmatprep.subr.bf16.mxu0 %v1080_v16  ;;  %v1136_v4 = vpack.c.bf16 %v693_v2, %v692_v1  ;;  %v786_v9 = vld [vmem:[%s1457_s16] sm:$0xff]  ;;  %v787_v10 = vld [vmem:[%s1457_s16 + $0x8] sm:$0xff] }
  0x12   :  { %v1144_v11 = vpack.c.bf16 %v787_v10, %v786_v9  ;;  %v900_v13 = vld [vmem:[%s1458_s13] ss:$0 sm:$0xff] }
  0x13   :  { %1091 = vmatpush3.bf16.msra.mxu1 %v1088_v14  ;;  %v904_v31 = vld [vmem:[%s1460_s17] ss:$0 sm:$0xff] }
  0x14   :  { %1083 = vmatpush3.bf16.msra.mxu0 %v1080_v16  ;;  %1093 = vmatprep.subr.bf16.mxu1 %v1092_v19 }
  0x15   :  { %1125 = vmatprep.subr.bf16.mxu0 %v1124_v30 }
  0x16   :  { %989 = vmatmul.mubr.msk.f32.vlgmr.msra.gmra.mrb[0].mxu1 %vm168_vm1, %v163_v20 }
  0x17   :  { %978 = vmatmul.mubr.msk.f32.vlgmr.msra.gmra.mrb[0].mxu0 %vm74_vm0, %v60_v21  ;;  %1095 = vmatpush3.bf16.msra.mxu1 %v1092_v19 }
  0x18   :  { %1047 = vmatprep.mubr.msk.f32.mxu0 %vm74_vm0, %v59_v8  ;;  %1097 = vmatprep.subr.bf16.mxu1 %v1096_v24  ;;  %v1140_v8 = vpack.c.bf16 %v695_v7, %v694_v6 }
  0x19   :  { %1127 = vmatpush3.bf16.msra.mxu0 %v1124_v30 }
  0x1a   :  { %1129 = vmatprep.subr.bf16.mxu0 %v1128_v33 }
  0x1b   :  { %1099 = vmatpush3.bf16.msra.mxu1 %v1096_v24  ;;  %v901_v24 = vld [vmem:[%s1459_s15] ss:$0 sm:$0xff] }
  0x1c   :  { %1101 = vmatprep.subr.bf16.mxu1 %v1100_v27 }
  0x1d   :  { %1131 = vmatpush3.bf16.msra.mxu0 %v1128_v33 }
  0x1e   :  { %1133 = vmatprep.subr.bf16.mxu0 %v1132_v36 }
  0x21   :  { %1135 = vmatpush3.bf16.msra.mxu0 %v1132_v36 }
  0x22   :  { %1137 = vmatprep.subr.bf16.mxu0 %v1136_v4 }
  0x24   :  { %1048 = vmatmul.mubr.msk.f32.vlgmr.msra.gmra.mrb[2].mxu0 %vm74_vm0, %v60_v21  ;;  %v788_v21 = vld [vmem:[%s1457_s16 + $0x10] sm:$0xff] }
  0x25   :  { %1139 = vmatpush3.bf16.msra.mxu0 %v1136_v4  ;;  %v1148_v23 = vpack.c.bf16 %v789_v22, %v788_v21 }
  0x26   :  { %1141 = vmatprep.subr.bf16.mxu0 %v1140_v8 }
  0x29   :  { %1143 = vmatpush3.bf16.msra.mxu0 %v1140_v8 }
  0x2a   :  { %1145 = vmatprep.subr.bf16.mxu0 %v1144_v11 }
  0xea   :  { %v979_v38 = vpop.f32.mrb[0].mxu0 }
  0xeb   :  { %v153_v39 = vadd.f32 %v979_v38, %v885_v37  ;;  %v147_v40 = vpop.f32.mrb[1].mxu0 }
  0xec   :  { %v148_v41 = vadd.f32 %v885_v37, %v147_v40 }
  0xed   :  { %v157_v45 = vmax.f32 %v153_v39, 0.0 }
  0xee   :  { %v156_v44 = vmax.f32 %v148_v41, 0.0 }
  0xf0   :  { %999 = vmatprep.mubr.msk.f32.mxu1 %vm168_vm1, %v156_v44 }
  0xf1   :  { %1000 = vmatmul.mubr.msk.f32.vlgmr.msra.gmra.mrb[0].mxu1 %vm168_vm1, %v157_v45 }
  0xf2   :  { %1103 = vmatpush3.bf16.msra.mxu1 %v1100_v27  ;;  %1010 = vmatprep.mubr.msk.f32.mxu1 %vm168_vm1, %v331_v47 }
  0xf3   :  { %1105 = vmatprep.subr.bf16.mxu1 %v1104_v46 }
  0xf6   :  { %1107 = vmatpush3.bf16.msra.mxu1 %v1104_v46 }
  0xf7   :  { %1109 = vmatprep.subr.bf16.mxu1 %v1108_v50  ;;  %v1049_v3 = vpop.f32.mrb[2].mxu0 }
  0xf8   :  { %v670_v5 = vpop.f32.mrb[3].mxu0 }
  0xf9   :  { %1011 = vmatmul.mubr.msk.f32.vlgmr.msra.gmra.mrb[0].mxu1 %vm168_vm1, %v332_v53 }
  0xfa   :  { %1111 = vmatpush3.bf16.msra.mxu1 %v1108_v50  ;;  %1021 = vmatprep.mubr.msk.f32.mxu1 %vm168_vm1, %v420_v55 }
  0xfb   :  { %1113 = vmatprep.subr.bf16.mxu1 %v1112_v54 }
  0xfe   :  { %1115 = vmatpush3.bf16.msra.mxu1 %v1112_v54 }
  0xff   :  { %1117 = vmatprep.subr.bf16.mxu1 %v1116_v58 }
 0x101   :  { %1022 = vmatmul.mubr.msk.f32.vlgmr.msra.gmra.mrb[0].mxu1 %vm168_vm1, %v421_v61 }
 0x102   :  { %1119 = vmatpush3.bf16.msra.mxu1 %v1116_v58  ;;  %1032 = vmatprep.mubr.msk.f32.mxu1 %vm168_vm1, %v509_v63 }
 0x103   :  { %1121 = vmatprep.subr.bf16.mxu1 %v1120_v62 }
 0x106   :  { %1123 = vmatpush3.bf16.msra.mxu1 %v1120_v62 }
 0x109   :  { %1033 = vmatmul.mubr.msk.f32.vlgmr.msra.gmra.mrb[0].mxu1 %vm168_vm1, %v510_v0 }
 0x1dc   :  { %v1034_v12 = vpop.f32.mrb[0].mxu1 }
 0x1dd   :  { %v1152_v14 = vadd.f32 %v1049_v3, %v1034_v12  ;;  %v587_v15 = vpop.f32.mrb[1].mxu1 }
 0x1de   :  { %v1153_v16 = vadd.f32 %v670_v5, %v587_v15 }
 0x1df   :  { %v689_v17 = vadd.f32 %v1152_v14, %v900_v13 }
 0x1e0   :  { %v688_v18 = vadd.f32 %v1153_v16, %v900_v13 }
 0x1e1   :  { %v691_v20 = vmax.f32 %v689_v17, 0.0 }
 0x1e2   :  { %v690_v19 = vmax.f32 %v688_v18, 0.0 }
 0x1e4   :  { %1058 = vmatprep.mubr.msk.f32.mxu0 %vm168_vm1, %v690_v19 }
 0x1e5   :  { %1059 = vmatmul.mubr.msk.f32.vlgmr.msra.gmra.mrb[4].mxu0 %vm168_vm1, %v691_v20 }
 0x1e6   :  { %1147 = vmatpush3.bf16.msra.mxu0 %v1144_v11 }
 0x1e7   :  { %1149 = vmatprep.subr.bf16.mxu0 %v1148_v23 }
 0x1ea   :  { %1151 = vmatpush3.bf16.msra.mxu0 %v1148_v23 }
 0x2b8   :  { %v1060_v25 = vpop.f32.mrb[4].mxu0 }
 0x2b9   :  { %v781_v26 = vadd.f32 %v1060_v25, %v901_v24  ;;  %v775_v27 = vpop.f32.mrb[5].mxu0 }
 0x2ba   :  { %v776_v28 = vadd.f32 %v901_v24, %v775_v27 }
 0x2bb   :  { %v785_v30 = vmax.f32 %v781_v26, 0.0 }
 0x2bc   :  { %v784_v29 = vmax.f32 %v776_v28, 0.0 }
 0x2be   :  { %1069 = vmatprep.mubr.msk.f32.mxu0 %vm168_vm1, %v784_v29 }
 0x2bf   :  { %1070 = vmatmul.mubr.msk.f32.vlgmr.msra.gmra.mrb[6].mxu0 %vm168_vm1, %v785_v30 }
 0x392   :  { %v1071_v32 = vpop.f32.mrb[6].mxu0 }
 0x393   :  { %v875_v33 = vadd.f32 %v1071_v32, %v904_v31  ;;  %v869_v34 = vpop.f32.mrb[7].mxu0 }
 0x394   :  { %v870_v35 = vadd.f32 %v904_v31, %v869_v34 }
 0x395   :  { %880 = vst.msk [vmem:[%s1461_s18 + $0x8] sm:$0xff] %vm878_vm2, %v875_v33 }
 0x396   :  { %879 = vst.msk [vmem:[%s1461_s18] sm:$0xff] %vm878_vm2, %v870_v35 }

// kernel: forward.8
= control target key start
LH: loop header
LB: loop body
LE: loop exit
PB: predicated region body
PF: predicated region fallthrough
CT: control target
= control target key end

     0   :  { %vm33_vm0 = vcmask 261120   ;;  %s1709_s0 = inlined_call_operand.vmem [shape: f32[2,8,32], index: 0, kind: input, shape index: {}]   ;;  %s1710_s1 = inlined_call_operand.vmem [shape: f32[2,8,32], index: 1, kind: input, shape index: {}]   ;;  %s1711_s2 = inlined_call_operand.vmem [shape: f32[32,32], index: 2, kind: input, shape index: {}]   ;;  %s1712_s3 = inlined_call_operand.vmem [shape: f32[32,32], index: 3, kind: input, shape index: {}]   ;;  %s1713_s4 = inlined_call_operand.vmem [shape: f32[2,8,32], index: 4, kind: output, shape index: {0}]   ;;  %s1714_s5 = inlined_call_operand.vmem [shape: f32[2,8,32], index: 5, kind: output, shape index: {1}]   ;;  %s1715_s6 = inlined_call_operand.hbm [shape: f32[1,1], index: 6, kind: output, shape index: {2}]  }
   0x1   :  { %v25_v0 = vld [vmem:[%s1711_s2] sm:$0xff]  ;;  %v26_v1 = vld [vmem:[%s1711_s2 + $0x8] sm:$0xff]  ;;  %v27_v5 = vld [vmem:[%s1711_s2 + $0x10] sm:$0xff] }
   0x2   :  { %v29_v2 = vld [vmem:[%s1712_s3] sm:$0xff]  ;;  %v1389_v3 = vpack.c.bf16 %v26_v1, %v25_v0  ;;  %v30_v4 = vld [vmem:[%s1712_s3 + $0x8] sm:$0xff]  ;;  %v28_v6 = vld [vmem:[%s1711_s2 + $0x18] sm:$0xff] }
   0x3   :  { %v1397_v7 = vpack.c.bf16 %v30_v4, %v29_v2  ;;  %v1393_v8 = vpack.c.bf16 %v28_v6, %v27_v5  ;;  %v1525_v9 = vld [vmem:[%s1709_s0] sm:$0xff]  ;;  %v31_v10 = vld [vmem:[%s1712_s3 + $0x10] sm:$0xff]  ;;  %v32_v11 = vld [vmem:[%s1712_s3 + $0x18] sm:$0xff] }
   0x4   :  { %1390 = vmatprep.subr.bf16.mxu0 %v1389_v3  ;;  %1335 = vmatprep.mubr.msk.f32.mxu0 %vm33_vm0, %v1525_v9  ;;  %v1401_v12 = vpack.c.bf16 %v32_v11, %v31_v10  ;;  %v1538_v13 = vld [vmem:[%s1710_s1] sm:$0xff] }
   0x5   :  { %1392 = vmatpush3.bf16.msra.mxu0 %v1389_v3  ;;  %1398 = vmatprep.subr.bf16.mxu1 %v1397_v7 }
   0x6   :  { %12 = vsyncpa [#allocation3], 0  ;;  %1394 = vmatprep.subr.bf16.mxu0 %v1393_v8  ;;  %1400 = vmatpush3.bf16.msra.mxu1 %v1397_v7  ;;  %v1545_v14 = vld [vmem:[%s1709_s0 + $0x8] sm:$0xff]  ;;  %v1461_v16 = vmov 0.0   ;;  %vm1462_vm1 = vmmov 0   ;;  %v841_v18 = vlaneseq  ;;  %s1467_s27 = smov 96  }
   0x7   :  { %1402 = vmatprep.subr.bf16.mxu1 %v1401_v12  ;;  %1346 = vmatprep.mubr.msk.f32.mxu1 %vm33_vm0, %v1538_v13  ;;  %v1550_v15 = vld [vmem:[%s1710_s1 + $0x8] sm:$0xff]  ;;  %v1295_v17 = vld.sshfl [vmem:[%s1709_s0] sm:$0xff pattern:$0x76325410]  ;;  %v1463_v21 = vmov 1934713408   ;;  %v830_v26 = vcombine.high %v1525_v9, %v1461_v16  ;;  %v846_v32 = vcombine.high %v1545_v14, %v1461_v16  ;;  %v930_v33 = vcombine.high %v1538_v13, %v1461_v16 }
   0x8   :  { %v1296_v19 = vld.sshfl [vmem:[%s1709_s0 + $0x8] sm:$0xff pattern:$0x76325410]  ;;  %v842_v20 = vshrl.u32 %v841_v18, 7  ;;  %v864_v22 = vunpack.c.l.s4 %v1463_v21  ;;  %v1464_v24 = vmov 1983009808   ;;  %v946_v34 = vcombine.high %v1550_v15, %v1461_v16 }
   0x9   :  { %1396 = vmatpush3.bf16.msra.mxu0 %v1393_v8  ;;  %v1297_v23 = vld.sshfl [vmem:[%s1710_s1] sm:$0xff pattern:$0x76325410]  ;;  %v839_v25 = vunpack.c.l.s4 %v1464_v24  ;;  %v1298_v27 = vld.sshfl [vmem:[%s1710_s1 + $0x8] sm:$0xff pattern:$0x76325410]  ;;  %v862_v28 = vcombine.high %v1295_v17, %v1296_v19  ;;  %v861_v36 = vcombine.low %v1295_v17, %v1296_v19 }
   0xa   :  { %1404 = vmatpush3.bf16.msra.mxu1 %v1401_v12  ;;  %1349 = vmatprep.subr.mxu0 %v1461_v16  ;;  %v865_v29 = vunpack.c.0.s8 %v864_v22  ;;  %v961_v30 = vcombine.low %v1297_v23, %v1298_v27  ;;  %v962_v37 = vcombine.high %v1297_v23, %v1298_v27  ;;  %s1465_s0 = smov 64   ;;  %s1466_s1 = smov 32   ;;  %vm922_vm2 = vcmask 523264  }
   0xb   :  { %1354 = vmatprep.subr.mxu1 %v1461_v16  ;;  %v840_v31 = vunpack.c.0.s8 %v839_v25  ;;  %vm924_vm3 = vcmask 785408   ;;  %vm1027_vm4 = vcmask 1041408   ;;  %vm488_vm5 = vcmask 64512  }
   0xc   :  { %1336 = vmatmul.mubr.msk.f32.vlgmr.msra.gmra.mrb[0].mxu0 %vm33_vm0, %v1545_v14  ;;  %v868_v35 = vsub.s32 %v865_v29, %v842_v20  ;;  %vm1242_vm10 = vcmask 9216   ;;  %vm1255_vm11 = vcmask 0  }
   0xd   :  { %1347 = vmatmul.mubr.msk.f32.vlgmr.msra.gmra.mrb[0].mxu1 %vm33_vm0, %v1550_v15  ;;  %1351 = vmatprep.mubr.msk.f32.mxu0 %vm1462_vm1, %v1461_v16  ;;  %v843_v38 = vsub.s32 %v840_v31, %v842_v20 }
   0xe   :  { %1356 = vmatprep.mubr.msk.f32.mxu1 %vm1462_vm1, %v1461_v16  ;;  %v876_v39 = vrot.slane %v862_v28, %v868_v35  ;;  %v1588_v40 = vrot.slane %v961_v30, %v868_v35  ;;  %v976_v46 = vrot.slane %v962_v37, %v868_v35  ;;  %v869_v47 = vrot.slane %v861_v36, %v868_v35 }
   0xf   :  { %v844_v41 = vrot.slane %v830_v26, %v843_v38  ;;  %v860_v42 = vrot.slane %v846_v32, %v843_v38  ;;  %v944_v43 = vrot.slane %v930_v33, %v843_v38  ;;  %v960_v44 = vrot.slane %v946_v34, %v843_v38 }
  0x10   :  { %902 = vrot.lane.b32.xlu0 %v876_v39, %s1465_s0  ;;  %v993_v45 = vcombine.high %v1588_v40, %v1461_v16  ;;  %v893_v53 = vcombine.high %v869_v47, %v1461_v16  ;;  %v894_v59 = vcombine.high %v876_v39, %v1461_v16  ;;  %v994_v61 = vcombine.high %v976_v46, %v1461_v16 }
  0x11   :  { %v878_v48 = vcombine.high %v844_v41, %v860_v42  ;;  %v978_v49 = vcombine.high %v944_v43, %v960_v44  ;;  %v977_v50 = vcombine.low %v944_v43, %v960_v44  ;;  %v877_v51 = vcombine.low %v844_v41, %v860_v42 }
  0x12   :  { %1350 = vmatpush3.xpose.msk.msra.mxu0 %vm33_vm0, %v1538_v13  ;;  %998 = vrot.lane.b32.xlu1 %v993_v45, %s1466_s1 }
  0x13   :  { %1355 = vmatpush3.xpose.msk.msra.mxu1 %vm33_vm0, %v1550_v15  ;;  %1359 = vmatprep.subr.mxu0 %v1461_v16  ;;  %v892_v52 = vrot.slane %v878_v48, %v868_v35  ;;  %v885_v54 = vrot.slane %v877_v51, %v868_v35  ;;  %v992_v55 = vrot.slane %v978_v49, %v868_v35 }
  0x14   :  { %1364 = vmatprep.subr.mxu1 %v1461_v16  ;;  %1002 = vrot.lane.b32.xlu0 %v976_v46, %s1465_s0  ;;  %v985_v56 = vrot.slane %v977_v50, %v868_v35 }
  0x15   :  { %v895_v57 = vcombine.high %v885_v54, %v1461_v16  ;;  %v896_v60 = vcombine.high %v892_v52, %v1461_v16  ;;  %v996_v62 = vcombine.high %v992_v55, %v1461_v16 }
  0x16   :  { %914 = vrot.lane.b32.xlu1 %v892_v52, %s1465_s0  ;;  %v995_v58 = vcombine.high %v985_v56, %v1461_v16 }
  0x18   :  { %898 = vrot.lane.b32.xlu0 %v893_v53, %s1466_s1 }
  0x1a   :  { %1014 = vrot.lane.b32.xlu1 %v992_v55, %s1465_s0 }
  0x1c   :  { %910 = vrot.lane.b32.xlu0 %v895_v57, %s1466_s1 }
  0x1e   :  { %1010 = vrot.lane.b32.xlu1 %v995_v58, %s1466_s1 }
  0x20   :  { %906 = vrot.lane.b32.xlu0 %v894_v59, %s1467_s27 }
  0x22   :  { %918 = vrot.lane.b32.xlu1 %v896_v60, %s1467_s27 }
  0x24   :  { %1006 = vrot.lane.b32.xlu0 %v994_v61, %s1467_s27 }
  0x26   :  { %1018 = vrot.lane.b32.xlu1 %v996_v62, %s1467_s27 }
  0x82   :  { %v903_v3 = vpop.permute.xlu0 %902 }
  0x84   :  { %v999_v4 = vpop.permute.xlu1 %998 }
  0x85   :  { %v1021_v22 = vsel %vm33_vm0, %v1588_v40, %v999_v4 }
  0x86   :  { %v1003_v5 = vpop.permute.xlu0 %1002 }
  0x87   :  { %v1022_v26 = vsel %vm922_vm2, %v1021_v22, %v1003_v5 }
  0x88   :  { %v915_v6 = vpop.permute.xlu1 %914 }
  0x8a   :  { %v899_v7 = vpop.permute.xlu0 %898 }
  0x8b   :  { %v921_v12 = vsel %vm33_vm0, %v869_v47, %v899_v7 }
  0x8c   :  { %v1015_v8 = vpop.permute.xlu1 %1014  ;;  %v923_v18 = vsel %vm922_vm2, %v921_v12, %v903_v3 }
  0x8e   :  { %v911_v11 = vpop.permute.xlu0 %910 }
  0x90   :  { %v1011_v10 = vpop.permute.xlu1 %1010 }
  0x91   :  { %v1024_v23 = vsel %vm33_vm0, %v985_v56, %v1011_v10 }
  0x92   :  { %v907_v19 = vpop.permute.xlu0 %906  ;;  %v1025_v29 = vsel %vm922_vm2, %v1024_v23, %v1015_v8 }
  0x93   :  { %v925_v21 = vsel %vm924_vm3, %v923_v18, %v907_v19 }
  0x94   :  { %v1028_v25 = vsel %vm1027_vm4, %v925_v21, 0.0 }
  0x95   :  { %v1029_v28 = vrot.slane %v1028_v25, 4 }
  0x96   :  { %v1007_v31 = vpop.permute.xlu0 %1006 }
  0x97   :  { %v1023_v33 = vsel %vm924_vm3, %v1022_v26, %v1007_v31  ;;  %v1030_v35 = vadd.f32 %v1029_v28, %v1028_v25 }
  0x98   :  { %v1047_v37 = vsel %vm1027_vm4, %v1023_v33, 0.0 }
  0x99   :  { %v1031_v39 = vrot.slane %v1030_v35, 2  ;;  %v1048_v41 = vrot.slane %v1047_v37, 4 }
  0x9b   :  { %v1032_v43 = vadd.f32 %v1031_v39, %v1030_v35  ;;  %v1049_v45 = vadd.f32 %v1048_v41, %v1047_v37 }
  0x9d   :  { %v1033_v47 = vrot.slane %v1032_v43, 1  ;;  %v1050_v49 = vrot.slane %v1049_v45, 2 }
  0x9f   :  { %v1034_v51 = vadd.f32 %v1033_v47, %v1032_v43  ;;  %v1051_v53 = vadd.f32 %v1050_v49, %v1049_v45 }
  0xa1   :  { %v1043_v55 = vmul.f32 0.5, %v1034_v51  ;;  %v1052_v57 = vrot.slane %v1051_v53, 1 }
  0xa3   :  { %v1640_v59 = vsub.f32 %v925_v21, %v1043_v55  ;;  %v1053_v61 = vadd.f32 %v1052_v57, %v1051_v53 }
  0xa5   :  { %v1065_v62 = vmul.f32 %v1640_v59, %v1640_v59 }
  0xdf   :  { %v1337_v63 = vpop.f32.mrb[0].mxu0 }
  0xe0   :  { %v106_v0 = vpop.f32.mrb[1].mxu0  ;;  %1357 = vmatmul.mubr.msk.f32.vlgmr.msra.gmra.mrb[2].mxu1 %vm33_vm0, %v1337_v63  ;;  %v1348_v1 = vpop.f32.mrb[0].mxu1 }
  0xe1   :  { %1352 = vmatmul.mubr.msk.f32.vlgmr.msra.gmra.mrb[2].mxu0 %vm33_vm0, %v106_v0  ;;  %1365 = vmatpush3.xpose.msk.msra.mxu1 %vm33_vm0, %v1545_v14  ;;  %v187_v2 = vpop.f32.mrb[1].mxu1 }
  0xe2   :  { %1360 = vmatpush3.xpose.msk.msra.mxu0 %vm33_vm0, %v1525_v9  ;;  %1366 = vmatprep.mubr.msk.f32.mxu1 %vm1462_vm1, %v1461_v16 }
  0xe3   :  { %1361 = vmatprep.mubr.msk.f32.mxu0 %vm1462_vm1, %v1461_v16  ;;  %1374 = vmatprep.subr.mxu1 %v1461_v16 }
  0xe4   :  { %1367 = vmatmul.mubr.msk.f32.vlgmr.msra.gmra.mrb[4].mxu1 %vm33_vm0, %v1348_v1  ;;  %1369 = vmatprep.subr.mxu0 %v1461_v16  ;;  %v1061_v1 = vmul.f32 0.5, %v1053_v61 }
  0xe5   :  { %1362 = vmatmul.mubr.msk.f32.vlgmr.msra.gmra.mrb[4].mxu0 %vm33_vm0, %v187_v2  ;;  %1375 = vmatpush3.msra.mxu1 %v1550_v15  ;;  %v919_v15 = vpop.permute.xlu1 %918  ;;  %v1067_v2 = vsel %vm1027_vm4, %v1065_v62, 0.0 }
  0xe6   :  { %1370 = vmatpush3.msra.mxu0 %v1538_v13  ;;  %1376 = vmatprep.mubr.msk.f32.mxu1 %vm1462_vm1, %v1461_v16  ;;  %v926_v13 = vsel %vm33_vm0, %v885_v54, %v911_v11  ;;  %v1650_v5 = vsub.f32 %v1023_v33, %v1061_v1 }
  0xe7   :  { %1384 = vmatprep.subr.mxu1 %v1461_v16  ;;  %1371 = vmatprep.mubr.msk.f32.mxu0 %vm1462_vm1, %v1461_v16  ;;  %v927_v17 = vsel %vm922_vm2, %v926_v13, %v915_v6 }
  0xe8   :  { %1379 = vmatprep.subr.mxu0 %v1461_v16  ;;  %v928_v20 = vsel %vm924_vm3, %v927_v17, %v919_v15  ;;  %v1079_v17 = vmul.f32 %v1650_v5, %v1650_v5 }
  0xe9   :  { %v1035_v24 = vsel %vm1027_vm4, %v928_v20, 0.0  ;;  %v1019_v30 = vpop.permute.xlu1 %1018 }
  0xea   :  { %v1036_v27 = vrot.slane %v1035_v24, 4  ;;  %v1026_v32 = vsel %vm924_vm3, %v1025_v29, %v1019_v30  ;;  %v1081_v23 = vsel %vm1027_vm4, %v1079_v17, 0.0 }
  0xeb   :  { %v1054_v36 = vsel %vm1027_vm4, %v1026_v32, 0.0 }
  0xec   :  { %v1037_v34 = vadd.f32 %v1036_v27, %v1035_v24  ;;  %v1055_v40 = vrot.slane %v1054_v36, 4 }
  0xee   :  { %v1038_v38 = vrot.slane %v1037_v34, 2  ;;  %v1056_v44 = vadd.f32 %v1055_v40, %v1054_v36 }
  0xf0   :  { %v1039_v42 = vadd.f32 %v1038_v38, %v1037_v34  ;;  %v1057_v48 = vrot.slane %v1056_v44, 2 }
  0xf2   :  { %v1040_v46 = vrot.slane %v1039_v42, 1  ;;  %v1058_v52 = vadd.f32 %v1057_v48, %v1056_v44 }
  0xf4   :  { %v1041_v50 = vadd.f32 %v1040_v46, %v1039_v42  ;;  %v1059_v56 = vrot.slane %v1058_v52, 1 }
  0xf6   :  { %v1044_v54 = vmul.f32 0.5, %v1041_v50  ;;  %v1060_v60 = vadd.f32 %v1059_v56, %v1058_v52 }
  0xf8   :  { %v1638_v58 = vsub.f32 %v928_v20, %v1044_v54  ;;  %v1062_v0 = vmul.f32 0.5, %v1060_v60 }
  0xfa   :  { %v1066_v63 = vmul.f32 %v1638_v58, %v1638_v58  ;;  %v1648_v4 = vsub.f32 %v1026_v32, %v1062_v0 }
  0xfc   :  { %v1068_v3 = vsel %vm1027_vm4, %v1066_v63, 0.0  ;;  %v1080_v18 = vmul.f32 %v1648_v4, %v1648_v4 }
  0xfd   :  { %v1069_v13 = vadd.f32 %v1068_v3, %v1067_v2 }
  0xfe   :  { %v1082_v24 = vsel %vm1027_vm4, %v1080_v18, 0.0 }
  0xff   :  { %v1083_v26 = vadd.f32 %v1082_v24, %v1081_v23 }
 0x1b3   :  { %v338_v6 = vpop.f32.mrb[2].mxu1 }
 0x1b4   :  { %v265_v7 = vpop.f32.mrb[2].mxu0  ;;  %v1358_v8 = vpop.f32.mrb[3].mxu1  ;;  %v492_v10 = vsel %vm488_vm5, %v338_v6, -inf }
 0x1b5   :  { %493 = vmax.xlane.f32.xlu1 %v492_v10  ;;  %v1353_v11 = vpop.f32.mrb[3].mxu0  ;;  %v489_v12 = vsel %vm488_vm5, %v265_v7, -inf }
 0x1b6   :  { %490 = vmax.xlane.f32.xlu0 %v489_v12 }
 0x1b7   :  { %v484_v15 = vpop.f32.mrb[4].mxu1 }
 0x1b8   :  { %v411_v19 = vpop.f32.mrb[4].mxu0  ;;  %v1368_v20 = vpop.f32.mrb[5].mxu1  ;;  %v514_v25 = vsel %vm488_vm5, %v484_v15, -inf }
 0x1b9   :  { %1070 = vadd.xlane.f32.xlu1 %v1069_v13  ;;  %v1363_v21 = vpop.f32.mrb[5].mxu0  ;;  %v511_v22 = vsel %vm488_vm5, %v411_v19, -inf }
 0x1ba   :  { %512 = vmax.xlane.f32.xlu0 %v511_v22 }
 0x1be   :  { %515 = vmax.xlane.f32.xlu0 %v514_v25 }
 0x1c2   :  { %1084 = vadd.xlane.f32.xlu0 %v1083_v26 }
 0x242   :  { %v494_v27 = vpop.xlane.xlu1 %493 }
 0x243   :  { %v496_v28 = vsub.f32 %v338_v6, %v494_v27  ;;  %v491_v29 = vpop.xlane.xlu0 %490 }
 0x244   :  { %v495_v30 = vsub.f32 %v265_v7, %v491_v29 }
 0x245   :  { %v499_v31 = vmul.f32 1.442695, %v496_v28 }
 0x246   :  { %v497_v32 = vmul.f32 1.442695, %v495_v30  ;;  %v1071_v47 = vpop.xlane.xlu1 %1070 }
 0x247   :  { %1413 = vpow2.f32 %v499_v31  ;;  %v513_v33 = vpop.xlane.xlu0 %512  ;;  %vm1074_vm6 = vcmp.eq.f32.partialorder %v1071_v47, inf  ;;  %v1077_v53 = vand.u32 2147483648, %v1071_v47  ;;  %vm1076_vm8 = vcmp.eq.f32.partialorder %v1071_v47, 0.0 }
 0x248   :  { %1415 = vpow2.f32 %v497_v32  ;;  %v517_v34 = vsub.f32 %v411_v19, %v513_v33 }
 0x24a   :  { %v519_v35 = vmul.f32 1.442695, %v517_v34 }
 0x24b   :  { %v516_v36 = vpop.xlane.xlu0 %515 }
 0x24c   :  { %1417 = vpow2.f32 %v519_v35  ;;  %v518_v37 = vsub.f32 %v484_v15, %v516_v36 }
 0x24e   :  { %v521_v38 = vmul.f32 1.442695, %v518_v37 }
 0x24f   :  { %v1085_v48 = vpop.xlane.xlu0 %1084 }
 0x250   :  { %1419 = vpow2.f32 %v521_v38  ;;  %vm1088_vm7 = vcmp.eq.f32.partialorder %v1085_v48, inf  ;;  %v1091_v55 = vand.u32 2147483648, %v1085_v48  ;;  %vm1090_vm9 = vcmp.eq.f32.partialorder %v1085_v48, 0.0 }
 0x251   :  { %v1414_v39 = vpop.eup %1413  ;;  %1421 = vrsqrt.f32 %v1071_v47 }
 0x252   :  { %v1416_v40 = vpop.eup %1415  ;;  %v504_v41 = vsel %vm488_vm5, %v1414_v39, 0.0  ;;  %1423 = vrsqrt.f32 %v1085_v48 }
 0x253   :  { %505 = vadd.xlane.f32.xlu0 %v504_v41  ;;  %v501_v42 = vsel %vm488_vm5, %v1416_v40, 0.0 }
 0x254   :  { %502 = vadd.xlane.f32.xlu1 %v501_v42 }
 0x256   :  { %v1418_v43 = vpop.eup %1417 }
 0x257   :  { %v523_v44 = vsel %vm488_vm5, %v1418_v43, 0.0 }
 0x258   :  { %524 = vadd.xlane.f32.xlu1 %v523_v44 }
 0x25a   :  { %v1420_v45 = vpop.eup %1419 }
 0x25b   :  { %v526_v46 = vsel %vm488_vm5, %v1420_v45, 0.0  ;;  %v1422_v49 = vpop.eup %1421 }
 0x25c   :  { %527 = vadd.xlane.f32.xlu0 %v526_v46  ;;  %v1424_v50 = vpop.eup %1423  ;;  %v1073_v51 = vmul.f32 %v1422_v49, %v1071_v47 }
 0x25d   :  { %v1087_v52 = vmul.f32 %v1424_v50, %v1085_v48 }
 0x25e   :  { %v1075_v54 = vsel %vm1074_vm6, %v1071_v47, %v1073_v51 }
 0x25f   :  { %v1089_v56 = vsel %vm1088_vm7, %v1085_v48, %v1087_v52  ;;  %v1078_v57 = vsel %vm1076_vm8, %v1077_v53, %v1075_v54 }
 0x260   :  { %v1092_v60 = vsel %vm1090_vm9, %v1091_v55, %v1089_v56  ;;  %v1093_v61 = vadd.f32 1e-06, %v1078_v57 }
 0x261   :  { %v1097_v62 = vadd.f32 1e-06, %v1092_v60 }
 0x262   :  { %1425 = vrcp.f32 %v1093_v61 }
 0x263   :  { %1427 = vrcp.f32 %v1097_v62 }
 0x26c   :  { %v1426_v2 = vpop.eup %1425 }
 0x26d   :  { %v1428_v6 = vpop.eup %1427  ;;  %v1096_v13 = vmul.f32 %v1426_v2, %v1638_v58  ;;  %v1095_v18 = vmul.f32 %v1426_v2, %v1640_v59 }
 0x26e   :  { %v1100_v12 = vmul.f32 %v1428_v6, %v1648_v4  ;;  %v1099_v58 = vmul.f32 %v1428_v6, %v1650_v5 }
 0x2e0   :  { %v506_v63 = vpop.xlane.xlu0 %505 }
 0x2e1   :  { %1429 = vrcp.f32 %v506_v63  ;;  %v503_v0 = vpop.xlane.xlu1 %502 }
 0x2e2   :  { %1431 = vrcp.f32 %v503_v0 }
 0x2e5   :  { %v525_v1 = vpop.xlane.xlu1 %524 }
 0x2e6   :  { %1433 = vrcp.f32 %v525_v1 }
 0x2e9   :  { %v528_v3 = vpop.xlane.xlu0 %527 }
 0x2ea   :  { %1435 = vrcp.f32 %v528_v3 }
 0x2eb   :  { %v1430_v7 = vpop.eup %1429 }
 0x2ec   :  { %v1432_v8 = vpop.eup %1431  ;;  %v510_v10 = vmul.f32 %v1430_v7, %v1414_v39 }
 0x2ed   :  { %v508_v11 = vmul.f32 %v1432_v8, %v1416_v40 }
 0x2ee   :  { %1377 = vmatmul.mubr.msk.f32.vlgmr.msra.gmra.mrb[6].mxu1 %vm488_vm5, %v510_v10 }
 0x2ef   :  { %1385 = vmatpush3.msra.mxu1 %v1545_v14  ;;  %1372 = vmatmul.mubr.msk.f32.vlgmr.msra.gmra.mrb[6].mxu0 %vm488_vm5, %v508_v11 }
 0x2f0   :  { %v1434_v15 = vpop.eup %1433  ;;  %1380 = vmatpush3.msra.mxu0 %v1525_v9  ;;  %1171 = vmatprep.subr.mxu1 %v1100_v12 }
 0x2f1   :  { %v530_v17 = vmul.f32 %v1434_v15, %v1418_v43  ;;  %1101 = vmatprep.subr.mxu0 %v1096_v13  ;;  %1381 = vmatprep.mubr.msk.f32.mxu0 %vm1462_vm1, %v1461_v16 }
 0x2f2   :  { %1386 = vmatprep.mubr.msk.f32.mxu1 %vm1462_vm1, %v1461_v16 }
 0x2f3   :  { %1382 = vmatmul.mubr.msk.f32.vlgmr.msra.gmra.mrb[8].mxu0 %vm488_vm5, %v530_v17 }
 0x2f4   :  { %v1436_v4 = vpop.eup %1435  ;;  %1165 = vmatprep.mubr.f32.mxu0 %v1096_v13 }
 0x2f5   :  { %v532_v14 = vmul.f32 %v1436_v4, %v1420_v45 }
 0x2f7   :  { %1102 = vmatpush1.xpose.msra.mxu0 %v1095_v18  ;;  %1387 = vmatmul.mubr.msk.f32.vlgmr.msra.gmra.mrb[8].mxu1 %vm488_vm5, %v532_v14 }
 0x2f8   :  { %1172 = vmatpush1.xpose.msra.mxu1 %v1099_v58  ;;  %1235 = vmatprep.mubr.f32.mxu1 %v1100_v12 }
 0x2fa   :  { %1166 = vmatmul.mubr.f32.vlgmr.msra.gmra.mrb[10].mxu0 %v1095_v18 }
 0x2fb   :  { %1236 = vmatmul.mubr.f32.vlgmr.msra.gmra.mrb[10].mxu1 %v1099_v58 }
 0x3c1   :  { %v675_v9 = vpop.f32.mrb[6].mxu1 }
 0x3c2   :  { %680 = vst.msk [vmem:[%s1713_s4 + $0x8] sm:$0xff] %vm33_vm0, %v675_v9  ;;  %v602_v16 = vpop.f32.mrb[6].mxu0  ;;  %v1378_v19 = vpop.f32.mrb[7].mxu1 }
 0x3c3   :  { %679 = vst.msk [vmem:[%s1713_s4] sm:$0xff] %vm33_vm0, %v602_v16  ;;  %v1373_v59 = vpop.f32.mrb[7].mxu0  ;;  %s1468_s4 = smov [#allocation2]  }
 0x3c4   :  { %s1267_s12 = sshll.u32 %s1468_s4, 4  ;;  %s1268_s12 = int_to_ptr.vmem [resolvable:$true] %s1267_s12 }
 0x3c5   :  { %s1441_s13 = scalar_lea.vmem %s1268_s12, 32  ;;  %p1442_p1 = scmp.lt.s32.totalorder %s1268_s12, %s1268_s12 }
 0x3c6   :  { %v750_v5 = vpop.f32.mrb[8].mxu0 }
 0x3c7   :  { %827 = vst.msk [vmem:[%s1714_s5] sm:$0xff] %vm33_vm0, %v750_v5  ;;  %v1383_v20 = vpop.f32.mrb[9].mxu0 }
 0x3ca   :  { %v823_v21 = vpop.f32.mrb[8].mxu1 }
 0x3cb   :  { %828 = vst.msk [vmem:[%s1714_s5 + $0x8] sm:$0xff] %vm33_vm0, %v823_v21  ;;  %v1388_v22 = vpop.f32.mrb[9].mxu1  ;;  %s1437_s5 = scalar_lea.vmem %s1268_s12, 16 }
 0x3cc   :  { %p1438_p0 = scmp.ne.s32.totalorder %s1268_s12, %s1437_s5  ;;  %p1443_p2 = scmp.lt.s32.totalorder %s1441_s13, %s1437_s5 }
 0x3cd   :  { %v1167_v23 = vpop.f32.mrb[10].mxu0 }
 0x3ce   :  { %v1169_v24 = vpop.f32.mrb[11].mxu0  ;;  %v1237_v25 = vpop.f32.mrb[10].mxu1  ;;  %p1444_p3 = por %p1443_p2, %p1442_p1 }
 0x3cf   :  { %v1241_v26 = vmul.f32 %v1237_v25, %v1167_v23  ;;  %v1239_v27 = vpop.f32.mrb[11].mxu1 }
 0x3d0   :  { %p1445_p4 = pnand %p1444_p3, %p1438_p0 }
 0x3d1   :  { %v1243_v28 = vsel %vm1242_vm10, %v1241_v26, 0.0 }
 0x3d2   :  { %1244 = vadd.xlane.f32.xlu1 %v1243_v28 }
 0x45f   :  { %v1245_v29 = vpop.xlane.xlu1 %1244 }
 0x460   :  { %v1246_v30 = vsel %vm1027_vm4, %v1245_v29, 0.0 }
 0x461   :  { %v1247_v31 = vrot.slane %v1246_v30, 4 }
 0x463   :  { %v1248_v32 = vadd.f32 %v1247_v31, %v1246_v30 }
 0x465   :  { %v1249_v33 = vrot.slane %v1248_v32, 2 }
 0x467   :  { %v1250_v34 = vadd.f32 %v1249_v33, %v1248_v32 }
 0x469   :  { %v1251_v35 = vrot.slane %v1250_v34, 1 }
 0x46b   :  { %v1252_v36 = vadd.f32 %v1251_v35, %v1250_v34 }
 0x46d   :  { %v1254_v37 = vmul.f32 1.5258789e-05, %v1252_v36 }
 0x46f   :  { %1256 = vst.msk [vmem:[#allocation2] sm:$0x1] %vm1255_vm11, %v1254_v37 }
 0x470   :  { %1448 = shalt.err (!%p1445_p4)
}
 0x471   :  { %s1449_s15 = scalar_lea.hbm %s1715_s6, 16 }
 0x472   :  { %p1450_p5 = scmp.ne.s32.totalorder %s1715_s6, %s1449_s15  ;;  %p1453_p6 = scmp.lt.u32.totalorder %s1449_s15, %s1715_s6 }
 0x474   :  { %p1455_p7 = pnand %p1453_p6, %p1450_p5 }
 0x476   :  { %1458 = shalt.err (!%p1455_p7)
}
 0x477   :  { %1270 = dma.vmem_to_hbm [thread:$0]  %s1268_s12, 16, %s1715_s6, [#allocation3]  }
 0x478   :  { %1459 = dma.done.wait [#allocation3], 16  }
 0x479   :  { %1460 = vsyncadd [#allocation3], 4294967280 }
 0x47a   :  { %1278 = vsyncpa [#allocation3], 1 }

// kernel: forward.5
= control target key start
LH: loop header
LB: loop body
LE: loop exit
PB: predicated region body
PF: predicated region fallthrough
CT: control target
= control target key end

     0   :  { %s5887_s25 = smov 0   ;;  %s6978_s0 = inlined_call_operand.vmem [shape: f32[8,2,48], index: 0, kind: input, shape index: {}]   ;;  %s6979_s1 = inlined_call_operand.vmem [shape: f32[48,32], index: 1, kind: input, shape index: {}]   ;;  %s6980_s2 = inlined_call_operand.vmem [shape: f32[1,32], index: 2, kind: input, shape index: {}]   ;;  %s6981_s3 = inlined_call_operand.vmem [shape: f32[2,8,2,8], index: 3, kind: input, shape index: {}]   ;;  %s6982_s4 = inlined_call_operand.vmem [shape: f32[8,2,8], index: 4, kind: input, shape index: {}]   ;;  %s6983_s5 = inlined_call_operand.vmem [shape: f32[2,32,192], index: 5, kind: input, shape index: {}]   ;;  %s6984_s6 = inlined_call_operand.vmem [shape: f32[2,32,192], index: 6, kind: input, shape index: {}]   ;;  %s6985_s7 = inlined_call_operand.vmem [shape: f32[2,1,192], index: 7, kind: input, shape index: {}]   ;;  %s6986_s8 = inlined_call_operand.vmem [shape: f32[2,1,192], index: 8, kind: input, shape index: {}]   ;;  %s6987_s9 = inlined_call_operand.vmem [shape: f32[2,1,32], index: 9, kind: input, shape index: {}]   ;;  %s6988_s10 = inlined_call_operand.vmem [shape: f32[2,1,32], index: 10, kind: input, shape index: {}]   ;;  %s6989_s11 = inlined_call_operand.vmem [shape: f32[2,1,1], index: 11, kind: input, shape index: {}]   ;;  %s6990_s12 = inlined_call_operand.vmem [shape: f32[2,64,32], index: 12, kind: input, shape index: {}]   ;;  %s6991_s13 = inlined_call_operand.vmem [shape: f32[2,8,2,32], index: 13, kind: output, shape index: {}]  }
   0x1 LB: > { %s5130_s26 = sadd.s32 4294967295, %s5807_s25   ;;  %p5134_p0 = scmp.ge.s32.totalorder %s5807_s25, 1  ;;  %s5807_s25 = sphi %s5887_s25, %s23_s25  }
   0x2   : > { %p459_p1 = scmp.lt.s32.totalorder %s5807_s25, 3 }
   0x4   : > { %p460_p2 = pnand %p5134_p0, %p459_p1 }
   0x5   : > { %v614_v0 = vld [vmem:[%s6979_s1] sm:$0xff] (!%p460_p2)  ;;  %v615_v1 = vld [vmem:[%s6979_s1 + $0x8] sm:$0xff] (!%p460_p2)  ;;  %v616_v2 = vld [vmem:[%s6979_s1 + $0x10] sm:$0xff] (!%p460_p2)  ;;  %v640_v3 = vlaneseq (!%p460_p2)  ;;  %v5809_v8 = vmov (!%p460_p2), 1983009808   ;;  %p5915_p3 = scmp.lt.s32.totalorder (!%p460_p2), %s5130_s26, 1 }
   0x6   : > { %463 = sbr.rel (%p460_p2) target bundleno = 14149 (0x3745), region = 72  ;;  %v5431_v4 = vpack.c.bf16 (!%p460_p2), %v615_v1, %v614_v0  ;;  %v617_v5 = vld [vmem:[%s6979_s1 + $0x18] sm:$0xff] (!%p460_p2)  ;;  %v618_v6 = vld [vmem:[%s6979_s1 + $0x20] sm:$0xff] (!%p460_p2)  ;;  %v619_v7 = vld [vmem:[%s6979_s1 + $0x28] sm:$0xff] (!%p460_p2)  ;;  %v638_v9 = vunpack.c.l.s4 (!%p460_p2), %v5809_v8  ;;  %vm669_vm0 = vcmask (!%p460_p2), 392192   ;;  %v5810_v48 = vmov (!%p460_p2), 0.0  }
   0x7   : > { %v5435_v10 = vpack.c.bf16 (!%p460_p2), %v617_v5, %v616_v2  ;;  %v606_v11 = vld [vmem:[%s6978_s0] sm:$0x3] (!%p460_p2)  ;;  %v607_v12 = vld [vmem:[%s6978_s0 + $0x2] sm:$0x3] (!%p460_p2)  ;;  %v608_v13 = vld [vmem:[%s6978_s0 + $0x4] sm:$0x3] (!%p460_p2)  ;;  %v5439_v23 = vpack.c.bf16 (!%p460_p2), %v619_v7, %v618_v6  ;;  %875 = vmatprep.mubr.f32.mxu1 (!%p460_p2), %v5810_v48 }
   0x8   : > { %5432 = vmatprep.subr.bf16.mxu0 (!%p460_p2), %v5431_v4  ;;  %v609_v14 = vld [vmem:[%s6978_s0 + $0x6] sm:$0x3] (!%p460_p2)  ;;  %v635_v15 = vcombine.low (!%p460_p2), %v606_v11, %v607_v12  ;;  %v639_v16 = vunpack.c.0.s8 (!%p460_p2), %v638_v9  ;;  %v5932_v17 = vshrl.u32 (!%p460_p2), %v640_v3, 7  ;;  %v610_v18 = vld [vmem:[%s6978_s0 + $0x8] sm:$0x3] (!%p460_p2)  ;;  %vm808_vm1 = vcmask (!%p460_p2), 261120  }
   0x9   : > { %5434 = vmatpush3.bf16.msra.mxu0 (!%p460_p2), %v5431_v4  ;;  %v636_v19 = vcombine.low (!%p460_p2), %v608_v13, %v609_v14  ;;  %v611_v20 = vld [vmem:[%s6978_s0 + $0xa] sm:$0x3] (!%p460_p2)  ;;  %v612_v21 = vld [vmem:[%s6978_s0 + $0xc] sm:$0x3] (!%p460_p2)  ;;  %v613_v22 = vld [vmem:[%s6978_s0 + $0xe] sm:$0x3] (!%p460_p2) }
   0xa   : > { %5436 = vmatprep.subr.bf16.mxu0 (!%p460_p2), %v5435_v10  ;;  %v5947_v24 = vsub.s32 (!%p460_p2), %v639_v16, %v5932_v17  ;;  %v652_v25 = vcombine.low (!%p460_p2), %v610_v18, %v611_v20  ;;  %v653_v26 = vcombine.low (!%p460_p2), %v612_v21, %v613_v22  ;;  %v5147_v49 = vld [vmem:[%s6980_s2] ss:$0 sm:$0xff] (!%p460_p2)  ;;  %v6032_v2 = vsub.s32 (!%p460_p2), 1, %v5932_v17  ;;  %s5811_s29 = smov (!%p460_p2), 64   ;;  %s5813_s16 = smov (!%p460_p2), 32  }
   0xb   : > { %vm1040_vm2 = vcmask (!%p460_p2), 254976   ;;  %vm1077_vm5 = vcmask (!%p460_p2), 58368   ;;  %vm1276_vm6 = vcmask (!%p460_p2), 517376   ;;  %vm5816_vm7 = vmmov (!%p460_p2), 0  }
   0xc   : > { %v643_v27 = vrot.slane (!%p460_p2), %v635_v15, %v5947_v24  ;;  %v650_v28 = vrot.slane (!%p460_p2), %v636_v19, %v5947_v24  ;;  %v660_v29 = vrot.slane (!%p460_p2), %v652_v25, %v5947_v24  ;;  %v667_v30 = vrot.slane (!%p460_p2), %v653_v26, %v5947_v24 }
   0xd   : > { %s6994_s26 = smov (!%p5915_p3, %s5130_s26), 1  ;;  %5438 = vmatpush3.bf16.msra.mxu0 %v5435_v10  ;;  %v6042_v10 = vsub.s32 0, %v5932_v17  ;;  %vm1320_vm8 = vcmask 523264  }
   0xe   : > { %s5959_s27 = sshll.u32 %s6994_s26, 6  ;;  %5440 = vmatprep.subr.bf16.mxu0 %v5439_v23  ;;  %v651_v31 = vcombine.low %v643_v27, %v650_v28  ;;  %v668_v35 = vcombine.low %v660_v29, %v667_v30  ;;  %s5141_s18 = sshll.u32 %s6994_s26, 1 }
   0xf   : > { %s544_s22 = scalar_lea.vmem %s6983_s5, %s5959_s27  ;;  %s549_s15 = scalar_lea.vmem %s6984_s6, %s5959_s27 }
  0x10   : > { %v578_v32 = vld [vmem:[%s544_s22 + $0x8] sm:$0xff]  ;;  %v580_v33 = vld [vmem:[%s544_s22 + $0x18] sm:$0xff]  ;;  %5295 = vmatprep.mubr.msk.f32.mxu0 %vm669_vm0, %v651_v31  ;;  %v577_v36 = vld [vmem:[%s544_s22] sm:$0xff]  ;;  %s553_s21 = scalar_lea.vmem %s6985_s7, %s5141_s18  ;;  %s557_s28 = scalar_lea.vmem %s6986_s8, %s5141_s18 }
  0x11   : > { %v5966_v34 = vpack.c.bf16 %v580_v33, %v578_v32  ;;  %5442 = vmatpush3.bf16.msra.mxu0 %v5439_v23  ;;  %v579_v37 = vld [vmem:[%s544_s22 + $0x10] sm:$0xff]  ;;  %v582_v39 = vld [vmem:[%s544_s22 + $0x28] sm:$0xff]  ;;  %v584_v40 = vld [vmem:[%s544_s22 + $0x38] sm:$0xff]  ;;  %s6077_s19 = scalar_lea.vmem %s6987_s9, %s6994_s26  ;;  %s6097_s23 = scalar_lea.vmem %s6989_s11, %s6994_s26 }
  0x12   : > { %v5969_v38 = vpack.c.bf16 %v579_v37, %v577_v36  ;;  %v5972_v41 = vpack.c.bf16 %v584_v40, %v582_v39  ;;  %v581_v42 = vld [vmem:[%s544_s22 + $0x20] sm:$0xff]  ;;  %v583_v43 = vld [vmem:[%s544_s22 + $0x30] sm:$0xff]  ;;  %v586_v45 = vld [vmem:[%s549_s15 + $0x8] sm:$0xff]  ;;  %s5812_s22 = smov 96   ;;  %s5207_s24 = sshll.u32 %s6994_s26, 4 }
  0x13   : > { %5444 = vmatprep.subr.bf16.mxu1 %v5966_v34  ;;  %v5974_v44 = vpack.c.bf16 %v583_v43, %v581_v42  ;;  %v588_v46 = vld [vmem:[%s549_s15 + $0x18] sm:$0xff]  ;;  %v585_v54 = vld [vmem:[%s549_s15] sm:$0xff]  ;;  %v587_v55 = vld [vmem:[%s549_s15 + $0x10] sm:$0xff]  ;;  %s6110_s14 = scalar_lea.vmem %s6981_s3, %s5207_s24  ;;  %s576_s30 = scalar_lea.vmem %s6991_s13, %s5207_s24 }
  0x14   : > { %5296 = vmatmul.mubr.msk.f32.vlgmr.msra.gmra.mrb[0].mxu0 %vm669_vm0, %v668_v35  ;;  %5446 = vmatpush1.bf16.msra.mxu1 %v5969_v38  ;;  %v5982_v47 = vpack.c.bf16 %v588_v46, %v586_v45  ;;  %v590_v56 = vld [vmem:[%s549_s15 + $0x28] sm:$0xff]  ;;  %v592_v57 = vld [vmem:[%s549_s15 + $0x38] sm:$0xff]  ;;  %v5993_v59 = vpack.c.bf16 %v587_v55, %v585_v54  ;;  %v589_v62 = vld [vmem:[%s549_s15 + $0x20] sm:$0xff] }
  0x15   : > { %5448 = vmatprep.subr.bf16.mxu1 %v5972_v41  ;;  %v5999_v61 = vpack.c.bf16 %v592_v57, %v590_v56  ;;  %v591_v63 = vld [vmem:[%s549_s15 + $0x30] sm:$0xff]  ;;  %v593_v4 = vld [vmem:[%s553_s21] sm:$0x3]  ;;  %s563_s15 = scalar_lea.vmem %s6988_s10, %s6994_s26  ;;  %s6162_s21 = scalar_lea.vmem %s6990_s12, %s5959_s27  ;;  %5314 = vmatprep.mubr.msk.f32.mxu0 %vm5816_vm7, %v5810_v48 }
  0x16   : > { %v6004_v0 = vpack.c.bf16 %v591_v63, %v589_v62  ;;  %v6035_v5 = vrot.slane %v593_v4, %v6032_v2  ;;  %v594_v9 = vld [vmem:[%s557_s28] sm:$0x3]  ;;  %v6055_v18 = vrot.slane %v593_v4, %v6042_v10 }
  0x17   : > { %v6046_v11 = vrot.slane %v594_v9, %v6042_v10  ;;  %v6061_v30 = vrot.slane %v594_v9, %v6032_v2  ;;  %v5153_v40 = vld [vmem:[%s563_s15] ss:$0 sm:$0xff] }
  0x18   : > { %5450 = vmatpush1.bf16.msra.mxu1 %v5974_v44  ;;  %v6080_v56 = vld [vmem:[%s6077_s19] ss:$0 sm:$0xff] }
  0x19   : > { %5452 = vmatprep.subr.bf16.mxu1 %v5982_v47 }
  0xe7   : > { %v5297_v50 = vpop.f32.mrb[0].mxu0 }
  0xe8   : > { %v5989_v51 = vadd.f32 %v5297_v50, %v5147_v49  ;;  %v740_v52 = vpop.f32.mrb[1].mxu0 }
  0xe9   : > { %v741_v53 = vadd.f32 %v5147_v49, %v740_v52 }
  0xeb   : > { %v5991_v58 = vmax.f32 %v741_v53, 0.0 }
  0xed   : > { %v5997_v60 = vrot.slane %v5991_v58, %v5947_v24 }
  0xef   : > { %5150 = vmatmul.mubr.msk.f32.vlgmr.msra.gmra.mrb[0].mxu1 %vm808_vm1, %v5997_v60  ;;  %v6017_v1 = vcombine.high %v5997_v60, %v5997_v60 }
  0xf0   : > { %5454 = vmatpush1.bf16.msra.mxu1 %v5993_v59  ;;  %960 = vmatprep.mubr.f32.mxu1 %v5810_v48 }
  0xf1   : > { %5456 = vmatprep.subr.bf16.mxu1 %v5999_v61  ;;  %v1055_v57 = vmul.f32 %v6080_v56, %v6017_v1 }
  0xf3   : > { %v1056_v62 = vsel %vm1040_vm2, %v1055_v57, 0.0 }
  0xf4   : > { %5458 = vmatpush1.bf16.msra.mxu1 %v6004_v0 }
  0xf5   : > { %5472 = vmatprep.subr.bf16.mxu1 %v5966_v34 }
  0xf7   : > { %961 = vmatmul.mubr.f32.vlgmr.msra.gmra.mrb[2].mxu1 %v5810_v48 }
  0xf8   : > { %5474 = vmatpush1.bf16.msra.mxu1 %v5969_v38  ;;  %1460 = vmatprep.mubr.f32.mxu1 %v5810_v48 }
  0xf9   : > { %5476 = vmatprep.subr.bf16.mxu1 %v5972_v41 }
  0xfc   : > { %5478 = vmatpush1.bf16.msra.mxu1 %v5974_v44 }
  0xfd   : > { %5480 = vmatprep.subr.bf16.mxu1 %v5982_v47 }
  0xff   : > { %5159 = vmatmul.mubr.msk.f32.vlgmr.msra.gmra.mrb[4].mxu1 %vm808_vm1, %v6017_v1 }
 0x100   : > { %5482 = vmatpush1.bf16.msra.mxu1 %v5993_v59  ;;  %1534 = vmatprep.mubr.f32.mxu1 %v5810_v48 }
 0x101   : > { %5484 = vmatprep.subr.bf16.mxu1 %v5999_v61 }
 0x104   : > { %5486 = vmatpush1.bf16.msra.mxu1 %v6004_v0 }
 0x105   : > { %5500 = vmatprep.subr.bf16.mxu1 %v5966_v34 }
 0x1c2   : > { %v877_v6 = vpop.f32.mrb[0].mxu1 }
 0x1c3   : > { %v879_v7 = vpop.f32.mrb[1].mxu1  ;;  %v878_v19 = vadd.f32 %v877_v6, %v6055_v18 }
 0x1c4   : > { %v880_v8 = vadd.f32 %v879_v7, %v6035_v5 }
 0x1c6   : > { %993 = vrot.lane.b32.xlu0 %v880_v8, %s5811_s29 }
 0x1ca   : > { %v962_v12 = vpop.f32.mrb[2].mxu1 }
 0x1cb   : > { %v963_v13 = vadd.f32 %v962_v12, %v6046_v11  ;;  %v964_v14 = vpop.f32.mrb[3].mxu1 }
 0x1cc   : > { %v965_v31 = vadd.f32 %v964_v14, %v6061_v30 }
 0x1cd   : > { %982 = vrot.lane.b32.xlu0 %v963_v13, %s5811_s29  ;;  %v967_v20 = vadd.f32 %v963_v13, %v878_v19 }
 0x1ce   : > { %v968_v42 = vadd.f32 %v965_v31, %v880_v8 }
 0x1cf   : > { %v5151_v21 = vmul.f32 -1.442695, %v967_v20 }
 0x1d0   : > { %v5152_v43 = vmul.f32 -1.442695, %v968_v42 }
 0x1d1   : > { %5673 = vpow2.f32 %v5151_v21 }
 0x1d2   : > { %v6050_v15 = vpop.f32.mrb[4].mxu1 }
 0x1d3   : > { %v6052_v16 = vpop.f32.mrb[5].mxu1 }
 0x1db   : > { %v5674_v22 = vpop.eup %5673 }
 0x1dc   : > { %v975_v23 = vadd.f32 1.0, %v5674_v22 }
 0x1de   : > { %5675 = vrcp.f32 %v975_v23 }
 0x1e8   : > { %v5676_v25 = vpop.eup %5675 }
 0x1e9   : > { %v1003_v4 = vsub.f32 1.0, %v5676_v25  ;;  %v1009_v7 = vmul.f32 0.0, %v5676_v25 }
 0x238   : > { %v994_v26 = vpop.permute.xlu0 %993 }
 0x239   : > { %v996_v27 = vmul.f32 %v5676_v25, %v994_v26  ;;  %v6114_v26 = vand.u32 127, %v640_v3 }
 0x23b   : > { %998 = vrot.lane.b32.xlu1 %v996_v27, %s5811_s29  ;;  %vm1026_vm3 = vcmp.eq.s32.totalorder %v6114_v26, 0  ;;  %vm1075_vm4 = vcmp.lt.s32.totalorder %v6114_v26, 1  ;;  %vm1604_vm9 = vcmp.eq.s32.totalorder %v6114_v26, 1  ;;  %vm1632_vm10 = vcmp.lt.s32.totalorder %v6114_v26, 2 }
 0x23c   : > { %vm2159_vm11 = vcmp.eq.s32.totalorder %v6114_v26, 2  ;;  %vm2187_vm12 = vcmp.lt.s32.totalorder %v6114_v26, 3  ;;  %vm2715_vm13 = vcmp.eq.s32.totalorder %v6114_v26, 3  ;;  %vm2743_vm14 = vcmp.lt.s32.totalorder %v6114_v26, 4 }
 0x23d   : > { %vm3272_vm15 = vcmp.eq.s32.totalorder %v6114_v26, 4  ;;  %vm3300_vm0 = vcmp.lt.s32.totalorder %v6114_v26, 5 }
 0x23f   : > { %v983_v28 = vpop.permute.xlu0 %982 }
 0x240   : > { %v985_v29 = vmul.f32 %v5676_v25, %v983_v28  ;;  %v5154_v25 = vld [vmem:[%s6110_s14 + $0x2] sm:$0x3] }
 0x241   : > { %v1072_v27 = vsub.f32 1.0, %v5154_v25 }
 0x242   : > { %987 = vrot.lane.b32.xlu1 %v985_v29, %s5811_s29 }
 0x243   : > { %v1073_v29 = vmul.f32 1e+30, %v1072_v27 }
 0x2ad   : > { %v999_v32 = vpop.permute.xlu1 %998 }
 0x2ae   : > { %v1001_v33 = vadd.f32 %v999_v32, %v965_v31 }
 0x2b0   : > { %5677 = vtanh.f32 %v1001_v33 }
 0x2b4   : > { %v988_v35 = vpop.permute.xlu1 %987 }
 0x2b5   : > { %v990_v36 = vadd.f32 %v988_v35, %v878_v19  ;;  %v6100_v19 = vld [vmem:[%s6097_s23] ss:$0 sm:$0xff] }
 0x2b7   : > { %5679 = vtanh.f32 %v990_v36 }
 0x2b8   : > { %5681 = vpow2.f32 %v5152_v43 }
 0x2ba   : > { %v5678_v37 = vpop.eup %5677 }
 0x2bb   : > { %1013 = vrot.lane.b32.xlu0 %v5678_v37, %s5812_s22 }
 0x2c1   : > { %v5680_v39 = vpop.eup %5679 }
 0x2c2   : > { %1005 = vrot.lane.b32.xlu1 %v5680_v39, %s5812_s22  ;;  %v5682_v45 = vpop.eup %5681 }
 0x2c3   : > { %v976_v46 = vadd.f32 1.0, %v5682_v45 }
 0x2c5   : > { %5683 = vrcp.f32 %v976_v46 }
 0x2c6   : > { %1032 = vrot.lane.b32.xlu1 %v5153_v40, %s5813_s16 }
 0x2cf   : > { %v5684_v49 = vpop.eup %5683 }
 0x2d0   : > { %v1011_v50 = vsub.f32 1.0, %v5684_v49  ;;  %v1017_v53 = vmul.f32 %v5684_v49, %v5997_v60  ;;  %v5814_v60 = vmov 0  }
 0x2d1   : > { %5671 = vset.pattern.permute.xlu0 %v5814_v60 }
 0x32d   : > { %v1014_v52 = vpop.permute.xlu0 %1013 }
 0x32e   : > { %v1016_v54 = vmul.f32 %v1014_v52, %v1011_v50  ;;  %v5155_v50 = vld [vmem:[%s6982_s4 + $0x2] sm:$0x3] }
 0x330   : > { %v1018_v55 = vadd.f32 %v1017_v53, %v1016_v54  ;;  %v6127_v53 = vsub.s32 7, %v5932_v17 }
 0x332   : > { %1020 = vrot.lane.b32.xlu0 %v1018_v55, %s5813_s16 }
 0x334   : > { %v1006_v63 = vpop.permute.xlu1 %1005 }
 0x335   : > { %v1008_v6 = vmul.f32 %v1006_v63, %v1003_v4  ;;  %v6133_v63 = vsub.s32 2, %v5932_v17 }
 0x337   : > { %v1010_v8 = vadd.f32 %v1009_v7, %v1008_v6  ;;  %v6137_v6 = vsub.s32 3, %v5932_v17 }
 0x338   : > { %v6086_v12 = vpop.permute.xlu1 %1032 }
 0x351   : > { %1057 = vadd.xlane.f32.xlu0 %v1056_v62 }
 0x3a4   : > { %v1021_v9 = vpop.permute.xlu0 %1020 }
 0x3a5   : > { %v6088_v13 = vadd.f32 %v1021_v9, %v1010_v8  ;;  %v6141_v8 = vsub.s32 4, %v5932_v17 }
 0x3a7   : > { %v1035_v14 = vmul.f32 %v6086_v12, %v6088_v13 }
 0x3a9   : > { %1037 = vrot.lane.b32.xlu1 %v1035_v14, %s5812_s22  ;;  %v6145_v14 = vsub.s32 5, %v5932_v17 }
 0x3de   : > { %v1058_v20 = vpop.xlane.xlu0 %1057 }
 0x3df   : > { %v1065_v21 = vadd.f32 %v6100_v19, %v1058_v20 }
 0x3e1   : > { %1068 = vperm.xlu0 %5671, %v1065_v21   ;;  %v6149_v21 = vsub.s32 6, %v5932_v17 }
 0x41b   : > { %v1038_v22 = vpop.permute.xlu1 %1037 }
 0x41c   : > { %v1041_v23 = vsel %vm1040_vm2, %v1038_v22, 0.0 }
 0x41d   : > { %1042 = vadd.xlane.f32.xlu1 %v1041_v23  ;;  %v1178_v23 = vsub.f32 1.0, %v5155_v50 }
 0x460   : > { %v1069_v31 = vpop.permute.xlu0 %1068 }
 0x4aa   : > { %v1043_v28 = vpop.xlane.xlu1 %1042 }
 0x4ab   : > { %v6117_v32 = vsel %vm1026_vm3, %v1043_v28, 0.0  ;;  %vm3830_vm3 = vcmp.eq.s32.totalorder %v6114_v26, 5 }
 0x4ac   : > { %v1071_v33 = vadd.f32 %v1069_v31, %v6117_v32 }
 0x4ae   : > { %v1074_v35 = vsub.f32 %v1071_v33, %v1073_v29 }
 0x4b0   : > { %v1076_v36 = vsel %vm1075_vm4, %v1074_v35, -inf  ;;  %vm3858_vm4 = vcmp.lt.s32.totalorder %v6114_v26, 6 }
 0x4b1   : > { %v1078_v37 = vsel %vm1077_vm5, %v1076_v36, -inf }
 0x4b2   : > { %1079 = vmax.xlane.f32.xlu1 %v1078_v37 }
 0x53f   : > { %v1080_v3 = vpop.xlane.xlu1 %1079 }
 0x540   : > { %v1081_v39 = vsub.f32 %v1076_v36, %v1080_v3 }
 0x542   : > { %v1082_v40 = vmul.f32 1.442695, %v1081_v39  ;;  %v598_v39 = vld [vmem:[%s6162_s21] sm:$0xff] }
 0x544   : > { %5685 = vpow2.f32 %v1082_v40  ;;  %v599_v40 = vld [vmem:[%s6162_s21 + $0x8] sm:$0xff] }
 0x54e   : > { %v5686_v42 = vpop.eup %5685 }
 0x54f   : > { %v1084_v43 = vsel %vm1077_vm5, %v5686_v42, 0.0 }
 0x550   : > { %1085 = vadd.xlane.f32.xlu1 %v1084_v43 }
 0x5dd   : > { %v1086_v45 = vpop.xlane.xlu1 %1085 }
 0x5de   : > { %5687 = vrcp.f32 %v1086_v45  ;;  %v5815_v45 = vmov 0.0|0.0  }
 0x5df   : > { %5459 = vmatprep.subr.bf16.mxu0 %v5815_v45 }
 0x5e8   : > { %v5688_v46 = vpop.eup %5687 }
 0x5e9   : > { %v1088_v49 = vmul.f32 %v5688_v46, %v5686_v42  ;;  %v6166_v42 = vpack.c.bf16 %v599_v40, %v598_v39  ;;  %v600_v46 = vld [vmem:[%s6162_s21 + $0x10] sm:$0xff] }
 0x5eb   : > { %v1089_v52 = vmul.f32 %v5155_v50, %v1088_v49  ;;  %v1179_v25 = vmul.f32 %v1178_v23, %v1088_v49  ;;  %5461 = vmatpush3.bf16.msra.mxu0 %v6166_v42  ;;  %v601_v49 = vld [vmem:[%s6162_s21 + $0x18] sm:$0xff] }
 0x5ec   : > { %5462 = vmatprep.subr.bf16.mxu0 %v5815_v45 }
 0x5ed   : > { %1090 = vxpose.xlu1.b32.start.end [1/1] (short) (narrow) %v1089_v52, 8  ;;  %v6175_v52 = vpack.c.bf16 %v601_v49, %v600_v46 }
 0x5ef   : > { %5464 = vmatpush3.bf16.msra.mxu0 %v6175_v52 }
 0x5f0   : > { %5465 = vmatprep.subr.bf16.mxu0 %v5815_v45 }
 0x66d   : > { %v1106_v54 = vpop.trf.xlu1 }
 0x66e   : > { %v1174_v55 = vrot.slane %v1106_v54, %v6127_v53  ;;  %v1125_v57 = vrot.slane %v1106_v54, %v6042_v10  ;;  %v1132_v62 = vrot.slane %v1106_v54, %v6032_v2  ;;  %v1139_v4 = vrot.slane %v1106_v54, %v6133_v63 }
 0x66f   : > { %v1146_v7 = vrot.slane %v1106_v54, %v6137_v6  ;;  %v1153_v9 = vrot.slane %v1106_v54, %v6141_v8  ;;  %v1160_v20 = vrot.slane %v1106_v54, %v6145_v14  ;;  %v1167_v22 = vrot.slane %v1106_v54, %v6149_v21 }
 0x670   : > { %1176 = vbcast.lane.b32.xlu1 %v1174_v55, 256  ;;  %1127 = vbcast.lane.b32.xlu0 %v1125_v57, 256 }
 0x674   : > { %1134 = vbcast.lane.b32.xlu0 %v1132_v62, 256  ;;  %v602_v62 = vld [vmem:[%s6162_s21 + $0x20] sm:$0xff] }
 0x678   : > { %1141 = vbcast.lane.b32.xlu0 %v1139_v4, 256  ;;  %v603_v4 = vld [vmem:[%s6162_s21 + $0x28] sm:$0xff] }
 0x67c   : > { %1148 = vbcast.lane.b32.xlu0 %v1146_v7, 256 }
 0x680   : > { %1155 = vbcast.lane.b32.xlu0 %v1153_v9, 256 }
 0x684   : > { %1162 = vbcast.lane.b32.xlu0 %v1160_v20, 256  ;;  %v6185_v20 = vpack.c.bf16 %v603_v4, %v602_v62 }
 0x686   : > { %5467 = vmatpush3.bf16.msra.mxu0 %v6185_v20 }
 0x687   : > { %5468 = vmatprep.subr.bf16.mxu0 %v5815_v45 }
 0x688   : > { %1169 = vbcast.lane.b32.xlu0 %v1167_v22, 256 }
 0x6a6   : > { %1180 = vxpose.xlu0.b32.start.end [1/1] (short) (narrow) %v1179_v25, 8 }
 0x6e2   : > { %v1128_v27 = vpop.permute.xlu0 %1127 }
 0x6e3   : > { %v1268_v55 = vmul.f32 %v1128_v27, %v6088_v13 }
 0x6e5   : > { %v1277_v23 = vsel %vm1276_vm6, %v1268_v55, 0.0 }
 0x6e6   : > { %v1135_v28 = vpop.permute.xlu0 %1134 }
 0x6e7   : > { %v1269_v50 = vmul.f32 0.0, %v1135_v28 }
 0x6e9   : > { %v1278_v7 = vsel %vm1276_vm6, %v1269_v50, 0.0 }
 0x6ea   : > { %v1142_v29 = vpop.permute.xlu0 %1141  ;;  %v1279_v28 = vadd.f32 %v1278_v7, %v1277_v23  ;;  %v6215_v23 = vadd.f32 %v6052_v16, %v6035_v5 }
 0x6eb   : > { %v1270_v57 = vmul.f32 0.0, %v1142_v29  ;;  %v604_v29 = vld [vmem:[%s6162_s21 + $0x30] sm:$0xff] }
 0x6ed   : > { %v1280_v25 = vsel %vm1276_vm6, %v1270_v57, 0.0 }
 0x6ee   : > { %v1149_v31 = vpop.permute.xlu0 %1148  ;;  %v1281_v40 = vadd.f32 %v1280_v25, %v1279_v28 }
 0x6ef   : > { %v1271_v9 = vmul.f32 0.0, %v1149_v31 }
 0x6f1   : > { %v1282_v31 = vsel %vm1276_vm6, %v1271_v9, 0.0 }
 0x6f2   : > { %v1156_v33 = vpop.permute.xlu0 %1155  ;;  %v1283_v49 = vadd.f32 %v1282_v31, %v1281_v40 }
 0x6f3   : > { %v1272_v27 = vmul.f32 0.0, %v1156_v33 }
 0x6f5   : > { %v1284_v46 = vsel %vm1276_vm6, %v1272_v27, 0.0 }
 0x6f6   : > { %v1163_v35 = vpop.permute.xlu0 %1162 }
 0x6fa   : > { %v1170_v36 = vpop.permute.xlu0 %1169 }
 0x6fb   : > { %v1274_v33 = vmul.f32 0.0, %v1170_v36 }
 0x6fd   : > { %v1288_v57 = vsel %vm1276_vm6, %v1274_v33, 0.0 }
 0x726   : > { %v6152_v37 = vpop.trf.xlu0 }
 0x727   : > { %v1222_v17 = vrot.slane %v6152_v37, %v6032_v2  ;;  %v1215_v3 = vrot.slane %v6152_v37, %v6042_v10  ;;  %v1229_v43 = vrot.slane %v6152_v37, %v6133_v63  ;;  %v1236_v54 = vrot.slane %v6152_v37, %v6137_v6 }
 0x728   : > { %v1243_v22 = vrot.slane %v6152_v37, %v6141_v8  ;;  %v1257_v55 = vrot.slane %v6152_v37, %v6149_v21  ;;  %v1264_v7 = vrot.slane %v6152_v37, %v6127_v53 }
 0x729   : > { %1224 = vbcast.lane.b32.xlu0 %v1222_v17, 256  ;;  %1217 = vbcast.lane.b32.xlu1 %v1215_v3, 256  ;;  %v605_v17 = vld [vmem:[%s6162_s21 + $0x38] sm:$0xff]  ;;  %v1273_v3 = vmul.f32 0.0, %v1163_v35  ;;  %v1177_v35 = vpop.permute.xlu1 %1176 }
 0x72a   : > { %v6196_v39 = vpack.c.bf16 %v605_v17, %v604_v29  ;;  %v1275_v62 = vmul.f32 0.0, %v1177_v35 }
 0x72b   : > { %v1286_v50 = vsel %vm1276_vm6, %v1273_v3, 0.0 }
 0x72c   : > { %5470 = vmatpush3.bf16.msra.mxu0 %v6196_v39  ;;  %v1290_v9 = vsel %vm1276_vm6, %v1275_v62, 0.0 }
 0x72d   : > { %1231 = vbcast.lane.b32.xlu1 %v1229_v43, 256  ;;  %v1250_v43 = vrot.slane %v6152_v37, %v6145_v14  ;;  %5487 = vmatprep.subr.bf16.mxu0 %v5815_v45 }
 0x731   : > { %1238 = vbcast.lane.b32.xlu1 %v1236_v54, 256  ;;  %v1285_v54 = vadd.f32 %v1284_v46, %v1283_v49 }
 0x733   : > { %v1287_v36 = vadd.f32 %v1286_v50, %v1285_v54 }
 0x735   : > { %1245 = vbcast.lane.b32.xlu1 %v1243_v22, 256  ;;  %v1289_v4 = vadd.f32 %v1288_v57, %v1287_v36 }
 0x737   : > { %v1291_v22 = vadd.f32 %v1290_v9, %v1289_v4 }
 0x739   : > { %1252 = vbcast.lane.b32.xlu1 %v1250_v43, 256 }
 0x73d   : > { %1259 = vbcast.lane.b32.xlu1 %v1257_v55, 256 }
 0x741   : > { %1266 = vbcast.lane.b32.xlu1 %v1264_v7, 256 }
 0x745   : > { %1316 = vrot.lane.b32.xlu1 %v1291_v22, %s5812_s22 }
 0x749   : > { %1567 = vrot.lane.b32.xlu1 %v6215_v23, %s5811_s29 }
 0x79b   : > { %v1218_v25 = vpop.permute.xlu1 %1217  ;;  %v1225_v28 = vpop.permute.xlu0 %1224 }
 0x79c   : > { %v1293_v17 = vmul.f32 0.0, %v1225_v28  ;;  %v1292_v37 = vmul.f32 %v1218_v25, %v6088_v13 }
 0x79e   : > { %v1301_v40 = vsel %vm1276_vm6, %v1293_v17, 0.0  ;;  %v1300_v43 = vsel %vm1276_vm6, %v1292_v37, 0.0 }
 0x79f   : > { %v1232_v27 = vpop.permute.xlu1 %1231  ;;  %v1302_v49 = vadd.f32 %v1301_v40, %v1300_v43 }
 0x7a0   : > { %v1294_v31 = vmul.f32 0.0, %v1232_v27 }
 0x7a2   : > { %v1303_v16 = vsel %vm1276_vm6, %v1294_v31, 0.0 }
 0x7a3   : > { %v1239_v29 = vpop.permute.xlu1 %1238  ;;  %v1304_v55 = vadd.f32 %v1303_v16, %v1302_v49 }
 0x7a4   : > { %v1295_v46 = vmul.f32 0.0, %v1239_v29 }
 0x7a6   : > { %v1305_v35 = vsel %vm1276_vm6, %v1295_v46, 0.0  ;;  %v753_v46 = vcombine.high %v5991_v58, %v5991_v58 }
 0x7a7   : > { %v1246_v3 = vpop.permute.xlu1 %1245  ;;  %v1306_v36 = vadd.f32 %v1305_v35, %v1304_v55 }
 0x7a8   : > { %v1296_v33 = vmul.f32 0.0, %v1246_v3  ;;  %v6248_v16 = vrot.slane %v753_v46, %v5947_v24 }
 0x7aa   : > { %v1307_v57 = vsel %vm1276_vm6, %v1296_v33, 0.0  ;;  %v1463_v33 = vadd.f32 %v6050_v15, %v6055_v18 }
 0x7ab   : > { %v1253_v50 = vpop.permute.xlu1 %1252  ;;  %v1308_v9 = vadd.f32 %v1307_v57, %v1306_v36 }
 0x7ac   : > { %v1297_v54 = vmul.f32 0.0, %v1253_v50 }
 0x7ae   : > { %v1309_v4 = vsel %vm1276_vm6, %v1297_v54, 0.0 }
 0x7af   : > { %v1260_v62 = vpop.permute.xlu1 %1259  ;;  %v1310_v25 = vadd.f32 %v1309_v4, %v1308_v9 }
 0x7b0   : > { %v1298_v7 = vmul.f32 0.0, %v1260_v62 }
 0x7b2   : > { %v1311_v22 = vsel %vm1276_vm6, %v1298_v7, 0.0 }
 0x7b3   : > { %v1267_v27 = vpop.permute.xlu1 %1266  ;;  %v1312_v29 = vadd.f32 %v1311_v22, %v1310_v25 }
 0x7b4   : > { %v1299_v28 = vmul.f32 0.0, %v1267_v27 }
 0x7b6   : > { %v1313_v17 = vsel %vm1276_vm6, %v1299_v28, 0.0 }
 0x7b7   : > { %v1314_v37 = vadd.f32 %v1313_v17, %v1312_v29  ;;  %v1317_v31 = vpop.permute.xlu1 %1316  ;;  %v1618_v17 = vmul.f32 %v6080_v56, %v6248_v16 }
 0x7b9   : > { %v1319_v3 = vsel %vm808_vm1, %v1317_v31, %v1314_v37  ;;  %v1619_v37 = vsel %vm1040_vm2, %v1618_v17, 0.0 }
 0x7ba   : > { %5315 = vmatmul.mubr.msk.f32.vlgmr.msra.gmra.mrb[2].mxu0 %vm1320_vm8, %v1319_v3 }
 0x7bb   : > { %5489 = vmatpush3.bf16.msra.mxu0 %v6166_v42  ;;  %5333 = vmatprep.mubr.msk.f32.mxu0 %vm5816_vm7, %v5810_v48  ;;  %v1568_v7 = vpop.permute.xlu1 %1567 }
 0x7bc   : > { %5490 = vmatprep.subr.bf16.mxu0 %v5815_v45 }
 0x7bf   : > { %5492 = vmatpush3.bf16.msra.mxu0 %v6175_v52 }
 0x7c0   : > { %5493 = vmatprep.subr.bf16.mxu0 %v5815_v45 }
 0x7c3   : > { %5495 = vmatpush3.bf16.msra.mxu0 %v6185_v20 }
 0x7c4   : > { %5496 = vmatprep.subr.bf16.mxu0 %v5815_v45 }
 0x7c7   : > { %5498 = vmatpush3.bf16.msra.mxu0 %v6196_v39 }
 0x7c8   : > { %5515 = vmatprep.subr.bf16.mxu0 %v5815_v45 }
 0x88d   : > { %v1390_v40 = vpop.f32.mrb[2].mxu0 }
 0x88e   : > { %v5316_v43 = vpop.f32.mrb[3].mxu0  ;;  %5160 = vmatmul.mubr.msk.f32.vlgmr.msra.gmra.mrb[6].mxu1 %vm808_vm1, %v1390_v40 }
 0x88f   : > { %5502 = vmatpush1.bf16.msra.mxu1 %v5969_v38  ;;  %2014 = vmatprep.mubr.f32.mxu1 %v5810_v48 }
 0x890   : > { %5504 = vmatprep.subr.bf16.mxu1 %v5972_v41 }
 0x893   : > { %5506 = vmatpush1.bf16.msra.mxu1 %v5974_v44 }
 0x894   : > { %5508 = vmatprep.subr.bf16.mxu1 %v5982_v47 }
 0x896   : > { %5166 = vmatmul.mubr.msk.f32.vlgmr.msra.gmra.mrb[8].mxu1 %vm808_vm1, %v6248_v16 }
 0x897   : > { %5510 = vmatpush1.bf16.msra.mxu1 %v5993_v59  ;;  %2088 = vmatprep.mubr.f32.mxu1 %v5810_v48 }
 0x898   : > { %5512 = vmatprep.subr.bf16.mxu1 %v5999_v61 }
 0x89b   : > { %5514 = vmatpush1.bf16.msra.mxu1 %v6004_v0 }
 0x89c   : > { %5528 = vmatprep.subr.bf16.mxu1 %v5966_v34 }
 0x961   : > { %v1536_v58 = vpop.f32.mrb[6].mxu1 }
 0x962   : > { %v1537_v49 = vadd.f32 %v1536_v58, %v6046_v11  ;;  %v1538_v50 = vpop.f32.mrb[7].mxu1 }
 0x963   : > { %v1539_v25 = vadd.f32 %v1538_v50, %v6061_v30 }
 0x964   : > { %v1541_v35 = vadd.f32 %v1537_v49, %v1463_v33  ;;  %1556 = vrot.lane.b32.xlu1 %v1537_v49, %s5811_s29 }
 0x965   : > { %v1542_v43 = vadd.f32 %v1539_v25, %v6215_v23 }
 0x966   : > { %v5161_v54 = vmul.f32 -1.442695, %v1541_v35 }
 0x967   : > { %v5162_v46 = vmul.f32 -1.442695, %v1542_v43 }
 0x968   : > { %5689 = vpow2.f32 %v5161_v54 }
 0x969   : > { %v6262_v55 = vpop.f32.mrb[8].mxu1 }
 0x96a   : > { %v6264_v57 = vpop.f32.mrb[9].mxu1 }
 0x972   : > { %v5690_v36 = vpop.eup %5689 }
 0x973   : > { %v1549_v62 = vadd.f32 1.0, %v5690_v36 }
 0x975   : > { %5691 = vrcp.f32 %v1549_v62 }
 0x97f   : > { %v5692_v4 = vpop.eup %5691 }
 0x980   : > { %v1570_v9 = vmul.f32 %v5692_v4, %v1568_v7 }
 0x982   : > { %1572 = vrot.lane.b32.xlu1 %v1570_v9, %s5811_s29 }
 0x9d6   : > { %v1557_v15 = vpop.permute.xlu1 %1556 }
 0x9d7   : > { %v1559_v22 = vmul.f32 %v5692_v4, %v1557_v15 }
 0x9d9   : > { %1561 = vrot.lane.b32.xlu1 %v1559_v22, %s5811_s29  ;;  %v1577_v22 = vsub.f32 1.0, %v5692_v4 }
 0x9f4   : > { %v1573_v27 = vpop.permute.xlu1 %1572 }
 0x9f5   : > { %v1575_v28 = vadd.f32 %v1573_v27, %v1539_v25 }
 0x9f7   : > { %5693 = vtanh.f32 %v1575_v28 }
 0xa01   : > { %v5694_v29 = vpop.eup %5693 }
 0xa02   : > { %1590 = vrot.lane.b32.xlu0 %v5694_v29, %s5812_s22 }
 0xa06   : > { %1583 = vrot.lane.b32.xlu0 %v1390_v40, %s5813_s16 }
 0xa25   : > { %1620 = vadd.xlane.f32.xlu0 %v1619_v37 }
 0xa4b   : > { %v1562_v31 = vpop.permute.xlu1 %1561 }
 0xa4c   : > { %v1564_v3 = vadd.f32 %v1562_v31, %v1463_v33 }
 0xa4e   : > { %5695 = vtanh.f32 %v1564_v3  ;;  %v5163_v3 = vld [vmem:[%s6110_s14 + $0x4] sm:$0x3] }
 0xa4f   : > { %5697 = vpow2.f32 %v5162_v46  ;;  %v1629_v43 = vsub.f32 1.0, %v5163_v3 }
 0xa58   : > { %v5696_v58 = vpop.eup %5695 }
 0xa59   : > { %1579 = vrot.lane.b32.xlu1 %v5696_v58, %s5812_s22  ;;  %v5698_v49 = vpop.eup %5697  ;;  %v1630_v58 = vmul.f32 1e+30, %v1629_v43 }
 0xa5a   : > { %v1550_v50 = vadd.f32 1.0, %v5698_v49 }
 0xa5c   : > { %5699 = vrcp.f32 %v1550_v50 }
 0xa66   : > { %v5700_v40 = vpop.eup %5699 }
 0xa67   : > { %v1588_v35 = vsub.f32 1.0, %v5700_v40  ;;  %v1594_v36 = vmul.f32 %v5700_v40, %v6017_v1 }
 0xa74   : > { %v1591_v54 = vpop.permute.xlu0 %1590 }
 0xa75   : > { %v1593_v62 = vmul.f32 %v1591_v54, %v1588_v35 }
 0xa77   : > { %v1595_v7 = vadd.f32 %v1594_v36, %v1593_v62 }
 0xa78   : > { %v1584_v33 = vpop.permute.xlu0 %1583 }
 0xa79   : > { %1597 = vrot.lane.b32.xlu1 %v1595_v7, %s5813_s16  ;;  %v1586_v27 = vmul.f32 %v5692_v4, %v1584_v33 }
 0xab2   : > { %v1621_v23 = vpop.xlane.xlu0 %1620 }
 0xab3   : > { %v1622_v9 = vadd.f32 %v6100_v19, %v1621_v23 }
 0xab5   : > { %1625 = vperm.xlu0 %5671, %v1622_v9  }
 0xacb   : > { %v1580_v15 = vpop.permute.xlu1 %1579 }
 0xacc   : > { %v1582_v25 = vmul.f32 %v1580_v15, %v1577_v22  ;;  %v5164_v22 = vld [vmem:[%s6982_s4 + $0x4] sm:$0x3] }
 0xace   : > { %v1587_v28 = vadd.f32 %v1586_v27, %v1582_v25 }
 0xaeb   : > { %v1598_v29 = vpop.permute.xlu1 %1597 }
 0xaec   : > { %v6279_v17 = vadd.f32 %v1598_v29, %v1587_v28 }
 0xaee   : > { %v1605_v1 = vmul.f32 %v6279_v17, %v6086_v12 }
 0xaf0   : > { %1607 = vrot.lane.b32.xlu1 %v1605_v1, %s5812_s22 }
 0xb34   : > { %v1626_v4 = vpop.permute.xlu0 %1625 }
 0xb62   : > { %v1608_v37 = vpop.permute.xlu1 %1607 }
 0xb63   : > { %v1610_v31 = vsel %vm1040_vm2, %v1608_v37, 0.0 }
 0xb64   : > { %1611 = vadd.xlane.f32.xlu1 %v1610_v31 }
 0xbf1   : > { %v1612_v46 = vpop.xlane.xlu1 %1611 }
 0xbf2   : > { %v6288_v49 = vsel %vm1604_vm9, %v1612_v46, %v6117_v32  ;;  %v1734_v46 = vsub.f32 1.0, %v5164_v22  ;;  %vm4417_vm9 = vcmp.lt.s32.totalorder %v6114_v26, 7 }
 0xbf3   : > { %v1628_v50 = vadd.f32 %v1626_v4, %v6288_v49 }
 0xbf5   : > { %v1631_v40 = vsub.f32 %v1628_v50, %v1630_v58 }
 0xbf7   : > { %v1633_v35 = vsel %vm1632_vm10, %v1631_v40, -inf }
 0xbf8   : > { %v1634_v54 = vsel %vm1077_vm5, %v1633_v35, -inf }
 0xbf9   : > { %1635 = vmax.xlane.f32.xlu1 %v1634_v54 }
 0xc86   : > { %v1636_v36 = vpop.xlane.xlu1 %1635 }
 0xc87   : > { %v1637_v62 = vsub.f32 %v1633_v35, %v1636_v36 }
 0xc89   : > { %v1638_v7 = vmul.f32 1.442695, %v1637_v62 }
 0xc8b   : > { %5701 = vpow2.f32 %v1638_v7 }
 0xc95   : > { %v5702_v33 = vpop.eup %5701 }
 0xc96   : > { %v1640_v23 = vsel %vm1077_vm5, %v5702_v33, 0.0 }
 0xc97   : > { %1641 = vadd.xlane.f32.xlu1 %v1640_v23 }
 0xd24   : > { %v1642_v9 = vpop.xlane.xlu1 %1641 }
 0xd25   : > { %5703 = vrcp.f32 %v1642_v9 }
 0xd2f   : > { %v5704_v32 = vpop.eup %5703 }
 0xd30   : > { %v1644_v15 = vmul.f32 %v5704_v32, %v5702_v33 }
 0xd32   : > { %v1645_v25 = vmul.f32 %v5164_v22, %v1644_v15  ;;  %v1735_v58 = vmul.f32 %v1734_v46, %v1644_v15 }
 0xd34   : > { %1646 = vxpose.xlu1.b32.start.end [1/1] (short) (narrow) %v1645_v25, 8 }
 0xd52   : > { %5672 = vset.pattern.permute.xlu1 %v5814_v60 }
 0xdb4   : > { %v1662_v27 = vpop.trf.xlu1 }
 0xdb5   : > { %v1681_v28 = vrot.slane %v1662_v27, %v6042_v10  ;;  %v1688_v29 = vrot.slane %v1662_v27, %v6032_v2  ;;  %v1695_v1 = vrot.slane %v1662_v27, %v6133_v63  ;;  %v1702_v37 = vrot.slane %v1662_v27, %v6137_v6 }
 0xdb6   : > { %v1709_v31 = vrot.slane %v1662_v27, %v6141_v8  ;;  %v1716_v3 = vrot.slane %v1662_v27, %v6145_v14  ;;  %v1723_v60 = vrot.slane %v1662_v27, %v6149_v21  ;;  %v1730_v43 = vrot.slane %v1662_v27, %v6127_v53 }
 0xdb7   : > { %1683 = vbcast.lane.b32.xlu0 %v1681_v28, 256 }
 0xdbb   : > { %1690 = vbcast.lane.b32.xlu0 %v1688_v29, 256 }
 0xdbf   : > { %1697 = vbcast.lane.b32.xlu0 %v1695_v1, 256 }
 0xdc3   : > { %1704 = vbcast.lane.b32.xlu0 %v1702_v37, 256 }
 0xdc7   : > { %1711 = vbcast.lane.b32.xlu0 %v1709_v31, 256 }
 0xdcb   : > { %1718 = vbcast.lane.b32.xlu0 %v1716_v3, 256 }
 0xdcf   : > { %1725 = vbcast.lane.b32.xlu0 %v1723_v60, 256 }
 0xdd3   : > { %1732 = vbcast.lane.b32.xlu0 %v1730_v43, 256 }
 0xdf1   : > { %1736 = vxpose.xlu0.b32.start.end [1/1] (short) (narrow) %v1735_v58, 8 }
 0xe29   : > { %v1684_v4 = vpop.permute.xlu0 %1683 }
 0xe2a   : > { %v1824_v7 = vmul.f32 %v1684_v4, %v6088_v13 }
 0xe2c   : > { %v1832_v25 = vsel %vm1276_vm6, %v1824_v7, 0.0 }
 0xe2d   : > { %v1691_v50 = vpop.permute.xlu0 %1690 }
 0xe2e   : > { %v1825_v62 = vmul.f32 %v1691_v50, %v6279_v17 }
 0xe30   : > { %v1833_v9 = vsel %vm1276_vm6, %v1825_v62, 0.0 }
 0xe31   : > { %v1698_v40 = vpop.permute.xlu0 %1697  ;;  %v1834_v27 = vadd.f32 %v1833_v9, %v1832_v25 }
 0xe32   : > { %v1826_v33 = vmul.f32 0.0, %v1698_v40 }
 0xe34   : > { %v1835_v15 = vsel %vm1276_vm6, %v1826_v33, 0.0 }
 0xe35   : > { %v1705_v35 = vpop.permute.xlu0 %1704  ;;  %v1836_v1 = vadd.f32 %v1835_v15, %v1834_v27 }
 0xe36   : > { %v1827_v32 = vmul.f32 0.0, %v1705_v35 }
 0xe38   : > { %v1837_v28 = vsel %vm1276_vm6, %v1827_v32, 0.0 }
 0xe39   : > { %v1712_v54 = vpop.permute.xlu0 %1711  ;;  %v1838_v60 = vadd.f32 %v1837_v28, %v1836_v1 }
 0xe3a   : > { %v1828_v22 = vmul.f32 0.0, %v1712_v54 }
 0xe3c   : > { %v1839_v31 = vsel %vm1276_vm6, %v1828_v22, 0.0  ;;  %v6327_v22 = vadd.f32 %v6264_v57, %v6035_v5 }
 0xe3d   : > { %v1719_v36 = vpop.permute.xlu0 %1718  ;;  %v1840_v58 = vadd.f32 %v1839_v31, %v1838_v60 }
 0xe3e   : > { %v1829_v29 = vmul.f32 0.0, %v1719_v36 }
 0xe40   : > { %v1841_v43 = vsel %vm1276_vm6, %v1829_v29, 0.0 }
 0xe41   : > { %v1726_v23 = vpop.permute.xlu0 %1725  ;;  %v1842_v40 = vadd.f32 %v1841_v43, %v1840_v58 }
 0xe42   : > { %v1830_v3 = vmul.f32 0.0, %v1726_v23 }
 0xe44   : > { %v1843_v4 = vsel %vm1276_vm6, %v1830_v3, 0.0 }
 0xe45   : > { %v1733_v37 = vpop.permute.xlu0 %1732  ;;  %v1844_v62 = vadd.f32 %v1843_v4, %v1842_v40 }
 0xe46   : > { %v1831_v46 = vmul.f32 0.0, %v1733_v37 }
 0xe48   : > { %v1845_v36 = vsel %vm1276_vm6, %v1831_v46, 0.0 }
 0xe49   : > { %v1846_v7 = vadd.f32 %v1845_v36, %v1844_v62 }
 0xe71   : > { %v1752_v50 = vpop.trf.xlu0 }
 0xe72   : > { %v1778_v35 = vrot.slane %v1752_v50, %v6032_v2  ;;  %v1771_v54 = vrot.slane %v1752_v50, %v6042_v10  ;;  %v1785_v33 = vrot.slane %v1752_v50, %v6133_v63  ;;  %v1792_v23 = vrot.slane %v1752_v50, %v6137_v6 }
 0xe73   : > { %v1799_v9 = vrot.slane %v1752_v50, %v6141_v8  ;;  %v1806_v32 = vrot.slane %v1752_v50, %v6145_v14  ;;  %v1813_v25 = vrot.slane %v1752_v50, %v6149_v21  ;;  %v1820_v15 = vrot.slane %v1752_v50, %v6127_v53 }
 0xe74   : > { %1780 = vbcast.lane.b32.xlu0 %v1778_v35, 256  ;;  %1773 = vbcast.lane.b32.xlu1 %v1771_v54, 256 }
 0xe78   : > { %1871 = vrot.lane.b32.xlu0 %v1846_v7, %s5812_s22  ;;  %1787 = vbcast.lane.b32.xlu1 %v1785_v33, 256 }
 0xe7c   : > { %1794 = vbcast.lane.b32.xlu1 %v1792_v23, 256 }
 0xe80   : > { %1801 = vbcast.lane.b32.xlu1 %v1799_v9, 256 }
 0xe84   : > { %1808 = vbcast.lane.b32.xlu1 %v1806_v32, 256 }
 0xe88   : > { %1815 = vbcast.lane.b32.xlu1 %v1813_v25, 256 }
 0xe8c   : > { %1822 = vbcast.lane.b32.xlu1 %v1820_v15, 256 }
 0xe90   : > { %2121 = vrot.lane.b32.xlu1 %v6327_v22, %s5811_s29 }
 0xee6   : > { %v1774_v27 = vpop.permute.xlu1 %1773  ;;  %v1781_v29 = vpop.permute.xlu0 %1780 }
 0xee7   : > { %v1848_v37 = vmul.f32 %v1781_v29, %v6279_v17  ;;  %v1847_v31 = vmul.f32 %v1774_v27, %v6088_v13 }
 0xee9   : > { %v1856_v43 = vsel %vm1276_vm6, %v1848_v37, 0.0  ;;  %v1855_v46 = vsel %vm1276_vm6, %v1847_v31, 0.0 }
 0xeea   : > { %v1788_v28 = vpop.permute.xlu1 %1787  ;;  %v1857_v50 = vadd.f32 %v1856_v43, %v1855_v46  ;;  %v1872_v31 = vpop.permute.xlu0 %1871  ;;  %v6360_v46 = vcombine.high %v6248_v16, %v6248_v16 }
 0xeeb   : > { %v1849_v3 = vmul.f32 0.0, %v1788_v28 }
 0xeed   : > { %v1858_v57 = vsel %vm1276_vm6, %v1849_v3, 0.0 }
 0xeee   : > { %v1795_v1 = vpop.permute.xlu1 %1794  ;;  %v1859_v36 = vadd.f32 %v1858_v57, %v1857_v50  ;;  %v2017_v57 = vadd.f32 %v6262_v55, %v6055_v18 }
 0xeef   : > { %v1850_v58 = vmul.f32 0.0, %v1795_v1 }
 0xef1   : > { %v1860_v35 = vsel %vm1276_vm6, %v1850_v58, 0.0 }
 0xef2   : > { %v1802_v60 = vpop.permute.xlu1 %1801  ;;  %v1861_v7 = vadd.f32 %v1860_v35, %v1859_v36 }
 0xef3   : > { %v1851_v4 = vmul.f32 0.0, %v1802_v60 }
 0xef5   : > { %v1862_v62 = vsel %vm1276_vm6, %v1851_v4, 0.0 }
 0xef6   : > { %v1809_v40 = vpop.permute.xlu1 %1808  ;;  %v1863_v32 = vadd.f32 %v1862_v62, %v1861_v7 }
 0xef7   : > { %v1852_v54 = vmul.f32 0.0, %v1809_v40 }
 0xef9   : > { %v1864_v23 = vsel %vm1276_vm6, %v1852_v54, 0.0 }
 0xefa   : > { %v1816_v33 = vpop.permute.xlu1 %1815  ;;  %v1865_v15 = vadd.f32 %v1864_v23, %v1863_v32 }
 0xefb   : > { %v1853_v9 = vmul.f32 0.0, %v1816_v33 }
 0xefd   : > { %v1866_v25 = vsel %vm1276_vm6, %v1853_v9, 0.0 }
 0xefe   : > { %v1823_v27 = vpop.permute.xlu1 %1822  ;;  %v1867_v29 = vadd.f32 %v1866_v25, %v1865_v15 }
 0xeff   : > { %v1854_v28 = vmul.f32 0.0, %v1823_v27 }
 0xf01   : > { %v1868_v1 = vsel %vm1276_vm6, %v1854_v28, 0.0 }
 0xf02   : > { %v1869_v37 = vadd.f32 %v1868_v1, %v1867_v29  ;;  %v2122_v23 = vpop.permute.xlu1 %2121  ;;  %v2173_v29 = vmul.f32 %v6080_v56, %v6360_v46 }
 0xf04   : > { %v1874_v3 = vsel %vm808_vm1, %v1872_v31, %v1869_v37  ;;  %v2174_v1 = vsel %vm1040_vm2, %v2173_v29, 0.0 }
 0xf05   : > { %5334 = vmatmul.mubr.msk.f32.vlgmr.msra.gmra.mrb[4].mxu0 %vm1320_vm8, %v1874_v3 }
 0xf06   : > { %5517 = vmatpush3.bf16.msra.mxu0 %v6166_v42  ;;  %5352 = vmatprep.mubr.msk.f32.mxu0 %vm5816_vm7, %v5810_v48 }
 0xf07   : > { %5518 = vmatprep.subr.bf16.mxu0 %v5815_v45 }
 0xf0a   : > { %5520 = vmatpush3.bf16.msra.mxu0 %v6175_v52 }
 0xf0b   : > { %5521 = vmatprep.subr.bf16.mxu0 %v5815_v45 }
 0xf0e   : > { %5523 = vmatpush3.bf16.msra.mxu0 %v6185_v20 }
 0xf0f   : > { %5524 = vmatprep.subr.bf16.mxu0 %v5815_v45 }
 0xf12   : > { %5526 = vmatpush3.bf16.msra.mxu0 %v6196_v39 }
 0xf13   : > { %5543 = vmatprep.subr.bf16.mxu0 %v5815_v45 }
 0xfd8   : > { %v1944_v60 = vpop.f32.mrb[4].mxu0 }
 0xfd9   : > { %v5335_v43 = vpop.f32.mrb[5].mxu0  ;;  %5167 = vmatmul.mubr.msk.f32.vlgmr.msra.gmra.mrb[10].mxu1 %vm808_vm1, %v1944_v60 }
 0xfda   : > { %5530 = vmatpush1.bf16.msra.mxu1 %v5969_v38  ;;  %2569 = vmatprep.mubr.f32.mxu1 %v5810_v48 }
 0xfdb   : > { %5532 = vmatprep.subr.bf16.mxu1 %v5972_v41 }
 0xfde   : > { %5534 = vmatpush1.bf16.msra.mxu1 %v5974_v44 }
 0xfdf   : > { %5536 = vmatprep.subr.bf16.mxu1 %v5982_v47 }
 0xfe1   : > { %5173 = vmatmul.mubr.msk.f32.vlgmr.msra.gmra.mrb[12].mxu1 %vm808_vm1, %v6360_v46 }
 0xfe2   : > { %5538 = vmatpush1.bf16.msra.mxu1 %v5993_v59  ;;  %2643 = vmatprep.mubr.f32.mxu1 %v5810_v48 }
 0xfe3   : > { %5540 = vmatprep.subr.bf16.mxu1 %v5999_v61 }
 0xfe6   : > { %5542 = vmatpush1.bf16.msra.mxu1 %v6004_v0 }
 0xfe7   : > { %5556 = vmatprep.subr.bf16.mxu1 %v5966_v34 }
0x10ac   : > { %v2090_v58 = vpop.f32.mrb[10].mxu1 }
0x10ad   : > { %v2091_v4 = vadd.f32 %v2090_v58, %v6046_v11  ;;  %v2092_v50 = vpop.f32.mrb[11].mxu1 }
0x10ae   : > { %v2093_v25 = vadd.f32 %v2092_v50, %v6061_v30 }
0x10af   : > { %v2095_v40 = vadd.f32 %v2091_v4, %v2017_v57  ;;  %2110 = vrot.lane.b32.xlu0 %v2091_v4, %s5811_s29 }
0x10b0   : > { %v2096_v3 = vadd.f32 %v2093_v25, %v6327_v22 }
0x10b1   : > { %v5168_v35 = vmul.f32 -1.442695, %v2095_v40 }
0x10b2   : > { %v5169_v43 = vmul.f32 -1.442695, %v2096_v3 }
0x10b3   : > { %5705 = vpow2.f32 %v5168_v35 }
0x10b4   : > { %v6374_v54 = vpop.f32.mrb[12].mxu1 }
0x10b5   : > { %v6376_v36 = vpop.f32.mrb[13].mxu1 }
0x10bd   : > { %v5706_v62 = vpop.eup %5705 }
0x10be   : > { %v2103_v7 = vadd.f32 1.0, %v5706_v62 }
0x10c0   : > { %5707 = vrcp.f32 %v2103_v7 }
0x10ca   : > { %v5708_v33 = vpop.eup %5707 }
0x10cb   : > { %v2124_v9 = vmul.f32 %v5708_v33, %v2122_v23 }
0x10cd   : > { %2126 = vrot.lane.b32.xlu1 %v2124_v9, %s5811_s29 }
0x1121   : > { %v2111_v55 = vpop.permute.xlu0 %2110 }
0x1122   : > { %v2113_v32 = vmul.f32 %v5708_v33, %v2111_v55  ;;  %v2131_v55 = vsub.f32 1.0, %v5708_v33 }
0x1124   : > { %2115 = vrot.lane.b32.xlu0 %v2113_v32, %s5811_s29 }
0x113f   : > { %v2127_v15 = vpop.permute.xlu1 %2126 }
0x1140   : > { %v2129_v27 = vadd.f32 %v2127_v15, %v2093_v25 }
0x1142   : > { %5709 = vtanh.f32 %v2129_v27 }
0x114c   : > { %v5710_v28 = vpop.eup %5709 }
0x114d   : > { %2144 = vrot.lane.b32.xlu1 %v5710_v28, %s5812_s22 }
0x1151   : > { %2137 = vrot.lane.b32.xlu1 %v1944_v60, %s5813_s16 }
0x1175   : > { %2175 = vadd.xlane.f32.xlu1 %v2174_v1 }
0x1196   : > { %v2116_v37 = vpop.permute.xlu0 %2115 }
0x1197   : > { %v2118_v31 = vadd.f32 %v2116_v37, %v2017_v57  ;;  %v5170_v37 = vld [vmem:[%s6110_s14 + $0x6] sm:$0x3] }
0x1199   : > { %5711 = vtanh.f32 %v2118_v31 }
0x119a   : > { %5713 = vpow2.f32 %v5169_v43 }
0x11a3   : > { %v5712_v58 = vpop.eup %5711 }
0x11a4   : > { %2133 = vrot.lane.b32.xlu0 %v5712_v58, %s5812_s22  ;;  %v5714_v4 = vpop.eup %5713 }
0x11a5   : > { %v2104_v50 = vadd.f32 1.0, %v5714_v4 }
0x11a7   : > { %5715 = vrcp.f32 %v2104_v50 }
0x11b1   : > { %v5716_v60 = vpop.eup %5715 }
0x11b2   : > { %v2142_v40 = vsub.f32 1.0, %v5716_v60  ;;  %v2148_v56 = vmul.f32 %v5716_v60, %v6248_v16 }
0x11bf   : > { %v2145_v35 = vpop.permute.xlu1 %2144 }
0x11c0   : > { %v2147_v62 = vmul.f32 %v2145_v35, %v2142_v40 }
0x11c2   : > { %v2149_v7 = vadd.f32 %v2148_v56, %v2147_v62 }
0x11c3   : > { %v2138_v57 = vpop.permute.xlu1 %2137 }
0x11c4   : > { %2151 = vrot.lane.b32.xlu0 %v2149_v7, %s5813_s16  ;;  %v2140_v25 = vmul.f32 %v5708_v33, %v2138_v57 }
0x1202   : > { %v2176_v22 = vpop.xlane.xlu1 %2175 }
0x1203   : > { %v2177_v23 = vadd.f32 %v6100_v19, %v2176_v22  ;;  %v2184_v19 = vsub.f32 1.0, %v5170_v37 }
0x1205   : > { %2180 = vperm.xlu1 %5672, %v2177_v23   ;;  %v2185_v3 = vmul.f32 1e+30, %v2184_v19  ;;  %v5171_v23 = vld [vmem:[%s6982_s4 + $0x6] sm:$0x3] }
0x1206   : > { %v2289_v19 = vsub.f32 1.0, %v5171_v23 }
0x1216   : > { %v2134_v9 = vpop.permute.xlu0 %2133 }
0x1217   : > { %v2136_v32 = vmul.f32 %v2134_v9, %v2131_v55 }
0x1219   : > { %v2141_v15 = vadd.f32 %v2140_v25, %v2136_v32 }
0x1236   : > { %v2152_v27 = vpop.permute.xlu0 %2151 }
0x1237   : > { %v6391_v28 = vadd.f32 %v2152_v27, %v2141_v15 }
0x1239   : > { %v2160_v16 = vmul.f32 %v6391_v28, %v6086_v12 }
0x123b   : > { %2162 = vrot.lane.b32.xlu0 %v2160_v16, %s5812_s22 }
0x1284   : > { %v2181_v33 = vpop.permute.xlu1 %2180 }
0x12ad   : > { %v2163_v29 = vpop.permute.xlu0 %2162 }
0x12ae   : > { %v2165_v1 = vsel %vm1040_vm2, %v2163_v29, 0.0 }
0x12af   : > { %2166 = vadd.xlane.f32.xlu0 %v2165_v1 }
0x133c   : > { %v2167_v31 = vpop.xlane.xlu0 %2166 }
0x133d   : > { %v6400_v43 = vsel %vm2159_vm11, %v2167_v31, %v6288_v49 }
0x133e   : > { %v2183_v58 = vadd.f32 %v2181_v33, %v6400_v43 }
0x1340   : > { %v2186_v4 = vsub.f32 %v2183_v58, %v2185_v3 }
0x1342   : > { %v2188_v50 = vsel %vm2187_vm12, %v2186_v4, -inf }
0x1343   : > { %v2189_v60 = vsel %vm1077_vm5, %v2188_v50, -inf }
0x1344   : > { %2190 = vmax.xlane.f32.xlu0 %v2189_v60 }
0x13d1   : > { %v2191_v40 = vpop.xlane.xlu0 %2190 }
0x13d2   : > { %v2192_v35 = vsub.f32 %v2188_v50, %v2191_v40 }
0x13d4   : > { %v2193_v56 = vmul.f32 1.442695, %v2192_v35 }
0x13d6   : > { %5717 = vpow2.f32 %v2193_v56 }
0x13e0   : > { %v5718_v62 = vpop.eup %5717 }
0x13e1   : > { %v2195_v7 = vsel %vm1077_vm5, %v5718_v62, 0.0 }
0x13e2   : > { %2196 = vadd.xlane.f32.xlu0 %v2195_v7 }
0x146f   : > { %v2197_v57 = vpop.xlane.xlu0 %2196 }
0x1470   : > { %5719 = vrcp.f32 %v2197_v57 }
0x147a   : > { %v5720_v49 = vpop.eup %5719 }
0x147b   : > { %v2199_v22 = vmul.f32 %v5720_v49, %v5718_v62 }
0x147d   : > { %v2200_v9 = vmul.f32 %v5171_v23, %v2199_v22  ;;  %v2290_v31 = vmul.f32 %v2289_v19, %v2199_v22 }
0x147f   : > { %2201 = vxpose.xlu0.b32.start.end [1/1] (short) (narrow) %v2200_v9, 8 }
0x14ff   : > { %v2217_v55 = vpop.trf.xlu0 }
0x1500   : > { %v2236_v32 = vrot.slane %v2217_v55, %v6042_v10  ;;  %v2243_v25 = vrot.slane %v2217_v55, %v6032_v2  ;;  %v2250_v15 = vrot.slane %v2217_v55, %v6133_v63  ;;  %v2257_v27 = vrot.slane %v2217_v55, %v6137_v6 }
0x1501   : > { %v2264_v16 = vrot.slane %v2217_v55, %v6141_v8  ;;  %v2271_v29 = vrot.slane %v2217_v55, %v6145_v14  ;;  %v2278_v1 = vrot.slane %v2217_v55, %v6149_v21  ;;  %v2285_v37 = vrot.slane %v2217_v55, %v6127_v53 }
0x1502   : > { %2238 = vbcast.lane.b32.xlu1 %v2236_v32, 256 }
0x1506   : > { %2245 = vbcast.lane.b32.xlu1 %v2243_v25, 256 }
0x150a   : > { %2252 = vbcast.lane.b32.xlu1 %v2250_v15, 256 }
0x150e   : > { %2259 = vbcast.lane.b32.xlu1 %v2257_v27, 256 }
0x1512   : > { %2266 = vbcast.lane.b32.xlu1 %v2264_v16, 256 }
0x1516   : > { %2273 = vbcast.lane.b32.xlu1 %v2271_v29, 256 }
0x151a   : > { %2280 = vbcast.lane.b32.xlu1 %v2278_v1, 256 }
0x151e   : > { %2287 = vbcast.lane.b32.xlu1 %v2285_v37, 256 }
0x1547   : > { %2291 = vxpose.xlu1.b32.start.end [1/1] (short) (narrow) %v2290_v31, 8 }
0x1574   : > { %v2239_v3 = vpop.permute.xlu1 %2238 }
0x1575   : > { %v2379_v35 = vmul.f32 %v2239_v3, %v6088_v13 }
0x1577   : > { %v2387_v49 = vsel %vm1276_vm6, %v2379_v35, 0.0 }
0x1578   : > { %v2246_v33 = vpop.permute.xlu1 %2245 }
0x1579   : > { %v2380_v40 = vmul.f32 %v2246_v33, %v6279_v17 }
0x157b   : > { %v2388_v7 = vsel %vm1276_vm6, %v2380_v40, 0.0 }
0x157c   : > { %v2253_v58 = vpop.permute.xlu1 %2252  ;;  %v2389_v9 = vadd.f32 %v2388_v7, %v2387_v49 }
0x157d   : > { %v2381_v56 = vmul.f32 %v2253_v58, %v6391_v28 }
0x157f   : > { %v2390_v22 = vsel %vm1276_vm6, %v2381_v56, 0.0 }
0x1580   : > { %v2260_v4 = vpop.permute.xlu1 %2259  ;;  %v2391_v25 = vadd.f32 %v2390_v22, %v2389_v9  ;;  %v6439_v22 = vadd.f32 %v6376_v36, %v6035_v5 }
0x1581   : > { %v2382_v57 = vmul.f32 0.0, %v2260_v4 }
0x1583   : > { %v2392_v55 = vsel %vm1276_vm6, %v2382_v57, 0.0 }
0x1584   : > { %v2267_v50 = vpop.permute.xlu1 %2266  ;;  %v2393_v29 = vadd.f32 %v2392_v55, %v2391_v25 }
0x1585   : > { %v2383_v23 = vmul.f32 0.0, %v2267_v50 }
0x1587   : > { %v2394_v27 = vsel %vm1276_vm6, %v2383_v23, 0.0 }
0x1588   : > { %v2274_v60 = vpop.permute.xlu1 %2273  ;;  %v2395_v19 = vadd.f32 %v2394_v27, %v2393_v29 }
0x1589   : > { %v2384_v32 = vmul.f32 0.0, %v2274_v60 }
0x158b   : > { %v2396_v1 = vsel %vm1276_vm6, %v2384_v32, 0.0 }
0x158c   : > { %v2281_v62 = vpop.permute.xlu1 %2280  ;;  %v2397_v33 = vadd.f32 %v2396_v1, %v2395_v19 }
0x158d   : > { %v2385_v16 = vmul.f32 0.0, %v2281_v62 }
0x158f   : > { %v2398_v31 = vsel %vm1276_vm6, %v2385_v16, 0.0 }
0x1590   : > { %v2288_v15 = vpop.permute.xlu1 %2287  ;;  %v2399_v60 = vadd.f32 %v2398_v31, %v2397_v33 }
0x1591   : > { %v2386_v37 = vmul.f32 0.0, %v2288_v15 }
0x1593   : > { %v2400_v50 = vsel %vm1276_vm6, %v2386_v37, 0.0 }
0x1594   : > { %v2401_v40 = vadd.f32 %v2400_v50, %v2399_v60 }
0x15c7   : > { %v2307_v3 = vpop.trf.xlu1 }
0x15c8   : > { %v2333_v58 = vrot.slane %v2307_v3, %v6032_v2  ;;  %v2326_v4 = vrot.slane %v2307_v3, %v6042_v10  ;;  %v2340_v35 = vrot.slane %v2307_v3, %v6133_v63  ;;  %v2347_v56 = vrot.slane %v2307_v3, %v6137_v6 }
0x15c9   : > { %v2354_v62 = vrot.slane %v2307_v3, %v6141_v8  ;;  %v2361_v7 = vrot.slane %v2307_v3, %v6145_v14  ;;  %v2368_v57 = vrot.slane %v2307_v3, %v6149_v21  ;;  %v2375_v49 = vrot.slane %v2307_v3, %v6127_v53 }
0x15ca   : > { %2335 = vbcast.lane.b32.xlu1 %v2333_v58, 256  ;;  %2328 = vbcast.lane.b32.xlu0 %v2326_v4, 256 }
0x15ce   : > { %2426 = vrot.lane.b32.xlu1 %v2401_v40, %s5812_s22  ;;  %2342 = vbcast.lane.b32.xlu0 %v2340_v35, 256 }
0x15d2   : > { %2349 = vbcast.lane.b32.xlu0 %v2347_v56, 256 }
0x15d6   : > { %2356 = vbcast.lane.b32.xlu0 %v2354_v62, 256 }
0x15da   : > { %2363 = vbcast.lane.b32.xlu0 %v2361_v7, 256 }
0x15de   : > { %2370 = vbcast.lane.b32.xlu0 %v2368_v57, 256 }
0x15e2   : > { %2377 = vbcast.lane.b32.xlu0 %v2375_v49, 256 }
0x15e6   : > { %2676 = vrot.lane.b32.xlu0 %v6439_v22, %s5811_s29 }
0x163c   : > { %v2329_v23 = vpop.permute.xlu0 %2328  ;;  %v2336_v55 = vpop.permute.xlu1 %2335 }
0x163d   : > { %v2403_v25 = vmul.f32 %v2336_v55, %v6279_v17  ;;  %v2402_v15 = vmul.f32 %v2329_v23, %v6088_v13 }
0x163f   : > { %v2411_v29 = vsel %vm1276_vm6, %v2403_v25, 0.0  ;;  %v2410_v1 = vsel %vm1276_vm6, %v2402_v15, 0.0 }
0x1640   : > { %v2343_v9 = vpop.permute.xlu0 %2342  ;;  %v2412_v31 = vadd.f32 %v2411_v29, %v2410_v1  ;;  %v2427_v25 = vpop.permute.xlu1 %2426  ;;  %v6470_v29 = vmax.f32 %v5989_v51, 0.0 }
0x1641   : > { %v2404_v27 = vmul.f32 %v2343_v9, %v6391_v28 }
0x1642   : > { %v6476_v1 = vrot.slane %v6470_v29, %v5947_v24 }
0x1643   : > { %v2413_v37 = vsel %vm1276_vm6, %v2404_v27, 0.0 }
0x1644   : > { %v2350_v32 = vpop.permute.xlu0 %2349  ;;  %v2414_v4 = vadd.f32 %v2413_v37, %v2412_v31 }
0x1645   : > { %v2405_v36 = vmul.f32 0.0, %v2350_v32 }
0x1647   : > { %v2415_v33 = vsel %vm1276_vm6, %v2405_v36, 0.0  ;;  %v2572_v36 = vadd.f32 %v6374_v54, %v6055_v18 }
0x1648   : > { %v2357_v16 = vpop.permute.xlu0 %2356  ;;  %v2416_v60 = vadd.f32 %v2415_v33, %v2414_v4 }
0x1649   : > { %v2406_v19 = vmul.f32 0.0, %v2357_v16 }
0x164b   : > { %v2417_v50 = vsel %vm1276_vm6, %v2406_v19, 0.0 }
0x164c   : > { %v2364_v3 = vpop.permute.xlu0 %2363  ;;  %v2418_v62 = vadd.f32 %v2417_v50, %v2416_v60 }
0x164d   : > { %v2407_v58 = vmul.f32 0.0, %v2364_v3 }
0x164f   : > { %v2419_v35 = vsel %vm1276_vm6, %v2407_v58, 0.0 }
0x1650   : > { %v2371_v40 = vpop.permute.xlu0 %2370  ;;  %v2420_v57 = vadd.f32 %v2419_v35, %v2418_v62 }
0x1651   : > { %v2408_v56 = vmul.f32 0.0, %v2371_v40 }
0x1653   : > { %v2421_v7 = vsel %vm1276_vm6, %v2408_v56, 0.0 }
0x1654   : > { %v2378_v49 = vpop.permute.xlu0 %2377  ;;  %v2422_v9 = vadd.f32 %v2421_v7, %v2420_v57 }
0x1655   : > { %v2409_v23 = vmul.f32 0.0, %v2378_v49 }
0x1657   : > { %v2423_v55 = vsel %vm1276_vm6, %v2409_v23, 0.0  ;;  %v6500_v23 = vld [vmem:[%s6077_s19] ss:$0 sm:$0xff] }
0x1658   : > { %v2424_v32 = vadd.f32 %v2423_v55, %v2422_v9  ;;  %v2677_v40 = vpop.permute.xlu0 %2676  ;;  %v2729_v9 = vmul.f32 %v6500_v23, %v6476_v1 }
0x165a   : > { %v2429_v15 = vsel %vm808_vm1, %v2427_v25, %v2424_v32  ;;  %v2730_v55 = vsel %vm1040_vm2, %v2729_v9, 0.0 }
0x165b   : > { %5353 = vmatmul.mubr.msk.f32.vlgmr.msra.gmra.mrb[6].mxu0 %vm1320_vm8, %v2429_v15 }
0x165c   : > { %5545 = vmatpush3.bf16.msra.mxu0 %v6166_v42  ;;  %5371 = vmatprep.mubr.msk.f32.mxu0 %vm5816_vm7, %v5810_v48 }
0x165d   : > { %5546 = vmatprep.subr.bf16.mxu0 %v5815_v45 }
0x1660   : > { %5548 = vmatpush3.bf16.msra.mxu0 %v6175_v52 }
0x1661   : > { %5549 = vmatprep.subr.bf16.mxu0 %v5815_v45 }
0x1664   : > { %5551 = vmatpush3.bf16.msra.mxu0 %v6185_v20 }
0x1665   : > { %5552 = vmatprep.subr.bf16.mxu0 %v5815_v45 }
0x1668   : > { %5554 = vmatpush3.bf16.msra.mxu0 %v6196_v39 }
0x1669   : > { %5571 = vmatprep.subr.bf16.mxu0 %v5815_v45 }
0x172e   : > { %v2499_v27 = vpop.f32.mrb[6].mxu0 }
0x172f   : > { %v5354_v16 = vpop.f32.mrb[7].mxu0  ;;  %5174 = vmatmul.mubr.msk.f32.vlgmr.msra.gmra.mrb[14].mxu1 %vm808_vm1, %v2499_v27 }
0x1730   : > { %5558 = vmatpush1.bf16.msra.mxu1 %v5969_v38  ;;  %3125 = vmatprep.mubr.f32.mxu1 %v5810_v48 }
0x1731   : > { %5560 = vmatprep.subr.bf16.mxu1 %v5972_v41 }
0x1734   : > { %5562 = vmatpush1.bf16.msra.mxu1 %v5974_v44 }
0x1735   : > { %5564 = vmatprep.subr.bf16.mxu1 %v5982_v47 }
0x1737   : > { %5180 = vmatmul.mubr.msk.f32.vlgmr.msra.gmra.mrb[16].mxu1 %vm808_vm1, %v6476_v1 }
0x1738   : > { %5566 = vmatpush1.bf16.msra.mxu1 %v5993_v59  ;;  %3199 = vmatprep.mubr.f32.mxu1 %v5810_v48 }
0x1739   : > { %5568 = vmatprep.subr.bf16.mxu1 %v5999_v61 }
0x173c   : > { %5570 = vmatpush1.bf16.msra.mxu1 %v6004_v0 }
0x173d   : > { %5584 = vmatprep.subr.bf16.mxu1 %v5966_v34 }
0x1802   : > { %v2645_v51 = vpop.f32.mrb[14].mxu1 }
0x1803   : > { %v2646_v37 = vadd.f32 %v2645_v51, %v6046_v11  ;;  %v2647_v19 = vpop.f32.mrb[15].mxu1 }
0x1804   : > { %v2648_v62 = vadd.f32 %v2647_v19, %v6061_v30 }
0x1805   : > { %v2650_v31 = vadd.f32 %v2646_v37, %v2572_v36  ;;  %2665 = vrot.lane.b32.xlu1 %v2646_v37, %s5811_s29 }
0x1806   : > { %v2651_v15 = vadd.f32 %v2648_v62, %v6439_v22 }
0x1807   : > { %v5175_v3 = vmul.f32 -1.442695, %v2650_v31 }
0x1808   : > { %v5176_v16 = vmul.f32 -1.442695, %v2651_v15  ;;  %v5177_v15 = vld [vmem:[%s6110_s14 + $0x8] sm:$0x3] }
0x1809   : > { %5721 = vpow2.f32 %v5175_v3 }
0x180a   : > { %v6490_v33 = vpop.f32.mrb[16].mxu1 }
0x180b   : > { %v6492_v58 = vpop.f32.mrb[17].mxu1 }
0x1813   : > { %v5722_v4 = vpop.eup %5721 }
0x1814   : > { %v2658_v50 = vadd.f32 1.0, %v5722_v4 }
0x1816   : > { %5723 = vrcp.f32 %v2658_v50 }
0x1820   : > { %v5724_v60 = vpop.eup %5723 }
0x1821   : > { %v2679_v35 = vmul.f32 %v5724_v60, %v2677_v40 }
0x1823   : > { %2681 = vrot.lane.b32.xlu0 %v2679_v35, %s5811_s29  ;;  %v6510_v35 = vld [vmem:[%s6097_s23] ss:$0 sm:$0xff] }
0x1877   : > { %v2666_v54 = vpop.permute.xlu1 %2665 }
0x1878   : > { %v2668_v56 = vmul.f32 %v5724_v60, %v2666_v54 }
0x187a   : > { %2670 = vrot.lane.b32.xlu1 %v2668_v56, %s5811_s29 }
0x1895   : > { %v2682_v7 = vpop.permute.xlu0 %2681 }
0x1896   : > { %v2684_v57 = vadd.f32 %v2682_v7, %v2648_v62  ;;  %v2686_v62 = vsub.f32 1.0, %v5724_v60 }
0x1898   : > { %5725 = vtanh.f32 %v2684_v57 }
0x18a2   : > { %v5726_v49 = vpop.eup %5725 }
0x18a3   : > { %2699 = vrot.lane.b32.xlu0 %v5726_v49, %s5812_s22 }
0x18a7   : > { %2692 = vrot.lane.b32.xlu0 %v2499_v27, %s5813_s16 }
0x18c6   : > { %2731 = vadd.xlane.f32.xlu0 %v2730_v55 }
0x18ec   : > { %v2671_v32 = vpop.permute.xlu1 %2670 }
0x18ed   : > { %v2673_v25 = vadd.f32 %v2671_v32, %v2572_v36 }
0x18ef   : > { %5727 = vtanh.f32 %v2673_v25 }
0x18f0   : > { %5729 = vpow2.f32 %v5176_v16  ;;  %v2740_v16 = vsub.f32 1.0, %v5177_v15 }
0x18f9   : > { %v5728_v51 = vpop.eup %5727 }
0x18fa   : > { %2688 = vrot.lane.b32.xlu1 %v5728_v51, %s5812_s22  ;;  %v5730_v27 = vpop.eup %5729 }
0x18fb   : > { %v2659_v37 = vadd.f32 1.0, %v5730_v27  ;;  %v2741_v27 = vmul.f32 1e+30, %v2740_v16 }
0x18fd   : > { %5731 = vrcp.f32 %v2659_v37 }
0x1907   : > { %v5732_v19 = vpop.eup %5731 }
0x1908   : > { %v2697_v31 = vsub.f32 1.0, %v5732_v19  ;;  %v2703_v4 = vmul.f32 %v5732_v19, %v6360_v46 }
0x1915   : > { %v2700_v3 = vpop.permute.xlu0 %2699 }
0x1916   : > { %v2702_v50 = vmul.f32 %v2700_v3, %v2697_v31 }
0x1918   : > { %v2704_v40 = vadd.f32 %v2703_v4, %v2702_v50 }
0x1919   : > { %v2693_v22 = vpop.permute.xlu0 %2692 }
0x191a   : > { %2706 = vrot.lane.b32.xlu1 %v2704_v40, %s5813_s16  ;;  %v2695_v57 = vmul.f32 %v5724_v60, %v2693_v22 }
0x1953   : > { %v2732_v36 = vpop.xlane.xlu0 %2731 }
0x1954   : > { %v2733_v54 = vadd.f32 %v6510_v35, %v2732_v36 }
0x1956   : > { %2736 = vperm.xlu0 %5671, %v2733_v54  }
0x196c   : > { %v2689_v56 = vpop.permute.xlu1 %2688 }
0x196d   : > { %v2691_v7 = vmul.f32 %v2689_v56, %v2686_v62 }
0x196f   : > { %v2696_v49 = vadd.f32 %v2695_v57, %v2691_v7  ;;  %v5178_v7 = vld [vmem:[%s6982_s4 + $0x8] sm:$0x3] }
0x198c   : > { %v2707_v9 = vpop.permute.xlu1 %2706 }
0x198d   : > { %v6513_v55 = vadd.f32 %v2707_v9, %v2696_v49 }
0x198f   : > { %v2716_v46 = vmul.f32 %v6513_v55, %v6086_v12 }
0x1991   : > { %2718 = vrot.lane.b32.xlu1 %v2716_v46, %s5812_s22 }
0x19d5   : > { %v2737_v60 = vpop.permute.xlu0 %2736 }
0x1a03   : > { %v2719_v32 = vpop.permute.xlu1 %2718 }
0x1a04   : > { %v2721_v25 = vsel %vm1040_vm2, %v2719_v32, 0.0 }
0x1a05   : > { %2722 = vadd.xlane.f32.xlu1 %v2721_v25 }
0x1a92   : > { %v2723_v51 = vpop.xlane.xlu1 %2722 }
0x1a93   : > { %v6522_v37 = vsel %vm2715_vm13, %v2723_v51, %v6400_v43 }
0x1a94   : > { %v2739_v19 = vadd.f32 %v2737_v60, %v6522_v37  ;;  %v2845_v60 = vsub.f32 1.0, %v5178_v7 }
0x1a96   : > { %v2742_v31 = vsub.f32 %v2739_v19, %v2741_v27 }
0x1a98   : > { %v2744_v3 = vsel %vm2743_vm14, %v2742_v31, -inf }
0x1a99   : > { %v2745_v4 = vsel %vm1077_vm5, %v2744_v3, -inf }
0x1a9a   : > { %2746 = vmax.xlane.f32.xlu1 %v2745_v4 }
0x1b27   : > { %v2747_v50 = vpop.xlane.xlu1 %2746 }
0x1b28   : > { %v2748_v40 = vsub.f32 %v2744_v3, %v2747_v50 }
0x1b2a   : > { %v2749_v22 = vmul.f32 1.442695, %v2748_v40 }
0x1b2c   : > { %5733 = vpow2.f32 %v2749_v22 }
0x1b36   : > { %v5734_v36 = vpop.eup %5733 }
0x1b37   : > { %v2751_v54 = vsel %vm1077_vm5, %v5734_v36, 0.0 }
0x1b38   : > { %2752 = vadd.xlane.f32.xlu1 %v2751_v54 }
0x1bc5   : > { %v2753_v56 = vpop.xlane.xlu1 %2752 }
0x1bc6   : > { %5735 = vrcp.f32 %v2753_v56 }
0x1bd0   : > { %v5736_v43 = vpop.eup %5735 }
0x1bd1   : > { %v2755_v62 = vmul.f32 %v5736_v43, %v5734_v36 }
0x1bd3   : > { %v2756_v57 = vmul.f32 %v5178_v7, %v2755_v62  ;;  %v2846_v19 = vmul.f32 %v2845_v60, %v2755_v62 }
0x1bd5   : > { %2757 = vxpose.xlu1.b32.start.end [1/1] (short) (narrow) %v2756_v57, 8 }
0x1c55   : > { %v2773_v49 = vpop.trf.xlu1 }
0x1c56   : > { %v2792_v9 = vrot.slane %v2773_v49, %v6042_v10  ;;  %v2799_v46 = vrot.slane %v2773_v49, %v6032_v2  ;;  %v2806_v32 = vrot.slane %v2773_v49, %v6133_v63  ;;  %v2813_v25 = vrot.slane %v2773_v49, %v6137_v6 }
0x1c57   : > { %v2820_v15 = vrot.slane %v2773_v49, %v6141_v8  ;;  %v2827_v16 = vrot.slane %v2773_v49, %v6145_v14  ;;  %v2834_v51 = vrot.slane %v2773_v49, %v6149_v21  ;;  %v2841_v27 = vrot.slane %v2773_v49, %v6127_v53 }
0x1c58   : > { %2794 = vbcast.lane.b32.xlu0 %v2792_v9, 256 }
0x1c5c   : > { %2801 = vbcast.lane.b32.xlu0 %v2799_v46, 256 }
0x1c60   : > { %2808 = vbcast.lane.b32.xlu0 %v2806_v32, 256 }
0x1c64   : > { %2815 = vbcast.lane.b32.xlu0 %v2813_v25, 256 }
0x1c68   : > { %2822 = vbcast.lane.b32.xlu0 %v2820_v15, 256 }
0x1c6c   : > { %2829 = vbcast.lane.b32.xlu0 %v2827_v16, 256 }
0x1c70   : > { %2836 = vbcast.lane.b32.xlu0 %v2834_v51, 256 }
0x1c74   : > { %2843 = vbcast.lane.b32.xlu0 %v2841_v27, 256 }
0x1c92   : > { %2847 = vxpose.xlu0.b32.start.end [1/1] (short) (narrow) %v2846_v19, 8 }
0x1cca   : > { %v2795_v31 = vpop.permute.xlu0 %2794 }
0x1ccb   : > { %v2935_v54 = vmul.f32 %v2795_v31, %v6088_v13 }
0x1ccd   : > { %v2943_v62 = vsel %vm1276_vm6, %v2935_v54, 0.0 }
0x1cce   : > { %v2802_v3 = vpop.permute.xlu0 %2801 }
0x1ccf   : > { %v2936_v36 = vmul.f32 %v2802_v3, %v6279_v17 }
0x1cd1   : > { %v2944_v57 = vsel %vm1276_vm6, %v2936_v36, 0.0 }
0x1cd2   : > { %v2809_v4 = vpop.permute.xlu0 %2808  ;;  %v2945_v46 = vadd.f32 %v2944_v57, %v2943_v62 }
0x1cd3   : > { %v2937_v56 = vmul.f32 %v2809_v4, %v6391_v28 }
0x1cd5   : > { %v2946_v7 = vsel %vm1276_vm6, %v2937_v56, 0.0 }
0x1cd6   : > { %v2816_v50 = vpop.permute.xlu0 %2815  ;;  %v2947_v15 = vadd.f32 %v2946_v7, %v2945_v46 }
0x1cd7   : > { %v2938_v49 = vmul.f32 %v2816_v50, %v6513_v55 }
0x1cd9   : > { %v2948_v32 = vsel %vm1276_vm6, %v2938_v49, 0.0 }
0x1cda   : > { %v2823_v40 = vpop.permute.xlu0 %2822  ;;  %v2949_v60 = vadd.f32 %v2948_v32, %v2947_v15  ;;  %v6562_v32 = vadd.f32 %v6492_v58, %v6035_v5 }
0x1cdb   : > { %v2939_v9 = vmul.f32 0.0, %v2823_v40 }
0x1cdd   : > { %v2950_v51 = vsel %vm1276_vm6, %v2939_v9, 0.0 }
0x1cde   : > { %v2830_v22 = vpop.permute.xlu0 %2829  ;;  %v2951_v3 = vadd.f32 %v2950_v51, %v2949_v60 }
0x1cdf   : > { %v2940_v25 = vmul.f32 0.0, %v2830_v22 }
0x1ce1   : > { %v2952_v19 = vsel %vm1276_vm6, %v2940_v25, 0.0 }
0x1ce2   : > { %v2837_v43 = vpop.permute.xlu0 %2836  ;;  %v2953_v36 = vadd.f32 %v2952_v19, %v2951_v3 }
0x1ce3   : > { %v2941_v27 = vmul.f32 0.0, %v2837_v43 }
0x1ce5   : > { %v2954_v4 = vsel %vm1276_vm6, %v2941_v27, 0.0 }
0x1ce6   : > { %v2844_v16 = vpop.permute.xlu0 %2843  ;;  %v2955_v56 = vadd.f32 %v2954_v4, %v2953_v36 }
0x1ce7   : > { %v2942_v31 = vmul.f32 0.0, %v2844_v16 }
0x1ce9   : > { %v2956_v22 = vsel %vm1276_vm6, %v2942_v31, 0.0 }
0x1cea   : > { %v2957_v57 = vadd.f32 %v2956_v22, %v2955_v56 }
0x1d12   : > { %v2863_v50 = vpop.trf.xlu0 }
0x1d13   : > { %v2889_v40 = vrot.slane %v2863_v50, %v6032_v2  ;;  %v2882_v54 = vrot.slane %v2863_v50, %v6042_v10  ;;  %v2896_v43 = vrot.slane %v2863_v50, %v6133_v63  ;;  %v2903_v49 = vrot.slane %v2863_v50, %v6137_v6 }
0x1d14   : > { %v2910_v62 = vrot.slane %v2863_v50, %v6141_v8  ;;  %v2917_v7 = vrot.slane %v2863_v50, %v6145_v14  ;;  %v2924_v9 = vrot.slane %v2863_v50, %v6149_v21  ;;  %v2931_v46 = vrot.slane %v2863_v50, %v6127_v53 }
0x1d15   : > { %2891 = vbcast.lane.b32.xlu0 %v2889_v40, 256  ;;  %2884 = vbcast.lane.b32.xlu1 %v2882_v54, 256 }
0x1d19   : > { %2982 = vrot.lane.b32.xlu0 %v2957_v57, %s5812_s22  ;;  %2898 = vbcast.lane.b32.xlu1 %v2896_v43, 256 }
0x1d1d   : > { %2905 = vbcast.lane.b32.xlu1 %v2903_v49, 256 }
0x1d21   : > { %2912 = vbcast.lane.b32.xlu1 %v2910_v62, 256 }
0x1d25   : > { %2919 = vbcast.lane.b32.xlu1 %v2917_v7, 256 }
0x1d29   : > { %2926 = vbcast.lane.b32.xlu1 %v2924_v9, 256 }
0x1d2d   : > { %2933 = vbcast.lane.b32.xlu1 %v2931_v46, 256 }
0x1d31   : > { %3232 = vrot.lane.b32.xlu1 %v6562_v32, %s5811_s29 }
0x1d87   : > { %v2885_v25 = vpop.permute.xlu1 %2884  ;;  %v2892_v16 = vpop.permute.xlu0 %2891 }
0x1d88   : > { %v2959_v27 = vmul.f32 %v2892_v16, %v6279_v17  ;;  %v2958_v60 = vmul.f32 %v2885_v25, %v6088_v13 }
0x1d8a   : > { %v2967_v3 = vsel %vm1276_vm6, %v2959_v27, 0.0  ;;  %v2966_v4 = vsel %vm1276_vm6, %v2958_v60, 0.0 }
0x1d8b   : > { %v2899_v15 = vpop.permute.xlu1 %2898  ;;  %v2968_v40 = vadd.f32 %v2967_v3, %v2966_v4 }
0x1d8c   : > { %v2960_v19 = vmul.f32 %v2899_v15, %v6391_v28 }
0x1d8e   : > { %v2969_v50 = vsel %vm1276_vm6, %v2960_v19, 0.0 }
0x1d8f   : > { %v2906_v51 = vpop.permute.xlu1 %2905  ;;  %v2970_v57 = vadd.f32 %v2969_v50, %v2968_v40  ;;  %v6597_v50 = vcombine.high %v6476_v1, %v6476_v1  ;;  %v3128_v40 = vadd.f32 %v6490_v33, %v6055_v18 }
0x1d90   : > { %v2961_v58 = vmul.f32 %v2906_v51, %v6513_v55 }
0x1d92   : > { %v2971_v22 = vsel %vm1276_vm6, %v2961_v58, 0.0 }
0x1d93   : > { %v2913_v31 = vpop.permute.xlu1 %2912  ;;  %v2972_v49 = vadd.f32 %v2971_v22, %v2970_v57 }
0x1d94   : > { %v2962_v36 = vmul.f32 0.0, %v2913_v31  ;;  %v2983_v31 = vpop.permute.xlu0 %2982 }
0x1d96   : > { %v2973_v43 = vsel %vm1276_vm6, %v2962_v36, 0.0 }
0x1d97   : > { %v2920_v54 = vpop.permute.xlu1 %2919  ;;  %v2974_v46 = vadd.f32 %v2973_v43, %v2972_v49 }
0x1d98   : > { %v2963_v56 = vmul.f32 0.0, %v2920_v54 }
0x1d9a   : > { %v2975_v7 = vsel %vm1276_vm6, %v2963_v56, 0.0 }
0x1d9b   : > { %v2927_v62 = vpop.permute.xlu1 %2926  ;;  %v2976_v15 = vadd.f32 %v2975_v7, %v2974_v46 }
0x1d9c   : > { %v2964_v9 = vmul.f32 0.0, %v2927_v62 }
0x1d9e   : > { %v2977_v25 = vsel %vm1276_vm6, %v2964_v9, 0.0 }
0x1d9f   : > { %v2934_v16 = vpop.permute.xlu1 %2933  ;;  %v2978_v27 = vadd.f32 %v2977_v25, %v2976_v15 }
0x1da0   : > { %v2965_v51 = vmul.f32 0.0, %v2934_v16 }
0x1da2   : > { %v2979_v60 = vsel %vm1276_vm6, %v2965_v51, 0.0 }
0x1da3   : > { %v2980_v19 = vadd.f32 %v2979_v60, %v2978_v27  ;;  %v3233_v46 = vpop.permute.xlu1 %3232 }
0x1da5   : > { %v2985_v3 = vsel %vm808_vm1, %v2983_v31, %v2980_v19  ;;  %v3286_v19 = vmul.f32 %v6500_v23, %v6597_v50 }
0x1da6   : > { %5372 = vmatmul.mubr.msk.f32.vlgmr.msra.gmra.mrb[8].mxu0 %vm1320_vm8, %v2985_v3 }
0x1da7   : > { %5573 = vmatpush3.bf16.msra.mxu0 %v6166_v42  ;;  %5390 = vmatprep.mubr.msk.f32.mxu0 %vm5816_vm7, %v5810_v48  ;;  %v3287_v31 = vsel %vm1040_vm2, %v3286_v19, 0.0 }
0x1da8   : > { %5574 = vmatprep.subr.bf16.mxu0 %v5815_v45 }
0x1dab   : > { %5576 = vmatpush3.bf16.msra.mxu0 %v6175_v52 }
0x1dac   : > { %5577 = vmatprep.subr.bf16.mxu0 %v5815_v45 }
0x1daf   : > { %5579 = vmatpush3.bf16.msra.mxu0 %v6185_v20 }
0x1db0   : > { %5580 = vmatprep.subr.bf16.mxu0 %v5815_v45 }
0x1db3   : > { %5582 = vmatpush3.bf16.msra.mxu0 %v6196_v39 }
0x1db4   : > { %5599 = vmatprep.subr.bf16.mxu0 %v5815_v45 }
0x1e79   : > { %v3055_v4 = vpop.f32.mrb[8].mxu0 }
0x1e7a   : > { %v5373_v58 = vpop.f32.mrb[9].mxu0  ;;  %5181 = vmatmul.mubr.msk.f32.vlgmr.msra.gmra.mrb[18].mxu1 %vm808_vm1, %v3055_v4 }
0x1e7b   : > { %5586 = vmatpush1.bf16.msra.mxu1 %v5969_v38  ;;  %3682 = vmatprep.mubr.f32.mxu1 %v5810_v48 }
0x1e7c   : > { %5588 = vmatprep.subr.bf16.mxu1 %v5972_v41 }
0x1e7f   : > { %5590 = vmatpush1.bf16.msra.mxu1 %v5974_v44 }
0x1e80   : > { %5592 = vmatprep.subr.bf16.mxu1 %v5982_v47 }
0x1e82   : > { %5187 = vmatmul.mubr.msk.f32.vlgmr.msra.gmra.mrb[20].mxu1 %vm808_vm1, %v6597_v50 }
0x1e83   : > { %5594 = vmatpush1.bf16.msra.mxu1 %v5993_v59  ;;  %3756 = vmatprep.mubr.f32.mxu1 %v5810_v48 }
0x1e84   : > { %5596 = vmatprep.subr.bf16.mxu1 %v5999_v61 }
0x1e87   : > { %5598 = vmatpush1.bf16.msra.mxu1 %v6004_v0 }
0x1e88   : > { %5612 = vmatprep.subr.bf16.mxu1 %v5966_v34 }
0x1f4d   : > { %v3201_v36 = vpop.f32.mrb[18].mxu1 }
0x1f4e   : > { %v3202_v54 = vadd.f32 %v3201_v36, %v6046_v11  ;;  %v3203_v22 = vpop.f32.mrb[19].mxu1 }
0x1f4f   : > { %v3204_v16 = vadd.f32 %v3203_v22, %v6061_v30 }
0x1f50   : > { %v3206_v56 = vadd.f32 %v3202_v54, %v3128_v40  ;;  %3221 = vrot.lane.b32.xlu0 %v3202_v54, %s5811_s29 }
0x1f51   : > { %v3207_v36 = vadd.f32 %v3204_v16, %v6562_v32 }
0x1f52   : > { %v5182_v57 = vmul.f32 -1.442695, %v3206_v56 }
0x1f53   : > { %v5183_v54 = vmul.f32 -1.442695, %v3207_v36 }
0x1f54   : > { %5737 = vpow2.f32 %v5182_v57 }
0x1f55   : > { %v6611_v43 = vpop.f32.mrb[20].mxu1 }
0x1f56   : > { %v6613_v49 = vpop.f32.mrb[21].mxu1 }
0x1f5e   : > { %v5738_v62 = vpop.eup %5737 }
0x1f5f   : > { %v3214_v7 = vadd.f32 1.0, %v5738_v62 }
0x1f61   : > { %5739 = vrcp.f32 %v3214_v7 }
0x1f6b   : > { %v5740_v9 = vpop.eup %5739 }
0x1f6c   : > { %v3235_v25 = vmul.f32 %v5740_v9, %v3233_v46 }
0x1f6e   : > { %3237 = vrot.lane.b32.xlu1 %v3235_v25, %s5811_s29 }
0x1fc2   : > { %v3222_v33 = vpop.permute.xlu0 %3221 }
0x1fc3   : > { %v3224_v15 = vmul.f32 %v5740_v9, %v3222_v33 }
0x1fc5   : > { %3226 = vrot.lane.b32.xlu0 %v3224_v15, %s5811_s29 }
0x1fe0   : > { %v3238_v51 = vpop.permute.xlu1 %3237 }
0x1fe1   : > { %v3240_v27 = vadd.f32 %v3238_v51, %v3204_v16  ;;  %v3242_v51 = vsub.f32 1.0, %v5740_v9 }
0x1fe3   : > { %5741 = vtanh.f32 %v3240_v27 }
0x1fed   : > { %v5742_v60 = vpop.eup %5741 }
0x1fee   : > { %3255 = vrot.lane.b32.xlu1 %v5742_v60, %s5812_s22 }
0x1ff2   : > { %3248 = vrot.lane.b32.xlu1 %v3055_v4, %s5813_s16 }
0x2016   : > { %3288 = vadd.xlane.f32.xlu1 %v3287_v31 }
0x2037   : > { %v3227_v3 = vpop.permute.xlu0 %3226 }
0x2038   : > { %v3229_v58 = vadd.f32 %v3227_v3, %v3128_v40 }
0x203a   : > { %5743 = vtanh.f32 %v3229_v58 }
0x203b   : > { %5745 = vpow2.f32 %v5183_v54  ;;  %v5184_v54 = vld [vmem:[%s6110_s14 + $0xa] sm:$0x3] }
0x2044   : > { %v5744_v22 = vpop.eup %5743 }
0x2045   : > { %3244 = vrot.lane.b32.xlu0 %v5744_v22, %s5812_s22  ;;  %v5746_v56 = vpop.eup %5745  ;;  %v3297_v22 = vsub.f32 1.0, %v5184_v54 }
0x2046   : > { %v3215_v57 = vadd.f32 1.0, %v5746_v56 }
0x2048   : > { %5747 = vrcp.f32 %v3215_v57  ;;  %v3298_v57 = vmul.f32 1e+30, %v3297_v22 }
0x2052   : > { %v5748_v4 = vpop.eup %5747 }
0x2053   : > { %v3253_v62 = vsub.f32 1.0, %v5748_v4  ;;  %v3259_v46 = vmul.f32 %v5748_v4, %v6476_v1 }
0x2060   : > { %v3256_v7 = vpop.permute.xlu1 %3255 }
0x2061   : > { %v3258_v25 = vmul.f32 %v3256_v7, %v3253_v62 }
0x2063   : > { %v3260_v33 = vadd.f32 %v3259_v46, %v3258_v25 }
0x2064   : > { %v3249_v40 = vpop.permute.xlu1 %3248 }
0x2065   : > { %3262 = vrot.lane.b32.xlu0 %v3260_v33, %s5813_s16  ;;  %v3251_v60 = vmul.f32 %v5740_v9, %v3249_v40 }
0x20a3   : > { %v3289_v32 = vpop.xlane.xlu1 %3288 }
0x20a4   : > { %v3290_v15 = vadd.f32 %v6510_v35, %v3289_v32 }
0x20a6   : > { %3293 = vperm.xlu1 %5672, %v3290_v15  }
0x20b7   : > { %v3245_v16 = vpop.permute.xlu0 %3244 }
0x20b8   : > { %v3247_v27 = vmul.f32 %v3245_v16, %v3242_v51 }
0x20ba   : > { %v3252_v19 = vadd.f32 %v3251_v60, %v3247_v27  ;;  %v5185_v60 = vld [vmem:[%s6982_s4 + $0xa] sm:$0x3] }
0x20d7   : > { %v3263_v31 = vpop.permute.xlu0 %3262 }
0x20d8   : > { %v6628_v3 = vadd.f32 %v3263_v31, %v3252_v19 }
0x20da   : > { %v3273_v1 = vmul.f32 %v6628_v3, %v6086_v12 }
0x20dc   : > { %3275 = vrot.lane.b32.xlu0 %v3273_v1, %s5812_s22 }
0x2125   : > { %v3294_v9 = vpop.permute.xlu1 %3293 }
0x214e   : > { %v3276_v58 = vpop.permute.xlu0 %3275 }
0x214f   : > { %v3278_v36 = vsel %vm1040_vm2, %v3276_v58, 0.0 }
0x2150   : > { %3279 = vadd.xlane.f32.xlu0 %v3278_v36 }
0x21dd   : > { %v3280_v56 = vpop.xlane.xlu0 %3279 }
0x21de   : > { %v6637_v4 = vsel %vm3272_vm15, %v3280_v56, %v6522_v37 }
0x21df   : > { %v3296_v62 = vadd.f32 %v3294_v9, %v6637_v4 }
0x21e1   : > { %v3299_v7 = vsub.f32 %v3296_v62, %v3298_v57  ;;  %v3402_v62 = vsub.f32 1.0, %v5185_v60 }
0x21e3   : > { %v3301_v46 = vsel %vm3300_vm0, %v3299_v7, -inf }
0x21e4   : > { %v3302_v25 = vsel %vm1077_vm5, %v3301_v46, -inf }
0x21e5   : > { %3303 = vmax.xlane.f32.xlu0 %v3302_v25 }
0x2272   : > { %v3304_v33 = vpop.xlane.xlu0 %3303 }
0x2273   : > { %v3305_v40 = vsub.f32 %v3301_v46, %v3304_v33 }
0x2275   : > { %v3306_v32 = vmul.f32 1.442695, %v3305_v40 }
0x2277   : > { %5749 = vpow2.f32 %v3306_v32 }
0x2281   : > { %v5750_v15 = vpop.eup %5749 }
0x2282   : > { %v3308_v16 = vsel %vm1077_vm5, %v5750_v15, 0.0 }
0x2283   : > { %3309 = vadd.xlane.f32.xlu0 %v3308_v16 }
0x2310   : > { %v3310_v51 = vpop.xlane.xlu0 %3309 }
0x2311   : > { %5751 = vrcp.f32 %v3310_v51 }
0x231b   : > { %v5752_v37 = vpop.eup %5751 }
0x231c   : > { %v3312_v27 = vmul.f32 %v5752_v37, %v5750_v15 }
0x231e   : > { %v3313_v19 = vmul.f32 %v5185_v60, %v3312_v27  ;;  %v3403_v7 = vmul.f32 %v3402_v62, %v3312_v27 }
0x2320   : > { %3314 = vxpose.xlu0.b32.start.end [1/1] (short) (narrow) %v3313_v19, 8 }
0x23a0   : > { %v3330_v31 = vpop.trf.xlu0 }
0x23a1   : > { %v3349_v1 = vrot.slane %v3330_v31, %v6042_v10  ;;  %v3356_v58 = vrot.slane %v3330_v31, %v6032_v2  ;;  %v3363_v36 = vrot.slane %v3330_v31, %v6133_v63  ;;  %v3370_v54 = vrot.slane %v3330_v31, %v6137_v6 }
0x23a2   : > { %v3377_v22 = vrot.slane %v3330_v31, %v6141_v8  ;;  %v3384_v56 = vrot.slane %v3330_v31, %v6145_v14  ;;  %v3391_v57 = vrot.slane %v3330_v31, %v6149_v21  ;;  %v3398_v9 = vrot.slane %v3330_v31, %v6127_v53 }
0x23a3   : > { %3351 = vbcast.lane.b32.xlu1 %v3349_v1, 256 }
0x23a7   : > { %3358 = vbcast.lane.b32.xlu1 %v3356_v58, 256 }
0x23ab   : > { %3365 = vbcast.lane.b32.xlu1 %v3363_v36, 256 }
0x23af   : > { %3372 = vbcast.lane.b32.xlu1 %v3370_v54, 256 }
0x23b3   : > { %3379 = vbcast.lane.b32.xlu1 %v3377_v22, 256 }
0x23b7   : > { %3386 = vbcast.lane.b32.xlu1 %v3384_v56, 256 }
0x23bb   : > { %3393 = vbcast.lane.b32.xlu1 %v3391_v57, 256 }
0x23bf   : > { %3400 = vbcast.lane.b32.xlu1 %v3398_v9, 256 }
0x23e8   : > { %3404 = vxpose.xlu1.b32.start.end [1/1] (short) (narrow) %v3403_v7, 8 }
0x2415   : > { %v3352_v46 = vpop.permute.xlu1 %3351 }
0x2416   : > { %v3492_v51 = vmul.f32 %v3352_v46, %v6088_v13 }
0x2418   : > { %v3500_v27 = vsel %vm1276_vm6, %v3492_v51, 0.0 }
0x2419   : > { %v3359_v25 = vpop.permute.xlu1 %3358 }
0x241a   : > { %v3493_v16 = vmul.f32 %v3359_v25, %v6279_v17 }
0x241c   : > { %v3501_v1 = vsel %vm1276_vm6, %v3493_v16, 0.0 }
0x241d   : > { %v3366_v33 = vpop.permute.xlu1 %3365  ;;  %v3502_v36 = vadd.f32 %v3501_v1, %v3500_v27 }
0x241e   : > { %v3494_v37 = vmul.f32 %v3366_v33, %v6391_v28 }
0x2420   : > { %v3503_v60 = vsel %vm1276_vm6, %v3494_v37, 0.0 }
0x2421   : > { %v3373_v40 = vpop.permute.xlu1 %3372  ;;  %v3504_v56 = vadd.f32 %v3503_v60, %v3502_v36 }
0x2422   : > { %v3495_v31 = vmul.f32 %v3373_v40, %v6513_v55 }
0x2424   : > { %v3505_v54 = vsel %vm1276_vm6, %v3495_v31, 0.0 }
0x2425   : > { %v3380_v32 = vpop.permute.xlu1 %3379  ;;  %v3506_v7 = vadd.f32 %v3505_v54, %v3504_v56 }
0x2426   : > { %v3496_v58 = vmul.f32 %v3380_v32, %v6628_v3 }
0x2428   : > { %v3507_v9 = vsel %vm1276_vm6, %v3496_v58, 0.0 }
0x2429   : > { %v3387_v15 = vpop.permute.xlu1 %3386  ;;  %v3508_v33 = vadd.f32 %v3507_v9, %v3506_v7 }
0x242a   : > { %v3497_v22 = vmul.f32 0.0, %v3387_v15 }
0x242c   : > { %v3509_v46 = vsel %vm1276_vm6, %v3497_v22, 0.0  ;;  %v6678_v22 = vadd.f32 %v6613_v49, %v6035_v5 }
0x242d   : > { %v3394_v19 = vpop.permute.xlu1 %3393  ;;  %v3510_v51 = vadd.f32 %v3509_v46, %v3508_v33 }
0x242e   : > { %v3498_v62 = vmul.f32 0.0, %v3394_v19 }
0x2430   : > { %v3511_v40 = vsel %vm1276_vm6, %v3498_v62, 0.0 }
0x2431   : > { %v3401_v57 = vpop.permute.xlu1 %3400  ;;  %v3512_v1 = vadd.f32 %v3511_v40, %v3510_v51 }
0x2432   : > { %v3499_v25 = vmul.f32 0.0, %v3401_v57 }
0x2434   : > { %v3513_v15 = vsel %vm1276_vm6, %v3499_v25, 0.0 }
0x2435   : > { %v3514_v31 = vadd.f32 %v3513_v15, %v3512_v1 }
0x2468   : > { %v3420_v16 = vpop.trf.xlu1 }
0x2469   : > { %v3446_v32 = vrot.slane %v3420_v16, %v6032_v2  ;;  %v3439_v37 = vrot.slane %v3420_v16, %v6042_v10  ;;  %v3453_v19 = vrot.slane %v3420_v16, %v6133_v63  ;;  %v3460_v27 = vrot.slane %v3420_v16, %v6137_v6 }
0x246a   : > { %v3467_v60 = vrot.slane %v3420_v16, %v6141_v8  ;;  %v3474_v58 = vrot.slane %v3420_v16, %v6145_v14  ;;  %v3481_v36 = vrot.slane %v3420_v16, %v6149_v21  ;;  %v3488_v54 = vrot.slane %v3420_v16, %v6127_v53 }
0x246b   : > { %3448 = vbcast.lane.b32.xlu1 %v3446_v32, 256  ;;  %3441 = vbcast.lane.b32.xlu0 %v3439_v37, 256 }
0x246f   : > { %3539 = vrot.lane.b32.xlu1 %v3514_v31, %s5812_s22  ;;  %3455 = vbcast.lane.b32.xlu0 %v3453_v19, 256 }
0x2473   : > { %3462 = vbcast.lane.b32.xlu0 %v3460_v27, 256 }
0x2477   : > { %3469 = vbcast.lane.b32.xlu0 %v3467_v60, 256 }
0x247b   : > { %3476 = vbcast.lane.b32.xlu0 %v3474_v58, 256 }
0x247f   : > { %3483 = vbcast.lane.b32.xlu0 %v3481_v36, 256 }
0x2483   : > { %3490 = vbcast.lane.b32.xlu0 %v3488_v54, 256 }
0x2487   : > { %3789 = vrot.lane.b32.xlu0 %v6678_v22, %s5811_s29 }
0x24dd   : > { %v3442_v56 = vpop.permute.xlu0 %3441  ;;  %v3449_v9 = vpop.permute.xlu1 %3448 }
0x24de   : > { %v3516_v7 = vmul.f32 %v3449_v9, %v6279_v17  ;;  %v3515_v46 = vmul.f32 %v3442_v56, %v6088_v13 }
0x24e0   : > { %v3524_v40 = vsel %vm1276_vm6, %v3516_v7, 0.0  ;;  %v3523_v16 = vsel %vm1276_vm6, %v3515_v46, 0.0 }
0x24e1   : > { %v3456_v57 = vpop.permute.xlu0 %3455  ;;  %v3525_v37 = vadd.f32 %v3524_v40, %v3523_v16  ;;  %v3540_v40 = vpop.permute.xlu1 %3539 }
0x24e2   : > { %v3517_v25 = vmul.f32 %v3456_v57, %v6391_v28 }
0x24e4   : > { %v3526_v51 = vsel %vm1276_vm6, %v3517_v25, 0.0 }
0x24e5   : > { %v3463_v62 = vpop.permute.xlu0 %3462  ;;  %v3527_v19 = vadd.f32 %v3526_v51, %v3525_v37 }
0x24e6   : > { %v3518_v49 = vmul.f32 %v3463_v62, %v6513_v55 }
0x24e8   : > { %v3528_v1 = vsel %vm1276_vm6, %v3518_v49, 0.0 }
0x24e9   : > { %v3470_v33 = vpop.permute.xlu0 %3469  ;;  %v3529_v60 = vadd.f32 %v3528_v1, %v3527_v19 }
0x24ea   : > { %v3519_v32 = vmul.f32 %v3470_v33, %v6628_v3 }
0x24ec   : > { %v3530_v27 = vsel %vm1276_vm6, %v3519_v32, 0.0  ;;  %v770_v32 = vcombine.high %v6470_v29, %v6470_v29 }
0x24ed   : > { %v3477_v15 = vpop.permute.xlu0 %3476  ;;  %v3531_v56 = vadd.f32 %v3530_v27, %v3529_v60 }
0x24ee   : > { %v3520_v31 = vmul.f32 0.0, %v3477_v15  ;;  %v6715_v37 = vrot.slane %v770_v32, %v5947_v24  ;;  %v3685_v24 = vadd.f32 %v6611_v43, %v6055_v18 }
0x24f0   : > { %v3532_v36 = vsel %vm1276_vm6, %v3520_v31, 0.0 }
0x24f1   : > { %v3484_v58 = vpop.permute.xlu0 %3483  ;;  %v3533_v9 = vadd.f32 %v3532_v36, %v3531_v56 }
0x24f2   : > { %v3521_v54 = vmul.f32 0.0, %v3484_v58 }
0x24f4   : > { %v3534_v57 = vsel %vm1276_vm6, %v3521_v54, 0.0 }
0x24f5   : > { %v3491_v62 = vpop.permute.xlu0 %3490  ;;  %v3535_v46 = vadd.f32 %v3534_v57, %v3533_v9 }
0x24f6   : > { %v3522_v7 = vmul.f32 0.0, %v3491_v62 }
0x24f8   : > { %v3536_v25 = vsel %vm1276_vm6, %v3522_v7, 0.0 }
0x24f9   : > { %v3537_v33 = vadd.f32 %v3536_v25, %v3535_v46  ;;  %v3790_v54 = vpop.permute.xlu0 %3789  ;;  %v3844_v25 = vmul.f32 %v6500_v23, %v6715_v37 }
0x24fb   : > { %v3542_v16 = vsel %vm808_vm1, %v3540_v40, %v3537_v33  ;;  %v3845_v33 = vsel %vm1040_vm2, %v3844_v25, 0.0 }
0x24fc   : > { %5391 = vmatmul.mubr.msk.f32.vlgmr.msra.gmra.mrb[10].mxu0 %vm1320_vm8, %v3542_v16 }
0x24fd   : > { %5601 = vmatpush3.bf16.msra.mxu0 %v6166_v42  ;;  %5409 = vmatprep.mubr.msk.f32.mxu0 %vm5816_vm7, %v5810_v48 }
0x24fe   : > { %5602 = vmatprep.subr.bf16.mxu0 %v5815_v45 }
0x2501   : > { %5604 = vmatpush3.bf16.msra.mxu0 %v6175_v52 }
0x2502   : > { %5605 = vmatprep.subr.bf16.mxu0 %v5815_v45 }
0x2505   : > { %5607 = vmatpush3.bf16.msra.mxu0 %v6185_v20 }
0x2506   : > { %5608 = vmatprep.subr.bf16.mxu0 %v5815_v45 }
0x2509   : > { %5610 = vmatpush3.bf16.msra.mxu0 %v6196_v39 }
0x250a   : > { %5627 = vmatprep.subr.bf16.mxu0 %v5815_v45 }
0x25cf   : > { %v3612_v49 = vpop.f32.mrb[10].mxu0 }
0x25d0   : > { %v5392_v51 = vpop.f32.mrb[11].mxu0  ;;  %5188 = vmatmul.mubr.msk.f32.vlgmr.msra.gmra.mrb[22].mxu1 %vm808_vm1, %v3612_v49 }
0x25d1   : > { %5614 = vmatpush1.bf16.msra.mxu1 %v5969_v38  ;;  %4240 = vmatprep.mubr.f32.mxu1 %v5810_v48 }
0x25d2   : > { %5616 = vmatprep.subr.bf16.mxu1 %v5972_v41 }
0x25d5   : > { %5618 = vmatpush1.bf16.msra.mxu1 %v5974_v44 }
0x25d6   : > { %5620 = vmatprep.subr.bf16.mxu1 %v5982_v47 }
0x25d8   : > { %5194 = vmatmul.mubr.msk.f32.vlgmr.msra.gmra.mrb[24].mxu1 %vm808_vm1, %v6715_v37 }
0x25d9   : > { %5622 = vmatpush1.bf16.msra.mxu1 %v5993_v59  ;;  %4314 = vmatprep.mubr.f32.mxu1 %v5810_v48 }
0x25da   : > { %5624 = vmatprep.subr.bf16.mxu1 %v5999_v61 }
0x25dd   : > { %5626 = vmatpush1.bf16.msra.mxu1 %v6004_v0 }
0x25de   : > { %5640 = vmatprep.subr.bf16.mxu1 %v5966_v34 }
0x26a3   : > { %v3758_v29 = vpop.f32.mrb[22].mxu1 }
0x26a4   : > { %v3759_v15 = vadd.f32 %v3758_v29, %v6046_v11  ;;  %v3760_v1 = vpop.f32.mrb[23].mxu1 }
0x26a5   : > { %v3761_v9 = vadd.f32 %v3760_v1, %v6061_v30 }
0x26a6   : > { %v3763_v31 = vadd.f32 %v3759_v15, %v3685_v24  ;;  %3778 = vrot.lane.b32.xlu1 %v3759_v15, %s5811_s29 }
0x26a7   : > { %v3764_v51 = vadd.f32 %v3761_v9, %v6678_v22 }
0x26a8   : > { %v5189_v19 = vmul.f32 -1.442695, %v3763_v31 }
0x26a9   : > { %v5190_v32 = vmul.f32 -1.442695, %v3764_v51 }
0x26aa   : > { %5753 = vpow2.f32 %v5189_v19 }
0x26ab   : > { %v6729_v27 = vpop.f32.mrb[24].mxu1 }
0x26ac   : > { %v6731_v60 = vpop.f32.mrb[25].mxu1 }
0x26b4   : > { %v5754_v58 = vpop.eup %5753 }
0x26b5   : > { %v3771_v36 = vadd.f32 1.0, %v5754_v58 }
0x26b7   : > { %5755 = vrcp.f32 %v3771_v36 }
0x26c1   : > { %v5756_v34 = vpop.eup %5755 }
0x26c2   : > { %v3792_v56 = vmul.f32 %v5756_v34, %v3790_v54 }
0x26c4   : > { %3794 = vrot.lane.b32.xlu0 %v3792_v56, %s5811_s29 }
0x2718   : > { %v3779_v43 = vpop.permute.xlu1 %3778 }
0x2719   : > { %v3781_v57 = vmul.f32 %v5756_v34, %v3779_v43  ;;  %v3799_v43 = vsub.f32 1.0, %v5756_v34 }
0x271b   : > { %3783 = vrot.lane.b32.xlu1 %v3781_v57, %s5811_s29 }
0x2736   : > { %v3795_v62 = vpop.permute.xlu0 %3794 }
0x2737   : > { %v3797_v7 = vadd.f32 %v3795_v62, %v3761_v9 }
0x2739   : > { %5757 = vtanh.f32 %v3797_v7 }
0x2743   : > { %v5758_v46 = vpop.eup %5757 }
0x2744   : > { %3812 = vrot.lane.b32.xlu0 %v5758_v46, %s5812_s22 }
0x2748   : > { %3805 = vrot.lane.b32.xlu0 %v3612_v49, %s5813_s16 }
0x2767   : > { %3846 = vadd.xlane.f32.xlu0 %v3845_v33 }
0x278d   : > { %v3784_v40 = vpop.permute.xlu1 %3783 }
0x278e   : > { %v3786_v16 = vadd.f32 %v3784_v40, %v3685_v24  ;;  %v5191_v40 = vld [vmem:[%s6110_s14 + $0xc] sm:$0x3] }
0x2790   : > { %5759 = vtanh.f32 %v3786_v16 }
0x2791   : > { %5761 = vpow2.f32 %v5190_v32 }
0x279a   : > { %v5760_v29 = vpop.eup %5759 }
0x279b   : > { %3801 = vrot.lane.b32.xlu1 %v5760_v29, %s5812_s22  ;;  %v5762_v15 = vpop.eup %5761 }
0x279c   : > { %v3772_v1 = vadd.f32 1.0, %v5762_v15 }
0x279e   : > { %5763 = vrcp.f32 %v3772_v1 }
0x27a8   : > { %v5764_v49 = vpop.eup %5763 }
0x27a9   : > { %v3810_v31 = vsub.f32 1.0, %v5764_v49  ;;  %v3816_v23 = vmul.f32 %v5764_v49, %v6597_v50 }
0x27b6   : > { %v3813_v19 = vpop.permute.xlu0 %3812 }
0x27b7   : > { %v3815_v58 = vmul.f32 %v3813_v19, %v3810_v31 }
0x27b9   : > { %v3817_v36 = vadd.f32 %v3816_v23, %v3815_v58 }
0x27ba   : > { %v3806_v24 = vpop.permute.xlu0 %3805 }
0x27bb   : > { %3819 = vrot.lane.b32.xlu1 %v3817_v36, %s5813_s16  ;;  %v3808_v9 = vmul.f32 %v5756_v34, %v3806_v24 }
0x27f4   : > { %v3847_v22 = vpop.xlane.xlu0 %3846 }
0x27f5   : > { %v3848_v54 = vadd.f32 %v6510_v35, %v3847_v22  ;;  %v3855_v35 = vsub.f32 1.0, %v5191_v40 }
0x27f7   : > { %3851 = vperm.xlu0 %5671, %v3848_v54   ;;  %v3856_v51 = vmul.f32 1e+30, %v3855_v35  ;;  %v5192_v54 = vld [vmem:[%s6982_s4 + $0xc] sm:$0x3] }
0x27f8   : > { %v3960_v35 = vsub.f32 1.0, %v5192_v54 }
0x280d   : > { %v3802_v56 = vpop.permute.xlu1 %3801 }
0x280e   : > { %v3804_v57 = vmul.f32 %v3802_v56, %v3799_v43 }
0x2810   : > { %v3809_v62 = vadd.f32 %v3808_v9, %v3804_v57 }
0x282d   : > { %v3820_v7 = vpop.permute.xlu1 %3819 }
0x282e   : > { %v6746_v46 = vadd.f32 %v3820_v7, %v3809_v62 }
0x2830   : > { %v3831_v50 = vmul.f32 %v6746_v46, %v6086_v12 }
0x2832   : > { %3833 = vrot.lane.b32.xlu1 %v3831_v50, %s5812_s22 }
0x2876   : > { %v3852_v34 = vpop.permute.xlu0 %3851 }
0x28a4   : > { %v3834_v25 = vpop.permute.xlu1 %3833 }
0x28a5   : > { %v3836_v33 = vsel %vm1040_vm2, %v3834_v25, 0.0 }
0x28a6   : > { %3837 = vadd.xlane.f32.xlu1 %v3836_v33 }
0x2933   : > { %v3838_v16 = vpop.xlane.xlu1 %3837 }
0x2934   : > { %v6755_v32 = vsel %vm3830_vm3, %v3838_v16, %v6637_v4 }
0x2935   : > { %v3854_v29 = vadd.f32 %v3852_v34, %v6755_v32 }
0x2937   : > { %v3857_v15 = vsub.f32 %v3854_v29, %v3856_v51 }
0x2939   : > { %v3859_v1 = vsel %vm3858_vm4, %v3857_v15, -inf }
0x293a   : > { %v3860_v49 = vsel %vm1077_vm5, %v3859_v1, -inf }
0x293b   : > { %3861 = vmax.xlane.f32.xlu1 %v3860_v49 }
0x29c8   : > { %v3862_v31 = vpop.xlane.xlu1 %3861 }
0x29c9   : > { %v3863_v19 = vsub.f32 %v3859_v1, %v3862_v31 }
0x29cb   : > { %v3864_v23 = vmul.f32 1.442695, %v3863_v19 }
0x29cd   : > { %5765 = vpow2.f32 %v3864_v23 }
0x29d7   : > { %v5766_v58 = vpop.eup %5765 }
0x29d8   : > { %v3866_v36 = vsel %vm1077_vm5, %v5766_v58, 0.0 }
0x29d9   : > { %3867 = vadd.xlane.f32.xlu1 %v3866_v36 }
0x2a66   : > { %v3868_v24 = vpop.xlane.xlu1 %3867 }
0x2a67   : > { %5767 = vrcp.f32 %v3868_v24 }
0x2a71   : > { %v5768_v4 = vpop.eup %5767 }
0x2a72   : > { %v3870_v22 = vmul.f32 %v5768_v4, %v5766_v58 }
0x2a74   : > { %v3871_v56 = vmul.f32 %v5192_v54, %v3870_v22  ;;  %v3961_v16 = vmul.f32 %v3960_v35, %v3870_v22 }
0x2a76   : > { %3872 = vxpose.xlu1.b32.start.end [1/1] (short) (narrow) %v3871_v56, 8 }
0x2af6   : > { %v3888_v43 = vpop.trf.xlu1 }
0x2af7   : > { %v3907_v57 = vrot.slane %v3888_v43, %v6042_v10  ;;  %v3914_v9 = vrot.slane %v3888_v43, %v6032_v2  ;;  %v3921_v62 = vrot.slane %v3888_v43, %v6133_v63  ;;  %v3928_v7 = vrot.slane %v3888_v43, %v6137_v6 }
0x2af8   : > { %v3935_v50 = vrot.slane %v3888_v43, %v6141_v8  ;;  %v3942_v25 = vrot.slane %v3888_v43, %v6145_v14  ;;  %v3949_v33 = vrot.slane %v3888_v43, %v6149_v21  ;;  %v3956_v40 = vrot.slane %v3888_v43, %v6127_v53 }
0x2af9   : > { %3909 = vbcast.lane.b32.xlu0 %v3907_v57, 256 }
0x2afd   : > { %3916 = vbcast.lane.b32.xlu0 %v3914_v9, 256 }
0x2b01   : > { %3923 = vbcast.lane.b32.xlu0 %v3921_v62, 256 }
0x2b05   : > { %3930 = vbcast.lane.b32.xlu0 %v3928_v7, 256 }
0x2b09   : > { %3937 = vbcast.lane.b32.xlu0 %v3935_v50, 256 }
0x2b0d   : > { %3944 = vbcast.lane.b32.xlu0 %v3942_v25, 256 }
0x2b11   : > { %3951 = vbcast.lane.b32.xlu0 %v3949_v33, 256 }
0x2b15   : > { %3958 = vbcast.lane.b32.xlu0 %v3956_v40, 256 }
0x2b33   : > { %3962 = vxpose.xlu0.b32.start.end [1/1] (short) (narrow) %v3961_v16, 8 }
0x2b6b   : > { %v3910_v51 = vpop.permute.xlu0 %3909 }
0x2b6c   : > { %v4050_v19 = vmul.f32 %v3910_v51, %v6088_v13 }
0x2b6e   : > { %v4058_v4 = vsel %vm1276_vm6, %v4050_v19, 0.0 }
0x2b6f   : > { %v3917_v34 = vpop.permute.xlu0 %3916 }
0x2b70   : > { %v4051_v31 = vmul.f32 %v3917_v34, %v6279_v17 }
0x2b72   : > { %v4059_v36 = vsel %vm1276_vm6, %v4051_v31, 0.0 }
0x2b73   : > { %v3924_v29 = vpop.permute.xlu0 %3923  ;;  %v4060_v56 = vadd.f32 %v4059_v36, %v4058_v4 }
0x2b74   : > { %v4052_v23 = vmul.f32 %v3924_v29, %v6391_v28 }
0x2b76   : > { %v4061_v22 = vsel %vm1276_vm6, %v4052_v23, 0.0 }
0x2b77   : > { %v3931_v15 = vpop.permute.xlu0 %3930  ;;  %v4062_v9 = vadd.f32 %v4061_v22, %v4060_v56  ;;  %v6797_v22 = vadd.f32 %v6731_v60, %v6035_v5 }
0x2b78   : > { %v4053_v24 = vmul.f32 %v3931_v15, %v6513_v55 }
0x2b7a   : > { %v4063_v43 = vsel %vm1276_vm6, %v4053_v24, 0.0 }
0x2b7b   : > { %v3938_v1 = vpop.permute.xlu0 %3937  ;;  %v4064_v25 = vadd.f32 %v4063_v43, %v4062_v9 }
0x2b7c   : > { %v4054_v54 = vmul.f32 %v3938_v1, %v6628_v3 }
0x2b7e   : > { %v4065_v7 = vsel %vm1276_vm6, %v4054_v54, 0.0 }
0x2b7f   : > { %v3945_v49 = vpop.permute.xlu0 %3944  ;;  %v4066_v35 = vadd.f32 %v4065_v7, %v4064_v25 }
0x2b80   : > { %v4055_v57 = vmul.f32 %v3945_v49, %v6746_v46 }
0x2b82   : > { %v4067_v33 = vsel %vm1276_vm6, %v4055_v57, 0.0 }
0x2b83   : > { %v3952_v58 = vpop.permute.xlu0 %3951  ;;  %v4068_v34 = vadd.f32 %v4067_v33, %v4066_v35 }
0x2b84   : > { %v4056_v50 = vmul.f32 0.0, %v3952_v58 }
0x2b86   : > { %v4069_v16 = vsel %vm1276_vm6, %v4056_v50, 0.0 }
0x2b87   : > { %v3959_v62 = vpop.permute.xlu0 %3958  ;;  %v4070_v49 = vadd.f32 %v4069_v16, %v4068_v34 }
0x2b88   : > { %v4057_v40 = vmul.f32 0.0, %v3959_v62 }
0x2b8a   : > { %v4071_v1 = vsel %vm1276_vm6, %v4057_v40, 0.0 }
0x2b8b   : > { %v4072_v31 = vadd.f32 %v4071_v1, %v4070_v49 }
0x2bb3   : > { %v3978_v51 = vpop.trf.xlu0 }
0x2bb4   : > { %v4004_v29 = vrot.slane %v3978_v51, %v6032_v2  ;;  %v3997_v15 = vrot.slane %v3978_v51, %v6042_v10  ;;  %v4011_v19 = vrot.slane %v3978_v51, %v6133_v63  ;;  %v4018_v23 = vrot.slane %v3978_v51, %v6137_v6 }
0x2bb5   : > { %v4025_v58 = vrot.slane %v3978_v51, %v6141_v8  ;;  %v4032_v36 = vrot.slane %v3978_v51, %v6145_v14  ;;  %v4039_v24 = vrot.slane %v3978_v51, %v6149_v21  ;;  %v4046_v4 = vrot.slane %v3978_v51, %v6127_v53 }
0x2bb6   : > { %4006 = vbcast.lane.b32.xlu0 %v4004_v29, 256  ;;  %3999 = vbcast.lane.b32.xlu1 %v3997_v15, 256 }
0x2bba   : > { %4097 = vrot.lane.b32.xlu0 %v4072_v31, %s5812_s22  ;;  %4013 = vbcast.lane.b32.xlu1 %v4011_v19, 256 }
0x2bbe   : > { %4020 = vbcast.lane.b32.xlu1 %v4018_v23, 256 }
0x2bc2   : > { %4027 = vbcast.lane.b32.xlu1 %v4025_v58, 256 }
0x2bc6   : > { %4034 = vbcast.lane.b32.xlu1 %v4032_v36, 256 }
0x2bca   : > { %4041 = vbcast.lane.b32.xlu1 %v4039_v24, 256 }
0x2bce   : > { %4048 = vbcast.lane.b32.xlu1 %v4046_v4, 256 }
0x2bd2   : > { %4347 = vrot.lane.b32.xlu1 %v6797_v22, %s5811_s29 }
0x2c28   : > { %v4000_v54 = vpop.permute.xlu1 %3999  ;;  %v4007_v43 = vpop.permute.xlu0 %4006 }
0x2c29   : > { %v4074_v9 = vmul.f32 %v4007_v43, %v6279_v17  ;;  %v4073_v62 = vmul.f32 %v4000_v54, %v6088_v13 }
0x2c2b   : > { %v4082_v25 = vsel %vm1276_vm6, %v4074_v9, 0.0  ;;  %v4081_v33 = vsel %vm1276_vm6, %v4073_v62, 0.0 }
0x2c2c   : > { %v4014_v56 = vpop.permute.xlu1 %4013  ;;  %v4083_v16 = vadd.f32 %v4082_v25, %v4081_v33  ;;  %v4098_v9 = vpop.permute.xlu0 %4097 }
0x2c2d   : > { %v4075_v7 = vmul.f32 %v4014_v56, %v6391_v28 }
0x2c2f   : > { %v4084_v40 = vsel %vm1276_vm6, %v4075_v7, 0.0 }
0x2c30   : > { %v4021_v57 = vpop.permute.xlu1 %4020  ;;  %v4085_v15 = vadd.f32 %v4084_v40, %v4083_v16 }
0x2c31   : > { %v4076_v60 = vmul.f32 %v4021_v57, %v6513_v55 }
0x2c33   : > { %v4086_v34 = vsel %vm1276_vm6, %v4076_v60, 0.0 }
0x2c34   : > { %v4028_v50 = vpop.permute.xlu1 %4027  ;;  %v4087_v49 = vadd.f32 %v4086_v34, %v4085_v15 }
0x2c35   : > { %v4077_v35 = vmul.f32 %v4028_v50, %v6628_v3 }
0x2c37   : > { %v4088_v1 = vsel %vm1276_vm6, %v4077_v35, 0.0 }
0x2c38   : > { %v4035_v51 = vpop.permute.xlu1 %4034  ;;  %v4089_v58 = vadd.f32 %v4088_v1, %v4087_v49 }
0x2c39   : > { %v4078_v29 = vmul.f32 %v4035_v51, %v6746_v46  ;;  %v5799_v51 = vld [vmem:[%s6077_s19] ss:$0 sm:$0xff] }
0x2c3b   : > { %v4090_v19 = vsel %vm1276_vm6, %v4078_v29, 0.0 }
0x2c3c   : > { %v4042_v31 = vpop.permute.xlu1 %4041  ;;  %v4091_v24 = vadd.f32 %v4090_v19, %v4089_v58 }
0x2c3d   : > { %v4079_v23 = vmul.f32 0.0, %v4042_v31 }
0x2c3f   : > { %v4092_v36 = vsel %vm1276_vm6, %v4079_v23, 0.0 }
0x2c40   : > { %v4049_v4 = vpop.permute.xlu1 %4048  ;;  %v4093_v56 = vadd.f32 %v4092_v36, %v4091_v24 }
0x2c41   : > { %v4080_v54 = vmul.f32 0.0, %v4049_v4 }
0x2c43   : > { %v4094_v43 = vsel %vm1276_vm6, %v4080_v54, 0.0 }
0x2c44   : > { %v4095_v57 = vadd.f32 %v4094_v43, %v4093_v56 }
0x2c46   : > { %v4100_v62 = vsel %vm808_vm1, %v4098_v9, %v4095_v57  ;;  %v5800_v9 = vld [vmem:[%s6097_s23] ss:$0 sm:$0xff] }
0x2c47   : > { %5410 = vmatmul.mubr.msk.f32.vlgmr.msra.gmra.mrb[12].mxu0 %vm1320_vm8, %v4100_v62 }
0x2c48   : > { %5629 = vmatpush3.bf16.msra.mxu0 %v6166_v42  ;;  %5428 = vmatprep.mubr.msk.f32.mxu0 %vm5816_vm7, %v5810_v48  ;;  %v6833_v42 = vcombine.high %v6715_v37, %v6715_v37  ;;  %vm4389_vm7 = vcmp.eq.s32.totalorder %v6114_v26, 6  ;;  %v5199_v26 = vld [vmem:[%s6982_s4 + $0xe] sm:$0x3] }
0x2c49   : > { %5630 = vmatprep.subr.bf16.mxu0 %v5815_v45 }
0x2c4a   : > { %v4403_v34 = vmul.f32 %v5799_v51, %v6833_v42 }
0x2c4c   : > { %5632 = vmatpush3.bf16.msra.mxu0 %v6175_v52  ;;  %v4404_v29 = vsel %vm1040_vm2, %v4403_v34, 0.0 }
0x2c4d   : > { %5633 = vmatprep.subr.bf16.mxu0 %v5815_v45 }
0x2c50   : > { %5635 = vmatpush3.bf16.msra.mxu0 %v6185_v20 }
0x2c51   : > { %5636 = vmatprep.subr.bf16.mxu0 %v5815_v45 }
0x2c54   : > { %5638 = vmatpush3.bf16.msra.mxu0 %v6196_v39  ;;  %v4348_v39 = vpop.permute.xlu1 %4347 }
0x2d1a   : > { %v4170_v7 = vpop.f32.mrb[12].mxu0 }
0x2d1b   : > { %v5411_v50 = vpop.f32.mrb[13].mxu0  ;;  %5195 = vmatmul.mubr.msk.f32.vlgmr.msra.gmra.mrb[26].mxu1 %vm808_vm1, %v4170_v7 }
0x2d1c   : > { %5642 = vmatpush1.bf16.msra.mxu1 %v5969_v38  ;;  %4799 = vmatprep.mubr.f32.mxu1 %v5810_v48 }
0x2d1d   : > { %5644 = vmatprep.subr.bf16.mxu1 %v5972_v41  ;;  %v4243_v41 = vadd.f32 %v6729_v27, %v6055_v18 }
0x2d20   : > { %5646 = vmatpush1.bf16.msra.mxu1 %v5974_v44 }
0x2d21   : > { %5648 = vmatprep.subr.bf16.mxu1 %v5982_v47 }
0x2d23   : > { %5201 = vmatmul.mubr.msk.f32.vlgmr.msra.gmra.mrb[28].mxu1 %vm808_vm1, %v6833_v42 }
0x2d24   : > { %5650 = vmatpush1.bf16.msra.mxu1 %v5993_v59  ;;  %4873 = vmatprep.mubr.f32.mxu1 %v5810_v48 }
0x2d25   : > { %5652 = vmatprep.subr.bf16.mxu1 %v5999_v61 }
0x2d28   : > { %5654 = vmatpush1.bf16.msra.mxu1 %v6004_v0 }
0x2dee   : > { %v4316_v38 = vpop.f32.mrb[26].mxu1 }
0x2def   : > { %v4317_v44 = vadd.f32 %v4316_v38, %v6046_v11  ;;  %v4318_v45 = vpop.f32.mrb[27].mxu1 }
0x2df0   : > { %v4319_v60 = vadd.f32 %v4318_v45, %v6061_v30 }
0x2df1   : > { %v4321_v52 = vadd.f32 %v4317_v44, %v4243_v41  ;;  %4336 = vrot.lane.b32.xlu0 %v4317_v44, %s5811_s29 }
0x2df2   : > { %v4322_v49 = vadd.f32 %v4319_v60, %v6797_v22 }
0x2df3   : > { %v5196_v47 = vmul.f32 -1.442695, %v4321_v52 }
0x2df4   : > { %v5197_v31 = vmul.f32 -1.442695, %v4322_v49 }
0x2df5   : > { %5769 = vpow2.f32 %v5196_v47 }
0x2df6   : > { %v6846_v20 = vpop.f32.mrb[28].mxu1 }
0x2df7   : > { %v6848_v59 = vpop.f32.mrb[29].mxu1 }
0x2dff   : > { %v5770_v48 = vpop.eup %5769 }
0x2e00   : > { %v4329_v61 = vadd.f32 1.0, %v5770_v48 }
0x2e02   : > { %5771 = vrcp.f32 %v4329_v61  ;;  %v5198_v61 = vld [vmem:[%s6110_s14 + $0xe] sm:$0x3] }
0x2e0c   : > { %v5772_v0 = vpop.eup %5771 }
0x2e0d   : > { %v4350_v25 = vmul.f32 %v5772_v0, %v4348_v39  ;;  %v4357_v50 = vsub.f32 1.0, %v5772_v0  ;;  %v4414_v39 = vsub.f32 1.0, %v5198_v61 }
0x2e0f   : > { %4352 = vrot.lane.b32.xlu1 %v4350_v25, %s5811_s29 }
0x2e63   : > { %v4337_v27 = vpop.permute.xlu0 %4336 }
0x2e64   : > { %v4339_v33 = vmul.f32 %v5772_v0, %v4337_v27  ;;  %v4415_v27 = vmul.f32 1e+30, %v4414_v39 }
0x2e66   : > { %4341 = vrot.lane.b32.xlu0 %v4339_v33, %s5811_s29 }
0x2e81   : > { %v4353_v40 = vpop.permute.xlu1 %4352 }
0x2e82   : > { %v4355_v35 = vadd.f32 %v4353_v40, %v4319_v60 }
0x2e84   : > { %5773 = vtanh.f32 %v4355_v35 }
0x2e8e   : > { %v5774_v16 = vpop.eup %5773 }
0x2e8f   : > { %4370 = vrot.lane.b32.xlu1 %v5774_v16, %s5812_s22 }
0x2e93   : > { %4363 = vrot.lane.b32.xlu1 %v4170_v7, %s5813_s16 }
0x2eb7   : > { %4405 = vadd.xlane.f32.xlu1 %v4404_v29 }
0x2ed8   : > { %v4342_v15 = vpop.permute.xlu0 %4341 }
0x2ed9   : > { %v4344_v1 = vadd.f32 %v4342_v15, %v4243_v41 }
0x2edb   : > { %5775 = vtanh.f32 %v4344_v1 }
0x2edc   : > { %5777 = vpow2.f32 %v5197_v31 }
0x2ee5   : > { %v5776_v19 = vpop.eup %5775 }
0x2ee6   : > { %4359 = vrot.lane.b32.xlu0 %v5776_v19, %s5812_s22  ;;  %v5778_v23 = vpop.eup %5777 }
0x2ee7   : > { %v4330_v58 = vadd.f32 1.0, %v5778_v23 }
0x2ee9   : > { %5779 = vrcp.f32 %v4330_v58 }
0x2ef3   : > { %v5780_v36 = vpop.eup %5779 }
0x2ef4   : > { %v4368_v24 = vsub.f32 1.0, %v5780_v36  ;;  %v4374_v54 = vmul.f32 %v5780_v36, %v6715_v37 }
0x2f01   : > { %v4371_v4 = vpop.permute.xlu1 %4370 }
0x2f02   : > { %v4373_v56 = vmul.f32 %v4371_v4, %v4368_v24 }
0x2f04   : > { %v4375_v43 = vadd.f32 %v4374_v54, %v4373_v56 }
0x2f05   : > { %v4364_v22 = vpop.permute.xlu1 %4363 }
0x2f06   : > { %4377 = vrot.lane.b32.xlu0 %v4375_v43, %s5813_s16  ;;  %v4366_v41 = vmul.f32 %v5772_v0, %v4364_v22  ;;  %v4519_v22 = vsub.f32 1.0, %v5199_v26 }
0x2f44   : > { %v4406_v57 = vpop.xlane.xlu1 %4405 }
0x2f45   : > { %v4407_v62 = vadd.f32 %v5800_v9, %v4406_v57 }
0x2f47   : > { %4410 = vperm.xlu1 %5672, %v4407_v62  }
0x2f58   : > { %v4360_v7 = vpop.permute.xlu0 %4359 }
0x2f59   : > { %v4362_v38 = vmul.f32 %v4360_v7, %v4357_v50 }
0x2f5b   : > { %v4367_v44 = vadd.f32 %v4366_v41, %v4362_v38 }
0x2f78   : > { %v4378_v45 = vpop.permute.xlu0 %4377 }
0x2f79   : > { %v6863_v52 = vadd.f32 %v4378_v45, %v4367_v44 }
0x2f7b   : > { %v4390_v37 = vmul.f32 %v6863_v52, %v6086_v12 }
0x2f7d   : > { %4392 = vrot.lane.b32.xlu0 %v4390_v37, %s5812_s22 }
0x2fc6   : > { %v4411_v0 = vpop.permute.xlu1 %4410 }
0x2fef   : > { %v4393_v47 = vpop.permute.xlu0 %4392 }
0x2ff0   : > { %v4395_v48 = vsel %vm1040_vm2, %v4393_v47, 0.0 }
0x2ff1   : > { %4396 = vadd.xlane.f32.xlu0 %v4395_v48 }
0x307e   : > { %v4397_v25 = vpop.xlane.xlu0 %4396 }
0x307f   : > { %v4398_v33 = vsel %vm4389_vm7, %v4397_v25, %v6755_v32 }
0x3080   : > { %v4413_v60 = vadd.f32 %v4411_v0, %v4398_v33 }
0x3082   : > { %v4416_v40 = vsub.f32 %v4413_v60, %v4415_v27 }
0x3084   : > { %v4418_v12 = vsel %vm4417_vm9, %v4416_v40, -inf }
0x3085   : > { %v4419_v35 = vsel %vm1077_vm5, %v4418_v12, -inf }
0x3086   : > { %4420 = vmax.xlane.f32.xlu0 %v4419_v35 }
0x3113   : > { %v4421_v16 = vpop.xlane.xlu0 %4420 }
0x3114   : > { %v4422_v51 = vsub.f32 %v4418_v12, %v4421_v16 }
0x3116   : > { %v4423_v34 = vmul.f32 1.442695, %v4422_v51 }
0x3118   : > { %5781 = vpow2.f32 %v4423_v34 }
0x3122   : > { %v5782_v29 = vpop.eup %5781 }
0x3123   : > { %v4425_v15 = vsel %vm1077_vm5, %v5782_v29, 0.0 }
0x3124   : > { %4426 = vadd.xlane.f32.xlu0 %v4425_v15 }
0x31b1   : > { %v4427_v1 = vpop.xlane.xlu0 %4426 }
0x31b2   : > { %5783 = vrcp.f32 %v4427_v1 }
0x31bc   : > { %v5784_v49 = vpop.eup %5783 }
0x31bd   : > { %v4429_v32 = vmul.f32 %v5784_v49, %v5782_v29 }
0x31bf   : > { %v4430_v31 = vmul.f32 %v5199_v26, %v4429_v32  ;;  %v4520_v57 = vmul.f32 %v4519_v22, %v4429_v32 }
0x31c1   : > { %4431 = vxpose.xlu0.b32.start.end [1/1] (short) (narrow) %v4430_v31, 8 }
0x3241   : > { %v4447_v19 = vpop.trf.xlu0 }
0x3242   : > { %v4466_v23 = vrot.slane %v4447_v19, %v6042_v10  ;;  %v4473_v58 = vrot.slane %v4447_v19, %v6032_v2  ;;  %v4480_v36 = vrot.slane %v4447_v19, %v6133_v63  ;;  %v4487_v24 = vrot.slane %v4447_v19, %v6137_v6 }
0x3243   : > { %v4494_v4 = vrot.slane %v4447_v19, %v6141_v8  ;;  %v4501_v54 = vrot.slane %v4447_v19, %v6145_v14  ;;  %v4508_v56 = vrot.slane %v4447_v19, %v6149_v21  ;;  %v4515_v43 = vrot.slane %v4447_v19, %v6127_v53 }
0x3244   : > { %4468 = vbcast.lane.b32.xlu1 %v4466_v23, 256 }
0x3248   : > { %4475 = vbcast.lane.b32.xlu1 %v4473_v58, 256 }
0x324c   : > { %4482 = vbcast.lane.b32.xlu1 %v4480_v36, 256 }
0x3250   : > { %4489 = vbcast.lane.b32.xlu1 %v4487_v24, 256 }
0x3254   : > { %4496 = vbcast.lane.b32.xlu1 %v4494_v4, 256 }
0x3258   : > { %4503 = vbcast.lane.b32.xlu1 %v4501_v54, 256 }
0x325c   : > { %4510 = vbcast.lane.b32.xlu1 %v4508_v56, 256 }
0x3260   : > { %4517 = vbcast.lane.b32.xlu1 %v4515_v43, 256 }
0x3289   : > { %4521 = vxpose.xlu1.b32.start.end [1/1] (short) (narrow) %v4520_v57, 8 }
0x32b6   : > { %v4469_v9 = vpop.permute.xlu1 %4468 }
0x32b7   : > { %v4609_v45 = vmul.f32 %v4469_v9, %v6088_v13 }
0x32b9   : > { %v4617_v39 = vsel %vm1276_vm6, %v4609_v45, 0.0 }
0x32ba   : > { %v4476_v62 = vpop.permute.xlu1 %4475 }
0x32bb   : > { %v4610_v44 = vmul.f32 %v4476_v62, %v6279_v17 }
0x32bd   : > { %v4618_v48 = vsel %vm1276_vm6, %v4610_v44, 0.0 }
0x32be   : > { %v4483_v7 = vpop.permute.xlu1 %4482  ;;  %v4619_v0 = vadd.f32 %v4618_v48, %v4617_v39 }
0x32bf   : > { %v4611_v37 = vmul.f32 %v4483_v7, %v6391_v28 }
0x32c1   : > { %v4620_v25 = vsel %vm1276_vm6, %v4611_v37, 0.0 }
0x32c2   : > { %v4490_v50 = vpop.permute.xlu1 %4489  ;;  %v4621_v40 = vadd.f32 %v4620_v25, %v4619_v0 }
0x32c3   : > { %v4612_v61 = vmul.f32 %v4490_v50, %v6513_v55 }
0x32c5   : > { %v4622_v33 = vsel %vm1276_vm6, %v4612_v61, 0.0 }
0x32c6   : > { %v4497_v38 = vpop.permute.xlu1 %4496  ;;  %v4623_v51 = vadd.f32 %v4622_v33, %v4621_v40 }
0x32c7   : > { %v4613_v27 = vmul.f32 %v4497_v38, %v6628_v3 }
0x32c9   : > { %v4624_v35 = vsel %vm1276_vm6, %v4613_v27, 0.0 }
0x32ca   : > { %v4504_v41 = vpop.permute.xlu1 %4503  ;;  %v4625_v15 = vadd.f32 %v4624_v35, %v4623_v51 }
0x32cb   : > { %v4614_v60 = vmul.f32 %v4504_v41, %v6746_v46 }
0x32cd   : > { %v4626_v34 = vsel %vm1276_vm6, %v4614_v60, 0.0 }
0x32ce   : > { %v4511_v47 = vpop.permute.xlu1 %4510  ;;  %v4627_v32 = vadd.f32 %v4626_v34, %v4625_v15  ;;  %v4802_v15 = vadd.f32 %v6846_v20, %v6055_v18 }
0x32cf   : > { %v4615_v16 = vmul.f32 %v4511_v47, %v6863_v52 }
0x32d1   : > { %v4628_v1 = vsel %vm1276_vm6, %v4615_v16, 0.0 }
0x32d2   : > { %v4518_v12 = vpop.permute.xlu1 %4517  ;;  %v4629_v23 = vadd.f32 %v4628_v1, %v4627_v32 }
0x32d3   : > { %v4616_v29 = vmul.f32 0.0, %v4518_v12 }
0x32d5   : > { %v4630_v19 = vsel %vm1276_vm6, %v4616_v29, 0.0 }
0x32d6   : > { %v4631_v58 = vadd.f32 %v4630_v19, %v4629_v23 }
0x3309   : > { %v4537_v49 = vpop.trf.xlu1 }
0x330a   : > { %v4563_v26 = vrot.slane %v4537_v49, %v6032_v2  ;;  %v4556_v31 = vrot.slane %v4537_v49, %v6042_v10  ;;  %v4570_v36 = vrot.slane %v4537_v49, %v6133_v63  ;;  %v4577_v24 = vrot.slane %v4537_v49, %v6137_v6 }
0x330b   : > { %v4584_v4 = vrot.slane %v4537_v49, %v6141_v8  ;;  %v4591_v2 = vrot.slane %v4537_v49, %v6145_v14  ;;  %v4598_v10 = vrot.slane %v4537_v49, %v6149_v21  ;;  %v4605_v54 = vrot.slane %v4537_v49, %v6127_v53 }
0x330c   : > { %4565 = vbcast.lane.b32.xlu1 %v4563_v26, 256  ;;  %4558 = vbcast.lane.b32.xlu0 %v4556_v31, 256  ;;  %v6912_v63 = vadd.f32 %v6848_v59, %v6035_v5 }
0x3310   : > { %4656 = vrot.lane.b32.xlu1 %v4631_v58, %s5812_s22  ;;  %4572 = vbcast.lane.b32.xlu0 %v4570_v36, 256 }
0x3314   : > { %4579 = vbcast.lane.b32.xlu0 %v4577_v24, 256 }
0x3318   : > { %4586 = vbcast.lane.b32.xlu0 %v4584_v4, 256 }
0x331c   : > { %4593 = vbcast.lane.b32.xlu0 %v4591_v2, 256 }
0x3320   : > { %4600 = vbcast.lane.b32.xlu0 %v4598_v10, 256 }
0x3324   : > { %4607 = vbcast.lane.b32.xlu0 %v4605_v54, 256 }
0x3328   : > { %4906 = vrot.lane.b32.xlu0 %v6912_v63, %s5811_s29 }
0x337e   : > { %v4559_v6 = vpop.permute.xlu0 %4558  ;;  %v4566_v8 = vpop.permute.xlu1 %4565 }
0x337f   : > { %v4633_v14 = vmul.f32 %v4566_v8, %v6279_v17  ;;  %v4632_v22 = vmul.f32 %v4559_v6, %v6088_v13 }
0x3381   : > { %v4641_v53 = vsel %vm1276_vm6, %v4633_v14, 0.0  ;;  %v4640_v9 = vsel %vm1276_vm6, %v4632_v22, 0.0 }
0x3382   : > { %v4573_v56 = vpop.permute.xlu0 %4572  ;;  %v4642_v7 = vadd.f32 %v4641_v53, %v4640_v9  ;;  %v4657_v35 = vpop.permute.xlu1 %4656 }
0x3383   : > { %v4634_v21 = vmul.f32 %v4573_v56, %v6391_v28 }
0x3385   : > { %v4643_v59 = vsel %vm1276_vm6, %v4634_v21, 0.0 }
0x3386   : > { %v4580_v43 = vpop.permute.xlu0 %4579  ;;  %v4644_v44 = vadd.f32 %v4643_v59, %v4642_v7 }
0x3387   : > { %v4635_v5 = vmul.f32 %v4580_v43, %v6513_v55 }
0x3389   : > { %v4645_v38 = vsel %vm1276_vm6, %v4635_v5, 0.0 }
0x338a   : > { %v4587_v57 = vpop.permute.xlu0 %4586  ;;  %v4646_v37 = vadd.f32 %v4645_v38, %v4644_v44 }
0x338b   : > { %v4636_v62 = vmul.f32 %v4587_v57, %v6628_v3 }
0x338d   : > { %v4647_v45 = vsel %vm1276_vm6, %v4636_v62, 0.0 }
0x338e   : > { %v4594_v50 = vpop.permute.xlu0 %4593  ;;  %v4648_v39 = vadd.f32 %v4647_v45, %v4646_v37 }
0x338f   : > { %v4637_v41 = vmul.f32 %v4594_v50, %v6746_v46 }
0x3391   : > { %v4649_v48 = vsel %vm1276_vm6, %v4637_v41, 0.0 }
0x3392   : > { %v4601_v47 = vpop.permute.xlu0 %4600  ;;  %v4650_v27 = vadd.f32 %v4649_v48, %v4648_v39 }
0x3393   : > { %v4638_v61 = vmul.f32 %v4601_v47, %v6863_v52 }
0x3395   : > { %v4651_v25 = vsel %vm1276_vm6, %v4638_v61, 0.0 }
0x3396   : > { %v4608_v0 = vpop.permute.xlu0 %4607  ;;  %v4652_v60 = vadd.f32 %v4651_v25, %v4650_v27 }
0x3397   : > { %v4639_v33 = vmul.f32 0.0, %v4608_v0 }
0x3399   : > { %v4653_v40 = vsel %vm1276_vm6, %v4639_v33, 0.0 }
0x339a   : > { %v4654_v12 = vadd.f32 %v4653_v40, %v4652_v60  ;;  %v4907_v58 = vpop.permute.xlu0 %4906 }
0x339c   : > { %v4659_v16 = vsel %vm808_vm1, %v4657_v35, %v4654_v12 }
0x339d   : > { %5429 = vmatmul.mubr.msk.f32.vlgmr.msra.gmra.mrb[14].mxu0 %vm1320_vm8, %v4659_v16 }
0x3470   : > { %v4729_v51 = vpop.f32.mrb[14].mxu0 }
0x3471   : > { %v5430_v34 = vpop.f32.mrb[15].mxu0  ;;  %5202 = vmatmul.mubr.msk.f32.vlgmr.msra.gmra.mrb[30].mxu1 %vm808_vm1, %v4729_v51 }
0x3544   : > { %v4875_v29 = vpop.f32.mrb[30].mxu1 }
0x3545   : > { %v4876_v1 = vadd.f32 %v4875_v29, %v6046_v11  ;;  %v4877_v49 = vpop.f32.mrb[31].mxu1 }
0x3546   : > { %v4878_v11 = vadd.f32 %v4877_v49, %v6061_v30 }
0x3547   : > { %v4880_v32 = vadd.f32 %v4876_v1, %v4802_v15  ;;  %4895 = vrot.lane.b32.xlu1 %v4876_v1, %s5811_s29 }
0x3548   : > { %v4881_v54 = vadd.f32 %v4878_v11, %v6912_v63 }
0x3549   : > { %v5203_v26 = vmul.f32 -1.442695, %v4880_v32 }
0x354a   : > { %v5204_v6 = vmul.f32 -1.442695, %v4881_v54 }
0x354b   : > { %5785 = vpow2.f32 %v5203_v26 }
0x3555   : > { %v5786_v31 = vpop.eup %5785 }
0x3556   : > { %v4888_v19 = vadd.f32 1.0, %v5786_v31 }
0x3558   : > { %5787 = vrcp.f32 %v4888_v19 }
0x3562   : > { %v5788_v23 = vpop.eup %5787 }
0x3563   : > { %v4909_v36 = vmul.f32 %v5788_v23, %v4907_v58  ;;  %v4916_v5 = vsub.f32 1.0, %v5788_v23 }
0x3565   : > { %4911 = vrot.lane.b32.xlu0 %v4909_v36, %s5811_s29 }
0x35b9   : > { %v4896_v24 = vpop.permute.xlu1 %4895 }
0x35ba   : > { %v4898_v4 = vmul.f32 %v5788_v23, %v4896_v24 }
0x35bc   : > { %4900 = vrot.lane.b32.xlu1 %v4898_v4, %s5811_s29 }
0x35d7   : > { %v4912_v18 = vpop.permute.xlu0 %4911 }
0x35d8   : > { %v4914_v20 = vadd.f32 %v4912_v18, %v4878_v11 }
0x35da   : > { %5789 = vtanh.f32 %v4914_v20 }
0x35e4   : > { %v5790_v2 = vpop.eup %5789 }
0x35e5   : > { %4929 = vrot.lane.b32.xlu0 %v5790_v2, %s5812_s22 }
0x35e9   : > { %4922 = vrot.lane.b32.xlu0 %v4729_v51, %s5813_s16 }
0x35ed   : > { %4956 = vrot.lane.b32.xlu0 %v6088_v13, %s5812_s22 }
0x35f1   : > { %4960 = vrot.lane.b32.xlu0 %v6391_v28, %s5812_s22 }
0x35f5   : > { %4964 = vrot.lane.b32.xlu0 %v6628_v3, %s5812_s22 }
0x35f9   : > { %4968 = vrot.lane.b32.xlu0 %v6863_v52, %s5812_s22 }
0x362e   : > { %v4901_v30 = vpop.permute.xlu1 %4900 }
0x362f   : > { %v4903_v10 = vadd.f32 %v4901_v30, %v4802_v15 }
0x3631   : > { %5791 = vtanh.f32 %v4903_v10 }
0x3632   : > { %5793 = vpow2.f32 %v5204_v6 }
0x363b   : > { %v5792_v56 = vpop.eup %5791 }
0x363c   : > { %4918 = vrot.lane.b32.xlu1 %v5792_v56, %s5812_s22  ;;  %v5794_v13 = vpop.eup %5793 }
0x363d   : > { %v4889_v8 = vadd.f32 1.0, %v5794_v13 }
0x363f   : > { %5795 = vrcp.f32 %v4889_v8 }
0x3649   : > { %v5796_v28 = vpop.eup %5795 }
0x364a   : > { %v4927_v43 = vsub.f32 1.0, %v5796_v28  ;;  %v4933_v14 = vmul.f32 %v5796_v28, %v6833_v42 }
0x3657   : > { %v4930_v3 = vpop.permute.xlu0 %4929 }
0x3658   : > { %v4932_v52 = vmul.f32 %v4930_v3, %v4927_v43 }
0x365a   : > { %v4934_v22 = vadd.f32 %v4933_v14, %v4932_v52 }
0x365b   : > { %v4923_v21 = vpop.permute.xlu0 %4922 }
0x365c   : > { %4936 = vrot.lane.b32.xlu1 %v4934_v22, %s5813_s16  ;;  %v4925_v62 = vmul.f32 %v5788_v23, %v4923_v21 }
0x365f   : > { %v4957_v63 = vpop.permute.xlu0 %4956 }
0x3660   : > { %4980 = vst.msk [vmem:[%s576_s30] sm:$0x3] %vm1040_vm2, %v4957_v63  ;;  %4958 = vrot.lane.b32.xlu1 %v6279_v17, %s5812_s22 }
0x3663   : > { %v4961_v57 = vpop.permute.xlu0 %4960 }
0x3664   : > { %4982 = vst.msk [vmem:[%s576_s30 + $0x4] sm:$0x3] %vm1040_vm2, %v4961_v57  ;;  %4962 = vrot.lane.b32.xlu1 %v6513_v55, %s5812_s22 }
0x3667   : > { %v4965_v42 = vpop.permute.xlu0 %4964 }
0x3668   : > { %4984 = vst.msk [vmem:[%s576_s30 + $0x8] sm:$0x3] %vm1040_vm2, %v4965_v42  ;;  %4966 = vrot.lane.b32.xlu1 %v6746_v46, %s5812_s22 }
0x366b   : > { %v4969_v53 = vpop.permute.xlu0 %4968 }
0x366c   : > { %4986 = vst.msk [vmem:[%s576_s30 + $0xc] sm:$0x3] %vm1040_vm2, %v4969_v53 }
0x36ae   : > { %v4919_v9 = vpop.permute.xlu1 %4918 }
0x36af   : > { %v4921_v59 = vmul.f32 %v4919_v9, %v4916_v5 }
0x36b1   : > { %v4926_v17 = vadd.f32 %v4925_v62, %v4921_v59 }
0x36ce   : > { %v4937_v7 = vpop.permute.xlu1 %4936 }
0x36cf   : > { %v4939_v50 = vadd.f32 %v4937_v7, %v4926_v17 }
0x36d1   : > { %4970 = vrot.lane.b32.xlu1 %v4939_v50, %s5812_s22 }
0x36d2   : > { %v4959_v38 = vpop.permute.xlu1 %4958 }
0x36d3   : > { %4981 = vst.msk [vmem:[%s576_s30 + $0x2] sm:$0x3] %vm1040_vm2, %v4959_v38 }
0x36d6   : > { %v4963_v55 = vpop.permute.xlu1 %4962 }
0x36d7   : > { %4983 = vst.msk [vmem:[%s576_s30 + $0x6] sm:$0x3] %vm1040_vm2, %v4963_v55 }
0x36da   : > { %v4967_v41 = vpop.permute.xlu1 %4966 }
0x36db   : > { %4985 = vst.msk [vmem:[%s576_s30 + $0xa] sm:$0x3] %vm1040_vm2, %v4967_v41 }
0x3743   : > { %v4971_v46 = vpop.permute.xlu1 %4970 }
0x3744   : > { %4987 = vst.msk [vmem:[%s576_s30 + $0xe] sm:$0x3] %vm1040_vm2, %v4971_v46 }
0x3745 PF: > { %s23_s25 = sadd.s32 1, %s5807_s25  }
0x3746   : > { %p20_p4 = scmp.ge.s32.totalorder %s23_s25, 4  }
0x3748   :  { %22 = sbr.rel (!%p20_p4) target bundleno = 1 (0x1), region = 140 }

// kernel: forward.6
= control target key start
LH: loop header
LB: loop body
LE: loop exit
PB: predicated region body
PF: predicated region fallthrough
CT: control target
= control target key end

     0   :  { %s5645_s17 = smov 0   ;;  %s6593_s0 = inlined_call_operand.vmem [shape: f32[2,8,2,32], index: 0, kind: input, shape index: {}]   ;;  %s6594_s1 = inlined_call_operand.vmem [shape: f32[2,8,2,8], index: 1, kind: input, shape index: {}]   ;;  %s6595_s2 = inlined_call_operand.vmem [shape: f32[8,2,8], index: 2, kind: input, shape index: {}]   ;;  %s6596_s3 = inlined_call_operand.vmem [shape: f32[2,32,192], index: 3, kind: input, shape index: {}]   ;;  %s6597_s4 = inlined_call_operand.vmem [shape: f32[2,32,192], index: 4, kind: input, shape index: {}]   ;;  %s6598_s5 = inlined_call_operand.vmem [shape: f32[2,1,192], index: 5, kind: input, shape index: {}]   ;;  %s6599_s6 = inlined_call_operand.vmem [shape: f32[2,1,192], index: 6, kind: input, shape index: {}]   ;;  %s6600_s7 = inlined_call_operand.vmem [shape: f32[2,1,32], index: 7, kind: input, shape index: {}]   ;;  %s6601_s8 = inlined_call_operand.vmem [shape: f32[2,1,32], index: 8, kind: input, shape index: {}]   ;;  %s6602_s9 = inlined_call_operand.vmem [shape: f32[2,1,1], index: 9, kind: input, shape index: {}]   ;;  %s6603_s10 = inlined_call_operand.vmem [shape: f32[2,64,32], index: 10, kind: input, shape index: {}]   ;;  %s6604_s11 = inlined_call_operand.vmem [shape: f32[2,8,2,32], index: 11, kind: output, shape index: {}]  }
   0x1 LB: > { %s4935_s18 = sadd.s32 4294967295, %s5576_s17   ;;  %p4939_p0 = scmp.ge.s32.totalorder %s5576_s17, 1  ;;  %s5576_s17 = sphi %s5645_s17, %s21_s17  }
   0x2   : > { %p419_p1 = scmp.lt.s32.totalorder %s5576_s17, 3 }
   0x4   : > { %p420_p2 = pnand %p4939_p0, %p419_p1 }
   0x5   : > { %p496_p3 = scmp.lt.s32.totalorder (!%p420_p2), %s4935_s18, 1  ;;  %v5578_v0 = vmov (!%p420_p2), 0.0   ;;  %vm593_vm0 = vcmask (!%p420_p2), 261120   ;;  %v580_v26 = vlaneseq (!%p420_p2)  ;;  %s5579_s21 = smov (!%p420_p2), 64   ;;  %vm826_vm1 = vcmask (!%p420_p2), 254976  }
   0x6   : > { %423 = sbr.rel (%p420_p2) target bundleno = 13937 (0x3671), region = 64  ;;  %661 = vmatprep.mubr.f32.mxu0 (!%p420_p2), %v5578_v0  ;;  %746 = vmatprep.mubr.f32.mxu1 (!%p420_p2), %v5578_v0  ;;  %s5581_s27 = smov (!%p420_p2), 32   ;;  %vm863_vm4 = vcmask (!%p420_p2), 58368   ;;  %vm1062_vm5 = vcmask (!%p420_p2), 517376   ;;  %vm5584_vm6 = vmmov (!%p420_p2), 0   ;;  %vm1106_vm7 = vcmask (!%p420_p2), 523264  }
   0x7   : > { %v5715_v27 = vshrl.u32 (!%p420_p2), %v580_v26, 7 }
   0x9   : > { %v5721_v28 = vsub.s32 (!%p420_p2), 1, %v5715_v27  ;;  %v5727_v30 = vsub.s32 (!%p420_p2), 0, %v5715_v27 }
   0xd   : > { %s6606_s18 = smov (!%p496_p3, %s4935_s18), 1 }
   0xe   : > { %s5658_s19 = sshll.u32 %s6606_s18, 6  ;;  %s5675_s26 = sshll.u32 %s6606_s18, 4 }
   0xf   : > { %s510_s22 = scalar_lea.vmem %s6596_s3, %s5658_s19  ;;  %s515_s25 = scalar_lea.vmem %s6597_s4, %s5658_s19 }
  0x10   : > { %v544_v1 = vld [vmem:[%s510_s22 + $0x8] sm:$0xff]  ;;  %v546_v2 = vld [vmem:[%s510_s22 + $0x18] sm:$0xff]  ;;  %v543_v6 = vld [vmem:[%s510_s22] sm:$0xff]  ;;  %s5693_s29 = scalar_lea.vmem %s6593_s0, %s5675_s26  ;;  %s4948_s30 = sshll.u32 %s6606_s18, 1 }
  0x11   : > { %v552_v3 = vld [vmem:[%s515_s25 + $0x8] sm:$0xff]  ;;  %v5668_v4 = vpack.c.bf16 %v546_v2, %v544_v1  ;;  %v554_v5 = vld [vmem:[%s515_s25 + $0x18] sm:$0xff]  ;;  %v545_v7 = vld [vmem:[%s510_s22 + $0x10] sm:$0xff]  ;;  %s519_s14 = scalar_lea.vmem %s6598_s5, %s4948_s30  ;;  %s523_s20 = scalar_lea.vmem %s6599_s6, %s4948_s30 }
  0x12   : > { %v5670_v8 = vpack.c.bf16 %v554_v5, %v552_v3  ;;  %v5672_v9 = vpack.c.bf16 %v545_v7, %v543_v6  ;;  %v551_v10 = vld [vmem:[%s515_s25] sm:$0xff]  ;;  %v553_v11 = vld [vmem:[%s515_s25 + $0x10] sm:$0xff]  ;;  %v548_v12 = vld [vmem:[%s510_s22 + $0x28] sm:$0xff]  ;;  %s5772_s12 = scalar_lea.vmem %s6600_s7, %s6606_s18  ;;  %s5792_s15 = scalar_lea.vmem %s6602_s9, %s6606_s18 }
  0x13   : > { %5214 = vmatprep.subr.bf16.mxu0 %v5668_v4  ;;  %v5678_v13 = vpack.c.bf16 %v553_v11, %v551_v10  ;;  %v550_v14 = vld [vmem:[%s510_s22 + $0x38] sm:$0xff]  ;;  %v556_v15 = vld [vmem:[%s515_s25 + $0x28] sm:$0xff]  ;;  %v547_v19 = vld [vmem:[%s510_s22 + $0x20] sm:$0xff]  ;;  %s5803_s23 = scalar_lea.vmem %s6594_s1, %s5675_s26  ;;  %s5855_s30 = scalar_lea.vmem %s6603_s10, %s5658_s19 }
  0x14   : > { %v558_v16 = vld [vmem:[%s515_s25 + $0x38] sm:$0xff]  ;;  %5222 = vmatprep.subr.bf16.mxu1 %v5670_v8  ;;  %5216 = vmatpush1.bf16.msra.mxu0 %v5672_v9  ;;  %v5682_v17 = vpack.c.bf16 %v550_v14, %v548_v12  ;;  %v549_v20 = vld [vmem:[%s510_s22 + $0x30] sm:$0xff]  ;;  %v555_v21 = vld [vmem:[%s515_s25 + $0x20] sm:$0xff]  ;;  %s5580_s22 = smov 96  }
  0x15   : > { %v5684_v18 = vpack.c.bf16 %v558_v16, %v556_v15  ;;  %5224 = vmatpush1.bf16.msra.mxu1 %v5678_v13  ;;  %v5687_v22 = vpack.c.bf16 %v549_v20, %v547_v19  ;;  %v557_v23 = vld [vmem:[%s515_s25 + $0x30] sm:$0xff]  ;;  %v5701_v25 = vld [vmem:[%s5693_s29] sm:$0x3]  ;;  %v5750_v57 = vld [vmem:[%s5693_s29 + $0x2] sm:$0x3]  ;;  %s529_s25 = scalar_lea.vmem %s6601_s8, %s6606_s18  ;;  %v5582_v19 = vmov 0  }
  0x16   : > { %5218 = vmatprep.subr.bf16.mxu0 %v5682_v17  ;;  %v5697_v24 = vpack.c.bf16 %v557_v23, %v555_v21  ;;  %v559_v29 = vld [vmem:[%s519_s14] sm:$0x3]  ;;  %5440 = vset.pattern.permute.xlu0 %v5582_v19 }
  0x17   : > { %5226 = vmatprep.subr.bf16.mxu1 %v5684_v18  ;;  %v5730_v31 = vrot.slane %v559_v29, %v5721_v28  ;;  %v560_v32 = vld [vmem:[%s523_s20] sm:$0x3]  ;;  %v5740_v40 = vrot.slane %v559_v29, %v5727_v30 }
  0x18   : > { %5220 = vmatpush1.bf16.msra.mxu0 %v5687_v22  ;;  %v5733_v36 = vrot.slane %v560_v32, %v5727_v30  ;;  %v5746_v51 = vrot.slane %v560_v32, %v5721_v28  ;;  %v4957_v60 = vld [vmem:[%s529_s25] ss:$0 sm:$0xff] }
  0x19   : > { %5228 = vmatpush1.bf16.msra.mxu1 %v5697_v24  ;;  %v5775_v11 = vld [vmem:[%s5772_s12] ss:$0 sm:$0xff] }
  0x1a   : > { %5242 = vmatprep.subr.bf16.mxu1 %v5668_v4  ;;  %v841_v12 = vmul.f32 %v5775_v11, %v5750_v57 }
  0x1b   : > { %4954 = vmatmul.mubr.msk.f32.vlgmr.msra.gmra.mrb[0].mxu0 %vm593_vm0, %v5701_v25 }
  0x1c   : > { %747 = vmatmul.mubr.f32.vlgmr.msra.gmra.mrb[0].mxu1 %v5578_v0  ;;  %v842_v14 = vsel %vm826_vm1, %v841_v12, 0.0  ;;  %5096 = vmatprep.mubr.msk.f32.mxu0 %vm5584_vm6, %v5578_v0 }
  0x1d   : > { %5244 = vmatpush1.bf16.msra.mxu1 %v5672_v9  ;;  %1247 = vmatprep.mubr.f32.mxu1 %v5578_v0 }
  0x1e   : > { %5246 = vmatprep.subr.bf16.mxu1 %v5682_v17 }
  0x21   : > { %5248 = vmatpush1.bf16.msra.mxu1 %v5687_v22 }
  0x22   : > { %5250 = vmatprep.subr.bf16.mxu1 %v5670_v8 }
  0x24   : > { %4963 = vmatmul.mubr.msk.f32.vlgmr.msra.gmra.mrb[2].mxu1 %vm593_vm0, %v5750_v57 }
  0x25   : > { %5252 = vmatpush1.bf16.msra.mxu1 %v5678_v13  ;;  %1321 = vmatprep.mubr.f32.mxu1 %v5578_v0 }
  0x26   : > { %5254 = vmatprep.subr.bf16.mxu1 %v5684_v18 }
  0x29   : > { %5256 = vmatpush1.bf16.msra.mxu1 %v5697_v24 }
  0x2a   : > { %5270 = vmatprep.subr.bf16.mxu1 %v5668_v4 }
  0xee   : > { %v663_v33 = vpop.f32.mrb[0].mxu0 }
  0xef   : > { %v748_v34 = vpop.f32.mrb[0].mxu1  ;;  %v665_v35 = vpop.f32.mrb[1].mxu0  ;;  %v664_v41 = vadd.f32 %v663_v33, %v5740_v40 }
  0xf0   : > { %v666_v37 = vadd.f32 %v665_v35, %v5730_v31  ;;  %v750_v38 = vpop.f32.mrb[1].mxu1  ;;  %v749_v39 = vadd.f32 %v748_v34, %v5733_v36  ;;  %v5795_v34 = vld [vmem:[%s5792_s15] ss:$0 sm:$0xff] }
  0xf1   : > { %v751_v52 = vadd.f32 %v750_v38, %v5746_v51 }
  0xf2   : > { %779 = vrot.lane.b32.xlu0 %v666_v37, %s5579_s21  ;;  %v753_v42 = vadd.f32 %v749_v39, %v664_v41 }
  0xf3   : > { %v754_v61 = vadd.f32 %v751_v52, %v666_v37 }
  0xf4   : > { %v4955_v43 = vmul.f32 -1.442695, %v753_v42  ;;  %v5807_v42 = vand.u32 127, %v580_v26 }
  0xf5   : > { %v4956_v62 = vmul.f32 -1.442695, %v754_v61  ;;  %v4959_v61 = vld [vmem:[%s6595_s2 + $0x2] sm:$0x3] }
  0xf6   : > { %768 = vrot.lane.b32.xlu0 %v749_v39, %s5579_s21  ;;  %5442 = vpow2.f32 %v4955_v43  ;;  %vm812_vm2 = vcmp.eq.s32.totalorder %v5807_v42, 0  ;;  %vm861_vm3 = vcmp.lt.s32.totalorder %v5807_v42, 1  ;;  %vm1391_vm8 = vcmp.eq.s32.totalorder %v5807_v42, 1 }
  0xf7   : > { %vm1419_vm9 = vcmp.lt.s32.totalorder %v5807_v42, 2  ;;  %vm1947_vm10 = vcmp.eq.s32.totalorder %v5807_v42, 2  ;;  %vm1975_vm11 = vcmp.lt.s32.totalorder %v5807_v42, 3  ;;  %vm2504_vm12 = vcmp.eq.s32.totalorder %v5807_v42, 3 }
  0xf8   : > { %vm2532_vm13 = vcmp.lt.s32.totalorder %v5807_v42, 4  ;;  %vm3062_vm14 = vcmp.eq.s32.totalorder %v5807_v42, 4  ;;  %vm3090_vm15 = vcmp.lt.s32.totalorder %v5807_v42, 5 }
 0x100   : > { %v5443_v44 = vpop.eup %5442 }
 0x101   : > { %v761_v45 = vadd.f32 1.0, %v5443_v44 }
 0x103   : > { %5444 = vrcp.f32 %v761_v45 }
 0x10d   : > { %v5445_v46 = vpop.eup %5444 }
 0x10e   : > { %v789_v16 = vsub.f32 1.0, %v5445_v46  ;;  %v795_v21 = vmul.f32 0.0, %v5445_v46 }
 0x164   : > { %v780_v47 = vpop.permute.xlu0 %779 }
 0x165   : > { %v782_v48 = vmul.f32 %v5445_v46, %v780_v47 }
 0x167   : > { %784 = vrot.lane.b32.xlu1 %v782_v48, %s5579_s21 }
 0x168   : > { %v769_v49 = vpop.permute.xlu0 %768 }
 0x169   : > { %v771_v50 = vmul.f32 %v5445_v46, %v769_v49 }
 0x16b   : > { %773 = vrot.lane.b32.xlu1 %v771_v50, %s5579_s21 }
 0x1d9   : > { %v785_v53 = vpop.permute.xlu1 %784 }
 0x1da   : > { %v787_v54 = vadd.f32 %v785_v53, %v751_v52 }
 0x1dc   : > { %5446 = vtanh.f32 %v787_v54 }
 0x1dd   : > { %v774_v55 = vpop.permute.xlu1 %773 }
 0x1de   : > { %v776_v56 = vadd.f32 %v774_v55, %v664_v41  ;;  %v4958_v41 = vld [vmem:[%s5803_s23 + $0x2] sm:$0x3] }
 0x1df   : > { %v858_v43 = vsub.f32 1.0, %v4958_v41 }
 0x1e0   : > { %5448 = vtanh.f32 %v776_v56 }
 0x1e1   : > { %5450 = vpow2.f32 %v4956_v62  ;;  %v859_v46 = vmul.f32 1e+30, %v858_v43 }
 0x1e6   : > { %v5447_v58 = vpop.eup %5446 }
 0x1e7   : > { %799 = vrot.lane.b32.xlu0 %v5447_v58, %s5580_s22 }
 0x1ea   : > { %v5449_v59 = vpop.eup %5448 }
 0x1eb   : > { %791 = vrot.lane.b32.xlu1 %v5449_v59, %s5580_s22  ;;  %v5451_v63 = vpop.eup %5450 }
 0x1ec   : > { %v762_v1 = vadd.f32 1.0, %v5451_v63  ;;  %v5820_v63 = vsub.s32 7, %v5715_v27 }
 0x1ee   : > { %5452 = vrcp.f32 %v762_v1 }
 0x1ef   : > { %818 = vrot.lane.b32.xlu1 %v4957_v60, %s5581_s27 }
 0x1f8   : > { %v5453_v2 = vpop.eup %5452 }
 0x1f9   : > { %v797_v3 = vsub.f32 1.0, %v5453_v2  ;;  %v803_v6 = vmul.f32 %v5453_v2, %v5701_v25 }
 0x259   : > { %v800_v5 = vpop.permute.xlu0 %799 }
 0x25a   : > { %v802_v7 = vmul.f32 %v800_v5, %v797_v3 }
 0x25c   : > { %v804_v10 = vadd.f32 %v803_v6, %v802_v7  ;;  %v5826_v6 = vsub.s32 2, %v5715_v27 }
 0x25d   : > { %v792_v15 = vpop.permute.xlu1 %791 }
 0x25e   : > { %806 = vrot.lane.b32.xlu0 %v804_v10, %s5581_s27  ;;  %v794_v20 = vmul.f32 %v792_v15, %v789_v16  ;;  %v5830_v10 = vsub.s32 3, %v5715_v27  ;;  %v5838_v16 = vsub.s32 5, %v5715_v27 }
 0x260   : > { %v796_v23 = vadd.f32 %v795_v21, %v794_v20  ;;  %v5842_v21 = vsub.s32 6, %v5715_v27 }
 0x261   : > { %v5781_v29 = vpop.permute.xlu1 %818 }
 0x27d   : > { %843 = vadd.xlane.f32.xlu0 %v842_v14  ;;  %v5834_v14 = vsub.s32 4, %v5715_v27 }
 0x2d0   : > { %v807_v25 = vpop.permute.xlu0 %806 }
 0x2d1   : > { %v5783_v32 = vadd.f32 %v807_v25, %v796_v23  ;;  %v964_v25 = vsub.f32 1.0, %v4959_v61 }
 0x2d3   : > { %v821_v33 = vmul.f32 %v5781_v29, %v5783_v32 }
 0x2d5   : > { %823 = vrot.lane.b32.xlu1 %v821_v33, %s5580_s22 }
 0x30a   : > { %v844_v35 = vpop.xlane.xlu0 %843 }
 0x30b   : > { %v851_v37 = vadd.f32 %v5795_v34, %v844_v35 }
 0x30d   : > { %854 = vperm.xlu0 %5440, %v851_v37  }
 0x347   : > { %v824_v38 = vpop.permute.xlu1 %823 }
 0x348   : > { %v827_v39 = vsel %vm826_vm1, %v824_v38, 0.0 }
 0x349   : > { %828 = vadd.xlane.f32.xlu1 %v827_v39 }
 0x38c   : > { %v855_v44 = vpop.permute.xlu0 %854 }
 0x3d6   : > { %v829_v45 = vpop.xlane.xlu1 %828 }
 0x3d7   : > { %v5810_v47 = vsel %vm812_vm2, %v829_v45, 0.0  ;;  %vm3621_vm2 = vcmp.eq.s32.totalorder %v5807_v42, 5 }
 0x3d8   : > { %v857_v48 = vadd.f32 %v855_v44, %v5810_v47 }
 0x3da   : > { %v860_v49 = vsub.f32 %v857_v48, %v859_v46  ;;  %v564_v48 = vld [vmem:[%s5855_s30] sm:$0xff] }
 0x3dc   : > { %v862_v50 = vsel %vm861_vm3, %v860_v49, -inf  ;;  %v565_v49 = vld [vmem:[%s5855_s30 + $0x8] sm:$0xff]  ;;  %vm3649_vm3 = vcmp.lt.s32.totalorder %v5807_v42, 6 }
 0x3dd   : > { %v864_v52 = vsel %vm863_vm4, %v862_v50, -inf }
 0x3de   : > { %865 = vmax.xlane.f32.xlu1 %v864_v52 }
 0x46b   : > { %v866_v26 = vpop.xlane.xlu1 %865 }
 0x46c   : > { %v867_v53 = vsub.f32 %v862_v50, %v866_v26  ;;  %v5859_v50 = vpack.c.bf16 %v565_v49, %v564_v48  ;;  %v5583_v26 = vmov 0.0|0.0  }
 0x46d   : > { %5229 = vmatprep.subr.bf16.mxu0 %v5583_v26 }
 0x46e   : > { %v868_v54 = vmul.f32 1.442695, %v867_v53  ;;  %5231 = vmatpush3.bf16.msra.mxu0 %v5859_v50  ;;  %v566_v53 = vld [vmem:[%s5855_s30 + $0x10] sm:$0xff] }
 0x46f   : > { %5232 = vmatprep.subr.bf16.mxu0 %v5583_v26 }
 0x470   : > { %5454 = vpow2.f32 %v868_v54  ;;  %v567_v54 = vld [vmem:[%s5855_s30 + $0x18] sm:$0xff] }
 0x47a   : > { %v5455_v55 = vpop.eup %5454 }
 0x47b   : > { %v870_v56 = vsel %vm863_vm4, %v5455_v55, 0.0 }
 0x47c   : > { %871 = vadd.xlane.f32.xlu1 %v870_v56  ;;  %v5868_v56 = vpack.c.bf16 %v567_v54, %v566_v53 }
 0x47e   : > { %5234 = vmatpush3.bf16.msra.mxu0 %v5868_v56 }
 0x47f   : > { %5235 = vmatprep.subr.bf16.mxu0 %v5583_v26 }
 0x509   : > { %v872_v58 = vpop.xlane.xlu1 %871 }
 0x50a   : > { %5456 = vrcp.f32 %v872_v58 }
 0x514   : > { %v5457_v59 = vpop.eup %5456 }
 0x515   : > { %v874_v60 = vmul.f32 %v5457_v59, %v5455_v55 }
 0x517   : > { %v875_v62 = vmul.f32 %v4959_v61, %v874_v60  ;;  %v965_v33 = vmul.f32 %v964_v25, %v874_v60  ;;  %v568_v61 = vld [vmem:[%s5855_s30 + $0x20] sm:$0xff]  ;;  %v571_v25 = vld [vmem:[%s5855_s30 + $0x38] sm:$0xff] }
 0x519   : > { %876 = vxpose.xlu1.b32.start.end [1/1] (short) (narrow) %v875_v62, 8  ;;  %v569_v62 = vld [vmem:[%s5855_s30 + $0x28] sm:$0xff] }
 0x599   : > { %v892_v1 = vpop.trf.xlu1 }
 0x59a   : > { %v960_v2 = vrot.slane %v892_v1, %v5820_v63  ;;  %v911_v3 = vrot.slane %v892_v1, %v5727_v30  ;;  %v918_v5 = vrot.slane %v892_v1, %v5721_v28  ;;  %v925_v7 = vrot.slane %v892_v1, %v5826_v6 }
 0x59b   : > { %v932_v12 = vrot.slane %v892_v1, %v5830_v10  ;;  %v939_v15 = vrot.slane %v892_v1, %v5834_v14  ;;  %v946_v20 = vrot.slane %v892_v1, %v5838_v16  ;;  %v953_v23 = vrot.slane %v892_v1, %v5842_v21 }
 0x59c   : > { %962 = vbcast.lane.b32.xlu1 %v960_v2, 256  ;;  %913 = vbcast.lane.b32.xlu0 %v911_v3, 256  ;;  %v5878_v3 = vpack.c.bf16 %v569_v62, %v568_v61 }
 0x59e   : > { %5237 = vmatpush3.bf16.msra.mxu0 %v5878_v3 }
 0x59f   : > { %5238 = vmatprep.subr.bf16.mxu0 %v5583_v26 }
 0x5a0   : > { %920 = vbcast.lane.b32.xlu0 %v918_v5, 256 }
 0x5a4   : > { %927 = vbcast.lane.b32.xlu0 %v925_v7, 256 }
 0x5a8   : > { %934 = vbcast.lane.b32.xlu0 %v932_v12, 256 }
 0x5ac   : > { %941 = vbcast.lane.b32.xlu0 %v939_v15, 256 }
 0x5b0   : > { %948 = vbcast.lane.b32.xlu0 %v946_v20, 256 }
 0x5b4   : > { %955 = vbcast.lane.b32.xlu0 %v953_v23, 256  ;;  %v570_v23 = vld [vmem:[%s5855_s30 + $0x30] sm:$0xff] }
 0x5d2   : > { %966 = vxpose.xlu0.b32.start.end [1/1] (short) (narrow) %v965_v33, 8 }
 0x60e   : > { %v914_v35 = vpop.permute.xlu0 %913 }
 0x60f   : > { %v1054_v59 = vmul.f32 %v914_v35, %v5783_v32 }
 0x611   : > { %v1063_v7 = vsel %vm1062_vm5, %v1054_v59, 0.0 }
 0x612   : > { %v921_v37 = vpop.permute.xlu0 %920 }
 0x613   : > { %v1055_v55 = vmul.f32 0.0, %v921_v37  ;;  %v5889_v37 = vpack.c.bf16 %v571_v25, %v570_v23 }
 0x615   : > { %v1064_v1 = vsel %vm1062_vm5, %v1055_v55, 0.0  ;;  %5240 = vmatpush3.bf16.msra.mxu0 %v5889_v37 }
 0x616   : > { %v928_v38 = vpop.permute.xlu0 %927  ;;  %v1065_v20 = vadd.f32 %v1064_v1, %v1063_v7  ;;  %5257 = vmatprep.subr.bf16.mxu0 %v5583_v26 }
 0x617   : > { %v1056_v60 = vmul.f32 0.0, %v928_v38 }
 0x619   : > { %v1066_v12 = vsel %vm1062_vm5, %v1056_v60, 0.0 }
 0x61a   : > { %v935_v39 = vpop.permute.xlu0 %934  ;;  %v1067_v38 = vadd.f32 %v1066_v12, %v1065_v20 }
 0x61b   : > { %v1057_v2 = vmul.f32 0.0, %v935_v39 }
 0x61d   : > { %v1068_v33 = vsel %vm1062_vm5, %v1057_v2, 0.0 }
 0x61e   : > { %v942_v41 = vpop.permute.xlu0 %941 }
 0x61f   : > { %v1058_v15 = vmul.f32 0.0, %v942_v41 }
 0x622   : > { %v949_v43 = vpop.permute.xlu0 %948 }
 0x623   : > { %v1059_v35 = vmul.f32 0.0, %v949_v43  ;;  %v963_v43 = vpop.permute.xlu1 %962 }
 0x624   : > { %v1061_v54 = vmul.f32 0.0, %v963_v43 }
 0x625   : > { %v1072_v48 = vsel %vm1062_vm5, %v1059_v35, 0.0 }
 0x626   : > { %v956_v44 = vpop.permute.xlu0 %955  ;;  %v1076_v59 = vsel %vm1062_vm5, %v1061_v54, 0.0 }
 0x627   : > { %v1060_v41 = vmul.f32 0.0, %v956_v44 }
 0x629   : > { %v1074_v53 = vsel %vm1062_vm5, %v1060_v41, 0.0 }
 0x652   : > { %v5845_v45 = vpop.trf.xlu0 }
 0x653   : > { %v1008_v27 = vrot.slane %v5845_v45, %v5721_v28  ;;  %v1001_v46 = vrot.slane %v5845_v45, %v5727_v30  ;;  %v1015_v52 = vrot.slane %v5845_v45, %v5826_v6  ;;  %v1022_v58 = vrot.slane %v5845_v45, %v5830_v10 }
 0x654   : > { %v1029_v5 = vrot.slane %v5845_v45, %v5834_v14  ;;  %v1036_v39 = vrot.slane %v5845_v45, %v5838_v16 }
 0x655   : > { %1010 = vbcast.lane.b32.xlu0 %v1008_v27, 256  ;;  %1003 = vbcast.lane.b32.xlu1 %v1001_v46, 256  ;;  %v1070_v27 = vsel %vm1062_vm5, %v1058_v15, 0.0  ;;  %v1069_v46 = vadd.f32 %v1068_v33, %v1067_v38 }
 0x657   : > { %v1071_v49 = vadd.f32 %v1070_v27, %v1069_v46 }
 0x659   : > { %1017 = vbcast.lane.b32.xlu1 %v1015_v52, 256  ;;  %v1043_v52 = vrot.slane %v5845_v45, %v5842_v21  ;;  %v1073_v44 = vadd.f32 %v1072_v48, %v1071_v49 }
 0x65b   : > { %v1075_v55 = vadd.f32 %v1074_v53, %v1073_v44 }
 0x65d   : > { %1024 = vbcast.lane.b32.xlu1 %v1022_v58, 256  ;;  %v1050_v58 = vrot.slane %v5845_v45, %v5820_v63  ;;  %v1077_v60 = vadd.f32 %v1076_v59, %v1075_v55 }
 0x661   : > { %1031 = vbcast.lane.b32.xlu1 %v1029_v5, 256 }
 0x665   : > { %1038 = vbcast.lane.b32.xlu1 %v1036_v39, 256 }
 0x669   : > { %1045 = vbcast.lane.b32.xlu1 %v1043_v52, 256 }
 0x66d   : > { %1052 = vbcast.lane.b32.xlu1 %v1050_v58, 256 }
 0x671   : > { %1102 = vrot.lane.b32.xlu1 %v1077_v60, %s5580_s22 }
 0x6c7   : > { %v1004_v61 = vpop.permute.xlu1 %1003  ;;  %v1011_v1 = vpop.permute.xlu0 %1010 }
 0x6c8   : > { %v1079_v5 = vmul.f32 0.0, %v1011_v1  ;;  %v1078_v7 = vmul.f32 %v1004_v61, %v5783_v32 }
 0x6ca   : > { %v1087_v20 = vsel %vm1062_vm5, %v1079_v5, 0.0  ;;  %v1086_v23 = vsel %vm1062_vm5, %v1078_v7, 0.0 }
 0x6cb   : > { %v1018_v62 = vpop.permute.xlu1 %1017  ;;  %v1088_v35 = vadd.f32 %v1087_v20, %v1086_v23 }
 0x6cc   : > { %v1080_v12 = vmul.f32 0.0, %v1018_v62 }
 0x6ce   : > { %v1089_v25 = vsel %vm1062_vm5, %v1080_v12, 0.0 }
 0x6cf   : > { %v1025_v2 = vpop.permute.xlu1 %1024  ;;  %v1090_v41 = vadd.f32 %v1089_v25, %v1088_v35 }
 0x6d0   : > { %v1081_v45 = vmul.f32 0.0, %v1025_v2  ;;  %v1249_v2 = vpop.f32.mrb[2].mxu1 }
 0x6d1   : > { %v1251_v5 = vpop.f32.mrb[3].mxu1  ;;  %v1250_v23 = vadd.f32 %v1249_v2, %v5740_v40 }
 0x6d2   : > { %v1091_v39 = vsel %vm1062_vm5, %v1081_v45, 0.0  ;;  %v1252_v7 = vadd.f32 %v1251_v5, %v5730_v31 }
 0x6d3   : > { %v1032_v15 = vpop.permute.xlu1 %1031  ;;  %v1092_v48 = vadd.f32 %v1091_v39, %v1090_v41 }
 0x6d4   : > { %v1082_v33 = vmul.f32 0.0, %v1032_v15  ;;  %1354 = vrot.lane.b32.xlu1 %v1252_v7, %s5579_s21 }
 0x6d6   : > { %v1093_v46 = vsel %vm1062_vm5, %v1082_v33, 0.0 }
 0x6d7   : > { %v1039_v38 = vpop.permute.xlu1 %1038  ;;  %v1094_v53 = vadd.f32 %v1093_v46, %v1092_v48  ;;  %v5940_v48 = vld [vmem:[%s5693_s29 + $0x4] sm:$0x3] }
 0x6d8   : > { %v1083_v27 = vmul.f32 0.0, %v1039_v38 }
 0x6da   : > { %v1095_v49 = vsel %vm1062_vm5, %v1083_v27, 0.0 }
 0x6db   : > { %v1046_v43 = vpop.permute.xlu1 %1045  ;;  %v1096_v54 = vadd.f32 %v1095_v49, %v1094_v53 }
 0x6dc   : > { %v1084_v52 = vmul.f32 0.0, %v1046_v43 }
 0x6de   : > { %v1097_v44 = vsel %vm1062_vm5, %v1084_v52, 0.0 }
 0x6df   : > { %v1053_v55 = vpop.permute.xlu1 %1052  ;;  %v1098_v59 = vadd.f32 %v1097_v44, %v1096_v54 }
 0x6e0   : > { %v1085_v58 = vmul.f32 0.0, %v1053_v55  ;;  %v1405_v55 = vmul.f32 %v5775_v11, %v5940_v48 }
 0x6e2   : > { %v1099_v60 = vsel %vm1062_vm5, %v1085_v58, 0.0  ;;  %v1406_v58 = vsel %vm826_vm1, %v1405_v55, 0.0 }
 0x6e3   : > { %v1100_v61 = vadd.f32 %v1099_v60, %v1098_v59  ;;  %v1103_v62 = vpop.permute.xlu1 %1102 }
 0x6e5   : > { %v1105_v1 = vsel %vm593_vm0, %v1103_v62, %v1100_v61 }
 0x6e6   : > { %5097 = vmatmul.mubr.msk.f32.vlgmr.msra.gmra.mrb[2].mxu0 %vm1106_vm7, %v1105_v1 }
 0x6e7   : > { %5259 = vmatpush3.bf16.msra.mxu0 %v5859_v50  ;;  %5115 = vmatprep.mubr.msk.f32.mxu0 %vm5584_vm6, %v5578_v0 }
 0x6e8   : > { %5260 = vmatprep.subr.bf16.mxu0 %v5583_v26 }
 0x6eb   : > { %5262 = vmatpush3.bf16.msra.mxu0 %v5868_v56 }
 0x6ec   : > { %5263 = vmatprep.subr.bf16.mxu0 %v5583_v26 }
 0x6ef   : > { %5265 = vmatpush3.bf16.msra.mxu0 %v5878_v3 }
 0x6f0   : > { %5266 = vmatprep.subr.bf16.mxu0 %v5583_v26 }
 0x6f3   : > { %5268 = vmatpush3.bf16.msra.mxu0 %v5889_v37 }
 0x6f4   : > { %5285 = vmatprep.subr.bf16.mxu0 %v5583_v26 }
 0x746   : > { %v1355_v27 = vpop.permute.xlu1 %1354 }
 0x7b9   : > { %v1176_v12 = vpop.f32.mrb[2].mxu0 }
 0x7ba   : > { %v5098_v15 = vpop.f32.mrb[3].mxu0  ;;  %4964 = vmatmul.mubr.msk.f32.vlgmr.msra.gmra.mrb[4].mxu1 %vm593_vm0, %v1176_v12 }
 0x7bb   : > { %5272 = vmatpush1.bf16.msra.mxu1 %v5672_v9  ;;  %1802 = vmatprep.mubr.f32.mxu1 %v5578_v0 }
 0x7bc   : > { %5274 = vmatprep.subr.bf16.mxu1 %v5682_v17 }
 0x7bf   : > { %5276 = vmatpush1.bf16.msra.mxu1 %v5687_v22 }
 0x7c0   : > { %5278 = vmatprep.subr.bf16.mxu1 %v5670_v8 }
 0x7c2   : > { %4970 = vmatmul.mubr.msk.f32.vlgmr.msra.gmra.mrb[6].mxu1 %vm593_vm0, %v5940_v48 }
 0x7c3   : > { %5280 = vmatpush1.bf16.msra.mxu1 %v5678_v13  ;;  %1876 = vmatprep.mubr.f32.mxu1 %v5578_v0 }
 0x7c4   : > { %5282 = vmatprep.subr.bf16.mxu1 %v5684_v18 }
 0x7c7   : > { %5284 = vmatpush1.bf16.msra.mxu1 %v5697_v24 }
 0x7c8   : > { %5298 = vmatprep.subr.bf16.mxu1 %v5668_v4 }
 0x88d   : > { %v1323_v20 = vpop.f32.mrb[4].mxu1 }
 0x88e   : > { %v1324_v45 = vadd.f32 %v1323_v20, %v5733_v36  ;;  %v1325_v25 = vpop.f32.mrb[5].mxu1 }
 0x88f   : > { %v1326_v52 = vadd.f32 %v1325_v25, %v5746_v51 }
 0x890   : > { %v1328_v33 = vadd.f32 %v1324_v45, %v1250_v23  ;;  %1343 = vrot.lane.b32.xlu1 %v1324_v45, %s5579_s21 }
 0x891   : > { %v1329_v61 = vadd.f32 %v1326_v52, %v1252_v7 }
 0x892   : > { %v4965_v35 = vmul.f32 -1.442695, %v1328_v33 }
 0x893   : > { %v4966_v62 = vmul.f32 -1.442695, %v1329_v61 }
 0x894   : > { %5458 = vpow2.f32 %v4965_v35 }
 0x89e   : > { %v5459_v38 = vpop.eup %5458 }
 0x89f   : > { %v1336_v39 = vadd.f32 1.0, %v5459_v38 }
 0x8a1   : > { %5460 = vrcp.f32 %v1336_v39 }
 0x8ab   : > { %v5461_v41 = vpop.eup %5460 }
 0x8ac   : > { %v1357_v46 = vmul.f32 %v5461_v41, %v1355_v27  ;;  %v1364_v39 = vsub.f32 1.0, %v5461_v41 }
 0x8ae   : > { %1359 = vrot.lane.b32.xlu1 %v1357_v46, %s5579_s21 }
 0x902   : > { %v1344_v43 = vpop.permute.xlu1 %1343 }
 0x903   : > { %v1346_v49 = vmul.f32 %v5461_v41, %v1344_v43 }
 0x905   : > { %1348 = vrot.lane.b32.xlu1 %v1346_v49, %s5579_s21 }
 0x920   : > { %v1360_v53 = vpop.permute.xlu1 %1359 }
 0x921   : > { %v1362_v44 = vadd.f32 %v1360_v53, %v1326_v52 }
 0x923   : > { %5462 = vtanh.f32 %v1362_v44 }
 0x92d   : > { %v5463_v54 = vpop.eup %5462 }
 0x92e   : > { %1377 = vrot.lane.b32.xlu0 %v5463_v54, %s5580_s22  ;;  %v4967_v54 = vld [vmem:[%s5803_s23 + $0x4] sm:$0x3] }
 0x92f   : > { %v1416_v55 = vsub.f32 1.0, %v4967_v54 }
 0x932   : > { %1370 = vrot.lane.b32.xlu0 %v1176_v12, %s5581_s27 }
 0x951   : > { %1407 = vadd.xlane.f32.xlu0 %v1406_v58 }
 0x977   : > { %v1349_v59 = vpop.permute.xlu1 %1348 }
 0x978   : > { %v1351_v60 = vadd.f32 %v1349_v59, %v1250_v23  ;;  %v1417_v59 = vmul.f32 1e+30, %v1416_v55 }
 0x97a   : > { %5464 = vtanh.f32 %v1351_v60 }
 0x97b   : > { %5466 = vpow2.f32 %v4966_v62 }
 0x984   : > { %v5465_v1 = vpop.eup %5464 }
 0x985   : > { %1366 = vrot.lane.b32.xlu1 %v5465_v1, %s5580_s22  ;;  %v5467_v2 = vpop.eup %5466 }
 0x986   : > { %v1337_v5 = vadd.f32 1.0, %v5467_v2 }
 0x988   : > { %5468 = vrcp.f32 %v1337_v5 }
 0x992   : > { %v5469_v15 = vpop.eup %5468 }
 0x993   : > { %v1375_v12 = vsub.f32 1.0, %v5469_v15  ;;  %v1381_v45 = vmul.f32 %v5469_v15, %v5750_v57 }
 0x9a0   : > { %v1378_v20 = vpop.permute.xlu0 %1377 }
 0x9a1   : > { %v1380_v25 = vmul.f32 %v1378_v20, %v1375_v12 }
 0x9a3   : > { %v1382_v33 = vadd.f32 %v1381_v45, %v1380_v25 }
 0x9a4   : > { %v1371_v23 = vpop.permute.xlu0 %1370 }
 0x9a5   : > { %1384 = vrot.lane.b32.xlu1 %v1382_v33, %s5581_s27  ;;  %v1373_v46 = vmul.f32 %v5461_v41, %v1371_v23  ;;  %v4968_v23 = vld [vmem:[%s6595_s2 + $0x4] sm:$0x3] }
 0x9de   : > { %v1408_v7 = vpop.xlane.xlu0 %1407 }
 0x9df   : > { %v1409_v35 = vadd.f32 %v5795_v34, %v1408_v7 }
 0x9e1   : > { %1412 = vperm.xlu0 %5440, %v1409_v35  }
 0x9f7   : > { %v1367_v38 = vpop.permute.xlu1 %1366 }
 0x9f8   : > { %v1369_v27 = vmul.f32 %v1367_v38, %v1364_v39 }
 0x9fa   : > { %v1374_v43 = vadd.f32 %v1373_v46, %v1369_v27 }
 0xa17   : > { %v1385_v49 = vpop.permute.xlu1 %1384 }
 0xa18   : > { %v5960_v52 = vadd.f32 %v1385_v49, %v1374_v43 }
 0xa1a   : > { %v1392_v57 = vmul.f32 %v5960_v52, %v5781_v29 }
 0xa1c   : > { %1394 = vrot.lane.b32.xlu1 %v1392_v57, %s5580_s22 }
 0xa60   : > { %v1413_v41 = vpop.permute.xlu0 %1412 }
 0xa8e   : > { %v1395_v53 = vpop.permute.xlu1 %1394 }
 0xa8f   : > { %v1397_v44 = vsel %vm826_vm1, %v1395_v53, 0.0  ;;  %v1521_v53 = vsub.f32 1.0, %v4968_v23 }
 0xa90   : > { %1398 = vadd.xlane.f32.xlu1 %v1397_v44 }
 0xb1d   : > { %v1399_v58 = vpop.xlane.xlu1 %1398 }
 0xb1e   : > { %v5969_v60 = vsel %vm1391_vm8, %v1399_v58, %v5810_v47  ;;  %vm4209_vm8 = vcmp.lt.s32.totalorder %v5807_v42, 7 }
 0xb1f   : > { %v1415_v61 = vadd.f32 %v1413_v41, %v5969_v60 }
 0xb21   : > { %v1418_v62 = vsub.f32 %v1415_v61, %v1417_v59 }
 0xb23   : > { %v1420_v1 = vsel %vm1419_vm9, %v1418_v62, -inf }
 0xb24   : > { %v1421_v2 = vsel %vm863_vm4, %v1420_v1, -inf }
 0xb25   : > { %1422 = vmax.xlane.f32.xlu1 %v1421_v2 }
 0xbb2   : > { %v1423_v5 = vpop.xlane.xlu1 %1422 }
 0xbb3   : > { %v1424_v15 = vsub.f32 %v1420_v1, %v1423_v5 }
 0xbb5   : > { %v1425_v12 = vmul.f32 1.442695, %v1424_v15 }
 0xbb7   : > { %5470 = vpow2.f32 %v1425_v12 }
 0xbc1   : > { %v5471_v20 = vpop.eup %5470 }
 0xbc2   : > { %v1427_v45 = vsel %vm863_vm4, %v5471_v20, 0.0 }
 0xbc3   : > { %1428 = vadd.xlane.f32.xlu1 %v1427_v45 }
 0xc50   : > { %v1429_v25 = vpop.xlane.xlu1 %1428 }
 0xc51   : > { %5472 = vrcp.f32 %v1429_v25 }
 0xc5b   : > { %v5473_v47 = vpop.eup %5472 }
 0xc5c   : > { %v1431_v33 = vmul.f32 %v5473_v47, %v5471_v20 }
 0xc5e   : > { %v1432_v7 = vmul.f32 %v4968_v23, %v1431_v33  ;;  %v1522_v44 = vmul.f32 %v1521_v53, %v1431_v33 }
 0xc60   : > { %1433 = vxpose.xlu1.b32.start.end [1/1] (short) (narrow) %v1432_v7, 8 }
 0xc7e   : > { %5441 = vset.pattern.permute.xlu1 %v5582_v19 }
 0xce0   : > { %v1449_v35 = vpop.trf.xlu1 }
 0xce1   : > { %v1468_v38 = vrot.slane %v1449_v35, %v5727_v30  ;;  %v1475_v39 = vrot.slane %v1449_v35, %v5721_v28  ;;  %v1482_v27 = vrot.slane %v1449_v35, %v5826_v6  ;;  %v1489_v46 = vrot.slane %v1449_v35, %v5830_v10 }
 0xce2   : > { %v1496_v43 = vrot.slane %v1449_v35, %v5834_v14  ;;  %v1503_v49 = vrot.slane %v1449_v35, %v5838_v16  ;;  %v1510_v19 = vrot.slane %v1449_v35, %v5842_v21  ;;  %v1517_v57 = vrot.slane %v1449_v35, %v5820_v63 }
 0xce3   : > { %1470 = vbcast.lane.b32.xlu0 %v1468_v38, 256 }
 0xce7   : > { %1477 = vbcast.lane.b32.xlu0 %v1475_v39, 256 }
 0xceb   : > { %1484 = vbcast.lane.b32.xlu0 %v1482_v27, 256 }
 0xcef   : > { %1491 = vbcast.lane.b32.xlu0 %v1489_v46, 256 }
 0xcf3   : > { %1498 = vbcast.lane.b32.xlu0 %v1496_v43, 256 }
 0xcf7   : > { %1505 = vbcast.lane.b32.xlu0 %v1503_v49, 256 }
 0xcfb   : > { %1512 = vbcast.lane.b32.xlu0 %v1510_v19, 256 }
 0xcff   : > { %1519 = vbcast.lane.b32.xlu0 %v1517_v57, 256 }
 0xd1d   : > { %1523 = vxpose.xlu0.b32.start.end [1/1] (short) (narrow) %v1522_v44, 8 }
 0xd55   : > { %v1471_v54 = vpop.permute.xlu0 %1470 }
 0xd56   : > { %v1611_v1 = vmul.f32 %v1471_v54, %v5783_v32 }
 0xd58   : > { %v1619_v20 = vsel %vm1062_vm5, %v1611_v1, 0.0 }
 0xd59   : > { %v1478_v55 = vpop.permute.xlu0 %1477 }
 0xd5a   : > { %v1612_v62 = vmul.f32 %v1478_v55, %v5960_v52 }
 0xd5c   : > { %v1620_v15 = vsel %vm1062_vm5, %v1612_v62, 0.0 }
 0xd5d   : > { %v1485_v58 = vpop.permute.xlu0 %1484  ;;  %v1621_v47 = vadd.f32 %v1620_v15, %v1619_v20 }
 0xd5e   : > { %v1613_v2 = vmul.f32 0.0, %v1485_v58 }
 0xd60   : > { %v1622_v45 = vsel %vm1062_vm5, %v1613_v2, 0.0 }
 0xd61   : > { %v1492_v59 = vpop.permute.xlu0 %1491  ;;  %v1623_v7 = vadd.f32 %v1622_v45, %v1621_v47 }
 0xd62   : > { %v1614_v12 = vmul.f32 0.0, %v1492_v59 }
 0xd64   : > { %v1624_v33 = vsel %vm1062_vm5, %v1614_v12, 0.0 }
 0xd65   : > { %v1499_v41 = vpop.permute.xlu0 %1498  ;;  %v1625_v27 = vadd.f32 %v1624_v33, %v1623_v7 }
 0xd66   : > { %v1615_v25 = vmul.f32 0.0, %v1499_v41 }
 0xd68   : > { %v1626_v38 = vsel %vm1062_vm5, %v1615_v25, 0.0 }
 0xd69   : > { %v1506_v61 = vpop.permute.xlu0 %1505  ;;  %v1627_v49 = vadd.f32 %v1626_v38, %v1625_v27 }
 0xd6a   : > { %v1616_v23 = vmul.f32 0.0, %v1506_v61 }
 0xd6c   : > { %v1628_v46 = vsel %vm1062_vm5, %v1616_v23, 0.0 }
 0xd6d   : > { %v1513_v5 = vpop.permute.xlu0 %1512  ;;  %v1629_v53 = vadd.f32 %v1628_v46, %v1627_v49 }
 0xd6e   : > { %v1617_v39 = vmul.f32 0.0, %v1513_v5 }
 0xd70   : > { %v1630_v19 = vsel %vm1062_vm5, %v1617_v39, 0.0 }
 0xd71   : > { %v1520_v35 = vpop.permute.xlu0 %1519  ;;  %v1631_v58 = vadd.f32 %v1630_v19, %v1629_v53 }
 0xd72   : > { %v1618_v43 = vmul.f32 0.0, %v1520_v35 }
 0xd74   : > { %v1632_v55 = vsel %vm1062_vm5, %v1618_v43, 0.0 }
 0xd75   : > { %v1633_v59 = vadd.f32 %v1632_v55, %v1631_v58 }
 0xd9d   : > { %v1539_v57 = vpop.trf.xlu0 }
 0xd9e   : > { %v1565_v44 = vrot.slane %v1539_v57, %v5721_v28  ;;  %v1558_v54 = vrot.slane %v1539_v57, %v5727_v30  ;;  %v1572_v41 = vrot.slane %v1539_v57, %v5826_v6  ;;  %v1579_v61 = vrot.slane %v1539_v57, %v5830_v10 }
 0xd9f   : > { %v1586_v62 = vrot.slane %v1539_v57, %v5834_v14  ;;  %v1593_v1 = vrot.slane %v1539_v57, %v5838_v16  ;;  %v1600_v2 = vrot.slane %v1539_v57, %v5842_v21  ;;  %v1607_v5 = vrot.slane %v1539_v57, %v5820_v63 }
 0xda0   : > { %1567 = vbcast.lane.b32.xlu0 %v1565_v44, 256  ;;  %1560 = vbcast.lane.b32.xlu1 %v1558_v54, 256 }
 0xda4   : > { %1658 = vrot.lane.b32.xlu0 %v1633_v59, %s5580_s22  ;;  %1574 = vbcast.lane.b32.xlu1 %v1572_v41, 256 }
 0xda8   : > { %1581 = vbcast.lane.b32.xlu1 %v1579_v61, 256 }
 0xdac   : > { %1588 = vbcast.lane.b32.xlu1 %v1586_v62, 256 }
 0xdb0   : > { %1595 = vbcast.lane.b32.xlu1 %v1593_v1, 256 }
 0xdb4   : > { %1602 = vbcast.lane.b32.xlu1 %v1600_v2, 256 }
 0xdb8   : > { %1609 = vbcast.lane.b32.xlu1 %v1607_v5, 256 }
 0xe12   : > { %v1561_v15 = vpop.permute.xlu1 %1560  ;;  %v1568_v20 = vpop.permute.xlu0 %1567 }
 0xe13   : > { %v1635_v25 = vmul.f32 %v1568_v20, %v5960_v52  ;;  %v1634_v47 = vmul.f32 %v1561_v15, %v5783_v32 }
 0xe15   : > { %v1643_v7 = vsel %vm1062_vm5, %v1635_v25, 0.0  ;;  %v1642_v35 = vsel %vm1062_vm5, %v1634_v47, 0.0 }
 0xe16   : > { %v1575_v12 = vpop.permute.xlu1 %1574  ;;  %v1644_v46 = vadd.f32 %v1643_v7, %v1642_v35 }
 0xe17   : > { %v1636_v33 = vmul.f32 0.0, %v1575_v12  ;;  %v1659_v12 = vpop.permute.xlu0 %1658 }
 0xe19   : > { %v1645_v39 = vsel %vm1062_vm5, %v1636_v33, 0.0 }
 0xe1a   : > { %v1582_v45 = vpop.permute.xlu1 %1581  ;;  %v1646_v57 = vadd.f32 %v1645_v39, %v1644_v46 }
 0xe1b   : > { %v1637_v38 = vmul.f32 0.0, %v1582_v45  ;;  %v1804_v45 = vpop.f32.mrb[6].mxu1 }
 0xe1c   : > { %v1806_v25 = vpop.f32.mrb[7].mxu1  ;;  %v1805_v35 = vadd.f32 %v1804_v45, %v5740_v40 }
 0xe1d   : > { %v1647_v49 = vsel %vm1062_vm5, %v1637_v38, 0.0  ;;  %v1807_v47 = vadd.f32 %v1806_v25, %v5730_v31 }
 0xe1e   : > { %v1589_v23 = vpop.permute.xlu1 %1588  ;;  %v1648_v44 = vadd.f32 %v1647_v49, %v1646_v57 }
 0xe1f   : > { %v1638_v27 = vmul.f32 0.0, %v1589_v23  ;;  %1909 = vrot.lane.b32.xlu1 %v1807_v47, %s5579_s21 }
 0xe21   : > { %v1649_v53 = vsel %vm1062_vm5, %v1638_v27, 0.0 }
 0xe22   : > { %v1596_v43 = vpop.permute.xlu1 %1595  ;;  %v1650_v59 = vadd.f32 %v1649_v53, %v1648_v44 }
 0xe23   : > { %v1639_v19 = vmul.f32 0.0, %v1596_v43 }
 0xe25   : > { %v1651_v55 = vsel %vm1062_vm5, %v1639_v19, 0.0 }
 0xe26   : > { %v1603_v54 = vpop.permute.xlu1 %1602  ;;  %v1652_v61 = vadd.f32 %v1651_v55, %v1650_v59 }
 0xe27   : > { %v1640_v58 = vmul.f32 0.0, %v1603_v54 }
 0xe29   : > { %v1653_v41 = vsel %vm1062_vm5, %v1640_v58, 0.0 }
 0xe2a   : > { %v1610_v62 = vpop.permute.xlu1 %1609  ;;  %v1654_v2 = vadd.f32 %v1653_v41, %v1652_v61 }
 0xe2b   : > { %v1641_v1 = vmul.f32 0.0, %v1610_v62 }
 0xe2d   : > { %v1655_v5 = vsel %vm1062_vm5, %v1641_v1, 0.0  ;;  %v6045_v1 = vld [vmem:[%s5693_s29 + $0x6] sm:$0x3] }
 0xe2e   : > { %v1656_v15 = vadd.f32 %v1655_v5, %v1654_v2  ;;  %v1961_v5 = vmul.f32 %v5775_v11, %v6045_v1 }
 0xe30   : > { %v1661_v20 = vsel %vm593_vm0, %v1659_v12, %v1656_v15  ;;  %v1962_v15 = vsel %vm826_vm1, %v1961_v5, 0.0 }
 0xe31   : > { %5116 = vmatmul.mubr.msk.f32.vlgmr.msra.gmra.mrb[4].mxu0 %vm1106_vm7, %v1661_v20 }
 0xe32   : > { %5287 = vmatpush3.bf16.msra.mxu0 %v5859_v50  ;;  %5134 = vmatprep.mubr.msk.f32.mxu0 %vm5584_vm6, %v5578_v0 }
 0xe33   : > { %5288 = vmatprep.subr.bf16.mxu0 %v5583_v26 }
 0xe36   : > { %5290 = vmatpush3.bf16.msra.mxu0 %v5868_v56 }
 0xe37   : > { %5291 = vmatprep.subr.bf16.mxu0 %v5583_v26 }
 0xe3a   : > { %5293 = vmatpush3.bf16.msra.mxu0 %v5878_v3 }
 0xe3b   : > { %5294 = vmatprep.subr.bf16.mxu0 %v5583_v26 }
 0xe3e   : > { %5296 = vmatpush3.bf16.msra.mxu0 %v5889_v37 }
 0xe3f   : > { %5313 = vmatprep.subr.bf16.mxu0 %v5583_v26 }
 0xe91   : > { %v1910_v19 = vpop.permute.xlu1 %1909 }
 0xf04   : > { %v1731_v33 = vpop.f32.mrb[4].mxu0 }
 0xf05   : > { %v5117_v23 = vpop.f32.mrb[5].mxu0  ;;  %4971 = vmatmul.mubr.msk.f32.vlgmr.msra.gmra.mrb[8].mxu1 %vm593_vm0, %v1731_v33 }
 0xf06   : > { %5300 = vmatpush1.bf16.msra.mxu1 %v5672_v9  ;;  %2358 = vmatprep.mubr.f32.mxu1 %v5578_v0 }
 0xf07   : > { %5302 = vmatprep.subr.bf16.mxu1 %v5682_v17 }
 0xf0a   : > { %5304 = vmatpush1.bf16.msra.mxu1 %v5687_v22 }
 0xf0b   : > { %5306 = vmatprep.subr.bf16.mxu1 %v5670_v8 }
 0xf0d   : > { %4977 = vmatmul.mubr.msk.f32.vlgmr.msra.gmra.mrb[10].mxu1 %vm593_vm0, %v6045_v1 }
 0xf0e   : > { %5308 = vmatpush1.bf16.msra.mxu1 %v5678_v13  ;;  %2432 = vmatprep.mubr.f32.mxu1 %v5578_v0 }
 0xf0f   : > { %5310 = vmatprep.subr.bf16.mxu1 %v5684_v18 }
 0xf12   : > { %5312 = vmatpush1.bf16.msra.mxu1 %v5697_v24 }
 0xf13   : > { %5326 = vmatprep.subr.bf16.mxu1 %v5668_v4 }
 0xfd8   : > { %v1878_v7 = vpop.f32.mrb[8].mxu1 }
 0xfd9   : > { %v1879_v38 = vadd.f32 %v1878_v7, %v5733_v36  ;;  %v1880_v39 = vpop.f32.mrb[9].mxu1 }
 0xfda   : > { %v1881_v55 = vadd.f32 %v1880_v39, %v5746_v51 }
 0xfdb   : > { %v1883_v27 = vadd.f32 %v1879_v38, %v1805_v35  ;;  %1898 = vrot.lane.b32.xlu0 %v1879_v38, %s5579_s21 }
 0xfdc   : > { %v1884_v2 = vadd.f32 %v1881_v55, %v1807_v47 }
 0xfdd   : > { %v4972_v46 = vmul.f32 -1.442695, %v1883_v27 }
 0xfde   : > { %v4973_v12 = vmul.f32 -1.442695, %v1884_v2 }
 0xfdf   : > { %5474 = vpow2.f32 %v4972_v46 }
 0xfe9   : > { %v5475_v43 = vpop.eup %5474 }
 0xfea   : > { %v1891_v49 = vadd.f32 1.0, %v5475_v43 }
 0xfec   : > { %5476 = vrcp.f32 %v1891_v49 }
 0xff6   : > { %v5477_v57 = vpop.eup %5476 }
 0xff7   : > { %v1912_v53 = vmul.f32 %v5477_v57, %v1910_v19  ;;  %v1919_v27 = vsub.f32 1.0, %v5477_v57 }
 0xff9   : > { %1914 = vrot.lane.b32.xlu1 %v1912_v53, %s5579_s21 }
0x104d   : > { %v1899_v44 = vpop.permute.xlu0 %1898 }
0x104e   : > { %v1901_v54 = vmul.f32 %v5477_v57, %v1899_v44 }
0x1050   : > { %1903 = vrot.lane.b32.xlu0 %v1901_v54, %s5579_s21 }
0x106b   : > { %v1915_v58 = vpop.permute.xlu1 %1914 }
0x106c   : > { %v1917_v59 = vadd.f32 %v1915_v58, %v1881_v55 }
0x106e   : > { %5478 = vtanh.f32 %v1917_v59  ;;  %v4974_v59 = vld [vmem:[%s5803_s23 + $0x6] sm:$0x3] }
0x1078   : > { %v5479_v41 = vpop.eup %5478 }
0x1079   : > { %1932 = vrot.lane.b32.xlu1 %v5479_v41, %s5580_s22  ;;  %v1972_v41 = vsub.f32 1.0, %v4974_v59 }
0x107d   : > { %1925 = vrot.lane.b32.xlu1 %v1731_v33, %s5581_s27 }
0x10a1   : > { %1963 = vadd.xlane.f32.xlu1 %v1962_v15 }
0x10c2   : > { %v1904_v61 = vpop.permute.xlu0 %1903 }
0x10c3   : > { %v1906_v62 = vadd.f32 %v1904_v61, %v1805_v35 }
0x10c5   : > { %5480 = vtanh.f32 %v1906_v62 }
0x10c6   : > { %5482 = vpow2.f32 %v4973_v12 }
0x10cf   : > { %v5481_v11 = vpop.eup %5480 }
0x10d0   : > { %1921 = vrot.lane.b32.xlu0 %v5481_v11, %s5580_s22  ;;  %v5483_v20 = vpop.eup %5482 }
0x10d1   : > { %v1892_v45 = vadd.f32 1.0, %v5483_v20 }
0x10d3   : > { %5484 = vrcp.f32 %v1892_v45 }
0x10dd   : > { %v5485_v25 = vpop.eup %5484 }
0x10de   : > { %v1930_v47 = vsub.f32 1.0, %v5485_v25  ;;  %v1936_v23 = vmul.f32 %v5485_v25, %v5940_v48 }
0x10eb   : > { %v1933_v33 = vpop.permute.xlu1 %1932 }
0x10ec   : > { %v1935_v7 = vmul.f32 %v1933_v33, %v1930_v47 }
0x10ee   : > { %v1937_v35 = vadd.f32 %v1936_v23, %v1935_v7  ;;  %v4975_v7 = vld [vmem:[%s6595_s2 + $0x6] sm:$0x3] }
0x10ef   : > { %v1926_v38 = vpop.permute.xlu1 %1925 }
0x10f0   : > { %1939 = vrot.lane.b32.xlu0 %v1937_v35, %s5581_s27  ;;  %v1928_v19 = vmul.f32 %v5477_v57, %v1926_v38  ;;  %v1973_v57 = vmul.f32 1e+30, %v1972_v41 }
0x112e   : > { %v1964_v46 = vpop.xlane.xlu1 %1963 }
0x112f   : > { %v1965_v43 = vadd.f32 %v5795_v34, %v1964_v46 }
0x1131   : > { %1968 = vperm.xlu1 %5441, %v1965_v43  }
0x1142   : > { %v1922_v39 = vpop.permute.xlu0 %1921 }
0x1143   : > { %v1924_v49 = vmul.f32 %v1922_v39, %v1919_v27 }
0x1145   : > { %v1929_v53 = vadd.f32 %v1928_v19, %v1924_v49 }
0x1162   : > { %v1940_v44 = vpop.permute.xlu0 %1939 }
0x1163   : > { %v6061_v54 = vadd.f32 %v1940_v44, %v1929_v53 }
0x1165   : > { %v1948_v48 = vmul.f32 %v6061_v54, %v5781_v29 }
0x1167   : > { %1950 = vrot.lane.b32.xlu0 %v1948_v48, %s5580_s22  ;;  %v2077_v48 = vsub.f32 1.0, %v4975_v7 }
0x11b0   : > { %v1969_v34 = vpop.permute.xlu1 %1968 }
0x11d9   : > { %v1951_v55 = vpop.permute.xlu0 %1950 }
0x11da   : > { %v1953_v58 = vsel %vm826_vm1, %v1951_v55, 0.0 }
0x11db   : > { %1954 = vadd.xlane.f32.xlu0 %v1953_v58 }
0x1268   : > { %v1955_v61 = vpop.xlane.xlu0 %1954 }
0x1269   : > { %v6070_v62 = vsel %vm1947_vm10, %v1955_v61, %v5969_v60 }
0x126a   : > { %v1971_v2 = vadd.f32 %v1969_v34, %v6070_v62 }
0x126c   : > { %v1974_v5 = vsub.f32 %v1971_v2, %v1973_v57 }
0x126e   : > { %v1976_v15 = vsel %vm1975_vm11, %v1974_v5, -inf }
0x126f   : > { %v1977_v12 = vsel %vm863_vm4, %v1976_v15, -inf }
0x1270   : > { %1978 = vmax.xlane.f32.xlu0 %v1977_v12 }
0x12fd   : > { %v1979_v11 = vpop.xlane.xlu0 %1978 }
0x12fe   : > { %v1980_v20 = vsub.f32 %v1976_v15, %v1979_v11 }
0x1300   : > { %v1981_v45 = vmul.f32 1.442695, %v1980_v20 }
0x1302   : > { %5486 = vpow2.f32 %v1981_v45 }
0x130c   : > { %v5487_v25 = vpop.eup %5486 }
0x130d   : > { %v1983_v47 = vsel %vm863_vm4, %v5487_v25, 0.0 }
0x130e   : > { %1984 = vadd.xlane.f32.xlu0 %v1983_v47 }
0x139b   : > { %v1985_v33 = vpop.xlane.xlu0 %1984 }
0x139c   : > { %5488 = vrcp.f32 %v1985_v33 }
0x13a6   : > { %v5489_v60 = vpop.eup %5488 }
0x13a7   : > { %v1987_v23 = vmul.f32 %v5489_v60, %v5487_v25 }
0x13a9   : > { %v1988_v35 = vmul.f32 %v4975_v7, %v1987_v23  ;;  %v2078_v55 = vmul.f32 %v2077_v48, %v1987_v23 }
0x13ab   : > { %1989 = vxpose.xlu0.b32.start.end [1/1] (short) (narrow) %v1988_v35, 8 }
0x142b   : > { %v2005_v38 = vpop.trf.xlu0 }
0x142c   : > { %v2024_v39 = vrot.slane %v2005_v38, %v5727_v30  ;;  %v2031_v27 = vrot.slane %v2005_v38, %v5721_v28  ;;  %v2038_v46 = vrot.slane %v2005_v38, %v5826_v6  ;;  %v2045_v43 = vrot.slane %v2005_v38, %v5830_v10 }
0x142d   : > { %v2052_v49 = vrot.slane %v2005_v38, %v5834_v14  ;;  %v2059_v19 = vrot.slane %v2005_v38, %v5838_v16  ;;  %v2066_v53 = vrot.slane %v2005_v38, %v5842_v21  ;;  %v2073_v44 = vrot.slane %v2005_v38, %v5820_v63 }
0x142e   : > { %2026 = vbcast.lane.b32.xlu1 %v2024_v39, 256 }
0x1432   : > { %2033 = vbcast.lane.b32.xlu1 %v2031_v27, 256 }
0x1436   : > { %2040 = vbcast.lane.b32.xlu1 %v2038_v46, 256 }
0x143a   : > { %2047 = vbcast.lane.b32.xlu1 %v2045_v43, 256 }
0x143e   : > { %2054 = vbcast.lane.b32.xlu1 %v2052_v49, 256 }
0x1442   : > { %2061 = vbcast.lane.b32.xlu1 %v2059_v19, 256 }
0x1446   : > { %2068 = vbcast.lane.b32.xlu1 %v2066_v53, 256 }
0x144a   : > { %2075 = vbcast.lane.b32.xlu1 %v2073_v44, 256 }
0x1473   : > { %2079 = vxpose.xlu1.b32.start.end [1/1] (short) (narrow) %v2078_v55, 8 }
0x14a0   : > { %v2027_v58 = vpop.permute.xlu1 %2026 }
0x14a1   : > { %v2167_v5 = vmul.f32 %v2027_v58, %v5783_v32 }
0x14a3   : > { %v2175_v45 = vsel %vm1062_vm5, %v2167_v5, 0.0 }
0x14a4   : > { %v2034_v59 = vpop.permute.xlu1 %2033 }
0x14a5   : > { %v2168_v2 = vmul.f32 %v2034_v59, %v5960_v52 }
0x14a7   : > { %v2176_v11 = vsel %vm1062_vm5, %v2168_v2, 0.0 }
0x14a8   : > { %v2041_v41 = vpop.permute.xlu1 %2040  ;;  %v2177_v33 = vadd.f32 %v2176_v11, %v2175_v45 }
0x14a9   : > { %v2169_v15 = vmul.f32 %v2041_v41, %v6061_v54 }
0x14ab   : > { %v2178_v25 = vsel %vm1062_vm5, %v2169_v15, 0.0 }
0x14ac   : > { %v2048_v34 = vpop.permute.xlu1 %2047  ;;  %v2179_v7 = vadd.f32 %v2178_v25, %v2177_v33 }
0x14ad   : > { %v2170_v20 = vmul.f32 0.0, %v2048_v34 }
0x14af   : > { %v2180_v60 = vsel %vm1062_vm5, %v2170_v20, 0.0 }
0x14b0   : > { %v2055_v61 = vpop.permute.xlu1 %2054  ;;  %v2181_v27 = vadd.f32 %v2180_v60, %v2179_v7 }
0x14b1   : > { %v2171_v47 = vmul.f32 0.0, %v2055_v61 }
0x14b3   : > { %v2182_v38 = vsel %vm1062_vm5, %v2171_v47, 0.0 }
0x14b4   : > { %v2062_v57 = vpop.permute.xlu1 %2061  ;;  %v2183_v49 = vadd.f32 %v2182_v38, %v2181_v27 }
0x14b5   : > { %v2172_v23 = vmul.f32 0.0, %v2062_v57 }
0x14b7   : > { %v2184_v46 = vsel %vm1062_vm5, %v2172_v23, 0.0 }
0x14b8   : > { %v2069_v12 = vpop.permute.xlu1 %2068  ;;  %v2185_v44 = vadd.f32 %v2184_v46, %v2183_v49 }
0x14b9   : > { %v2173_v39 = vmul.f32 0.0, %v2069_v12 }
0x14bb   : > { %v2186_v19 = vsel %vm1062_vm5, %v2173_v39, 0.0 }
0x14bc   : > { %v2076_v35 = vpop.permute.xlu1 %2075  ;;  %v2187_v59 = vadd.f32 %v2186_v19, %v2185_v44 }
0x14bd   : > { %v2174_v43 = vmul.f32 0.0, %v2076_v35 }
0x14bf   : > { %v2188_v58 = vsel %vm1062_vm5, %v2174_v43, 0.0 }
0x14c0   : > { %v2189_v41 = vadd.f32 %v2188_v58, %v2187_v59 }
0x14f3   : > { %v2095_v53 = vpop.trf.xlu1 }
0x14f4   : > { %v2121_v48 = vrot.slane %v2095_v53, %v5721_v28  ;;  %v2114_v55 = vrot.slane %v2095_v53, %v5727_v30  ;;  %v2128_v34 = vrot.slane %v2095_v53, %v5826_v6  ;;  %v2135_v61 = vrot.slane %v2095_v53, %v5830_v10 }
0x14f5   : > { %v2142_v57 = vrot.slane %v2095_v53, %v5834_v14  ;;  %v2149_v2 = vrot.slane %v2095_v53, %v5838_v16  ;;  %v2156_v5 = vrot.slane %v2095_v53, %v5842_v21  ;;  %v2163_v15 = vrot.slane %v2095_v53, %v5820_v63 }
0x14f6   : > { %2123 = vbcast.lane.b32.xlu1 %v2121_v48, 256  ;;  %2116 = vbcast.lane.b32.xlu0 %v2114_v55, 256 }
0x14fa   : > { %2214 = vrot.lane.b32.xlu1 %v2189_v41, %s5580_s22  ;;  %2130 = vbcast.lane.b32.xlu0 %v2128_v34, 256 }
0x14fe   : > { %2137 = vbcast.lane.b32.xlu0 %v2135_v61, 256 }
0x1502   : > { %2144 = vbcast.lane.b32.xlu0 %v2142_v57, 256 }
0x1506   : > { %2151 = vbcast.lane.b32.xlu0 %v2149_v2, 256 }
0x150a   : > { %2158 = vbcast.lane.b32.xlu0 %v2156_v5, 256 }
0x150e   : > { %2165 = vbcast.lane.b32.xlu0 %v2163_v15, 256 }
0x1568   : > { %v2117_v12 = vpop.permute.xlu0 %2116  ;;  %v2124_v20 = vpop.permute.xlu1 %2123 }
0x1569   : > { %v2191_v25 = vmul.f32 %v2124_v20, %v5960_v52  ;;  %v2190_v47 = vmul.f32 %v2117_v12, %v5783_v32  ;;  %v2360_v20 = vpop.f32.mrb[10].mxu1 }
0x156b   : > { %v2199_v23 = vsel %vm1062_vm5, %v2191_v25, 0.0  ;;  %v2198_v7 = vsel %vm1062_vm5, %v2190_v47, 0.0 }
0x156c   : > { %v2131_v11 = vpop.permute.xlu0 %2130  ;;  %v2200_v27 = vadd.f32 %v2199_v23, %v2198_v7  ;;  %v2215_v12 = vpop.permute.xlu1 %2214  ;;  %v2361_v23 = vadd.f32 %v2360_v20, %v5740_v40 }
0x156d   : > { %v2192_v33 = vmul.f32 %v2131_v11, %v6061_v54 }
0x156f   : > { %v2201_v38 = vsel %vm1062_vm5, %v2192_v33, 0.0 }
0x1570   : > { %v2138_v45 = vpop.permute.xlu0 %2137  ;;  %v2202_v19 = vadd.f32 %v2201_v38, %v2200_v27 }
0x1571   : > { %v2193_v35 = vmul.f32 0.0, %v2138_v45  ;;  %v2362_v45 = vpop.f32.mrb[11].mxu1 }
0x1572   : > { %v2363_v25 = vadd.f32 %v2362_v45, %v5730_v31 }
0x1573   : > { %v2203_v43 = vsel %vm1062_vm5, %v2193_v35, 0.0 }
0x1574   : > { %v2145_v60 = vpop.permute.xlu0 %2144  ;;  %v2204_v44 = vadd.f32 %v2203_v43, %v2202_v19  ;;  %2465 = vrot.lane.b32.xlu0 %v2363_v25, %s5579_s21 }
0x1575   : > { %v2194_v39 = vmul.f32 0.0, %v2145_v60 }
0x1577   : > { %v2205_v53 = vsel %vm1062_vm5, %v2194_v39, 0.0 }
0x1578   : > { %v2152_v46 = vpop.permute.xlu0 %2151  ;;  %v2206_v59 = vadd.f32 %v2205_v53, %v2204_v44  ;;  %v6143_v53 = vld [vmem:[%s5693_s29 + $0x8] sm:$0x3] }
0x1579   : > { %v2195_v49 = vmul.f32 0.0, %v2152_v46 }
0x157b   : > { %v2207_v55 = vsel %vm1062_vm5, %v2195_v49, 0.0 }
0x157c   : > { %v2159_v48 = vpop.permute.xlu0 %2158  ;;  %v2208_v34 = vadd.f32 %v2207_v55, %v2206_v59 }
0x157d   : > { %v2196_v58 = vmul.f32 0.0, %v2159_v48 }
0x157f   : > { %v2209_v41 = vsel %vm1062_vm5, %v2196_v58, 0.0 }
0x1580   : > { %v2166_v61 = vpop.permute.xlu0 %2165  ;;  %v2210_v2 = vadd.f32 %v2209_v41, %v2208_v34  ;;  %v6157_v34 = vld [vmem:[%s5772_s12] ss:$0 sm:$0xff] }
0x1581   : > { %v2197_v57 = vmul.f32 0.0, %v2166_v61  ;;  %v2518_v61 = vmul.f32 %v6157_v34, %v6143_v53 }
0x1583   : > { %v2211_v5 = vsel %vm1062_vm5, %v2197_v57, 0.0  ;;  %v2519_v57 = vsel %vm826_vm1, %v2518_v61, 0.0  ;;  %v4981_v61 = vld [vmem:[%s5803_s23 + $0x8] sm:$0x3] }
0x1584   : > { %v2212_v15 = vadd.f32 %v2211_v5, %v2210_v2 }
0x1586   : > { %v2217_v11 = vsel %vm593_vm0, %v2215_v12, %v2212_v15 }
0x1587   : > { %5135 = vmatmul.mubr.msk.f32.vlgmr.msra.gmra.mrb[6].mxu0 %vm1106_vm7, %v2217_v11 }
0x1588   : > { %5315 = vmatpush3.bf16.msra.mxu0 %v5859_v50  ;;  %5153 = vmatprep.mubr.msk.f32.mxu0 %vm5584_vm6, %v5578_v0 }
0x1589   : > { %5316 = vmatprep.subr.bf16.mxu0 %v5583_v26 }
0x158c   : > { %5318 = vmatpush3.bf16.msra.mxu0 %v5868_v56 }
0x158d   : > { %5319 = vmatprep.subr.bf16.mxu0 %v5583_v26 }
0x1590   : > { %5321 = vmatpush3.bf16.msra.mxu0 %v5878_v3 }
0x1591   : > { %5322 = vmatprep.subr.bf16.mxu0 %v5583_v26 }
0x1594   : > { %5324 = vmatpush3.bf16.msra.mxu0 %v5889_v37 }
0x1595   : > { %5341 = vmatprep.subr.bf16.mxu0 %v5583_v26 }
0x15e6   : > { %v2466_v43 = vpop.permute.xlu0 %2465 }
0x165a   : > { %v2287_v47 = vpop.f32.mrb[6].mxu0 }
0x165b   : > { %v5136_v33 = vpop.f32.mrb[7].mxu0  ;;  %4978 = vmatmul.mubr.msk.f32.vlgmr.msra.gmra.mrb[12].mxu1 %vm593_vm0, %v2287_v47 }
0x165c   : > { %5328 = vmatpush1.bf16.msra.mxu1 %v5672_v9  ;;  %2915 = vmatprep.mubr.f32.mxu1 %v5578_v0 }
0x165d   : > { %5330 = vmatprep.subr.bf16.mxu1 %v5682_v17 }
0x1660   : > { %5332 = vmatpush1.bf16.msra.mxu1 %v5687_v22 }
0x1661   : > { %5334 = vmatprep.subr.bf16.mxu1 %v5670_v8 }
0x1663   : > { %4984 = vmatmul.mubr.msk.f32.vlgmr.msra.gmra.mrb[14].mxu1 %vm593_vm0, %v6143_v53 }
0x1664   : > { %5336 = vmatpush1.bf16.msra.mxu1 %v5678_v13  ;;  %2989 = vmatprep.mubr.f32.mxu1 %v5578_v0 }
0x1665   : > { %5338 = vmatprep.subr.bf16.mxu1 %v5684_v18 }
0x1668   : > { %5340 = vmatpush1.bf16.msra.mxu1 %v5697_v24 }
0x1669   : > { %5354 = vmatprep.subr.bf16.mxu1 %v5668_v4 }
0x172e   : > { %v2434_v60 = vpop.f32.mrb[12].mxu1 }
0x172f   : > { %v2435_v7 = vadd.f32 %v2434_v60, %v5733_v36  ;;  %v2436_v35 = vpop.f32.mrb[13].mxu1 }
0x1730   : > { %v2437_v55 = vadd.f32 %v2436_v35, %v5746_v51 }
0x1731   : > { %v2439_v38 = vadd.f32 %v2435_v7, %v2361_v23  ;;  %2454 = vrot.lane.b32.xlu1 %v2435_v7, %s5579_s21 }
0x1732   : > { %v2440_v15 = vadd.f32 %v2437_v55, %v2363_v25 }
0x1733   : > { %v4979_v39 = vmul.f32 -1.442695, %v2439_v38 }
0x1734   : > { %v4980_v12 = vmul.f32 -1.442695, %v2440_v15 }
0x1735   : > { %5490 = vpow2.f32 %v4979_v39  ;;  %v6166_v39 = vld [vmem:[%s5792_s15] ss:$0 sm:$0xff] }
0x173f   : > { %v5491_v27 = vpop.eup %5490 }
0x1740   : > { %v2447_v46 = vadd.f32 1.0, %v5491_v27 }
0x1742   : > { %5492 = vrcp.f32 %v2447_v46 }
0x174c   : > { %v5493_v49 = vpop.eup %5492 }
0x174d   : > { %v2468_v19 = vmul.f32 %v5493_v49, %v2466_v43  ;;  %v2475_v43 = vsub.f32 1.0, %v5493_v49 }
0x174f   : > { %2470 = vrot.lane.b32.xlu0 %v2468_v19, %s5579_s21 }
0x17a3   : > { %v2455_v44 = vpop.permute.xlu1 %2454 }
0x17a4   : > { %v2457_v48 = vmul.f32 %v5493_v49, %v2455_v44 }
0x17a6   : > { %2459 = vrot.lane.b32.xlu1 %v2457_v48, %s5579_s21 }
0x17c1   : > { %v2471_v58 = vpop.permute.xlu0 %2470 }
0x17c2   : > { %v2473_v59 = vadd.f32 %v2471_v58, %v2437_v55 }
0x17c4   : > { %5494 = vtanh.f32 %v2473_v59 }
0x17ce   : > { %v5495_v41 = vpop.eup %5494 }
0x17cf   : > { %2488 = vrot.lane.b32.xlu0 %v5495_v41, %s5580_s22 }
0x17d3   : > { %2481 = vrot.lane.b32.xlu0 %v2287_v47, %s5581_s27 }
0x17f2   : > { %2520 = vadd.xlane.f32.xlu0 %v2519_v57  ;;  %v2529_v57 = vsub.f32 1.0, %v4981_v61 }
0x1818   : > { %v2460_v2 = vpop.permute.xlu1 %2459 }
0x1819   : > { %v2462_v5 = vadd.f32 %v2460_v2, %v2361_v23 }
0x181b   : > { %5496 = vtanh.f32 %v2462_v5  ;;  %v2530_v5 = vmul.f32 1e+30, %v2529_v57 }
0x181c   : > { %5498 = vpow2.f32 %v4980_v12 }
0x1825   : > { %v5497_v11 = vpop.eup %5496 }
0x1826   : > { %2477 = vrot.lane.b32.xlu1 %v5497_v11, %s5580_s22  ;;  %v5499_v20 = vpop.eup %5498 }
0x1827   : > { %v2448_v45 = vadd.f32 1.0, %v5499_v20 }
0x1829   : > { %5500 = vrcp.f32 %v2448_v45 }
0x1833   : > { %v5501_v47 = vpop.eup %5500 }
0x1834   : > { %v2486_v33 = vsub.f32 1.0, %v5501_v47  ;;  %v2492_v7 = vmul.f32 %v5501_v47, %v6045_v1 }
0x1841   : > { %v2489_v60 = vpop.permute.xlu0 %2488 }
0x1842   : > { %v2491_v35 = vmul.f32 %v2489_v60, %v2486_v33 }
0x1844   : > { %v2493_v38 = vadd.f32 %v2492_v7, %v2491_v35 }
0x1845   : > { %v2482_v25 = vpop.permute.xlu0 %2481 }
0x1846   : > { %2495 = vrot.lane.b32.xlu1 %v2493_v38, %s5581_s27  ;;  %v2484_v44 = vmul.f32 %v5493_v49, %v2482_v25 }
0x187f   : > { %v2521_v23 = vpop.xlane.xlu0 %2520 }
0x1880   : > { %v2522_v27 = vadd.f32 %v6166_v39, %v2521_v23  ;;  %v4982_v23 = vld [vmem:[%s6595_s2 + $0x8] sm:$0x3] }
0x1881   : > { %v2634_v61 = vsub.f32 1.0, %v4982_v23 }
0x1882   : > { %2525 = vperm.xlu0 %5440, %v2522_v27  }
0x1898   : > { %v2478_v46 = vpop.permute.xlu1 %2477 }
0x1899   : > { %v2480_v19 = vmul.f32 %v2478_v46, %v2475_v43 }
0x189b   : > { %v2485_v48 = vadd.f32 %v2484_v44, %v2480_v19 }
0x18b8   : > { %v2496_v55 = vpop.permute.xlu1 %2495 }
0x18b9   : > { %v6169_v58 = vadd.f32 %v2496_v55, %v2485_v48 }
0x18bb   : > { %v2505_v1 = vmul.f32 %v6169_v58, %v5781_v29 }
0x18bd   : > { %2507 = vrot.lane.b32.xlu1 %v2505_v1, %s5580_s22 }
0x1901   : > { %v2526_v49 = vpop.permute.xlu0 %2525 }
0x192f   : > { %v2508_v59 = vpop.permute.xlu1 %2507 }
0x1930   : > { %v2510_v41 = vsel %vm826_vm1, %v2508_v59, 0.0 }
0x1931   : > { %2511 = vadd.xlane.f32.xlu1 %v2510_v41 }
0x19be   : > { %v2512_v2 = vpop.xlane.xlu1 %2511 }
0x19bf   : > { %v6178_v15 = vsel %vm2504_vm12, %v2512_v2, %v6070_v62 }
0x19c0   : > { %v2528_v12 = vadd.f32 %v2526_v49, %v6178_v15 }
0x19c2   : > { %v2531_v11 = vsub.f32 %v2528_v12, %v2530_v5 }
0x19c4   : > { %v2533_v20 = vsel %vm2532_vm13, %v2531_v11, -inf }
0x19c5   : > { %v2534_v45 = vsel %vm863_vm4, %v2533_v20, -inf }
0x19c6   : > { %2535 = vmax.xlane.f32.xlu1 %v2534_v45 }
0x1a53   : > { %v2536_v47 = vpop.xlane.xlu1 %2535 }
0x1a54   : > { %v2537_v33 = vsub.f32 %v2533_v20, %v2536_v47 }
0x1a56   : > { %v2538_v60 = vmul.f32 1.442695, %v2537_v33 }
0x1a58   : > { %5502 = vpow2.f32 %v2538_v60 }
0x1a62   : > { %v5503_v7 = vpop.eup %5502 }
0x1a63   : > { %v2540_v35 = vsel %vm863_vm4, %v5503_v7, 0.0 }
0x1a64   : > { %2541 = vadd.xlane.f32.xlu1 %v2540_v35 }
0x1af1   : > { %v2542_v38 = vpop.xlane.xlu1 %2541 }
0x1af2   : > { %5504 = vrcp.f32 %v2542_v38 }
0x1afc   : > { %v5505_v62 = vpop.eup %5504 }
0x1afd   : > { %v2544_v25 = vmul.f32 %v5505_v62, %v5503_v7 }
0x1aff   : > { %v2545_v27 = vmul.f32 %v4982_v23, %v2544_v25  ;;  %v2635_v57 = vmul.f32 %v2634_v61, %v2544_v25 }
0x1b01   : > { %2546 = vxpose.xlu1.b32.start.end [1/1] (short) (narrow) %v2545_v27, 8 }
0x1b81   : > { %v2562_v46 = vpop.trf.xlu1 }
0x1b82   : > { %v2581_v43 = vrot.slane %v2562_v46, %v5727_v30  ;;  %v2588_v19 = vrot.slane %v2562_v46, %v5721_v28  ;;  %v2595_v44 = vrot.slane %v2562_v46, %v5826_v6  ;;  %v2602_v48 = vrot.slane %v2562_v46, %v5830_v10 }
0x1b83   : > { %v2609_v55 = vrot.slane %v2562_v46, %v5834_v14  ;;  %v2616_v1 = vrot.slane %v2562_v46, %v5838_v16  ;;  %v2623_v59 = vrot.slane %v2562_v46, %v5842_v21  ;;  %v2630_v41 = vrot.slane %v2562_v46, %v5820_v63 }
0x1b84   : > { %2583 = vbcast.lane.b32.xlu0 %v2581_v43, 256 }
0x1b88   : > { %2590 = vbcast.lane.b32.xlu0 %v2588_v19, 256 }
0x1b8c   : > { %2597 = vbcast.lane.b32.xlu0 %v2595_v44, 256 }
0x1b90   : > { %2604 = vbcast.lane.b32.xlu0 %v2602_v48, 256 }
0x1b94   : > { %2611 = vbcast.lane.b32.xlu0 %v2609_v55, 256 }
0x1b98   : > { %2618 = vbcast.lane.b32.xlu0 %v2616_v1, 256 }
0x1b9c   : > { %2625 = vbcast.lane.b32.xlu0 %v2623_v59, 256 }
0x1ba0   : > { %2632 = vbcast.lane.b32.xlu0 %v2630_v41, 256 }
0x1bbe   : > { %2636 = vxpose.xlu0.b32.start.end [1/1] (short) (narrow) %v2635_v57, 8 }
0x1bf6   : > { %v2584_v2 = vpop.permute.xlu0 %2583 }
0x1bf7   : > { %v2724_v47 = vmul.f32 %v2584_v2, %v5783_v32 }
0x1bf9   : > { %v2732_v38 = vsel %vm1062_vm5, %v2724_v47, 0.0 }
0x1bfa   : > { %v2591_v5 = vpop.permute.xlu0 %2590 }
0x1bfb   : > { %v2725_v45 = vmul.f32 %v2591_v5, %v5960_v52 }
0x1bfd   : > { %v2733_v7 = vsel %vm1062_vm5, %v2725_v45, 0.0 }
0x1bfe   : > { %v2598_v49 = vpop.permute.xlu0 %2597  ;;  %v2734_v23 = vadd.f32 %v2733_v7, %v2732_v38 }
0x1bff   : > { %v2726_v33 = vmul.f32 %v2598_v49, %v6061_v54 }
0x1c01   : > { %v2735_v62 = vsel %vm1062_vm5, %v2726_v33, 0.0 }
0x1c02   : > { %v2605_v12 = vpop.permute.xlu0 %2604  ;;  %v2736_v43 = vadd.f32 %v2735_v62, %v2734_v23 }
0x1c03   : > { %v2727_v35 = vmul.f32 %v2605_v12, %v6169_v58 }
0x1c05   : > { %v2737_v27 = vsel %vm1062_vm5, %v2727_v35, 0.0 }
0x1c06   : > { %v2612_v11 = vpop.permute.xlu0 %2611  ;;  %v2738_v55 = vadd.f32 %v2737_v27, %v2736_v43 }
0x1c07   : > { %v2728_v25 = vmul.f32 0.0, %v2612_v11 }
0x1c09   : > { %v2739_v44 = vsel %vm1062_vm5, %v2728_v25, 0.0 }
0x1c0a   : > { %v2619_v20 = vpop.permute.xlu0 %2618  ;;  %v2740_v41 = vadd.f32 %v2739_v44, %v2738_v55 }
0x1c0b   : > { %v2729_v46 = vmul.f32 0.0, %v2619_v20 }
0x1c0d   : > { %v2741_v1 = vsel %vm1062_vm5, %v2729_v46, 0.0 }
0x1c0e   : > { %v2626_v60 = vpop.permute.xlu0 %2625  ;;  %v2742_v2 = vadd.f32 %v2741_v1, %v2740_v41 }
0x1c0f   : > { %v2730_v48 = vmul.f32 0.0, %v2626_v60 }
0x1c11   : > { %v2743_v61 = vsel %vm1062_vm5, %v2730_v48, 0.0 }
0x1c12   : > { %v2633_v19 = vpop.permute.xlu0 %2632  ;;  %v2744_v11 = vadd.f32 %v2743_v61, %v2742_v2 }
0x1c13   : > { %v2731_v59 = vmul.f32 0.0, %v2633_v19 }
0x1c15   : > { %v2745_v12 = vsel %vm1062_vm5, %v2731_v59, 0.0 }
0x1c16   : > { %v2746_v20 = vadd.f32 %v2745_v12, %v2744_v11 }
0x1c3e   : > { %v2652_v57 = vpop.trf.xlu0 }
0x1c3f   : > { %v2678_v5 = vrot.slane %v2652_v57, %v5721_v28  ;;  %v2671_v49 = vrot.slane %v2652_v57, %v5727_v30  ;;  %v2685_v45 = vrot.slane %v2652_v57, %v5826_v6  ;;  %v2692_v47 = vrot.slane %v2652_v57, %v5830_v10 }
0x1c40   : > { %v2699_v33 = vrot.slane %v2652_v57, %v5834_v14  ;;  %v2706_v60 = vrot.slane %v2652_v57, %v5838_v16  ;;  %v2713_v7 = vrot.slane %v2652_v57, %v5842_v21  ;;  %v2720_v35 = vrot.slane %v2652_v57, %v5820_v63 }
0x1c41   : > { %2680 = vbcast.lane.b32.xlu0 %v2678_v5, 256  ;;  %2673 = vbcast.lane.b32.xlu1 %v2671_v49, 256 }
0x1c45   : > { %2771 = vrot.lane.b32.xlu0 %v2746_v20, %s5580_s22  ;;  %2687 = vbcast.lane.b32.xlu1 %v2685_v45, 256 }
0x1c49   : > { %2694 = vbcast.lane.b32.xlu1 %v2692_v47, 256 }
0x1c4d   : > { %2701 = vbcast.lane.b32.xlu1 %v2699_v33, 256 }
0x1c51   : > { %2708 = vbcast.lane.b32.xlu1 %v2706_v60, 256 }
0x1c55   : > { %2715 = vbcast.lane.b32.xlu1 %v2713_v7, 256 }
0x1c59   : > { %2722 = vbcast.lane.b32.xlu1 %v2720_v35, 256 }
0x1cb3   : > { %v2674_v38 = vpop.permute.xlu1 %2673  ;;  %v2681_v25 = vpop.permute.xlu0 %2680 }
0x1cb4   : > { %v2748_v27 = vmul.f32 %v2681_v25, %v5960_v52  ;;  %v2747_v46 = vmul.f32 %v2674_v38, %v5783_v32 }
0x1cb6   : > { %v2756_v44 = vsel %vm1062_vm5, %v2748_v27, 0.0  ;;  %v2755_v48 = vsel %vm1062_vm5, %v2747_v46, 0.0  ;;  %v2917_v46 = vpop.f32.mrb[14].mxu1 }
0x1cb7   : > { %v2688_v62 = vpop.permute.xlu1 %2687  ;;  %v2757_v41 = vadd.f32 %v2756_v44, %v2755_v48 }
0x1cb8   : > { %v2749_v43 = vmul.f32 %v2688_v62, %v6061_v54 }
0x1cba   : > { %v2758_v1 = vsel %vm1062_vm5, %v2749_v43, 0.0  ;;  %v2919_v43 = vpop.f32.mrb[15].mxu1 }
0x1cbb   : > { %v2695_v23 = vpop.permute.xlu1 %2694  ;;  %v2759_v5 = vadd.f32 %v2758_v1, %v2757_v41  ;;  %v2918_v1 = vadd.f32 %v2917_v46, %v5740_v40 }
0x1cbc   : > { %v2750_v55 = vmul.f32 %v2695_v23, %v6169_v58  ;;  %v2772_v23 = vpop.permute.xlu0 %2771 }
0x1cbe   : > { %v2760_v57 = vsel %vm1062_vm5, %v2750_v55, 0.0 }
0x1cbf   : > { %v2702_v19 = vpop.permute.xlu1 %2701  ;;  %v2761_v12 = vadd.f32 %v2760_v57, %v2759_v5 }
0x1cc0   : > { %v2751_v59 = vmul.f32 0.0, %v2702_v19  ;;  %v2920_v19 = vadd.f32 %v2919_v43, %v5730_v31 }
0x1cc2   : > { %v2762_v49 = vsel %vm1062_vm5, %v2751_v59, 0.0  ;;  %3022 = vrot.lane.b32.xlu1 %v2920_v19, %s5579_s21 }
0x1cc3   : > { %v2709_v61 = vpop.permute.xlu1 %2708  ;;  %v2763_v47 = vadd.f32 %v2762_v49, %v2761_v12 }
0x1cc4   : > { %v2752_v2 = vmul.f32 0.0, %v2709_v61 }
0x1cc6   : > { %v2764_v20 = vsel %vm1062_vm5, %v2752_v2, 0.0 }
0x1cc7   : > { %v2716_v11 = vpop.permute.xlu1 %2715  ;;  %v2765_v60 = vadd.f32 %v2764_v20, %v2763_v47  ;;  %v6253_v20 = vld [vmem:[%s5693_s29 + $0xa] sm:$0x3] }
0x1cc8   : > { %v2753_v45 = vmul.f32 0.0, %v2716_v11 }
0x1cca   : > { %v2766_v33 = vsel %vm1062_vm5, %v2753_v45, 0.0 }
0x1ccb   : > { %v2723_v7 = vpop.permute.xlu1 %2722  ;;  %v2767_v38 = vadd.f32 %v2766_v33, %v2765_v60 }
0x1ccc   : > { %v2754_v35 = vmul.f32 0.0, %v2723_v7 }
0x1cce   : > { %v2768_v62 = vsel %vm1062_vm5, %v2754_v35, 0.0 }
0x1ccf   : > { %v2769_v25 = vadd.f32 %v2768_v62, %v2767_v38  ;;  %v3076_v38 = vmul.f32 %v6157_v34, %v6253_v20 }
0x1cd1   : > { %v2774_v27 = vsel %vm593_vm0, %v2772_v23, %v2769_v25  ;;  %v3077_v62 = vsel %vm826_vm1, %v3076_v38, 0.0 }
0x1cd2   : > { %5154 = vmatmul.mubr.msk.f32.vlgmr.msra.gmra.mrb[8].mxu0 %vm1106_vm7, %v2774_v27 }
0x1cd3   : > { %5343 = vmatpush3.bf16.msra.mxu0 %v5859_v50  ;;  %5172 = vmatprep.mubr.msk.f32.mxu0 %vm5584_vm6, %v5578_v0 }
0x1cd4   : > { %5344 = vmatprep.subr.bf16.mxu0 %v5583_v26 }
0x1cd7   : > { %5346 = vmatpush3.bf16.msra.mxu0 %v5868_v56 }
0x1cd8   : > { %5347 = vmatprep.subr.bf16.mxu0 %v5583_v26 }
0x1cdb   : > { %5349 = vmatpush3.bf16.msra.mxu0 %v5878_v3 }
0x1cdc   : > { %5350 = vmatprep.subr.bf16.mxu0 %v5583_v26 }
0x1cdf   : > { %5352 = vmatpush3.bf16.msra.mxu0 %v5889_v37 }
0x1ce0   : > { %5369 = vmatprep.subr.bf16.mxu0 %v5583_v26 }
0x1d34   : > { %v3023_v49 = vpop.permute.xlu1 %3022 }
0x1da5   : > { %v2844_v44 = vpop.f32.mrb[8].mxu0 }
0x1da6   : > { %v5155_v48 = vpop.f32.mrb[9].mxu0  ;;  %4985 = vmatmul.mubr.msk.f32.vlgmr.msra.gmra.mrb[16].mxu1 %vm593_vm0, %v2844_v44 }
0x1da7   : > { %5356 = vmatpush1.bf16.msra.mxu1 %v5672_v9  ;;  %3473 = vmatprep.mubr.f32.mxu1 %v5578_v0 }
0x1da8   : > { %5358 = vmatprep.subr.bf16.mxu1 %v5682_v17 }
0x1dab   : > { %5360 = vmatpush1.bf16.msra.mxu1 %v5687_v22 }
0x1dac   : > { %5362 = vmatprep.subr.bf16.mxu1 %v5670_v8 }
0x1dae   : > { %4991 = vmatmul.mubr.msk.f32.vlgmr.msra.gmra.mrb[18].mxu1 %vm593_vm0, %v6253_v20 }
0x1daf   : > { %5364 = vmatpush1.bf16.msra.mxu1 %v5678_v13  ;;  %3547 = vmatprep.mubr.f32.mxu1 %v5578_v0 }
0x1db0   : > { %5366 = vmatprep.subr.bf16.mxu1 %v5684_v18 }
0x1db3   : > { %5368 = vmatpush1.bf16.msra.mxu1 %v5697_v24 }
0x1db4   : > { %5382 = vmatprep.subr.bf16.mxu1 %v5668_v4 }
0x1e79   : > { %v2991_v55 = vpop.f32.mrb[16].mxu1 }
0x1e7a   : > { %v2992_v59 = vadd.f32 %v2991_v55, %v5733_v36  ;;  %v2993_v41 = vpop.f32.mrb[17].mxu1 }
0x1e7b   : > { %v2994_v33 = vadd.f32 %v2993_v41, %v5746_v51 }
0x1e7c   : > { %v2996_v61 = vadd.f32 %v2992_v59, %v2918_v1  ;;  %3011 = vrot.lane.b32.xlu0 %v2992_v59, %s5579_s21 }
0x1e7d   : > { %v2997_v27 = vadd.f32 %v2994_v33, %v2920_v19 }
0x1e7e   : > { %v4986_v57 = vmul.f32 -1.442695, %v2996_v61 }
0x1e7f   : > { %v4987_v46 = vmul.f32 -1.442695, %v2997_v27 }
0x1e80   : > { %5506 = vpow2.f32 %v4986_v57 }
0x1e8a   : > { %v5507_v2 = vpop.eup %5506 }
0x1e8b   : > { %v3004_v5 = vadd.f32 1.0, %v5507_v2 }
0x1e8d   : > { %5508 = vrcp.f32 %v3004_v5 }
0x1e97   : > { %v5509_v12 = vpop.eup %5508 }
0x1e98   : > { %v3025_v11 = vmul.f32 %v5509_v12, %v3023_v49 }
0x1e9a   : > { %3027 = vrot.lane.b32.xlu1 %v3025_v11, %s5579_s21  ;;  %v3032_v11 = vsub.f32 1.0, %v5509_v12 }
0x1eee   : > { %v3012_v45 = vpop.permute.xlu0 %3011 }
0x1eef   : > { %v3014_v47 = vmul.f32 %v5509_v12, %v3012_v45 }
0x1ef1   : > { %3016 = vrot.lane.b32.xlu0 %v3014_v47, %s5579_s21 }
0x1f0c   : > { %v3028_v60 = vpop.permute.xlu1 %3027 }
0x1f0d   : > { %v3030_v7 = vadd.f32 %v3028_v60, %v2994_v33 }
0x1f0f   : > { %5510 = vtanh.f32 %v3030_v7 }
0x1f19   : > { %v5511_v35 = vpop.eup %5510 }
0x1f1a   : > { %3045 = vrot.lane.b32.xlu1 %v5511_v35, %s5580_s22 }
0x1f1e   : > { %3038 = vrot.lane.b32.xlu1 %v2844_v44, %s5581_s27 }
0x1f42   : > { %3078 = vadd.xlane.f32.xlu1 %v3077_v62  ;;  %v4988_v62 = vld [vmem:[%s5803_s23 + $0xa] sm:$0x3] }
0x1f63   : > { %v3017_v25 = vpop.permute.xlu0 %3016 }
0x1f64   : > { %v3019_v23 = vadd.f32 %v3017_v25, %v2918_v1  ;;  %v3087_v25 = vsub.f32 1.0, %v4988_v62 }
0x1f66   : > { %5512 = vtanh.f32 %v3019_v23  ;;  %v3088_v27 = vmul.f32 1e+30, %v3087_v25 }
0x1f67   : > { %5514 = vpow2.f32 %v4987_v46 }
0x1f70   : > { %v5513_v43 = vpop.eup %5512 }
0x1f71   : > { %3034 = vrot.lane.b32.xlu0 %v5513_v43, %s5580_s22  ;;  %v5515_v48 = vpop.eup %5514 }
0x1f72   : > { %v3005_v55 = vadd.f32 1.0, %v5515_v48 }
0x1f74   : > { %5516 = vrcp.f32 %v3005_v55 }
0x1f7e   : > { %v5517_v59 = vpop.eup %5516 }
0x1f7f   : > { %v3043_v44 = vsub.f32 1.0, %v5517_v59  ;;  %v3049_v61 = vmul.f32 %v5517_v59, %v6143_v53 }
0x1f8c   : > { %v3046_v41 = vpop.permute.xlu1 %3045 }
0x1f8d   : > { %v3048_v57 = vmul.f32 %v3046_v41, %v3043_v44 }
0x1f8f   : > { %v3050_v2 = vadd.f32 %v3049_v61, %v3048_v57 }
0x1f90   : > { %v3039_v1 = vpop.permute.xlu1 %3038 }
0x1f91   : > { %3052 = vrot.lane.b32.xlu0 %v3050_v2, %s5581_s27  ;;  %v3041_v47 = vmul.f32 %v5509_v12, %v3039_v1 }
0x1fcf   : > { %v3079_v19 = vpop.xlane.xlu1 %3078 }
0x1fd0   : > { %v3080_v5 = vadd.f32 %v6166_v39, %v3079_v19 }
0x1fd2   : > { %3083 = vperm.xlu1 %5441, %v3080_v5   ;;  %v4989_v5 = vld [vmem:[%s6595_s2 + $0xa] sm:$0x3] }
0x1fd3   : > { %v3192_v25 = vsub.f32 1.0, %v4989_v5 }
0x1fe3   : > { %v3035_v49 = vpop.permute.xlu0 %3034 }
0x1fe4   : > { %v3037_v45 = vmul.f32 %v3035_v49, %v3032_v11 }
0x1fe6   : > { %v3042_v33 = vadd.f32 %v3041_v47, %v3037_v45 }
0x2003   : > { %v3053_v60 = vpop.permute.xlu0 %3052 }
0x2004   : > { %v6273_v7 = vadd.f32 %v3053_v60, %v3042_v33 }
0x2006   : > { %v3063_v53 = vmul.f32 %v6273_v7, %v5781_v29 }
0x2008   : > { %3065 = vrot.lane.b32.xlu0 %v3063_v53, %s5580_s22 }
0x2051   : > { %v3084_v12 = vpop.permute.xlu1 %3083 }
0x207a   : > { %v3066_v35 = vpop.permute.xlu0 %3065 }
0x207b   : > { %v3068_v38 = vsel %vm826_vm1, %v3066_v35, 0.0 }
0x207c   : > { %3069 = vadd.xlane.f32.xlu0 %v3068_v38 }
0x2109   : > { %v3070_v23 = vpop.xlane.xlu0 %3069 }
0x210a   : > { %v6282_v46 = vsel %vm3062_vm14, %v3070_v23, %v6178_v15 }
0x210b   : > { %v3086_v43 = vadd.f32 %v3084_v12, %v6282_v46 }
0x210d   : > { %v3089_v48 = vsub.f32 %v3086_v43, %v3088_v27 }
0x210f   : > { %v3091_v55 = vsel %vm3090_vm15, %v3089_v48, -inf }
0x2110   : > { %v3092_v59 = vsel %vm863_vm4, %v3091_v55, -inf }
0x2111   : > { %3093 = vmax.xlane.f32.xlu0 %v3092_v59 }
0x219e   : > { %v3094_v44 = vpop.xlane.xlu0 %3093 }
0x219f   : > { %v3095_v41 = vsub.f32 %v3091_v55, %v3094_v44 }
0x21a1   : > { %v3096_v61 = vmul.f32 1.442695, %v3095_v41 }
0x21a3   : > { %5518 = vpow2.f32 %v3096_v61 }
0x21ad   : > { %v5519_v57 = vpop.eup %5518 }
0x21ae   : > { %v3098_v2 = vsel %vm863_vm4, %v5519_v57, 0.0 }
0x21af   : > { %3099 = vadd.xlane.f32.xlu0 %v3098_v2 }
0x223c   : > { %v3100_v1 = vpop.xlane.xlu0 %3099 }
0x223d   : > { %5520 = vrcp.f32 %v3100_v1 }
0x2247   : > { %v5521_v15 = vpop.eup %5520 }
0x2248   : > { %v3102_v19 = vmul.f32 %v5521_v15, %v5519_v57 }
0x224a   : > { %v3103_v49 = vmul.f32 %v4989_v5, %v3102_v19  ;;  %v3193_v23 = vmul.f32 %v3192_v25, %v3102_v19 }
0x224c   : > { %3104 = vxpose.xlu0.b32.start.end [1/1] (short) (narrow) %v3103_v49, 8 }
0x22cc   : > { %v3120_v11 = vpop.trf.xlu0 }
0x22cd   : > { %v3139_v45 = vrot.slane %v3120_v11, %v5727_v30  ;;  %v3146_v47 = vrot.slane %v3120_v11, %v5721_v28  ;;  %v3153_v33 = vrot.slane %v3120_v11, %v5826_v6  ;;  %v3160_v60 = vrot.slane %v3120_v11, %v5830_v10 }
0x22ce   : > { %v3167_v53 = vrot.slane %v3120_v11, %v5834_v14  ;;  %v3174_v35 = vrot.slane %v3120_v11, %v5838_v16  ;;  %v3181_v38 = vrot.slane %v3120_v11, %v5842_v21  ;;  %v3188_v62 = vrot.slane %v3120_v11, %v5820_v63 }
0x22cf   : > { %3141 = vbcast.lane.b32.xlu1 %v3139_v45, 256 }
0x22d3   : > { %3148 = vbcast.lane.b32.xlu1 %v3146_v47, 256 }
0x22d7   : > { %3155 = vbcast.lane.b32.xlu1 %v3153_v33, 256 }
0x22db   : > { %3162 = vbcast.lane.b32.xlu1 %v3160_v60, 256 }
0x22df   : > { %3169 = vbcast.lane.b32.xlu1 %v3167_v53, 256 }
0x22e3   : > { %3176 = vbcast.lane.b32.xlu1 %v3174_v35, 256 }
0x22e7   : > { %3183 = vbcast.lane.b32.xlu1 %v3181_v38, 256 }
0x22eb   : > { %3190 = vbcast.lane.b32.xlu1 %v3188_v62, 256 }
0x2314   : > { %3194 = vxpose.xlu1.b32.start.end [1/1] (short) (narrow) %v3193_v23, 8 }
0x2341   : > { %v3142_v27 = vpop.permute.xlu1 %3141 }
0x2342   : > { %v3282_v41 = vmul.f32 %v3142_v27, %v5783_v32 }
0x2344   : > { %v3290_v15 = vsel %vm1062_vm5, %v3282_v41, 0.0 }
0x2345   : > { %v3149_v12 = vpop.permute.xlu1 %3148 }
0x2346   : > { %v3283_v44 = vmul.f32 %v3149_v12, %v5960_v52 }
0x2348   : > { %v3291_v2 = vsel %vm1062_vm5, %v3283_v44, 0.0 }
0x2349   : > { %v3156_v43 = vpop.permute.xlu1 %3155  ;;  %v3292_v49 = vadd.f32 %v3291_v2, %v3290_v15 }
0x234a   : > { %v3284_v61 = vmul.f32 %v3156_v43, %v6061_v54 }
0x234c   : > { %v3293_v19 = vsel %vm1062_vm5, %v3284_v61, 0.0 }
0x234d   : > { %v3163_v48 = vpop.permute.xlu1 %3162  ;;  %v3294_v47 = vadd.f32 %v3293_v19, %v3292_v49 }
0x234e   : > { %v3285_v1 = vmul.f32 %v3163_v48, %v6169_v58 }
0x2350   : > { %v3295_v11 = vsel %vm1062_vm5, %v3285_v1, 0.0 }
0x2351   : > { %v3170_v55 = vpop.permute.xlu1 %3169  ;;  %v3296_v35 = vadd.f32 %v3295_v11, %v3294_v47 }
0x2352   : > { %v3286_v5 = vmul.f32 %v3170_v55, %v6273_v7 }
0x2354   : > { %v3297_v60 = vsel %vm1062_vm5, %v3286_v5, 0.0 }
0x2355   : > { %v3177_v59 = vpop.permute.xlu1 %3176  ;;  %v3298_v25 = vadd.f32 %v3297_v60, %v3296_v35 }
0x2356   : > { %v3287_v45 = vmul.f32 0.0, %v3177_v59 }
0x2358   : > { %v3299_v38 = vsel %vm1062_vm5, %v3287_v45, 0.0 }
0x2359   : > { %v3184_v57 = vpop.permute.xlu1 %3183  ;;  %v3300_v12 = vadd.f32 %v3299_v38, %v3298_v25 }
0x235a   : > { %v3288_v53 = vmul.f32 0.0, %v3184_v57 }
0x235c   : > { %v3301_v23 = vsel %vm1062_vm5, %v3288_v53, 0.0 }
0x235d   : > { %v3191_v33 = vpop.permute.xlu1 %3190  ;;  %v3302_v59 = vadd.f32 %v3301_v23, %v3300_v12 }
0x235e   : > { %v3289_v62 = vmul.f32 0.0, %v3191_v33 }
0x2360   : > { %v3303_v55 = vsel %vm1062_vm5, %v3289_v62, 0.0 }
0x2361   : > { %v3304_v44 = vadd.f32 %v3303_v55, %v3302_v59 }
0x2394   : > { %v3210_v27 = vpop.trf.xlu1 }
0x2395   : > { %v3236_v43 = vrot.slane %v3210_v27, %v5721_v28  ;;  %v3229_v48 = vrot.slane %v3210_v27, %v5727_v30  ;;  %v3243_v41 = vrot.slane %v3210_v27, %v5826_v6  ;;  %v3250_v61 = vrot.slane %v3210_v27, %v5830_v10 }
0x2396   : > { %v3257_v57 = vrot.slane %v3210_v27, %v5834_v14  ;;  %v3264_v2 = vrot.slane %v3210_v27, %v5838_v16  ;;  %v3271_v1 = vrot.slane %v3210_v27, %v5842_v21  ;;  %v3278_v15 = vrot.slane %v3210_v27, %v5820_v63 }
0x2397   : > { %3238 = vbcast.lane.b32.xlu1 %v3236_v43, 256  ;;  %3231 = vbcast.lane.b32.xlu0 %v3229_v48, 256 }
0x239b   : > { %3329 = vrot.lane.b32.xlu1 %v3304_v44, %s5580_s22  ;;  %3245 = vbcast.lane.b32.xlu0 %v3243_v41, 256 }
0x239f   : > { %3252 = vbcast.lane.b32.xlu0 %v3250_v61, 256 }
0x23a3   : > { %3259 = vbcast.lane.b32.xlu0 %v3257_v57, 256 }
0x23a7   : > { %3266 = vbcast.lane.b32.xlu0 %v3264_v2, 256 }
0x23ab   : > { %3273 = vbcast.lane.b32.xlu0 %v3271_v1, 256 }
0x23af   : > { %3280 = vbcast.lane.b32.xlu0 %v3278_v15, 256 }
0x2409   : > { %v3232_v19 = vpop.permute.xlu0 %3231  ;;  %v3239_v49 = vpop.permute.xlu1 %3238 }
0x240a   : > { %v3306_v45 = vmul.f32 %v3239_v49, %v5960_v52  ;;  %v3305_v47 = vmul.f32 %v3232_v19, %v5783_v32 }
0x240c   : > { %v3314_v53 = vsel %vm1062_vm5, %v3306_v45, 0.0  ;;  %v3313_v35 = vsel %vm1062_vm5, %v3305_v47, 0.0 }
0x240d   : > { %v3246_v5 = vpop.permute.xlu0 %3245  ;;  %v3315_v23 = vadd.f32 %v3314_v53, %v3313_v35  ;;  %v3330_v45 = vpop.permute.xlu1 %3329 }
0x240e   : > { %v3307_v33 = vmul.f32 %v3246_v5, %v6061_v54 }
0x2410   : > { %v3316_v62 = vsel %vm1062_vm5, %v3307_v33, 0.0  ;;  %v3475_v33 = vpop.f32.mrb[18].mxu1 }
0x2411   : > { %v3253_v11 = vpop.permute.xlu0 %3252  ;;  %v3317_v48 = vadd.f32 %v3316_v62, %v3315_v23 }
0x2412   : > { %v3308_v38 = vmul.f32 %v3253_v11, %v6169_v58 }
0x2414   : > { %v3318_v12 = vsel %vm1062_vm5, %v3308_v38, 0.0 }
0x2415   : > { %v3260_v60 = vpop.permute.xlu0 %3259  ;;  %v3319_v59 = vadd.f32 %v3318_v12, %v3317_v48 }
0x2416   : > { %v3309_v25 = vmul.f32 %v3260_v60, %v6273_v7  ;;  %v3477_v60 = vpop.f32.mrb[19].mxu1 }
0x2417   : > { %v3478_v53 = vadd.f32 %v3477_v60, %v5730_v31 }
0x2418   : > { %v3320_v55 = vsel %vm1062_vm5, %v3309_v25, 0.0  ;;  %v3476_v25 = vadd.f32 %v3475_v33, %v5740_v40 }
0x2419   : > { %v3267_v27 = vpop.permute.xlu0 %3266  ;;  %v3321_v57 = vadd.f32 %v3320_v55, %v3319_v59  ;;  %3580 = vrot.lane.b32.xlu0 %v3478_v53, %s5579_s21 }
0x241a   : > { %v3310_v43 = vmul.f32 0.0, %v3267_v27 }
0x241c   : > { %v3322_v41 = vsel %vm1062_vm5, %v3310_v43, 0.0 }
0x241d   : > { %v3274_v44 = vpop.permute.xlu0 %3273  ;;  %v3323_v1 = vadd.f32 %v3322_v41, %v3321_v57 }
0x241e   : > { %v3311_v61 = vmul.f32 0.0, %v3274_v44 }
0x2420   : > { %v3324_v2 = vsel %vm1062_vm5, %v3311_v61, 0.0  ;;  %v6359_v61 = vld [vmem:[%s5693_s29 + $0xc] sm:$0x3] }
0x2421   : > { %v3281_v15 = vpop.permute.xlu0 %3280  ;;  %v3325_v5 = vadd.f32 %v3324_v2, %v3323_v1 }
0x2422   : > { %v3312_v19 = vmul.f32 0.0, %v3281_v15 }
0x2424   : > { %v3326_v49 = vsel %vm1062_vm5, %v3312_v19, 0.0 }
0x2425   : > { %v3327_v11 = vadd.f32 %v3326_v49, %v3325_v5  ;;  %v3635_v49 = vmul.f32 %v6157_v34, %v6359_v61 }
0x2427   : > { %v3332_v47 = vsel %vm593_vm0, %v3330_v45, %v3327_v11  ;;  %v3636_v11 = vsel %vm826_vm1, %v3635_v49, 0.0  ;;  %v4995_v49 = vld [vmem:[%s5803_s23 + $0xc] sm:$0x3] }
0x2428   : > { %5173 = vmatmul.mubr.msk.f32.vlgmr.msra.gmra.mrb[10].mxu0 %vm1106_vm7, %v3332_v47 }
0x2429   : > { %5371 = vmatpush3.bf16.msra.mxu0 %v5859_v50  ;;  %5191 = vmatprep.mubr.msk.f32.mxu0 %vm5584_vm6, %v5578_v0 }
0x242a   : > { %5372 = vmatprep.subr.bf16.mxu0 %v5583_v26 }
0x242d   : > { %5374 = vmatpush3.bf16.msra.mxu0 %v5868_v56 }
0x242e   : > { %5375 = vmatprep.subr.bf16.mxu0 %v5583_v26 }
0x2431   : > { %5377 = vmatpush3.bf16.msra.mxu0 %v5878_v3 }
0x2432   : > { %5378 = vmatprep.subr.bf16.mxu0 %v5583_v26 }
0x2435   : > { %5380 = vmatpush3.bf16.msra.mxu0 %v5889_v37 }
0x2436   : > { %5397 = vmatprep.subr.bf16.mxu0 %v5583_v26 }
0x248b   : > { %v3581_v59 = vpop.permute.xlu0 %3580 }
0x24fb   : > { %v3402_v35 = vpop.f32.mrb[10].mxu0 }
0x24fc   : > { %v5174_v38 = vpop.f32.mrb[11].mxu0  ;;  %4992 = vmatmul.mubr.msk.f32.vlgmr.msra.gmra.mrb[20].mxu1 %vm593_vm0, %v3402_v35 }
0x24fd   : > { %5384 = vmatpush1.bf16.msra.mxu1 %v5672_v9  ;;  %4032 = vmatprep.mubr.f32.mxu1 %v5578_v0 }
0x24fe   : > { %5386 = vmatprep.subr.bf16.mxu1 %v5682_v17 }
0x2501   : > { %5388 = vmatpush1.bf16.msra.mxu1 %v5687_v22 }
0x2502   : > { %5390 = vmatprep.subr.bf16.mxu1 %v5670_v8 }
0x2504   : > { %4998 = vmatmul.mubr.msk.f32.vlgmr.msra.gmra.mrb[22].mxu1 %vm593_vm0, %v6359_v61 }
0x2505   : > { %5392 = vmatpush1.bf16.msra.mxu1 %v5678_v13  ;;  %4106 = vmatprep.mubr.f32.mxu1 %v5578_v0 }
0x2506   : > { %5394 = vmatprep.subr.bf16.mxu1 %v5684_v18 }
0x2509   : > { %5396 = vmatpush1.bf16.msra.mxu1 %v5697_v24 }
0x250a   : > { %5410 = vmatprep.subr.bf16.mxu1 %v5668_v4 }
0x25cf   : > { %v3549_v62 = vpop.f32.mrb[20].mxu1 }
0x25d0   : > { %v3550_v23 = vadd.f32 %v3549_v62, %v5733_v36  ;;  %v3551_v27 = vpop.f32.mrb[21].mxu1 }
0x25d1   : > { %v3552_v1 = vadd.f32 %v3551_v27, %v5746_v51 }
0x25d2   : > { %v3554_v12 = vadd.f32 %v3550_v23, %v3476_v25  ;;  %3569 = vrot.lane.b32.xlu1 %v3550_v23, %s5579_s21 }
0x25d3   : > { %v3555_v47 = vadd.f32 %v3552_v1, %v3478_v53 }
0x25d4   : > { %v4993_v43 = vmul.f32 -1.442695, %v3554_v12 }
0x25d5   : > { %v4994_v33 = vmul.f32 -1.442695, %v3555_v47 }
0x25d6   : > { %5522 = vpow2.f32 %v4993_v43 }
0x25e0   : > { %v5523_v48 = vpop.eup %5522 }
0x25e1   : > { %v3562_v55 = vadd.f32 1.0, %v5523_v48 }
0x25e3   : > { %5524 = vrcp.f32 %v3562_v55 }
0x25ed   : > { %v5525_v44 = vpop.eup %5524 }
0x25ee   : > { %v3583_v41 = vmul.f32 %v5525_v44, %v3581_v59  ;;  %v3590_v59 = vsub.f32 1.0, %v5525_v44 }
0x25f0   : > { %3585 = vrot.lane.b32.xlu0 %v3583_v41, %s5579_s21 }
0x2644   : > { %v3570_v57 = vpop.permute.xlu1 %3569 }
0x2645   : > { %v3572_v2 = vmul.f32 %v5525_v44, %v3570_v57 }
0x2647   : > { %3574 = vrot.lane.b32.xlu1 %v3572_v2, %s5579_s21 }
0x2662   : > { %v3586_v15 = vpop.permute.xlu0 %3585 }
0x2663   : > { %v3588_v19 = vadd.f32 %v3586_v15, %v3552_v1 }
0x2665   : > { %5526 = vtanh.f32 %v3588_v19 }
0x266f   : > { %v5527_v5 = vpop.eup %5526 }
0x2670   : > { %3603 = vrot.lane.b32.xlu0 %v5527_v5, %s5580_s22 }
0x2674   : > { %3596 = vrot.lane.b32.xlu0 %v3402_v35, %s5581_s27 }
0x2693   : > { %3637 = vadd.xlane.f32.xlu0 %v3636_v11 }
0x26b9   : > { %v3575_v4 = vpop.permute.xlu1 %3574 }
0x26ba   : > { %v3577_v45 = vadd.f32 %v3575_v4, %v3476_v25 }
0x26bc   : > { %5528 = vtanh.f32 %v3577_v45 }
0x26bd   : > { %5530 = vpow2.f32 %v4994_v33 }
0x26c6   : > { %v5529_v60 = vpop.eup %5528 }
0x26c7   : > { %3592 = vrot.lane.b32.xlu1 %v5529_v60, %s5580_s22  ;;  %v5531_v38 = vpop.eup %5530 }
0x26c8   : > { %v3563_v62 = vadd.f32 1.0, %v5531_v38 }
0x26ca   : > { %5532 = vrcp.f32 %v3563_v62 }
0x26d4   : > { %v5533_v23 = vpop.eup %5532 }
0x26d5   : > { %v3601_v35 = vsub.f32 1.0, %v5533_v23  ;;  %v3607_v34 = vmul.f32 %v5533_v23, %v6253_v20 }
0x26e2   : > { %v3604_v27 = vpop.permute.xlu0 %3603 }
0x26e3   : > { %v3606_v12 = vmul.f32 %v3604_v27, %v3601_v35 }
0x26e5   : > { %v3608_v43 = vadd.f32 %v3607_v34, %v3606_v12 }
0x26e6   : > { %v3597_v25 = vpop.permute.xlu0 %3596 }
0x26e7   : > { %3610 = vrot.lane.b32.xlu1 %v3608_v43, %s5581_s27  ;;  %v3599_v57 = vmul.f32 %v5525_v44, %v3597_v25  ;;  %v4996_v25 = vld [vmem:[%s6595_s2 + $0xc] sm:$0x3] }
0x2720   : > { %v3638_v53 = vpop.xlane.xlu0 %3637 }
0x2721   : > { %v3639_v48 = vadd.f32 %v6166_v39, %v3638_v53  ;;  %v3646_v39 = vsub.f32 1.0, %v4995_v49 }
0x2723   : > { %3642 = vperm.xlu0 %5440, %v3639_v48   ;;  %v3647_v4 = vmul.f32 1e+30, %v3646_v39 }
0x2739   : > { %v3593_v55 = vpop.permute.xlu1 %3592 }
0x273a   : > { %v3595_v41 = vmul.f32 %v3593_v55, %v3590_v59 }
0x273c   : > { %v3600_v2 = vadd.f32 %v3599_v57, %v3595_v41 }
0x2759   : > { %v3611_v1 = vpop.permute.xlu1 %3610 }
0x275a   : > { %v6379_v15 = vadd.f32 %v3611_v1, %v3600_v2 }
0x275c   : > { %v3622_v20 = vmul.f32 %v6379_v15, %v5781_v29 }
0x275e   : > { %3624 = vrot.lane.b32.xlu1 %v3622_v20, %s5580_s22 }
0x27a2   : > { %v3643_v44 = vpop.permute.xlu0 %3642 }
0x27d0   : > { %v3625_v19 = vpop.permute.xlu1 %3624 }
0x27d1   : > { %v3627_v5 = vsel %vm826_vm1, %v3625_v19, 0.0 }
0x27d2   : > { %3628 = vadd.xlane.f32.xlu1 %v3627_v5  ;;  %v3751_v5 = vsub.f32 1.0, %v4996_v25 }
0x285f   : > { %v3629_v11 = vpop.xlane.xlu1 %3628 }
0x2860   : > { %v6388_v45 = vsel %vm3621_vm2, %v3629_v11, %v6282_v46 }
0x2861   : > { %v3645_v47 = vadd.f32 %v3643_v44, %v6388_v45 }
0x2863   : > { %v3648_v33 = vsub.f32 %v3645_v47, %v3647_v4 }
0x2865   : > { %v3650_v60 = vsel %vm3649_vm3, %v3648_v33, -inf }
0x2866   : > { %v3651_v38 = vsel %vm863_vm4, %v3650_v60, -inf }
0x2867   : > { %3652 = vmax.xlane.f32.xlu1 %v3651_v38 }
0x28f4   : > { %v3653_v62 = vpop.xlane.xlu1 %3652 }
0x28f5   : > { %v3654_v23 = vsub.f32 %v3650_v60, %v3653_v62 }
0x28f7   : > { %v3655_v35 = vmul.f32 1.442695, %v3654_v23 }
0x28f9   : > { %5534 = vpow2.f32 %v3655_v35 }
0x2903   : > { %v5535_v27 = vpop.eup %5534 }
0x2904   : > { %v3657_v34 = vsel %vm863_vm4, %v5535_v27, 0.0 }
0x2905   : > { %3658 = vadd.xlane.f32.xlu1 %v3657_v34 }
0x2992   : > { %v3659_v12 = vpop.xlane.xlu1 %3658 }
0x2993   : > { %5536 = vrcp.f32 %v3659_v12 }
0x299d   : > { %v5537_v46 = vpop.eup %5536 }
0x299e   : > { %v3661_v43 = vmul.f32 %v5537_v46, %v5535_v27 }
0x29a0   : > { %v3662_v53 = vmul.f32 %v4996_v25, %v3661_v43  ;;  %v3752_v49 = vmul.f32 %v3751_v5, %v3661_v43 }
0x29a2   : > { %3663 = vxpose.xlu1.b32.start.end [1/1] (short) (narrow) %v3662_v53, 8 }
0x2a22   : > { %v3679_v48 = vpop.trf.xlu1 }
0x2a23   : > { %v3698_v55 = vrot.slane %v3679_v48, %v5727_v30  ;;  %v3705_v59 = vrot.slane %v3679_v48, %v5721_v28  ;;  %v3712_v41 = vrot.slane %v3679_v48, %v5826_v6  ;;  %v3719_v57 = vrot.slane %v3679_v48, %v5830_v10 }
0x2a24   : > { %v3726_v2 = vrot.slane %v3679_v48, %v5834_v14  ;;  %v3733_v1 = vrot.slane %v3679_v48, %v5838_v16  ;;  %v3740_v20 = vrot.slane %v3679_v48, %v5842_v21  ;;  %v3747_v19 = vrot.slane %v3679_v48, %v5820_v63 }
0x2a25   : > { %3700 = vbcast.lane.b32.xlu0 %v3698_v55, 256 }
0x2a29   : > { %3707 = vbcast.lane.b32.xlu0 %v3705_v59, 256 }
0x2a2d   : > { %3714 = vbcast.lane.b32.xlu0 %v3712_v41, 256 }
0x2a31   : > { %3721 = vbcast.lane.b32.xlu0 %v3719_v57, 256 }
0x2a35   : > { %3728 = vbcast.lane.b32.xlu0 %v3726_v2, 256 }
0x2a39   : > { %3735 = vbcast.lane.b32.xlu0 %v3733_v1, 256 }
0x2a3d   : > { %3742 = vbcast.lane.b32.xlu0 %v3740_v20, 256 }
0x2a41   : > { %3749 = vbcast.lane.b32.xlu0 %v3747_v19, 256 }
0x2a5f   : > { %3753 = vxpose.xlu0.b32.start.end [1/1] (short) (narrow) %v3752_v49, 8 }
0x2a97   : > { %v3701_v39 = vpop.permute.xlu0 %3700 }
0x2a98   : > { %v3841_v38 = vmul.f32 %v3701_v39, %v5783_v32 }
0x2a9a   : > { %v3849_v34 = vsel %vm1062_vm5, %v3841_v38, 0.0 }
0x2a9b   : > { %v3708_v11 = vpop.permute.xlu0 %3707 }
0x2a9c   : > { %v3842_v60 = vmul.f32 %v3708_v11, %v5960_v52 }
0x2a9e   : > { %v3850_v35 = vsel %vm1062_vm5, %v3842_v60, 0.0 }
0x2a9f   : > { %v3715_v4 = vpop.permute.xlu0 %3714  ;;  %v3851_v43 = vadd.f32 %v3850_v35, %v3849_v34 }
0x2aa0   : > { %v3843_v62 = vmul.f32 %v3715_v4, %v6061_v54 }
0x2aa2   : > { %v3852_v12 = vsel %vm1062_vm5, %v3843_v62, 0.0 }
0x2aa3   : > { %v3722_v44 = vpop.permute.xlu0 %3721  ;;  %v3853_v48 = vadd.f32 %v3852_v12, %v3851_v43 }
0x2aa4   : > { %v3844_v27 = vmul.f32 %v3722_v44, %v6169_v58 }
0x2aa6   : > { %v3854_v25 = vsel %vm1062_vm5, %v3844_v27, 0.0 }
0x2aa7   : > { %v3729_v47 = vpop.permute.xlu0 %3728  ;;  %v3855_v57 = vadd.f32 %v3854_v25, %v3853_v48 }
0x2aa8   : > { %v3845_v46 = vmul.f32 %v3729_v47, %v6273_v7 }
0x2aaa   : > { %v3856_v59 = vsel %vm1062_vm5, %v3845_v46, 0.0 }
0x2aab   : > { %v3736_v33 = vpop.permute.xlu0 %3735  ;;  %v3857_v20 = vadd.f32 %v3856_v59, %v3855_v57 }
0x2aac   : > { %v3846_v53 = vmul.f32 %v3736_v33, %v6379_v15 }
0x2aae   : > { %v3858_v2 = vsel %vm1062_vm5, %v3846_v53, 0.0 }
0x2aaf   : > { %v3743_v23 = vpop.permute.xlu0 %3742  ;;  %v3859_v49 = vadd.f32 %v3858_v2, %v3857_v20 }
0x2ab0   : > { %v3847_v41 = vmul.f32 0.0, %v3743_v23 }
0x2ab2   : > { %v3860_v19 = vsel %vm1062_vm5, %v3847_v41, 0.0 }
0x2ab3   : > { %v3750_v55 = vpop.permute.xlu0 %3749  ;;  %v3861_v44 = vadd.f32 %v3860_v19, %v3859_v49 }
0x2ab4   : > { %v3848_v1 = vmul.f32 0.0, %v3750_v55 }
0x2ab6   : > { %v3862_v4 = vsel %vm1062_vm5, %v3848_v1, 0.0 }
0x2ab7   : > { %v3863_v47 = vadd.f32 %v3862_v4, %v3861_v44 }
0x2adf   : > { %v3769_v5 = vpop.trf.xlu0 }
0x2ae0   : > { %v3795_v39 = vrot.slane %v3769_v5, %v5721_v28  ;;  %v3788_v11 = vrot.slane %v3769_v5, %v5727_v30  ;;  %v3802_v33 = vrot.slane %v3769_v5, %v5826_v6  ;;  %v3809_v60 = vrot.slane %v3769_v5, %v5830_v10 }
0x2ae1   : > { %v3816_v38 = vrot.slane %v3769_v5, %v5834_v14  ;;  %v3823_v62 = vrot.slane %v3769_v5, %v5838_v16  ;;  %v3830_v23 = vrot.slane %v3769_v5, %v5842_v21  ;;  %v3837_v35 = vrot.slane %v3769_v5, %v5820_v63 }
0x2ae2   : > { %3797 = vbcast.lane.b32.xlu0 %v3795_v39, 256  ;;  %3790 = vbcast.lane.b32.xlu1 %v3788_v11, 256 }
0x2ae6   : > { %3888 = vrot.lane.b32.xlu0 %v3863_v47, %s5580_s22  ;;  %3804 = vbcast.lane.b32.xlu1 %v3802_v33, 256 }
0x2aea   : > { %3811 = vbcast.lane.b32.xlu1 %v3809_v60, 256 }
0x2aee   : > { %3818 = vbcast.lane.b32.xlu1 %v3816_v38, 256 }
0x2af2   : > { %3825 = vbcast.lane.b32.xlu1 %v3823_v62, 256 }
0x2af6   : > { %3832 = vbcast.lane.b32.xlu1 %v3830_v23, 256 }
0x2afa   : > { %3839 = vbcast.lane.b32.xlu1 %v3837_v35, 256 }
0x2b54   : > { %v3791_v27 = vpop.permute.xlu1 %3790  ;;  %v3798_v12 = vpop.permute.xlu0 %3797 }
0x2b55   : > { %v3865_v43 = vmul.f32 %v3798_v12, %v5960_v52  ;;  %v3864_v25 = vmul.f32 %v3791_v27, %v5783_v32 }
0x2b57   : > { %v3873_v55 = vsel %vm1062_vm5, %v3865_v43, 0.0  ;;  %v3872_v59 = vsel %vm1062_vm5, %v3864_v25, 0.0  ;;  %v4034_v43 = vpop.f32.mrb[22].mxu1 }
0x2b58   : > { %v3805_v34 = vpop.permute.xlu1 %3804  ;;  %v3874_v1 = vadd.f32 %v3873_v55, %v3872_v59  ;;  %v3889_v12 = vpop.permute.xlu0 %3888 }
0x2b59   : > { %v3866_v53 = vmul.f32 %v3805_v34, %v6061_v54  ;;  %v4036_v25 = vpop.f32.mrb[23].mxu1 }
0x2b5b   : > { %v3875_v57 = vsel %vm1062_vm5, %v3866_v53, 0.0  ;;  %v4037_v53 = vadd.f32 %v4036_v25, %v5730_v31 }
0x2b5c   : > { %v3812_v46 = vpop.permute.xlu1 %3811  ;;  %v3876_v49 = vadd.f32 %v3875_v57, %v3874_v1 }
0x2b5d   : > { %v3867_v41 = vmul.f32 %v3812_v46, %v6169_v58  ;;  %4139 = vrot.lane.b32.xlu1 %v4037_v53, %s5579_s21 }
0x2b5f   : > { %v3877_v19 = vsel %vm1062_vm5, %v3867_v41, 0.0 }
0x2b60   : > { %v3819_v48 = vpop.permute.xlu1 %3818  ;;  %v3878_v11 = vadd.f32 %v3877_v19, %v3876_v49 }
0x2b61   : > { %v3868_v2 = vmul.f32 %v3819_v48, %v6273_v7 }
0x2b63   : > { %v3879_v39 = vsel %vm1062_vm5, %v3868_v2, 0.0 }
0x2b64   : > { %v3826_v20 = vpop.permute.xlu1 %3825  ;;  %v3880_v33 = vadd.f32 %v3879_v39, %v3878_v11 }
0x2b65   : > { %v3869_v5 = vmul.f32 %v3826_v20, %v6379_v15 }
0x2b67   : > { %v3881_v44 = vsel %vm1062_vm5, %v3869_v5, 0.0 }
0x2b68   : > { %v3833_v4 = vpop.permute.xlu1 %3832  ;;  %v3882_v38 = vadd.f32 %v3881_v44, %v3880_v33 }
0x2b69   : > { %v3870_v47 = vmul.f32 0.0, %v3833_v4 }
0x2b6b   : > { %v3883_v60 = vsel %vm1062_vm5, %v3870_v47, 0.0 }
0x2b6c   : > { %v3840_v62 = vpop.permute.xlu1 %3839  ;;  %v3884_v35 = vadd.f32 %v3883_v60, %v3882_v38 }
0x2b6d   : > { %v3871_v23 = vmul.f32 0.0, %v3840_v62 }
0x2b6f   : > { %v3885_v27 = vsel %vm1062_vm5, %v3871_v23, 0.0 }
0x2b70   : > { %v3886_v34 = vadd.f32 %v3885_v27, %v3884_v35 }
0x2b72   : > { %v3891_v46 = vsel %vm593_vm0, %v3889_v12, %v3886_v34 }
0x2b73   : > { %5192 = vmatmul.mubr.msk.f32.vlgmr.msra.gmra.mrb[12].mxu0 %vm1106_vm7, %v3891_v46  ;;  %v5569_v46 = vld [vmem:[%s5792_s15] ss:$0 sm:$0xff] }
0x2b74   : > { %5399 = vmatpush3.bf16.msra.mxu0 %v5859_v50  ;;  %5210 = vmatprep.mubr.msk.f32.mxu0 %vm5584_vm6, %v5578_v0  ;;  %vm4181_vm6 = vcmp.eq.s32.totalorder %v5807_v42, 6  ;;  %v5003_v42 = vld [vmem:[%s6595_s2 + $0xe] sm:$0x3] }
0x2b75   : > { %5400 = vmatprep.subr.bf16.mxu0 %v5583_v26 }
0x2b78   : > { %5402 = vmatpush3.bf16.msra.mxu0 %v5868_v56  ;;  %v4035_v56 = vadd.f32 %v4034_v43, %v5740_v40 }
0x2b79   : > { %5403 = vmatprep.subr.bf16.mxu0 %v5583_v26 }
0x2b7c   : > { %5405 = vmatpush3.bf16.msra.mxu0 %v5878_v3 }
0x2b7d   : > { %5406 = vmatprep.subr.bf16.mxu0 %v5583_v26 }
0x2b80   : > { %5408 = vmatpush3.bf16.msra.mxu0 %v5889_v37 }
0x2c46   : > { %v3961_v50 = vpop.f32.mrb[12].mxu0 }
0x2c47   : > { %v5193_v48 = vpop.f32.mrb[13].mxu0  ;;  %4999 = vmatmul.mubr.msk.f32.vlgmr.msra.gmra.mrb[24].mxu1 %vm593_vm0, %v3961_v50 }
0x2c48   : > { %5412 = vmatpush1.bf16.msra.mxu1 %v5672_v9  ;;  %4592 = vmatprep.mubr.f32.mxu1 %v5578_v0 }
0x2c49   : > { %5414 = vmatprep.subr.bf16.mxu1 %v5682_v17  ;;  %v4140_v17 = vpop.permute.xlu1 %4139 }
0x2c4c   : > { %5416 = vmatpush1.bf16.msra.mxu1 %v5687_v22 }
0x2c4d   : > { %5418 = vmatprep.subr.bf16.mxu1 %v5670_v8  ;;  %v6466_v8 = vld [vmem:[%s5693_s29 + $0xe] sm:$0x3] }
0x2c4f   : > { %5005 = vmatmul.mubr.msk.f32.vlgmr.msra.gmra.mrb[26].mxu1 %vm593_vm0, %v6466_v8 }
0x2c50   : > { %5420 = vmatpush1.bf16.msra.mxu1 %v5678_v13  ;;  %4666 = vmatprep.mubr.f32.mxu1 %v5578_v0  ;;  %v5568_v13 = vld [vmem:[%s5772_s12] ss:$0 sm:$0xff] }
0x2c51   : > { %5422 = vmatprep.subr.bf16.mxu1 %v5684_v18  ;;  %v4195_v0 = vmul.f32 %v5568_v13, %v6466_v8 }
0x2c53   : > { %v4196_v18 = vsel %vm826_vm1, %v4195_v0, 0.0 }
0x2c54   : > { %5424 = vmatpush1.bf16.msra.mxu1 %v5697_v24 }
0x2d1a   : > { %v4108_v26 = vpop.f32.mrb[24].mxu1 }
0x2d1b   : > { %v4109_v3 = vadd.f32 %v4108_v26, %v5733_v36  ;;  %v4110_v37 = vpop.f32.mrb[25].mxu1 }
0x2d1c   : > { %v4111_v20 = vadd.f32 %v4110_v37, %v5746_v51 }
0x2d1d   : > { %v4113_v55 = vadd.f32 %v4109_v3, %v4035_v56  ;;  %4128 = vrot.lane.b32.xlu0 %v4109_v3, %s5579_s21 }
0x2d1e   : > { %v4114_v11 = vadd.f32 %v4111_v20, %v4037_v53 }
0x2d1f   : > { %v5000_v59 = vmul.f32 -1.442695, %v4113_v55 }
0x2d20   : > { %v5001_v4 = vmul.f32 -1.442695, %v4114_v11 }
0x2d21   : > { %5538 = vpow2.f32 %v5000_v59  ;;  %v5002_v59 = vld [vmem:[%s5803_s23 + $0xe] sm:$0x3]  ;;  %s542_s23 = scalar_lea.vmem %s6604_s11, %s5675_s26 }
0x2d2b   : > { %v5539_v9 = vpop.eup %5538 }
0x2d2c   : > { %v4121_v41 = vadd.f32 1.0, %v5539_v9  ;;  %v4206_v9 = vsub.f32 1.0, %v5002_v59 }
0x2d2e   : > { %5540 = vrcp.f32 %v4121_v41 }
0x2d38   : > { %v5541_v57 = vpop.eup %5540 }
0x2d39   : > { %v4142_v22 = vmul.f32 %v5541_v57, %v4140_v17  ;;  %v4149_v53 = vsub.f32 1.0, %v5541_v57  ;;  %v4207_v17 = vmul.f32 1e+30, %v4206_v9 }
0x2d3b   : > { %4144 = vrot.lane.b32.xlu1 %v4142_v22, %s5579_s21 }
0x2d8f   : > { %v4129_v2 = vpop.permute.xlu0 %4128 }
0x2d90   : > { %v4131_v1 = vmul.f32 %v5541_v57, %v4129_v2 }
0x2d92   : > { %4133 = vrot.lane.b32.xlu0 %v4131_v1, %s5579_s21 }
0x2dad   : > { %v4145_v19 = vpop.permute.xlu1 %4144 }
0x2dae   : > { %v4147_v5 = vadd.f32 %v4145_v19, %v4111_v20 }
0x2db0   : > { %5542 = vtanh.f32 %v4147_v5 }
0x2dba   : > { %v5543_v49 = vpop.eup %5542 }
0x2dbb   : > { %4162 = vrot.lane.b32.xlu1 %v5543_v49, %s5580_s22 }
0x2dbf   : > { %4155 = vrot.lane.b32.xlu1 %v3961_v50, %s5581_s27 }
0x2de3   : > { %4197 = vadd.xlane.f32.xlu1 %v4196_v18 }
0x2e04   : > { %v4134_v24 = vpop.permute.xlu0 %4133 }
0x2e05   : > { %v4136_v39 = vadd.f32 %v4134_v24, %v4035_v56 }
0x2e07   : > { %5544 = vtanh.f32 %v4136_v39 }
0x2e08   : > { %5546 = vpow2.f32 %v5001_v4 }
0x2e11   : > { %v5545_v44 = vpop.eup %5544 }
0x2e12   : > { %4151 = vrot.lane.b32.xlu0 %v5545_v44, %s5580_s22  ;;  %v5547_v47 = vpop.eup %5546 }
0x2e13   : > { %v4122_v33 = vadd.f32 1.0, %v5547_v47 }
0x2e15   : > { %5548 = vrcp.f32 %v4122_v33 }
0x2e1f   : > { %v5549_v60 = vpop.eup %5548 }
0x2e20   : > { %v4160_v38 = vsub.f32 1.0, %v5549_v60  ;;  %v4166_v23 = vmul.f32 %v5549_v60, %v6359_v61 }
0x2e2d   : > { %v4163_v62 = vpop.permute.xlu1 %4162 }
0x2e2e   : > { %v4165_v35 = vmul.f32 %v4163_v62, %v4160_v38 }
0x2e30   : > { %v4167_v27 = vadd.f32 %v4166_v23, %v4165_v35  ;;  %v4311_v35 = vsub.f32 1.0, %v5003_v42 }
0x2e31   : > { %v4156_v34 = vpop.permute.xlu1 %4155 }
0x2e32   : > { %4169 = vrot.lane.b32.xlu0 %v4167_v27, %s5581_s27  ;;  %v4158_v48 = vmul.f32 %v5541_v57, %v4156_v34 }
0x2e70   : > { %v4198_v12 = vpop.xlane.xlu1 %4197 }
0x2e71   : > { %v4199_v43 = vadd.f32 %v5569_v46, %v4198_v12 }
0x2e73   : > { %4202 = vperm.xlu1 %5441, %v4199_v43  }
0x2e84   : > { %v4152_v25 = vpop.permute.xlu0 %4151 }
0x2e85   : > { %v4154_v50 = vmul.f32 %v4152_v25, %v4149_v53 }
0x2e87   : > { %v4159_v26 = vadd.f32 %v4158_v48, %v4154_v50 }
0x2ea4   : > { %v4170_v56 = vpop.permute.xlu0 %4169 }
0x2ea5   : > { %v6485_v3 = vadd.f32 %v4170_v56, %v4159_v26 }
0x2ea7   : > { %v4182_v61 = vmul.f32 %v6485_v3, %v5781_v29 }
0x2ea9   : > { %4184 = vrot.lane.b32.xlu0 %v4182_v61, %s5580_s22 }
0x2ef2   : > { %v4203_v57 = vpop.permute.xlu1 %4202 }
0x2f1b   : > { %v4185_v37 = vpop.permute.xlu0 %4184 }
0x2f1c   : > { %v4187_v55 = vsel %vm826_vm1, %v4185_v37, 0.0 }
0x2f1d   : > { %4188 = vadd.xlane.f32.xlu0 %v4187_v55 }
0x2faa   : > { %v4189_v41 = vpop.xlane.xlu0 %4188 }
0x2fab   : > { %v4190_v22 = vsel %vm4181_vm6, %v4189_v41, %v6388_v45 }
0x2fac   : > { %v4205_v2 = vadd.f32 %v4203_v57, %v4190_v22 }
0x2fae   : > { %v4208_v1 = vsub.f32 %v4205_v2, %v4207_v17 }
0x2fb0   : > { %v4210_v29 = vsel %vm4209_vm8, %v4208_v1, -inf }
0x2fb1   : > { %v4211_v20 = vsel %vm863_vm4, %v4210_v29, -inf }
0x2fb2   : > { %4212 = vmax.xlane.f32.xlu0 %v4211_v20 }
0x303f   : > { %v4213_v19 = vpop.xlane.xlu0 %4212 }
0x3040   : > { %v4214_v5 = vsub.f32 %v4210_v29, %v4213_v19 }
0x3042   : > { %v4215_v49 = vmul.f32 1.442695, %v4214_v5 }
0x3044   : > { %5550 = vpow2.f32 %v4215_v49 }
0x304e   : > { %v5551_v13 = vpop.eup %5550 }
0x304f   : > { %v4217_v0 = vsel %vm863_vm4, %v5551_v13, 0.0 }
0x3050   : > { %4218 = vadd.xlane.f32.xlu0 %v4217_v0 }
0x30dd   : > { %v4219_v18 = vpop.xlane.xlu0 %4218 }
0x30de   : > { %5552 = vrcp.f32 %v4219_v18 }
0x30e8   : > { %v5553_v24 = vpop.eup %5552 }
0x30e9   : > { %v4221_v45 = vmul.f32 %v5553_v24, %v5551_v13 }
0x30eb   : > { %v4222_v39 = vmul.f32 %v5003_v42, %v4221_v45  ;;  %v4312_v27 = vmul.f32 %v4311_v35, %v4221_v45 }
0x30ed   : > { %4223 = vxpose.xlu0.b32.start.end [1/1] (short) (narrow) %v4222_v39, 8 }
0x316d   : > { %v4239_v11 = vpop.trf.xlu0 }
0x316e   : > { %v4258_v4 = vrot.slane %v4239_v11, %v5727_v30  ;;  %v4265_v44 = vrot.slane %v4239_v11, %v5721_v28  ;;  %v4272_v47 = vrot.slane %v4239_v11, %v5826_v6  ;;  %v4279_v33 = vrot.slane %v4239_v11, %v5830_v10 }
0x316f   : > { %v4286_v60 = vrot.slane %v4239_v11, %v5834_v14  ;;  %v4293_v38 = vrot.slane %v4239_v11, %v5838_v16  ;;  %v4300_v62 = vrot.slane %v4239_v11, %v5842_v21  ;;  %v4307_v23 = vrot.slane %v4239_v11, %v5820_v63 }
0x3170   : > { %4260 = vbcast.lane.b32.xlu1 %v4258_v4, 256 }
0x3174   : > { %4267 = vbcast.lane.b32.xlu1 %v4265_v44, 256 }
0x3178   : > { %4274 = vbcast.lane.b32.xlu1 %v4272_v47, 256 }
0x317c   : > { %4281 = vbcast.lane.b32.xlu1 %v4279_v33, 256 }
0x3180   : > { %4288 = vbcast.lane.b32.xlu1 %v4286_v60, 256 }
0x3184   : > { %4295 = vbcast.lane.b32.xlu1 %v4293_v38, 256 }
0x3188   : > { %4302 = vbcast.lane.b32.xlu1 %v4300_v62, 256 }
0x318c   : > { %4309 = vbcast.lane.b32.xlu1 %v4307_v23, 256 }
0x31b5   : > { %4313 = vxpose.xlu1.b32.start.end [1/1] (short) (narrow) %v4312_v27, 8 }
0x31e2   : > { %v4261_v34 = vpop.permute.xlu1 %4260 }
0x31e3   : > { %v4401_v48 = vmul.f32 %v4261_v34, %v5783_v32 }
0x31e5   : > { %v4409_v55 = vsel %vm1062_vm5, %v4401_v48, 0.0 }
0x31e6   : > { %v4268_v12 = vpop.permute.xlu1 %4267 }
0x31e7   : > { %v4402_v50 = vmul.f32 %v4268_v12, %v5960_v52 }
0x31e9   : > { %v4410_v61 = vsel %vm1062_vm5, %v4402_v50, 0.0 }
0x31ea   : > { %v4275_v46 = vpop.permute.xlu1 %4274  ;;  %v4411_v41 = vadd.f32 %v4410_v61, %v4409_v55 }
0x31eb   : > { %v4403_v26 = vmul.f32 %v4275_v46, %v6061_v54 }
0x31ed   : > { %v4412_v59 = vsel %vm1062_vm5, %v4403_v26, 0.0 }
0x31ee   : > { %v4282_v43 = vpop.permute.xlu1 %4281  ;;  %v4413_v22 = vadd.f32 %v4412_v59, %v4411_v41 }
0x31ef   : > { %v4404_v37 = vmul.f32 %v4282_v43, %v6169_v58 }
0x31f1   : > { %v4414_v17 = vsel %vm1062_vm5, %v4404_v37, 0.0 }
0x31f2   : > { %v4289_v25 = vpop.permute.xlu1 %4288  ;;  %v4415_v20 = vadd.f32 %v4414_v17, %v4413_v22 }
0x31f3   : > { %v4405_v9 = vmul.f32 %v4289_v25, %v6273_v7 }
0x31f5   : > { %v4416_v1 = vsel %vm1062_vm5, %v4405_v9, 0.0 }
0x31f6   : > { %v4296_v53 = vpop.permute.xlu1 %4295  ;;  %v4417_v49 = vadd.f32 %v4416_v1, %v4415_v20 }
0x31f7   : > { %v4406_v57 = vmul.f32 %v4296_v53, %v6379_v15 }
0x31f9   : > { %v4418_v19 = vsel %vm1062_vm5, %v4406_v57, 0.0 }
0x31fa   : > { %v4303_v56 = vpop.permute.xlu1 %4302  ;;  %v4419_v18 = vadd.f32 %v4418_v19, %v4417_v49 }
0x31fb   : > { %v4407_v29 = vmul.f32 %v4303_v56, %v6485_v3 }
0x31fd   : > { %v4420_v13 = vsel %vm1062_vm5, %v4407_v29, 0.0  ;;  %v4594_v29 = vpop.f32.mrb[26].mxu1 }
0x31fe   : > { %v4310_v2 = vpop.permute.xlu1 %4309  ;;  %v4421_v39 = vadd.f32 %v4420_v13, %v4419_v18  ;;  %v4596_v20 = vpop.f32.mrb[27].mxu1 }
0x31ff   : > { %v4408_v5 = vmul.f32 0.0, %v4310_v2  ;;  %v4597_v19 = vadd.f32 %v4596_v20, %v5730_v31 }
0x3201   : > { %v4422_v42 = vsel %vm1062_vm5, %v4408_v5, 0.0 }
0x3202   : > { %v4423_v11 = vadd.f32 %v4422_v42, %v4421_v39 }
0x3235   : > { %v4329_v0 = vpop.trf.xlu1 }
0x3236   : > { %v4355_v24 = vrot.slane %v4329_v0, %v5721_v28  ;;  %v4348_v45 = vrot.slane %v4329_v0, %v5727_v30  ;;  %v4362_v4 = vrot.slane %v4329_v0, %v5826_v6  ;;  %v4369_v44 = vrot.slane %v4329_v0, %v5830_v10 }
0x3237   : > { %v4376_v47 = vrot.slane %v4329_v0, %v5834_v14  ;;  %v4383_v28 = vrot.slane %v4329_v0, %v5838_v16  ;;  %v4390_v30 = vrot.slane %v4329_v0, %v5842_v21  ;;  %v4397_v33 = vrot.slane %v4329_v0, %v5820_v63 }
0x3238   : > { %4357 = vbcast.lane.b32.xlu1 %v4355_v24, 256  ;;  %4350 = vbcast.lane.b32.xlu0 %v4348_v45, 256  ;;  %v4595_v0 = vadd.f32 %v4594_v29, %v5740_v40 }
0x323c   : > { %4448 = vrot.lane.b32.xlu1 %v4423_v11, %s5580_s22  ;;  %4364 = vbcast.lane.b32.xlu0 %v4362_v4, 256 }
0x3240   : > { %4371 = vbcast.lane.b32.xlu0 %v4369_v44, 256 }
0x3244   : > { %4378 = vbcast.lane.b32.xlu0 %v4376_v47, 256 }
0x3248   : > { %4385 = vbcast.lane.b32.xlu0 %v4383_v28, 256 }
0x324c   : > { %4392 = vbcast.lane.b32.xlu0 %v4390_v30, 256 }
0x3250   : > { %4399 = vbcast.lane.b32.xlu0 %v4397_v33, 256 }
0x3254   : > { %4699 = vrot.lane.b32.xlu0 %v4597_v19, %s5579_s21 }
0x32aa   : > { %v4351_v60 = vpop.permute.xlu0 %4350  ;;  %v4358_v38 = vpop.permute.xlu1 %4357 }
0x32ab   : > { %v4425_v23 = vmul.f32 %v4358_v38, %v5960_v52  ;;  %v4424_v10 = vmul.f32 %v4351_v60, %v5783_v32 }
0x32ad   : > { %v4433_v16 = vsel %vm1062_vm5, %v4425_v23, 0.0  ;;  %v4432_v27 = vsel %vm1062_vm5, %v4424_v10, 0.0 }
0x32ae   : > { %v4365_v6 = vpop.permute.xlu0 %4364  ;;  %v4434_v12 = vadd.f32 %v4433_v16, %v4432_v27  ;;  %v4449_v2 = vpop.permute.xlu1 %4448 }
0x32af   : > { %v4426_v14 = vmul.f32 %v4365_v6, %v6061_v54 }
0x32b1   : > { %v4435_v63 = vsel %vm1062_vm5, %v4426_v14, 0.0 }
0x32b2   : > { %v4372_v62 = vpop.permute.xlu0 %4371  ;;  %v4436_v53 = vadd.f32 %v4435_v63, %v4434_v12 }
0x32b3   : > { %v4427_v21 = vmul.f32 %v4372_v62, %v6169_v58 }
0x32b5   : > { %v4437_v43 = vsel %vm1062_vm5, %v4427_v21, 0.0 }
0x32b6   : > { %v4379_v35 = vpop.permute.xlu0 %4378  ;;  %v4438_v48 = vadd.f32 %v4437_v43, %v4436_v53 }
0x32b7   : > { %v4428_v34 = vmul.f32 %v4379_v35, %v6273_v7 }
0x32b9   : > { %v4439_v50 = vsel %vm1062_vm5, %v4428_v34, 0.0 }
0x32ba   : > { %v4386_v46 = vpop.permute.xlu0 %4385  ;;  %v4440_v37 = vadd.f32 %v4439_v50, %v4438_v48 }
0x32bb   : > { %v4429_v25 = vmul.f32 %v4386_v46, %v6379_v15 }
0x32bd   : > { %v4441_v56 = vsel %vm1062_vm5, %v4429_v25, 0.0 }
0x32be   : > { %v4393_v26 = vpop.permute.xlu0 %4392  ;;  %v4442_v59 = vadd.f32 %v4441_v56, %v4440_v37 }
0x32bf   : > { %v4430_v61 = vmul.f32 %v4393_v26, %v6485_v3 }
0x32c1   : > { %v4443_v55 = vsel %vm1062_vm5, %v4430_v61, 0.0 }
0x32c2   : > { %v4400_v9 = vpop.permute.xlu0 %4399  ;;  %v4444_v17 = vadd.f32 %v4443_v55, %v4442_v59 }
0x32c3   : > { %v4431_v41 = vmul.f32 0.0, %v4400_v9 }
0x32c5   : > { %v4445_v57 = vsel %vm1062_vm5, %v4431_v41, 0.0 }
0x32c6   : > { %v4446_v22 = vadd.f32 %v4445_v57, %v4444_v17  ;;  %v4700_v31 = vpop.permute.xlu0 %4699 }
0x32c8   : > { %v4451_v1 = vsel %vm593_vm0, %v4449_v2, %v4446_v22 }
0x32c9   : > { %5211 = vmatmul.mubr.msk.f32.vlgmr.msra.gmra.mrb[14].mxu0 %vm1106_vm7, %v4451_v1 }
0x339c   : > { %v4521_v5 = vpop.f32.mrb[14].mxu0 }
0x339d   : > { %v5212_v49 = vpop.f32.mrb[15].mxu0  ;;  %5006 = vmatmul.mubr.msk.f32.vlgmr.msra.gmra.mrb[28].mxu1 %vm593_vm0, %v4521_v5 }
0x3470   : > { %v4668_v13 = vpop.f32.mrb[28].mxu1 }
0x3471   : > { %v4669_v18 = vadd.f32 %v4668_v13, %v5733_v36  ;;  %v4670_v24 = vpop.f32.mrb[29].mxu1 }
0x3472   : > { %v4671_v36 = vadd.f32 %v4670_v24, %v5746_v51 }
0x3473   : > { %v4673_v45 = vadd.f32 %v4669_v18, %v4595_v0  ;;  %4688 = vrot.lane.b32.xlu1 %v4669_v18, %s5579_s21 }
0x3474   : > { %v4674_v6 = vadd.f32 %v4671_v36, %v4597_v19 }
0x3475   : > { %v5007_v42 = vmul.f32 -1.442695, %v4673_v45 }
0x3476   : > { %v5008_v38 = vmul.f32 -1.442695, %v4674_v6 }
0x3477   : > { %5554 = vpow2.f32 %v5007_v42 }
0x3481   : > { %v5555_v39 = vpop.eup %5554 }
0x3482   : > { %v4681_v11 = vadd.f32 1.0, %v5555_v39 }
0x3484   : > { %5556 = vrcp.f32 %v4681_v11 }
0x348e   : > { %v5557_v4 = vpop.eup %5556 }
0x348f   : > { %v4702_v44 = vmul.f32 %v5557_v4, %v4700_v31  ;;  %v4709_v12 = vsub.f32 1.0, %v5557_v4 }
0x3491   : > { %4704 = vrot.lane.b32.xlu0 %v4702_v44, %s5579_s21 }
0x34e5   : > { %v4689_v47 = vpop.permute.xlu1 %4688 }
0x34e6   : > { %v4691_v28 = vmul.f32 %v5557_v4, %v4689_v47 }
0x34e8   : > { %4693 = vrot.lane.b32.xlu1 %v4691_v28, %s5579_s21 }
0x3503   : > { %v4705_v40 = vpop.permute.xlu0 %4704 }
0x3504   : > { %v4707_v30 = vadd.f32 %v4705_v40, %v4671_v36 }
0x3506   : > { %5558 = vtanh.f32 %v4707_v30 }
0x3510   : > { %v5559_v33 = vpop.eup %5558 }
0x3511   : > { %4722 = vrot.lane.b32.xlu0 %v5559_v33, %s5580_s22 }
0x3515   : > { %4715 = vrot.lane.b32.xlu0 %v4521_v5, %s5581_s27 }
0x3519   : > { %4749 = vrot.lane.b32.xlu0 %v5783_v32, %s5580_s22 }
0x351d   : > { %4753 = vrot.lane.b32.xlu0 %v6061_v54, %s5580_s22 }
0x3521   : > { %4757 = vrot.lane.b32.xlu0 %v6273_v7, %s5580_s22 }
0x3525   : > { %4761 = vrot.lane.b32.xlu0 %v6485_v3, %s5580_s22 }
0x355a   : > { %v4694_v51 = vpop.permute.xlu1 %4693 }
0x355b   : > { %v4696_v60 = vadd.f32 %v4694_v51, %v4595_v0 }
0x355d   : > { %5560 = vtanh.f32 %v4696_v60 }
0x355e   : > { %5562 = vpow2.f32 %v5008_v38 }
0x3567   : > { %v5561_v62 = vpop.eup %5560 }
0x3568   : > { %4711 = vrot.lane.b32.xlu1 %v5561_v62, %s5580_s22  ;;  %v5563_v32 = vpop.eup %5562 }
0x3569   : > { %v4682_v23 = vadd.f32 1.0, %v5563_v32 }
0x356b   : > { %5564 = vrcp.f32 %v4682_v23 }
0x3575   : > { %v5565_v54 = vpop.eup %5564 }
0x3576   : > { %v4720_v10 = vsub.f32 1.0, %v5565_v54  ;;  %v4726_v7 = vmul.f32 %v5565_v54, %v6466_v8 }
0x3583   : > { %v4723_v14 = vpop.permute.xlu0 %4722 }
0x3584   : > { %v4725_v35 = vmul.f32 %v4723_v14, %v4720_v10 }
0x3586   : > { %v4727_v3 = vadd.f32 %v4726_v7, %v4725_v35 }
0x3587   : > { %v4716_v16 = vpop.permute.xlu0 %4715 }
0x3588   : > { %4729 = vrot.lane.b32.xlu1 %v4727_v3, %s5581_s27  ;;  %v4718_v43 = vmul.f32 %v5557_v4, %v4716_v16 }
0x358b   : > { %v4750_v27 = vpop.permute.xlu0 %4749 }
0x358c   : > { %4773 = vst.msk [vmem:[%s542_s23] sm:$0x3] %vm826_vm1, %v4750_v27  ;;  %4751 = vrot.lane.b32.xlu1 %v5960_v52, %s5580_s22 }
0x358f   : > { %v4754_v21 = vpop.permute.xlu0 %4753 }
0x3590   : > { %4775 = vst.msk [vmem:[%s542_s23 + $0x4] sm:$0x3] %vm826_vm1, %v4754_v21  ;;  %4755 = vrot.lane.b32.xlu1 %v6169_v58, %s5580_s22 }
0x3593   : > { %v4758_v8 = vpop.permute.xlu0 %4757 }
0x3594   : > { %4777 = vst.msk [vmem:[%s542_s23 + $0x8] sm:$0x3] %vm826_vm1, %v4758_v8  ;;  %4759 = vrot.lane.b32.xlu1 %v6379_v15, %s5580_s22 }
0x3597   : > { %v4762_v63 = vpop.permute.xlu0 %4761 }
0x3598   : > { %4779 = vst.msk [vmem:[%s542_s23 + $0xc] sm:$0x3] %vm826_vm1, %v4762_v63 }
0x35da   : > { %v4712_v34 = vpop.permute.xlu1 %4711 }
0x35db   : > { %v4714_v46 = vmul.f32 %v4712_v34, %v4709_v12 }
0x35dd   : > { %v4719_v52 = vadd.f32 %v4718_v43, %v4714_v46 }
0x35fa   : > { %v4730_v25 = vpop.permute.xlu1 %4729 }
0x35fb   : > { %v4732_v53 = vadd.f32 %v4730_v25, %v4719_v52 }
0x35fd   : > { %4763 = vrot.lane.b32.xlu1 %v4732_v53, %s5580_s22 }
0x35fe   : > { %v4752_v50 = vpop.permute.xlu1 %4751 }
0x35ff   : > { %4774 = vst.msk [vmem:[%s542_s23 + $0x2] sm:$0x3] %vm826_vm1, %v4752_v50 }
0x3602   : > { %v4756_v58 = vpop.permute.xlu1 %4755 }
0x3603   : > { %4776 = vst.msk [vmem:[%s542_s23 + $0x6] sm:$0x3] %vm826_vm1, %v4756_v58 }
0x3606   : > { %v4760_v48 = vpop.permute.xlu1 %4759 }
0x3607   : > { %4778 = vst.msk [vmem:[%s542_s23 + $0xa] sm:$0x3] %vm826_vm1, %v4760_v48 }
0x366f   : > { %v4764_v15 = vpop.permute.xlu1 %4763 }
0x3670   : > { %4780 = vst.msk [vmem:[%s542_s23 + $0xe] sm:$0x3] %vm826_vm1, %v4764_v15 }
0x3671 PF: > { %s21_s17 = sadd.s32 1, %s5576_s17  }
0x3672   : > { %p18_p4 = scmp.ge.s32.totalorder %s21_s17, 4  }
0x3674   :  { %20 = sbr.rel (!%p18_p4) target bundleno = 1 (0x1), region = 135 }

</bundles_post_ra>
